<compile_context>
chip_gen: v5e
topology: v5e:2x2
jax: 0.10.0
libtpu: 0.0.40
codegen_flags: <defaults>
</compile_context>

<pallas_src>
import jax
import jax.numpy as jnp
import numpy as np
from jax.experimental import pallas as pl
from jax.experimental.pallas import tpu as pltpu

EPS = 1e-5          # PyTorch BatchNorm2d default eps
_ROW_PAD = 8        # zero rows appended to the flattened input so every tap's
                    # row slice stays in bounds (>=1 for s2 convs, >=3 for the
                    # final 4x4/s1 conv)
_LW_TILE = 512      # target rows per grid tile along the flattened spatial
                    # dim (bounds per-step VMEM; 512x512xf32 acc ~= 1 MiB)
_VMEM_LIMIT = 64 * 1024 * 1024


# ---------------------------------------------------------------------------
# Pallas kernel: conv as a sum over filter taps (+ optional fused input BN)
# ---------------------------------------------------------------------------
def _make_tap_conv_kernel(tap_offsets, tile_rows, *, tiled, with_input_bn,
                          with_bias, with_stats):
    """Grid: (N,) or (N, LW/tile_rows).  Refs, in order:

      x_ref  : (1, RP, K)      bf16 flattened input rows (resident per image)
      w_ref  : (T, K, Cout)    bf16 per-tap weight matrices
      sc_ref : (1, K) f32      fused input-BN scale           [with_input_bn]
      sh_ref : (1, K) f32      fused input-BN shift           [with_input_bn]
      b_ref  : (1, Cout) f32   bias                           [with_bias]
      o_ref  : (1, tile, Cout) raw conv output (bf16/f32)
      s_ref, ss_ref : (1, 1, 8, Cout) f32 per-(image, tile) unmasked
                      sum / sum-of-squares                    [with_stats]
    """
    def kernel(*refs):
        it = iter(refs)
        x_ref = next(it)
        w_ref = next(it)
        sc_ref = next(it) if with_input_bn else None
        sh_ref = next(it) if with_input_bn else None
        b_ref = next(it) if with_bias else None
        o_ref = next(it)
        s_ref = next(it) if with_stats else None
        ss_ref = next(it) if with_stats else None

        if tiled:
            # tile_rows is a multiple of 8 on this path.
            row0 = pl.multiple_of(pl.program_id(1) * tile_rows, 8)
        else:
            row0 = 0          # python int -> fully static tap slices

        # In-kernel tap accumulation: each tap is a contiguous 2-D row slice,
        # (optionally) put through BN+ReLU of the previous layer on the VPU,
        # then fed to the MXU and accumulated in f32.
        acc = None
        for t, off in enumerate(tap_offsets):
            if tiled:
                tap = x_ref[0, pl.ds(row0 + off, tile_rows), :]
            else:
                tap = x_ref[0, off:off + tile_rows, :]
            if with_input_bn:
                t32 = tap.astype(jnp.float32) * sc_ref[...] + sh_ref[...]
                tap = jnp.maximum(t32, 0.0).astype(jnp.bfloat16)
            d = jnp.dot(tap, w_ref[t], preferred_element_type=jnp.float32)
            acc = d if acc is None else acc + d
        if with_bias:
            acc = acc + b_ref[...]                            # (T,C) + (1,C)
        o_ref[0] = acc.astype(o_ref.dtype)

        if with_stats:
            cout = acc.shape[-1]
            s = jnp.sum(acc, axis=0, keepdims=True)           # (1, Cout) f32
            ss = jnp.sum(acc * acc, axis=0, keepdims=True)
            s_ref[0, 0] = jnp.broadcast_to(s, (8, cout))
            ss_ref[0, 0] = jnp.broadcast_to(ss, (8, cout))

    return kernel


def _pick_tile_rows(lw):
    """Largest multiple of 8 dividing `lw` and <= _LW_TILE (else single tile)."""
    if lw <= _LW_TILE:
        return lw
    for t in range(_LW_TILE, 7, -1):
        if t % 8 == 0 and lw % t == 0:
            return t
    return lw


def tap_conv(x_flat, w_taps, tap_offsets, lw, *, scale=None, shift=None,
             bias=None, with_stats=False, out_dtype=jnp.bfloat16):
    """Shared tap-accumulation conv pallas_call.

    x_flat : (N, RP, K) bf16 flattened, row-padded input
    w_taps : (T, K, Cout) bf16 per-tap weights
    scale/shift : optional (1, K) f32 -> fused input BN+ReLU applied per tap
    bias   : optional (1, Cout) f32
    Returns (out[, ssum, ssq]):
      out        : (N, LW, Cout) raw conv output over the "wide" rows
      ssum, ssq  : (N, tiles, 8, Cout) f32 unmasked per-(image, tile) stats
    """
    n, rp, k = x_flat.shape
    cout = w_taps.shape[-1]
    assert max(tap_offsets) + lw <= rp, "insufficient row padding for taps"

    tile = _pick_tile_rows(lw)
    tiles = lw // tile
    tiled = tiles > 1
    with_input_bn = scale is not None
    with_bias = bias is not None

    if tiled:
        grid = (n, tiles)
        dims = ("parallel", "parallel")
        x_map = lambda i, j: (i, 0, 0)        # per-image input stays resident
        w_map = lambda i, j: (0, 0, 0)
        v_map = lambda i, j: (0, 0)
        o_map = lambda i, j: (i, j, 0)
        st_map = lambda i, j: (i, j, 0, 0)
    else:
        grid = (n,)
        dims = ("parallel",)
        x_map = lambda i: (i, 0, 0)
        w_map = lambda i: (0, 0, 0)
        v_map = lambda i: (0, 0)
        o_map = lambda i: (i, 0, 0)
        st_map = lambda i: (i, 0, 0, 0)

    in_specs = [
        pl.BlockSpec((1, rp, k), x_map),
        pl.BlockSpec(w_taps.shape, w_map),
    ]
    args = [x_flat, w_taps]
    if with_input_bn:
        in_specs += [pl.BlockSpec((1, k), v_map), pl.BlockSpec((1, k), v_map)]
        args += [scale, shift]
    if with_bias:
        in_specs += [pl.BlockSpec((1, cout), v_map)]
        args += [bias]

    out_specs = [pl.BlockSpec((1, tile, cout), o_map)]
    out_shape = [jax.ShapeDtypeStruct((n, lw, cout), out_dtype)]
    if with_stats:
        out_specs += [pl.BlockSpec((1, 1, 8, cout), st_map)] * 2
        out_shape += [jax.ShapeDtypeStruct((n, tiles, 8, cout), jnp.float32)] * 2

    kernel = _make_tap_conv_kernel(
        tap_offsets, tile, tiled=tiled, with_input_bn=with_input_bn,
        with_bias=with_bias, with_stats=with_stats)

    return pl.pallas_call(
        kernel,
        grid=grid,
        in_specs=in_specs,
        out_specs=tuple(out_specs),
        out_shape=tuple(out_shape),
        compiler_params=pltpu.CompilerParams(
            dimension_semantics=dims,
            vmem_limit_bytes=_VMEM_LIMIT),
    )(*args)


# ---------------------------------------------------------------------------
# Host-side layout helpers (pure reshapes / pads, no data duplication)
# ---------------------------------------------------------------------------
def _space_to_depth(x):
    """(N, H, W, C) with even H, W  ->  (N, H//2, W//2, 4*C); order (pi,pj,c)."""
    n, h, w, c = x.shape
    x = x.reshape(n, h // 2, 2, w // 2, 2, c)
    x = x.transpose(0, 1, 3, 2, 4, 5)
    return x.reshape(n, h // 2, w // 2, 4 * c)


def _s2d_weight(w):
    """(4, 4, Cin, Cout) -> (4, 4*Cin, Cout); tap index = di*2 + dj."""
    cin, cout = w.shape[2], w.shape[3]
    w = w.reshape(2, 2, 2, 2, cin, cout)        # (di, pi, dj, pj, c, o)
    w = w.transpose(0, 2, 1, 3, 4, 5)           # (di, dj, pi, pj, c, o)
    return w.reshape(4, 4 * cin, cout)


def _pad_with_value(x, pad_val):
    """Spatial pad=1 with a per-channel constant (both bf16)."""
    n, h, w, c = x.shape
    base = jnp.broadcast_to(pad_val.reshape(1, 1, 1, c), (n, h + 2, w + 2, c))
    return jax.lax.dynamic_update_slice(base, x, (0, 1, 1, 0))


def _bn_pad_value(scale, shift):
    """Per-channel pad value p with  max(bf16(p)*scale + shift, 0) == 0.

    The margin keeps the pre-ReLU value strictly negative under bf16 rounding.
    Assumes scale != 0 (true for the default gamma=1 BatchNorm affine init).
    """
    margin = 0.02 * jnp.abs(shift) + 1e-3
    safe_scale = jnp.where(scale == 0.0, 1.0, scale)
    return ((-shift - margin) / safe_scale).astype(jnp.bfloat16)


def _bn_scale_shift(raw_wide, ssum, ssq, gamma, beta, ho, wo, wy):
    """Training-mode BatchNorm scale/shift (batch stats, biased variance).

    The conv kernel emits unmasked per-image f32 sums over the wide rows; the
    contribution of the garbage column (wo-th column of each output row) is
    subtracted here from a tiny strided slice of the bf16 raw output.
    """
    n = raw_wide.shape[0]
    c = gamma.shape[0]
    count = float(n * ho * wo)
    s = jnp.sum(ssum[:, :, 0, :], axis=(0, 1))              # (C,)
    ss = jnp.sum(ssq[:, :, 0, :], axis=(0, 1))
    g = raw_wide.reshape(n, ho, wy, c)[:, :, wo, :].astype(jnp.float32)
    s = s - jnp.sum(g, axis=(0, 1))
    ss = ss - jnp.sum(g * g, axis=(0, 1))
    mean = s / count
    var = jnp.maximum(ss / count - mean * mean, 0.0)        # biased variance
    scale = gamma * jax.lax.rsqrt(var + EPS)
    shift = beta - mean * scale
    return scale, shift


# ---------------------------------------------------------------------------
# Parameters (deterministic synthetic init) and forward pass
# ---------------------------------------------------------------------------
def init_params(key):
    """Synthetic params mirroring the PyTorch module (weights as kh,kw,Cin,Cout).

    Conv biases of the BN blocks are omitted: a per-channel constant added
    before training-mode BatchNorm cancels exactly.  The final conv keeps its
    bias.  gamma=1 / beta=0 matches nn.BatchNorm2d's default affine init.
    """
    chans = [(6, 64), (64, 128), (128, 512)]
    ks = jax.random.split(key, len(chans) + 2)
    blocks = []
    for idx, (cin, cout) in enumerate(chans):
        w = 0.05 * jax.random.normal(ks[idx], (4, 4, cin, cout), jnp.float32)
        gamma = jnp.ones((cout,), jnp.float32)
        beta = jnp.zeros((cout,), jnp.float32)
        blocks.append((w, gamma, beta))
    wf = 0.05 * jax.random.normal(ks[-2], (4, 4, 512, 1), jnp.float32)
    bf = 0.01 * jax.random.normal(ks[-1], (1,), jnp.float32)
    return {"blocks": blocks, "final": (wf, bf)}


@jax.jit
def discriminator(params, img_a, img_b):
    # torch.cat((imgA, imgB), dim=1) -> 6 channels; NCHW -> NHWC.
    x = jnp.concatenate([img_a, img_b], axis=1)
    x = jnp.transpose(x, (0, 2, 3, 1))
    n, h, w, c = x.shape
    # Pad Cin 6 -> 8 (zeros, exact) so the MXU K dimension stays aligned.
    act = jnp.pad(x, ((0, 0), (0, 0), (0, 0), (0, 8 - c))).astype(jnp.bfloat16)

    scale = shift = None          # BN of the *previous* layer (fused forward)
    for (wgt, gamma, beta) in params["blocks"]:
        nb, hb, wb, cin = act.shape
        # Spatial pad = 1.  Layer 1 pads with zeros (no preceding BN); later
        # layers pad with the per-channel value that the fused BN+ReLU maps
        # exactly to zero, so the kernel needs no pad mask.
        if scale is None:
            padded = jnp.pad(act, ((0, 0), (1, 1), (1, 1), (0, 0)))
        else:
            padded = _pad_with_value(act, _bn_pad_value(scale, shift))
        hy, wy = (hb + 2) // 2, (wb + 2) // 2
        ho, wo = hb // 2, wb // 2
        lw = ho * wy                               # "wide" output rows
        x_flat = _space_to_depth(padded).reshape(nb, hy * wy, 4 * cin)
        x_flat = jnp.pad(x_flat, ((0, 0), (0, _ROW_PAD), (0, 0)))

        wp = wgt
        if wgt.shape[2] != cin:                    # layer 1: pad Cin 6 -> 8
            wp = jnp.pad(wgt, ((0, 0), (0, 0), (0, cin - wgt.shape[2]), (0, 0)))
        w2 = _s2d_weight(wp).astype(jnp.bfloat16)

        sc4 = sh4 = None
        if scale is not None:                      # tile per-channel BN x4 taps
            sc4 = jnp.tile(scale, 4).reshape(1, 4 * cin)
            sh4 = jnp.tile(shift, 4).reshape(1, 4 * cin)

        raw, ssum, ssq = tap_conv(
            x_flat, w2, (0, 1, wy, wy + 1), lw,
            scale=sc4, shift=sh4, with_stats=True, out_dtype=jnp.bfloat16)

        scale, shift = _bn_scale_shift(raw, ssum, ssq, gamma, beta, ho, wo, wy)
        # Narrow (pre-BN) activation for the next layer; BN+ReLU itself is
        # applied inside the next conv kernel's tap loads.
        act = raw.reshape(nb, ho, wy, -1)[:, :, :wo, :]

    # Final 4x4 / stride-1 / pad-1 conv (512 -> 1) with bias; BN3+ReLU fused
    # into its tap loads; Cout padded 1 -> 128 for lane-dense MXU output.
    wf, bf = params["final"]
    nb, hb, wb, cin = act.shape
    padded = _pad_with_value(act, _bn_pad_value(scale, shift))
    hp, wpw = hb + 2, wb + 2
    ho, wo = hp - 3, wpw - 3
    lw = ho * wpw
    x_flat = padded.reshape(nb, hp * wpw, cin)
    x_flat = jnp.pad(x_flat, ((0, 0), (0, _ROW_PAD), (0, 0)))
    taps = tuple(i * wpw + j for i in range(4) for j in range(4))

    cpad = 128
    wf_p = jnp.pad(wf, ((0, 0), (0, 0), (0, 0), (0, cpad - wf.shape[-1])))
    w_taps = wf_p.reshape(16, cin, cpad).astype(jnp.bfloat16)
    bias = jnp.pad(bf, (0, cpad - bf.shape[0])).reshape(1, cpad)

    (out,) = tap_conv(
        x_flat, w_taps, taps, lw,
        scale=scale.reshape(1, cin), shift=shift.reshape(1, cin),
        bias=bias, with_stats=False, out_dtype=jnp.bfloat16)

    out = out.reshape(nb, ho, wpw, cpad)[:, :, :wo, :1].astype(jnp.float32)
    return jnp.transpose(out, (0, 3, 1, 2))        # NHWC -> NCHW


# ---------------------------------------------------------------------------
# Pure-XLA reference (bf16 rounding of conv operands) for a sanity check
# ---------------------------------------------------------------------------
def _reference(params, img_a, img_b):
    def rnd(v):
        return v.astype(jnp.bfloat16).astype(jnp.float32)

    def conv(x, w, stride):
        dn = jax.lax.conv_dimension_numbers(
            x.shape, w.shape, ("NHWC", "HWIO", "NHWC"))
        return jax.lax.conv_general_dilated(
            x, w, window_strides=(stride, stride), padding=((1, 1), (1, 1)),
            dimension_numbers=dn)

    x = jnp.transpose(jnp.concatenate([img_a, img_b], axis=1), (0, 2, 3, 1))
    act = rnd(x)
    for (w, gamma, beta) in params["blocks"]:
        y = conv(act, rnd(w), 2)                   # bias-free (cancels in BN)
        mean = jnp.mean(y, axis=(0, 1, 2))
        var = jnp.mean(jnp.square(y - mean), axis=(0, 1, 2))
        y = (y - mean) * jax.lax.rsqrt(var + EPS) * gamma + beta
        act = rnd(jnp.maximum(y, 0.0))
    wf, bf = params["final"]
    y = conv(act, rnd(wf), 1) + bf
    return jnp.transpose(y, (0, 3, 1, 2))


if __name__ == "__main__":
    key = jax.random.PRNGKey(0)
    k_a, k_b, k_p = jax.random.split(key, 3)
    n, c, h, w = 2, 3, 16, 16
    img_a = jax.random.normal(k_a, (n, c, h, w), jnp.float32)
    img_b = jax.random.normal(k_b, (n, c, h, w), jnp.float32)
    params = init_params(k_p)

    out = jax.block_until_ready(discriminator(params, img_a, img_b))
    # 16x16 -> 8 -> 4 -> 2 -> final 4x4/s1/p1 conv -> 1x1
    assert out.shape == (n, 1, 1, 1), out.shape

    ref = jax.block_until_ready(jax.jit(_reference)(params, img_a, img_b))
    np.testing.assert_allclose(np.asarray(out), np.asarray(ref),
                               rtol=5e-2, atol=5e-2)
    print("KERNEL_OK")
</pallas_src>

<mosaic_0001>
module attributes {stable_mosaic.version = 11 : i64} {
  func.func @kernel(%arg0: i32, %arg1: memref<1x89x32xbf16, #tpu.memory_space<vmem>>, %arg2: memref<4x32x64xbf16, #tpu.memory_space<vmem>>, %arg3: memref<1x72x64xbf16, #tpu.memory_space<vmem>>, %arg4: memref<1x1x8x64xf32, #tpu.memory_space<vmem>>, %arg5: memref<1x1x8x64xf32, #tpu.memory_space<vmem>>) attributes {dimension_semantics = [#tpu.dimension_semantics<parallel>], iteration_bounds = array<i64: 2>, scalar_prefetch = 0 : i64, scratch_operands = 0 : i64, tpu.core_type = #tpu.core_type<tc>, window_params = [{transform_indices = @transform_0, window_bounds = array<i64: 1, 89, 32>}, {pipeline_mode = #tpu.pipeline_mode<synchronous>, transform_indices = @transform_1, window_bounds = array<i64: 4, 32, 64>}, {transform_indices = @transform_2, window_bounds = array<i64: 1, 72, 64>}, {transform_indices = @transform_3, window_bounds = array<i64: 1, 1, 8, 64>}, {transform_indices = @transform_4, window_bounds = array<i64: 1, 1, 8, 64>}]} {
    %c0 = arith.constant 0 : index
    %c0_0 = arith.constant 0 : index
    %c0_1 = arith.constant 0 : index
    %0 = vector.load %arg1[%c0, %c0_0, %c0_1] : memref<1x89x32xbf16, #tpu.memory_space<vmem>>, vector<1x72x32xbf16>
    %1 = vector.shape_cast %0 : vector<1x72x32xbf16> to vector<72x32xbf16>
    %c0_2 = arith.constant 0 : index
    %c0_3 = arith.constant 0 : index
    %c0_4 = arith.constant 0 : index
    %2 = vector.load %arg2[%c0_2, %c0_3, %c0_4] : memref<4x32x64xbf16, #tpu.memory_space<vmem>>, vector<1x32x64xbf16>
    %3 = vector.shape_cast %2 : vector<1x32x64xbf16> to vector<32x64xbf16>
    %cst = arith.constant dense<0.000000e+00> : vector<72x64xf32>
    %4 = tpu.matmul %1, %3, %cst {dimension_numbers = #tpu.dot_dimension_numbers<[1], [0], [0], [1], [0, 0, 1, 1], [], []>} : vector<72x32xbf16>, vector<32x64xbf16>, vector<72x64xf32> -> vector<72x64xf32>
    %c0_5 = arith.constant 0 : index
    %c1 = arith.constant 1 : index
    %c0_6 = arith.constant 0 : index
    %5 = vector.load %arg1[%c0_5, %c1, %c0_6] : memref<1x89x32xbf16, #tpu.memory_space<vmem>>, vector<1x72x32xbf16>
    %6 = vector.shape_cast %5 : vector<1x72x32xbf16> to vector<72x32xbf16>
    %c1_7 = arith.constant 1 : index
    %c0_8 = arith.constant 0 : index
    %c0_9 = arith.constant 0 : index
    %7 = vector.load %arg2[%c1_7, %c0_8, %c0_9] : memref<4x32x64xbf16, #tpu.memory_space<vmem>>, vector<1x32x64xbf16>
    %8 = vector.shape_cast %7 : vector<1x32x64xbf16> to vector<32x64xbf16>
    %cst_10 = arith.constant dense<0.000000e+00> : vector<72x64xf32>
    %9 = tpu.matmul %6, %8, %cst_10 {dimension_numbers = #tpu.dot_dimension_numbers<[1], [0], [0], [1], [0, 0, 1, 1], [], []>} : vector<72x32xbf16>, vector<32x64xbf16>, vector<72x64xf32> -> vector<72x64xf32>
    %10 = arith.addf %4, %9 : vector<72x64xf32>
    %c0_11 = arith.constant 0 : index
    %c9 = arith.constant 9 : index
    %c0_12 = arith.constant 0 : index
    %11 = vector.load %arg1[%c0_11, %c9, %c0_12] : memref<1x89x32xbf16, #tpu.memory_space<vmem>>, vector<1x72x32xbf16>
    %12 = vector.shape_cast %11 : vector<1x72x32xbf16> to vector<72x32xbf16>
    %c2 = arith.constant 2 : index
    %c0_13 = arith.constant 0 : index
    %c0_14 = arith.constant 0 : index
    %13 = vector.load %arg2[%c2, %c0_13, %c0_14] : memref<4x32x64xbf16, #tpu.memory_space<vmem>>, vector<1x32x64xbf16>
    %14 = vector.shape_cast %13 : vector<1x32x64xbf16> to vector<32x64xbf16>
    %cst_15 = arith.constant dense<0.000000e+00> : vector<72x64xf32>
    %15 = tpu.matmul %12, %14, %cst_15 {dimension_numbers = #tpu.dot_dimension_numbers<[1], [0], [0], [1], [0, 0, 1, 1], [], []>} : vector<72x32xbf16>, vector<32x64xbf16>, vector<72x64xf32> -> vector<72x64xf32>
    %16 = arith.addf %10, %15 : vector<72x64xf32>
    %c0_16 = arith.constant 0 : index
    %c10 = arith.constant 10 : index
    %c0_17 = arith.constant 0 : index
    %17 = vector.load %arg1[%c0_16, %c10, %c0_17] : memref<1x89x32xbf16, #tpu.memory_space<vmem>>, vector<1x72x32xbf16>
    %18 = vector.shape_cast %17 : vector<1x72x32xbf16> to vector<72x32xbf16>
    %c3 = arith.constant 3 : index
    %c0_18 = arith.constant 0 : index
    %c0_19 = arith.constant 0 : index
    %19 = vector.load %arg2[%c3, %c0_18, %c0_19] : memref<4x32x64xbf16, #tpu.memory_space<vmem>>, vector<1x32x64xbf16>
    %20 = vector.shape_cast %19 : vector<1x32x64xbf16> to vector<32x64xbf16>
    %cst_20 = arith.constant dense<0.000000e+00> : vector<72x64xf32>
    %21 = tpu.matmul %18, %20, %cst_20 {dimension_numbers = #tpu.dot_dimension_numbers<[1], [0], [0], [1], [0, 0, 1, 1], [], []>} : vector<72x32xbf16>, vector<32x64xbf16>, vector<72x64xf32> -> vector<72x64xf32>
    %22 = arith.addf %16, %21 : vector<72x64xf32>
    %23 = arith.truncf %22 : vector<72x64xf32> to vector<72x64xbf16>
    %c0_21 = arith.constant 0 : index
    %c0_22 = arith.constant 0 : index
    %c0_23 = arith.constant 0 : index
    %24 = vector.load %arg3[%c0_21, %c0_22, %c0_23] : memref<1x72x64xbf16, #tpu.memory_space<vmem>>, vector<1x72x64xbf16>
    %25 = vector.shape_cast %24 : vector<1x72x64xbf16> to vector<72x64xbf16>
    %26 = vector.shape_cast %23 : vector<72x64xbf16> to vector<1x72x64xbf16>
    tpu.vector_store %arg3[%c0_21, %c0_22, %c0_23], %26 {strides = array<i32>} : memref<1x72x64xbf16, #tpu.memory_space<vmem>>, vector<1x72x64xbf16>,
    %cst_24 = arith.constant dense<0.000000e+00> : vector<64xf32>
    %27 = vector.multi_reduction <add>, %22, %cst_24 [0] : vector<72x64xf32> to vector<64xf32>
    %28 = vector.shape_cast %27 : vector<64xf32> to vector<1x64xf32>
    %29 = arith.mulf %22, %22 : vector<72x64xf32>
    %cst_25 = arith.constant dense<0.000000e+00> : vector<64xf32>
    %30 = vector.multi_reduction <add>, %29, %cst_25 [0] : vector<72x64xf32> to vector<64xf32>
    %31 = vector.shape_cast %30 : vector<64xf32> to vector<1x64xf32>
    %32 = vector.shape_cast %28 : vector<1x64xf32> to vector<1x64xf32>
    %33 = vector.broadcast %32 : vector<1x64xf32> to vector<8x64xf32>
    %c0_26 = arith.constant 0 : index
    %c0_27 = arith.constant 0 : index
    %c0_28 = arith.constant 0 : index
    %c0_29 = arith.constant 0 : index
    %34 = vector.load %arg4[%c0_26, %c0_27, %c0_28, %c0_29] : memref<1x1x8x64xf32, #tpu.memory_space<vmem>>, vector<1x1x8x64xf32>
    %35 = vector.shape_cast %34 : vector<1x1x8x64xf32> to vector<8x64xf32>
    %36 = vector.shape_cast %33 : vector<8x64xf32> to vector<1x1x8x64xf32>
    tpu.vector_store %arg4[%c0_26, %c0_27, %c0_28, %c0_29], %36 {strides = array<i32>} : memref<1x1x8x64xf32, #tpu.memory_space<vmem>>, vector<1x1x8x64xf32>,
    %37 = vector.shape_cast %31 : vector<1x64xf32> to vector<1x64xf32>
    %38 = vector.broadcast %37 : vector<1x64xf32> to vector<8x64xf32>
    %c0_30 = arith.constant 0 : index
    %c0_31 = arith.constant 0 : index
    %c0_32 = arith.constant 0 : index
    %c0_33 = arith.constant 0 : index
    %39 = vector.load %arg5[%c0_30, %c0_31, %c0_32, %c0_33] : memref<1x1x8x64xf32, #tpu.memory_space<vmem>>, vector<1x1x8x64xf32>
    %40 = vector.shape_cast %39 : vector<1x1x8x64xf32> to vector<8x64xf32>
    %41 = vector.shape_cast %38 : vector<8x64xf32> to vector<1x1x8x64xf32>
    tpu.vector_store %arg5[%c0_30, %c0_31, %c0_32, %c0_33], %41 {strides = array<i32>} : memref<1x1x8x64xf32, #tpu.memory_space<vmem>>, vector<1x1x8x64xf32>,
    return
  }
  func.func @transform_0(%arg0: i32) -> (i32, i32, i32) {
    %c0_i32 = arith.constant 0 : i32
    %c0_i32_0 = arith.constant 0 : i32
    %c0_i32_1 = arith.constant 0 : i32
    return %arg0, %c0_i32, %c0_i32_0 : i32, i32, i32
  }
  func.func @transform_1(%arg0: i32) -> (i32, i32, i32) {
    %c0_i32 = arith.constant 0 : i32
    %c0_i32_0 = arith.constant 0 : i32
    %c0_i32_1 = arith.constant 0 : i32
    %c0_i32_2 = arith.constant 0 : i32
    return %c0_i32, %c0_i32_0, %c0_i32_1 : i32, i32, i32
  }
  func.func @transform_2(%arg0: i32) -> (i32, i32, i32) {
    %c0_i32 = arith.constant 0 : i32
    %c0_i32_0 = arith.constant 0 : i32
    %c0_i32_1 = arith.constant 0 : i32
    return %arg0, %c0_i32, %c0_i32_0 : i32, i32, i32
  }
  func.func @transform_3(%arg0: i32) -> (i32, i32, i32, i32) {
    %c0_i32 = arith.constant 0 : i32
    %c0_i32_0 = arith.constant 0 : i32
    %c0_i32_1 = arith.constant 0 : i32
    %c0_i32_2 = arith.constant 0 : i32
    return %arg0, %c0_i32, %c0_i32_0, %c0_i32_1 : i32, i32, i32, i32
  }
  func.func @transform_4(%arg0: i32) -> (i32, i32, i32, i32) {
    %c0_i32 = arith.constant 0 : i32
    %c0_i32_0 = arith.constant 0 : i32
    %c0_i32_1 = arith.constant 0 : i32
    %c0_i32_2 = arith.constant 0 : i32
    return %arg0, %c0_i32, %c0_i32_0, %c0_i32_1 : i32, i32, i32, i32
  }
}

module attributes {stable_mosaic.version = 11 : i64} {
  func.func @kernel(%arg0: i32, %arg1: memref<1x33x256xbf16, #tpu.memory_space<vmem>>, %arg2: memref<4x256x128xbf16, #tpu.memory_space<vmem>>, %arg3: memref<1x256xf32, #tpu.memory_space<vmem>>, %arg4: memref<1x256xf32, #tpu.memory_space<vmem>>, %arg5: memref<1x20x128xbf16, #tpu.memory_space<vmem>>, %arg6: memref<1x1x8x128xf32, #tpu.memory_space<vmem>>, %arg7: memref<1x1x8x128xf32, #tpu.memory_space<vmem>>) attributes {dimension_semantics = [#tpu.dimension_semantics<parallel>], iteration_bounds = array<i64: 2>, scalar_prefetch = 0 : i64, scratch_operands = 0 : i64, tpu.core_type = #tpu.core_type<tc>, window_params = [{transform_indices = @transform_0, window_bounds = array<i64: 1, 33, 256>}, {pipeline_mode = #tpu.pipeline_mode<synchronous>, transform_indices = @transform_1, window_bounds = array<i64: 4, 256, 128>}, {pipeline_mode = #tpu.pipeline_mode<synchronous>, transform_indices = @transform_2, window_bounds = array<i64: 1, 256>}, {pipeline_mode = #tpu.pipeline_mode<synchronous>, transform_indices = @transform_3, window_bounds = array<i64: 1, 256>}, {transform_indices = @transform_4, window_bounds = array<i64: 1, 20, 128>}, {transform_indices = @transform_5, window_bounds = array<i64: 1, 1, 8, 128>}, {transform_indices = @transform_6, window_bounds = array<i64: 1, 1, 8, 128>}]} {
    %c0 = arith.constant 0 : index
    %c0_0 = arith.constant 0 : index
    %c0_1 = arith.constant 0 : index
    %0 = vector.load %arg1[%c0, %c0_0, %c0_1] : memref<1x33x256xbf16, #tpu.memory_space<vmem>>, vector<1x20x256xbf16>
    %1 = vector.shape_cast %0 : vector<1x20x256xbf16> to vector<20x256xbf16>
    %2 = arith.extf %1 : vector<20x256xbf16> to vector<20x256xf32>
    %c0_2 = arith.constant 0 : index
    %c0_3 = arith.constant 0 : index
    %3 = vector.load %arg3[%c0_2, %c0_3] : memref<1x256xf32, #tpu.memory_space<vmem>>, vector<1x256xf32>
    %4 = vector.broadcast %3 : vector<1x256xf32> to vector<20x256xf32>
    %5 = arith.mulf %2, %4 : vector<20x256xf32>
    %c0_4 = arith.constant 0 : index
    %c0_5 = arith.constant 0 : index
    %6 = vector.load %arg4[%c0_4, %c0_5] : memref<1x256xf32, #tpu.memory_space<vmem>>, vector<1x256xf32>
    %7 = vector.broadcast %6 : vector<1x256xf32> to vector<20x256xf32>
    %8 = arith.addf %5, %7 : vector<20x256xf32>
    %cst = arith.constant 0.000000e+00 : f32
    %9 = vector.broadcast %cst : f32 to vector<20x256xf32>
    %10 = arith.maximumf %8, %9 : vector<20x256xf32>
    %11 = arith.truncf %10 : vector<20x256xf32> to vector<20x256xbf16>
    %c0_6 = arith.constant 0 : index
    %c0_7 = arith.constant 0 : index
    %c0_8 = arith.constant 0 : index
    %12 = vector.load %arg2[%c0_6, %c0_7, %c0_8] : memref<4x256x128xbf16, #tpu.memory_space<vmem>>, vector<1x256x128xbf16>
    %13 = vector.shape_cast %12 : vector<1x256x128xbf16> to vector<256x128xbf16>
    %cst_9 = arith.constant dense<0.000000e+00> : vector<20x128xf32>
    %14 = tpu.matmul %11, %13, %cst_9 {dimension_numbers = #tpu.dot_dimension_numbers<[1], [0], [0], [1], [0, 0, 1, 1], [], []>} : vector<20x256xbf16>, vector<256x128xbf16>, vector<20x128xf32> -> vector<20x128xf32>
    %c0_10 = arith.constant 0 : index
    %c1 = arith.constant 1 : index
    %c0_11 = arith.constant 0 : index
    %15 = vector.load %arg1[%c0_10, %c1, %c0_11] : memref<1x33x256xbf16, #tpu.memory_space<vmem>>, vector<1x20x256xbf16>
    %16 = vector.shape_cast %15 : vector<1x20x256xbf16> to vector<20x256xbf16>
    %17 = arith.extf %16 : vector<20x256xbf16> to vector<20x256xf32>
    %c0_12 = arith.constant 0 : index
    %c0_13 = arith.constant 0 : index
    %18 = vector.load %arg3[%c0_12, %c0_13] : memref<1x256xf32, #tpu.memory_space<vmem>>, vector<1x256xf32>
    %19 = vector.broadcast %18 : vector<1x256xf32> to vector<20x256xf32>
    %20 = arith.mulf %17, %19 : vector<20x256xf32>
    %c0_14 = arith.constant 0 : index
    %c0_15 = arith.constant 0 : index
    %21 = vector.load %arg4[%c0_14, %c0_15] : memref<1x256xf32, #tpu.memory_space<vmem>>, vector<1x256xf32>
    %22 = vector.broadcast %21 : vector<1x256xf32> to vector<20x256xf32>
    %23 = arith.addf %20, %22 : vector<20x256xf32>
    %cst_16 = arith.constant 0.000000e+00 : f32
    %24 = vector.broadcast %cst_16 : f32 to vector<20x256xf32>
    %25 = arith.maximumf %23, %24 : vector<20x256xf32>
    %26 = arith.truncf %25 : vector<20x256xf32> to vector<20x256xbf16>
    %c1_17 = arith.constant 1 : index
    %c0_18 = arith.constant 0 : index
    %c0_19 = arith.constant 0 : index
    %27 = vector.load %arg2[%c1_17, %c0_18, %c0_19] : memref<4x256x128xbf16, #tpu.memory_space<vmem>>, vector<1x256x128xbf16>
    %28 = vector.shape_cast %27 : vector<1x256x128xbf16> to vector<256x128xbf16>
    %cst_20 = arith.constant dense<0.000000e+00> : vector<20x128xf32>
    %29 = tpu.matmul %26, %28, %cst_20 {dimension_numbers = #tpu.dot_dimension_numbers<[1], [0], [0], [1], [0, 0, 1, 1], [], []>} : vector<20x256xbf16>, vector<256x128xbf16>, vector<20x128xf32> -> vector<20x128xf32>
    %30 = arith.addf %14, %29 : vector<20x128xf32>
    %c0_21 = arith.constant 0 : index
    %c5 = arith.constant 5 : index
    %c0_22 = arith.constant 0 : index
    %31 = vector.load %arg1[%c0_21, %c5, %c0_22] : memref<1x33x256xbf16, #tpu.memory_space<vmem>>, vector<1x20x256xbf16>
    %32 = vector.shape_cast %31 : vector<1x20x256xbf16> to vector<20x256xbf16>
    %33 = arith.extf %32 : vector<20x256xbf16> to vector<20x256xf32>
    %c0_23 = arith.constant 0 : index
    %c0_24 = arith.constant 0 : index
    %34 = vector.load %arg3[%c0_23, %c0_24] : memref<1x256xf32, #tpu.memory_space<vmem>>, vector<1x256xf32>
    %35 = vector.broadcast %34 : vector<1x256xf32> to vector<20x256xf32>
    %36 = arith.mulf %33, %35 : vector<20x256xf32>
    %c0_25 = arith.constant 0 : index
    %c0_26 = arith.constant 0 : index
    %37 = vector.load %arg4[%c0_25, %c0_26] : memref<1x256xf32, #tpu.memory_space<vmem>>, vector<1x256xf32>
    %38 = vector.broadcast %37 : vector<1x256xf32> to vector<20x256xf32>
    %39 = arith.addf %36, %38 : vector<20x256xf32>
    %cst_27 = arith.constant 0.000000e+00 : f32
    %40 = vector.broadcast %cst_27 : f32 to vector<20x256xf32>
    %41 = arith.maximumf %39, %40 : vector<20x256xf32>
    %42 = arith.truncf %41 : vector<20x256xf32> to vector<20x256xbf16>
    %c2 = arith.constant 2 : index
    %c0_28 = arith.constant 0 : index
    %c0_29 = arith.constant 0 : index
    %43 = vector.load %arg2[%c2, %c0_28, %c0_29] : memref<4x256x128xbf16, #tpu.memory_space<vmem>>, vector<1x256x128xbf16>
    %44 = vector.shape_cast %43 : vector<1x256x128xbf16> to vector<256x128xbf16>
    %cst_30 = arith.constant dense<0.000000e+00> : vector<20x128xf32>
    %45 = tpu.matmul %42, %44, %cst_30 {dimension_numbers = #tpu.dot_dimension_numbers<[1], [0], [0], [1], [0, 0, 1, 1], [], []>} : vector<20x256xbf16>, vector<256x128xbf16>, vector<20x128xf32> -> vector<20x128xf32>
    %46 = arith.addf %30, %45 : vector<20x128xf32>
    %c0_31 = arith.constant 0 : index
    %c6 = arith.constant 6 : index
    %c0_32 = arith.constant 0 : index
    %47 = vector.load %arg1[%c0_31, %c6, %c0_32] : memref<1x33x256xbf16, #tpu.memory_space<vmem>>, vector<1x20x256xbf16>
    %48 = vector.shape_cast %47 : vector<1x20x256xbf16> to vector<20x256xbf16>
    %49 = arith.extf %48 : vector<20x256xbf16> to vector<20x256xf32>
    %c0_33 = arith.constant 0 : index
    %c0_34 = arith.constant 0 : index
    %50 = vector.load %arg3[%c0_33, %c0_34] : memref<1x256xf32, #tpu.memory_space<vmem>>, vector<1x256xf32>
    %51 = vector.broadcast %50 : vector<1x256xf32> to vector<20x256xf32>
    %52 = arith.mulf %49, %51 : vector<20x256xf32>
    %c0_35 = arith.constant 0 : index
    %c0_36 = arith.constant 0 : index
    %53 = vector.load %arg4[%c0_35, %c0_36] : memref<1x256xf32, #tpu.memory_space<vmem>>, vector<1x256xf32>
    %54 = vector.broadcast %53 : vector<1x256xf32> to vector<20x256xf32>
    %55 = arith.addf %52, %54 : vector<20x256xf32>
    %cst_37 = arith.constant 0.000000e+00 : f32
    %56 = vector.broadcast %cst_37 : f32 to vector<20x256xf32>
    %57 = arith.maximumf %55, %56 : vector<20x256xf32>
    %58 = arith.truncf %57 : vector<20x256xf32> to vector<20x256xbf16>
    %c3 = arith.constant 3 : index
    %c0_38 = arith.constant 0 : index
    %c0_39 = arith.constant 0 : index
    %59 = vector.load %arg2[%c3, %c0_38, %c0_39] : memref<4x256x128xbf16, #tpu.memory_space<vmem>>, vector<1x256x128xbf16>
    %60 = vector.shape_cast %59 : vector<1x256x128xbf16> to vector<256x128xbf16>
    %cst_40 = arith.constant dense<0.000000e+00> : vector<20x128xf32>
    %61 = tpu.matmul %58, %60, %cst_40 {dimension_numbers = #tpu.dot_dimension_numbers<[1], [0], [0], [1], [0, 0, 1, 1], [], []>} : vector<20x256xbf16>, vector<256x128xbf16>, vector<20x128xf32> -> vector<20x128xf32>
    %62 = arith.addf %46, %61 : vector<20x128xf32>
    %63 = arith.truncf %62 : vector<20x128xf32> to vector<20x128xbf16>
    %c0_41 = arith.constant 0 : index
    %c0_42 = arith.constant 0 : index
    %c0_43 = arith.constant 0 : index
    %64 = vector.load %arg5[%c0_41, %c0_42, %c0_43] : memref<1x20x128xbf16, #tpu.memory_space<vmem>>, vector<1x20x128xbf16>
    %65 = vector.shape_cast %64 : vector<1x20x128xbf16> to vector<20x128xbf16>
    %66 = vector.shape_cast %63 : vector<20x128xbf16> to vector<1x20x128xbf16>
    tpu.vector_store %arg5[%c0_41, %c0_42, %c0_43], %66 {strides = array<i32>} : memref<1x20x128xbf16, #tpu.memory_space<vmem>>, vector<1x20x128xbf16>,
    %cst_44 = arith.constant dense<0.000000e+00> : vector<128xf32>
    %67 = vector.multi_reduction <add>, %62, %cst_44 [0] : vector<20x128xf32> to vector<128xf32>
    %68 = vector.shape_cast %67 : vector<128xf32> to vector<1x128xf32>
    %69 = arith.mulf %62, %62 : vector<20x128xf32>
    %cst_45 = arith.constant dense<0.000000e+00> : vector<128xf32>
    %70 = vector.multi_reduction <add>, %69, %cst_45 [0] : vector<20x128xf32> to vector<128xf32>
    %71 = vector.shape_cast %70 : vector<128xf32> to vector<1x128xf32>
    %72 = vector.shape_cast %68 : vector<1x128xf32> to vector<1x128xf32>
    %73 = vector.broadcast %72 : vector<1x128xf32> to vector<8x128xf32>
    %c0_46 = arith.constant 0 : index
    %c0_47 = arith.constant 0 : index
    %c0_48 = arith.constant 0 : index
    %c0_49 = arith.constant 0 : index
    %74 = vector.load %arg6[%c0_46, %c0_47, %c0_48, %c0_49] : memref<1x1x8x128xf32, #tpu.memory_space<vmem>>, vector<1x1x8x128xf32>
    %75 = vector.shape_cast %74 : vector<1x1x8x128xf32> to vector<8x128xf32>
    %76 = vector.shape_cast %73 : vector<8x128xf32> to vector<1x1x8x128xf32>
    tpu.vector_store %arg6[%c0_46, %c0_47, %c0_48, %c0_49], %76 {strides = array<i32>} : memref<1x1x8x128xf32, #tpu.memory_space<vmem>>, vector<1x1x8x128xf32>,
    %77 = vector.shape_cast %71 : vector<1x128xf32> to vector<1x128xf32>
    %78 = vector.broadcast %77 : vector<1x128xf32> to vector<8x128xf32>
    %c0_50 = arith.constant 0 : index
    %c0_51 = arith.constant 0 : index
    %c0_52 = arith.constant 0 : index
    %c0_53 = arith.constant 0 : index
    %79 = vector.load %arg7[%c0_50, %c0_51, %c0_52, %c0_53] : memref<1x1x8x128xf32, #tpu.memory_space<vmem>>, vector<1x1x8x128xf32>
    %80 = vector.shape_cast %79 : vector<1x1x8x128xf32> to vector<8x128xf32>
    %81 = vector.shape_cast %78 : vector<8x128xf32> to vector<1x1x8x128xf32>
    tpu.vector_store %arg7[%c0_50, %c0_51, %c0_52, %c0_53], %81 {strides = array<i32>} : memref<1x1x8x128xf32, #tpu.memory_space<vmem>>, vector<1x1x8x128xf32>,
    return
  }
  func.func @transform_0(%arg0: i32) -> (i32, i32, i32) {
    %c0_i32 = arith.constant 0 : i32
    %c0_i32_0 = arith.constant 0 : i32
    %c0_i32_1 = arith.constant 0 : i32
    return %arg0, %c0_i32, %c0_i32_0 : i32, i32, i32
  }
  func.func @transform_1(%arg0: i32) -> (i32, i32, i32) {
    %c0_i32 = arith.constant 0 : i32
    %c0_i32_0 = arith.constant 0 : i32
    %c0_i32_1 = arith.constant 0 : i32
    %c0_i32_2 = arith.constant 0 : i32
    return %c0_i32, %c0_i32_0, %c0_i32_1 : i32, i32, i32
  }
  func.func @transform_2(%arg0: i32) -> (i32, i32) {
    %c0_i32 = arith.constant 0 : i32
    %c0_i32_0 = arith.constant 0 : i32
    %c0_i32_1 = arith.constant 0 : i32
    return %c0_i32, %c0_i32_0 : i32, i32
  }
  func.func @transform_3(%arg0: i32) -> (i32, i32) {
    %c0_i32 = arith.constant 0 : i32
    %c0_i32_0 = arith.constant 0 : i32
    %c0_i32_1 = arith.constant 0 : i32
    return %c0_i32, %c0_i32_0 : i32, i32
  }
  func.func @transform_4(%arg0: i32) -> (i32, i32, i32) {
    %c0_i32 = arith.constant 0 : i32
    %c0_i32_0 = arith.constant 0 : i32
    %c0_i32_1 = arith.constant 0 : i32
    return %arg0, %c0_i32, %c0_i32_0 : i32, i32, i32
  }
  func.func @transform_5(%arg0: i32) -> (i32, i32, i32, i32) {
    %c0_i32 = arith.constant 0 : i32
    %c0_i32_0 = arith.constant 0 : i32
    %c0_i32_1 = arith.constant 0 : i32
    %c0_i32_2 = arith.constant 0 : i32
    return %arg0, %c0_i32, %c0_i32_0, %c0_i32_1 : i32, i32, i32, i32
  }
  func.func @transform_6(%arg0: i32) -> (i32, i32, i32, i32) {
    %c0_i32 = arith.constant 0 : i32
    %c0_i32_0 = arith.constant 0 : i32
    %c0_i32_1 = arith.constant 0 : i32
    %c0_i32_2 = arith.constant 0 : i32
    return %arg0, %c0_i32, %c0_i32_0, %c0_i32_1 : i32, i32, i32, i32
  }
}

module attributes {stable_mosaic.version = 11 : i64} {
  func.func @kernel(%arg0: i32, %arg1: memref<1x17x512xbf16, #tpu.memory_space<vmem>>, %arg2: memref<4x512x512xbf16, #tpu.memory_space<vmem>>, %arg3: memref<1x512xf32, #tpu.memory_space<vmem>>, %arg4: memref<1x512xf32, #tpu.memory_space<vmem>>, %arg5: memref<1x6x512xbf16, #tpu.memory_space<vmem>>, %arg6: memref<1x1x8x512xf32, #tpu.memory_space<vmem>>, %arg7: memref<1x1x8x512xf32, #tpu.memory_space<vmem>>) attributes {dimension_semantics = [#tpu.dimension_semantics<parallel>], iteration_bounds = array<i64: 2>, scalar_prefetch = 0 : i64, scratch_operands = 0 : i64, tpu.core_type = #tpu.core_type<tc>, window_params = [{transform_indices = @transform_0, window_bounds = array<i64: 1, 17, 512>}, {pipeline_mode = #tpu.pipeline_mode<synchronous>, transform_indices = @transform_1, window_bounds = array<i64: 4, 512, 512>}, {pipeline_mode = #tpu.pipeline_mode<synchronous>, transform_indices = @transform_2, window_bounds = array<i64: 1, 512>}, {pipeline_mode = #tpu.pipeline_mode<synchronous>, transform_indices = @transform_3, window_bounds = array<i64: 1, 512>}, {transform_indices = @transform_4, window_bounds = array<i64: 1, 6, 512>}, {transform_indices = @transform_5, window_bounds = array<i64: 1, 1, 8, 512>}, {transform_indices = @transform_6, window_bounds = array<i64: 1, 1, 8, 512>}]} {
    %c0 = arith.constant 0 : index
    %c0_0 = arith.constant 0 : index
    %c0_1 = arith.constant 0 : index
    %0 = vector.load %arg1[%c0, %c0_0, %c0_1] : memref<1x17x512xbf16, #tpu.memory_space<vmem>>, vector<1x6x512xbf16>
    %1 = vector.shape_cast %0 : vector<1x6x512xbf16> to vector<6x512xbf16>
    %2 = arith.extf %1 : vector<6x512xbf16> to vector<6x512xf32>
    %c0_2 = arith.constant 0 : index
    %c0_3 = arith.constant 0 : index
    %3 = vector.load %arg3[%c0_2, %c0_3] : memref<1x512xf32, #tpu.memory_space<vmem>>, vector<1x512xf32>
    %4 = vector.broadcast %3 : vector<1x512xf32> to vector<6x512xf32>
    %5 = arith.mulf %2, %4 : vector<6x512xf32>
    %c0_4 = arith.constant 0 : index
    %c0_5 = arith.constant 0 : index
    %6 = vector.load %arg4[%c0_4, %c0_5] : memref<1x512xf32, #tpu.memory_space<vmem>>, vector<1x512xf32>
    %7 = vector.broadcast %6 : vector<1x512xf32> to vector<6x512xf32>
    %8 = arith.addf %5, %7 : vector<6x512xf32>
    %cst = arith.constant 0.000000e+00 : f32
    %9 = vector.broadcast %cst : f32 to vector<6x512xf32>
    %10 = arith.maximumf %8, %9 : vector<6x512xf32>
    %11 = arith.truncf %10 : vector<6x512xf32> to vector<6x512xbf16>
    %c0_6 = arith.constant 0 : index
    %c0_7 = arith.constant 0 : index
    %c0_8 = arith.constant 0 : index
    %12 = vector.load %arg2[%c0_6, %c0_7, %c0_8] : memref<4x512x512xbf16, #tpu.memory_space<vmem>>, vector<1x512x512xbf16>
    %13 = vector.shape_cast %12 : vector<1x512x512xbf16> to vector<512x512xbf16>
    %cst_9 = arith.constant dense<0.000000e+00> : vector<6x512xf32>
    %14 = tpu.matmul %11, %13, %cst_9 {dimension_numbers = #tpu.dot_dimension_numbers<[1], [0], [0], [1], [0, 0, 1, 1], [], []>} : vector<6x512xbf16>, vector<512x512xbf16>, vector<6x512xf32> -> vector<6x512xf32>
    %c0_10 = arith.constant 0 : index
    %c1 = arith.constant 1 : index
    %c0_11 = arith.constant 0 : index
    %15 = vector.load %arg1[%c0_10, %c1, %c0_11] : memref<1x17x512xbf16, #tpu.memory_space<vmem>>, vector<1x6x512xbf16>
    %16 = vector.shape_cast %15 : vector<1x6x512xbf16> to vector<6x512xbf16>
    %17 = arith.extf %16 : vector<6x512xbf16> to vector<6x512xf32>
    %c0_12 = arith.constant 0 : index
    %c0_13 = arith.constant 0 : index
    %18 = vector.load %arg3[%c0_12, %c0_13] : memref<1x512xf32, #tpu.memory_space<vmem>>, vector<1x512xf32>
    %19 = vector.broadcast %18 : vector<1x512xf32> to vector<6x512xf32>
    %20 = arith.mulf %17, %19 : vector<6x512xf32>
    %c0_14 = arith.constant 0 : index
    %c0_15 = arith.constant 0 : index
    %21 = vector.load %arg4[%c0_14, %c0_15] : memref<1x512xf32, #tpu.memory_space<vmem>>, vector<1x512xf32>
    %22 = vector.broadcast %21 : vector<1x512xf32> to vector<6x512xf32>
    %23 = arith.addf %20, %22 : vector<6x512xf32>
    %cst_16 = arith.constant 0.000000e+00 : f32
    %24 = vector.broadcast %cst_16 : f32 to vector<6x512xf32>
    %25 = arith.maximumf %23, %24 : vector<6x512xf32>
    %26 = arith.truncf %25 : vector<6x512xf32> to vector<6x512xbf16>
    %c1_17 = arith.constant 1 : index
    %c0_18 = arith.constant 0 : index
    %c0_19 = arith.constant 0 : index
    %27 = vector.load %arg2[%c1_17, %c0_18, %c0_19] : memref<4x512x512xbf16, #tpu.memory_space<vmem>>, vector<1x512x512xbf16>
    %28 = vector.shape_cast %27 : vector<1x512x512xbf16> to vector<512x512xbf16>
    %cst_20 = arith.constant dense<0.000000e+00> : vector<6x512xf32>
    %29 = tpu.matmul %26, %28, %cst_20 {dimension_numbers = #tpu.dot_dimension_numbers<[1], [0], [0], [1], [0, 0, 1, 1], [], []>} : vector<6x512xbf16>, vector<512x512xbf16>, vector<6x512xf32> -> vector<6x512xf32>
    %30 = arith.addf %14, %29 : vector<6x512xf32>
    %c0_21 = arith.constant 0 : index
    %c3 = arith.constant 3 : index
    %c0_22 = arith.constant 0 : index
    %31 = vector.load %arg1[%c0_21, %c3, %c0_22] : memref<1x17x512xbf16, #tpu.memory_space<vmem>>, vector<1x6x512xbf16>
    %32 = vector.shape_cast %31 : vector<1x6x512xbf16> to vector<6x512xbf16>
    %33 = arith.extf %32 : vector<6x512xbf16> to vector<6x512xf32>
    %c0_23 = arith.constant 0 : index
    %c0_24 = arith.constant 0 : index
    %34 = vector.load %arg3[%c0_23, %c0_24] : memref<1x512xf32, #tpu.memory_space<vmem>>, vector<1x512xf32>
    %35 = vector.broadcast %34 : vector<1x512xf32> to vector<6x512xf32>
    %36 = arith.mulf %33, %35 : vector<6x512xf32>
    %c0_25 = arith.constant 0 : index
    %c0_26 = arith.constant 0 : index
    %37 = vector.load %arg4[%c0_25, %c0_26] : memref<1x512xf32, #tpu.memory_space<vmem>>, vector<1x512xf32>
    %38 = vector.broadcast %37 : vector<1x512xf32> to vector<6x512xf32>
    %39 = arith.addf %36, %38 : vector<6x512xf32>
    %cst_27 = arith.constant 0.000000e+00 : f32
    %40 = vector.broadcast %cst_27 : f32 to vector<6x512xf32>
    %41 = arith.maximumf %39, %40 : vector<6x512xf32>
    %42 = arith.truncf %41 : vector<6x512xf32> to vector<6x512xbf16>
    %c2 = arith.constant 2 : index
    %c0_28 = arith.constant 0 : index
    %c0_29 = arith.constant 0 : index
    %43 = vector.load %arg2[%c2, %c0_28, %c0_29] : memref<4x512x512xbf16, #tpu.memory_space<vmem>>, vector<1x512x512xbf16>
    %44 = vector.shape_cast %43 : vector<1x512x512xbf16> to vector<512x512xbf16>
    %cst_30 = arith.constant dense<0.000000e+00> : vector<6x512xf32>
    %45 = tpu.matmul %42, %44, %cst_30 {dimension_numbers = #tpu.dot_dimension_numbers<[1], [0], [0], [1], [0, 0, 1, 1], [], []>} : vector<6x512xbf16>, vector<512x512xbf16>, vector<6x512xf32> -> vector<6x512xf32>
    %46 = arith.addf %30, %45 : vector<6x512xf32>
    %c0_31 = arith.constant 0 : index
    %c4 = arith.constant 4 : index
    %c0_32 = arith.constant 0 : index
    %47 = vector.load %arg1[%c0_31, %c4, %c0_32] : memref<1x17x512xbf16, #tpu.memory_space<vmem>>, vector<1x6x512xbf16>
    %48 = vector.shape_cast %47 : vector<1x6x512xbf16> to vector<6x512xbf16>
    %49 = arith.extf %48 : vector<6x512xbf16> to vector<6x512xf32>
    %c0_33 = arith.constant 0 : index
    %c0_34 = arith.constant 0 : index
    %50 = vector.load %arg3[%c0_33, %c0_34] : memref<1x512xf32, #tpu.memory_space<vmem>>, vector<1x512xf32>
    %51 = vector.broadcast %50 : vector<1x512xf32> to vector<6x512xf32>
    %52 = arith.mulf %49, %51 : vector<6x512xf32>
    %c0_35 = arith.constant 0 : index
    %c0_36 = arith.constant 0 : index
    %53 = vector.load %arg4[%c0_35, %c0_36] : memref<1x512xf32, #tpu.memory_space<vmem>>, vector<1x512xf32>
    %54 = vector.broadcast %53 : vector<1x512xf32> to vector<6x512xf32>
    %55 = arith.addf %52, %54 : vector<6x512xf32>
    %cst_37 = arith.constant 0.000000e+00 : f32
    %56 = vector.broadcast %cst_37 : f32 to vector<6x512xf32>
    %57 = arith.maximumf %55, %56 : vector<6x512xf32>
    %58 = arith.truncf %57 : vector<6x512xf32> to vector<6x512xbf16>
    %c3_38 = arith.constant 3 : index
    %c0_39 = arith.constant 0 : index
    %c0_40 = arith.constant 0 : index
    %59 = vector.load %arg2[%c3_38, %c0_39, %c0_40] : memref<4x512x512xbf16, #tpu.memory_space<vmem>>, vector<1x512x512xbf16>
    %60 = vector.shape_cast %59 : vector<1x512x512xbf16> to vector<512x512xbf16>
    %cst_41 = arith.constant dense<0.000000e+00> : vector<6x512xf32>
    %61 = tpu.matmul %58, %60, %cst_41 {dimension_numbers = #tpu.dot_dimension_numbers<[1], [0], [0], [1], [0, 0, 1, 1], [], []>} : vector<6x512xbf16>, vector<512x512xbf16>, vector<6x512xf32> -> vector<6x512xf32>
    %62 = arith.addf %46, %61 : vector<6x512xf32>
    %63 = arith.truncf %62 : vector<6x512xf32> to vector<6x512xbf16>
    %c0_42 = arith.constant 0 : index
    %c0_43 = arith.constant 0 : index
    %c0_44 = arith.constant 0 : index
    %64 = vector.load %arg5[%c0_42, %c0_43, %c0_44] : memref<1x6x512xbf16, #tpu.memory_space<vmem>>, vector<1x6x512xbf16>
    %65 = vector.shape_cast %64 : vector<1x6x512xbf16> to vector<6x512xbf16>
    %66 = vector.shape_cast %63 : vector<6x512xbf16> to vector<1x6x512xbf16>
    tpu.vector_store %arg5[%c0_42, %c0_43, %c0_44], %66 {strides = array<i32>} : memref<1x6x512xbf16, #tpu.memory_space<vmem>>, vector<1x6x512xbf16>,
    %cst_45 = arith.constant dense<0.000000e+00> : vector<512xf32>
    %67 = vector.multi_reduction <add>, %62, %cst_45 [0] : vector<6x512xf32> to vector<512xf32>
    %68 = vector.shape_cast %67 : vector<512xf32> to vector<1x512xf32>
    %69 = arith.mulf %62, %62 : vector<6x512xf32>
    %cst_46 = arith.constant dense<0.000000e+00> : vector<512xf32>
    %70 = vector.multi_reduction <add>, %69, %cst_46 [0] : vector<6x512xf32> to vector<512xf32>
    %71 = vector.shape_cast %70 : vector<512xf32> to vector<1x512xf32>
    %72 = vector.shape_cast %68 : vector<1x512xf32> to vector<1x512xf32>
    %73 = vector.broadcast %72 : vector<1x512xf32> to vector<8x512xf32>
    %c0_47 = arith.constant 0 : index
    %c0_48 = arith.constant 0 : index
    %c0_49 = arith.constant 0 : index
    %c0_50 = arith.constant 0 : index
    %74 = vector.load %arg6[%c0_47, %c0_48, %c0_49, %c0_50] : memref<1x1x8x512xf32, #tpu.memory_space<vmem>>, vector<1x1x8x512xf32>
    %75 = vector.shape_cast %74 : vector<1x1x8x512xf32> to vector<8x512xf32>
    %76 = vector.shape_cast %73 : vector<8x512xf32> to vector<1x1x8x512xf32>
    tpu.vector_store %arg6[%c0_47, %c0_48, %c0_49, %c0_50], %76 {strides = array<i32>} : memref<1x1x8x512xf32, #tpu.memory_space<vmem>>, vector<1x1x8x512xf32>,
    %77 = vector.shape_cast %71 : vector<1x512xf32> to vector<1x512xf32>
    %78 = vector.broadcast %77 : vector<1x512xf32> to vector<8x512xf32>
    %c0_51 = arith.constant 0 : index
    %c0_52 = arith.constant 0 : index
    %c0_53 = arith.constant 0 : index
    %c0_54 = arith.constant 0 : index
    %79 = vector.load %arg7[%c0_51, %c0_52, %c0_53, %c0_54] : memref<1x1x8x512xf32, #tpu.memory_space<vmem>>, vector<1x1x8x512xf32>
    %80 = vector.shape_cast %79 : vector<1x1x8x512xf32> to vector<8x512xf32>
    %81 = vector.shape_cast %78 : vector<8x512xf32> to vector<1x1x8x512xf32>
    tpu.vector_store %arg7[%c0_51, %c0_52, %c0_53, %c0_54], %81 {strides = array<i32>} : memref<1x1x8x512xf32, #tpu.memory_space<vmem>>, vector<1x1x8x512xf32>,
    return
  }
  func.func @transform_0(%arg0: i32) -> (i32, i32, i32) {
    %c0_i32 = arith.constant 0 : i32
    %c0_i32_0 = arith.constant 0 : i32
    %c0_i32_1 = arith.constant 0 : i32
    return %arg0, %c0_i32, %c0_i32_0 : i32, i32, i32
  }
  func.func @transform_1(%arg0: i32) -> (i32, i32, i32) {
    %c0_i32 = arith.constant 0 : i32
    %c0_i32_0 = arith.constant 0 : i32
    %c0_i32_1 = arith.constant 0 : i32
    %c0_i32_2 = arith.constant 0 : i32
    return %c0_i32, %c0_i32_0, %c0_i32_1 : i32, i32, i32
  }
  func.func @transform_2(%arg0: i32) -> (i32, i32) {
    %c0_i32 = arith.constant 0 : i32
    %c0_i32_0 = arith.constant 0 : i32
    %c0_i32_1 = arith.constant 0 : i32
    return %c0_i32, %c0_i32_0 : i32, i32
  }
  func.func @transform_3(%arg0: i32) -> (i32, i32) {
    %c0_i32 = arith.constant 0 : i32
    %c0_i32_0 = arith.constant 0 : i32
    %c0_i32_1 = arith.constant 0 : i32
    return %c0_i32, %c0_i32_0 : i32, i32
  }
  func.func @transform_4(%arg0: i32) -> (i32, i32, i32) {
    %c0_i32 = arith.constant 0 : i32
    %c0_i32_0 = arith.constant 0 : i32
    %c0_i32_1 = arith.constant 0 : i32
    return %arg0, %c0_i32, %c0_i32_0 : i32, i32, i32
  }
  func.func @transform_5(%arg0: i32) -> (i32, i32, i32, i32) {
    %c0_i32 = arith.constant 0 : i32
    %c0_i32_0 = arith.constant 0 : i32
    %c0_i32_1 = arith.constant 0 : i32
    %c0_i32_2 = arith.constant 0 : i32
    return %arg0, %c0_i32, %c0_i32_0, %c0_i32_1 : i32, i32, i32, i32
  }
  func.func @transform_6(%arg0: i32) -> (i32, i32, i32, i32) {
    %c0_i32 = arith.constant 0 : i32
    %c0_i32_0 = arith.constant 0 : i32
    %c0_i32_1 = arith.constant 0 : i32
    %c0_i32_2 = arith.constant 0 : i32
    return %arg0, %c0_i32, %c0_i32_0, %c0_i32_1 : i32, i32, i32, i32
  }
}

module attributes {stable_mosaic.version = 11 : i64} {
  func.func @kernel(%arg0: i32, %arg1: memref<1x24x512xbf16, #tpu.memory_space<vmem>>, %arg2: memref<16x512x128xbf16, #tpu.memory_space<vmem>>, %arg3: memref<1x512xf32, #tpu.memory_space<vmem>>, %arg4: memref<1x512xf32, #tpu.memory_space<vmem>>, %arg5: memref<1x128xf32, #tpu.memory_space<vmem>>, %arg6: memref<1x4x128xbf16, #tpu.memory_space<vmem>>) attributes {dimension_semantics = [#tpu.dimension_semantics<parallel>], iteration_bounds = array<i64: 2>, scalar_prefetch = 0 : i64, scratch_operands = 0 : i64, tpu.core_type = #tpu.core_type<tc>, window_params = [{transform_indices = @transform_0, window_bounds = array<i64: 1, 24, 512>}, {pipeline_mode = #tpu.pipeline_mode<synchronous>, transform_indices = @transform_1, window_bounds = array<i64: 16, 512, 128>}, {pipeline_mode = #tpu.pipeline_mode<synchronous>, transform_indices = @transform_2, window_bounds = array<i64: 1, 512>}, {pipeline_mode = #tpu.pipeline_mode<synchronous>, transform_indices = @transform_3, window_bounds = array<i64: 1, 512>}, {pipeline_mode = #tpu.pipeline_mode<synchronous>, transform_indices = @transform_4, window_bounds = array<i64: 1, 128>}, {transform_indices = @transform_5, window_bounds = array<i64: 1, 4, 128>}]} {
    %c0 = arith.constant 0 : index
    %c0_0 = arith.constant 0 : index
    %c0_1 = arith.constant 0 : index
    %0 = vector.load %arg1[%c0, %c0_0, %c0_1] : memref<1x24x512xbf16, #tpu.memory_space<vmem>>, vector<1x4x512xbf16>
    %1 = vector.shape_cast %0 : vector<1x4x512xbf16> to vector<4x512xbf16>
    %2 = arith.extf %1 : vector<4x512xbf16> to vector<4x512xf32>
    %c0_2 = arith.constant 0 : index
    %c0_3 = arith.constant 0 : index
    %3 = vector.load %arg3[%c0_2, %c0_3] : memref<1x512xf32, #tpu.memory_space<vmem>>, vector<1x512xf32>
    %4 = vector.broadcast %3 : vector<1x512xf32> to vector<4x512xf32>
    %5 = arith.mulf %2, %4 : vector<4x512xf32>
    %c0_4 = arith.constant 0 : index
    %c0_5 = arith.constant 0 : index
    %6 = vector.load %arg4[%c0_4, %c0_5] : memref<1x512xf32, #tpu.memory_space<vmem>>, vector<1x512xf32>
    %7 = vector.broadcast %6 : vector<1x512xf32> to vector<4x512xf32>
    %8 = arith.addf %5, %7 : vector<4x512xf32>
    %cst = arith.constant 0.000000e+00 : f32
    %9 = vector.broadcast %cst : f32 to vector<4x512xf32>
    %10 = arith.maximumf %8, %9 : vector<4x512xf32>
    %11 = arith.truncf %10 : vector<4x512xf32> to vector<4x512xbf16>
    %c0_6 = arith.constant 0 : index
    %c0_7 = arith.constant 0 : index
    %c0_8 = arith.constant 0 : index
    %12 = vector.load %arg2[%c0_6, %c0_7, %c0_8] : memref<16x512x128xbf16, #tpu.memory_space<vmem>>, vector<1x512x128xbf16>
    %13 = vector.shape_cast %12 : vector<1x512x128xbf16> to vector<512x128xbf16>
    %cst_9 = arith.constant dense<0.000000e+00> : vector<4x128xf32>
    %14 = tpu.matmul %11, %13, %cst_9 {dimension_numbers = #tpu.dot_dimension_numbers<[1], [0], [0], [1], [0, 0, 1, 1], [], []>} : vector<4x512xbf16>, vector<512x128xbf16>, vector<4x128xf32> -> vector<4x128xf32>
    %c0_10 = arith.constant 0 : index
    %c1 = arith.constant 1 : index
    %c0_11 = arith.constant 0 : index
    %15 = vector.load %arg1[%c0_10, %c1, %c0_11] : memref<1x24x512xbf16, #tpu.memory_space<vmem>>, vector<1x4x512xbf16>
    %16 = vector.shape_cast %15 : vector<1x4x512xbf16> to vector<4x512xbf16>
    %17 = arith.extf %16 : vector<4x512xbf16> to vector<4x512xf32>
    %c0_12 = arith.constant 0 : index
    %c0_13 = arith.constant 0 : index
    %18 = vector.load %arg3[%c0_12, %c0_13] : memref<1x512xf32, #tpu.memory_space<vmem>>, vector<1x512xf32>
    %19 = vector.broadcast %18 : vector<1x512xf32> to vector<4x512xf32>
    %20 = arith.mulf %17, %19 : vector<4x512xf32>
    %c0_14 = arith.constant 0 : index
    %c0_15 = arith.constant 0 : index
    %21 = vector.load %arg4[%c0_14, %c0_15] : memref<1x512xf32, #tpu.memory_space<vmem>>, vector<1x512xf32>
    %22 = vector.broadcast %21 : vector<1x512xf32> to vector<4x512xf32>
    %23 = arith.addf %20, %22 : vector<4x512xf32>
    %cst_16 = arith.constant 0.000000e+00 : f32
    %24 = vector.broadcast %cst_16 : f32 to vector<4x512xf32>
    %25 = arith.maximumf %23, %24 : vector<4x512xf32>
    %26 = arith.truncf %25 : vector<4x512xf32> to vector<4x512xbf16>
    %c1_17 = arith.constant 1 : index
    %c0_18 = arith.constant 0 : index
    %c0_19 = arith.constant 0 : index
    %27 = vector.load %arg2[%c1_17, %c0_18, %c0_19] : memref<16x512x128xbf16, #tpu.memory_space<vmem>>, vector<1x512x128xbf16>
    %28 = vector.shape_cast %27 : vector<1x512x128xbf16> to vector<512x128xbf16>
    %cst_20 = arith.constant dense<0.000000e+00> : vector<4x128xf32>
    %29 = tpu.matmul %26, %28, %cst_20 {dimension_numbers = #tpu.dot_dimension_numbers<[1], [0], [0], [1], [0, 0, 1, 1], [], []>} : vector<4x512xbf16>, vector<512x128xbf16>, vector<4x128xf32> -> vector<4x128xf32>
    %30 = arith.addf %14, %29 : vector<4x128xf32>
    %c0_21 = arith.constant 0 : index
    %c2 = arith.constant 2 : index
    %c0_22 = arith.constant 0 : index
    %31 = vector.load %arg1[%c0_21, %c2, %c0_22] : memref<1x24x512xbf16, #tpu.memory_space<vmem>>, vector<1x4x512xbf16>
    %32 = vector.shape_cast %31 : vector<1x4x512xbf16> to vector<4x512xbf16>
    %33 = arith.extf %32 : vector<4x512xbf16> to vector<4x512xf32>
    %c0_23 = arith.constant 0 : index
    %c0_24 = arith.constant 0 : index
    %34 = vector.load %arg3[%c0_23, %c0_24] : memref<1x512xf32, #tpu.memory_space<vmem>>, vector<1x512xf32>
    %35 = vector.broadcast %34 : vector<1x512xf32> to vector<4x512xf32>
    %36 = arith.mulf %33, %35 : vector<4x512xf32>
    %c0_25 = arith.constant 0 : index
    %c0_26 = arith.constant 0 : index
    %37 = vector.load %arg4[%c0_25, %c0_26] : memref<1x512xf32, #tpu.memory_space<vmem>>, vector<1x512xf32>
    %38 = vector.broadcast %37 : vector<1x512xf32> to vector<4x512xf32>
    %39 = arith.addf %36, %38 : vector<4x512xf32>
    %cst_27 = arith.constant 0.000000e+00 : f32
    %40 = vector.broadcast %cst_27 : f32 to vector<4x512xf32>
    %41 = arith.maximumf %39, %40 : vector<4x512xf32>
    %42 = arith.truncf %41 : vector<4x512xf32> to vector<4x512xbf16>
    %c2_28 = arith.constant 2 : index
    %c0_29 = arith.constant 0 : index
    %c0_30 = arith.constant 0 : index
    %43 = vector.load %arg2[%c2_28, %c0_29, %c0_30] : memref<16x512x128xbf16, #tpu.memory_space<vmem>>, vector<1x512x128xbf16>
    %44 = vector.shape_cast %43 : vector<1x512x128xbf16> to vector<512x128xbf16>
    %cst_31 = arith.constant dense<0.000000e+00> : vector<4x128xf32>
    %45 = tpu.matmul %42, %44, %cst_31 {dimension_numbers = #tpu.dot_dimension_numbers<[1], [0], [0], [1], [0, 0, 1, 1], [], []>} : vector<4x512xbf16>, vector<512x128xbf16>, vector<4x128xf32> -> vector<4x128xf32>
    %46 = arith.addf %30, %45 : vector<4x128xf32>
    %c0_32 = arith.constant 0 : index
    %c3 = arith.constant 3 : index
    %c0_33 = arith.constant 0 : index
    %47 = vector.load %arg1[%c0_32, %c3, %c0_33] : memref<1x24x512xbf16, #tpu.memory_space<vmem>>, vector<1x4x512xbf16>
    %48 = vector.shape_cast %47 : vector<1x4x512xbf16> to vector<4x512xbf16>
    %49 = arith.extf %48 : vector<4x512xbf16> to vector<4x512xf32>
    %c0_34 = arith.constant 0 : index
    %c0_35 = arith.constant 0 : index
    %50 = vector.load %arg3[%c0_34, %c0_35] : memref<1x512xf32, #tpu.memory_space<vmem>>, vector<1x512xf32>
    %51 = vector.broadcast %50 : vector<1x512xf32> to vector<4x512xf32>
    %52 = arith.mulf %49, %51 : vector<4x512xf32>
    %c0_36 = arith.constant 0 : index
    %c0_37 = arith.constant 0 : index
    %53 = vector.load %arg4[%c0_36, %c0_37] : memref<1x512xf32, #tpu.memory_space<vmem>>, vector<1x512xf32>
    %54 = vector.broadcast %53 : vector<1x512xf32> to vector<4x512xf32>
    %55 = arith.addf %52, %54 : vector<4x512xf32>
    %cst_38 = arith.constant 0.000000e+00 : f32
    %56 = vector.broadcast %cst_38 : f32 to vector<4x512xf32>
    %57 = arith.maximumf %55, %56 : vector<4x512xf32>
    %58 = arith.truncf %57 : vector<4x512xf32> to vector<4x512xbf16>
    %c3_39 = arith.constant 3 : index
    %c0_40 = arith.constant 0 : index
    %c0_41 = arith.constant 0 : index
    %59 = vector.load %arg2[%c3_39, %c0_40, %c0_41] : memref<16x512x128xbf16, #tpu.memory_space<vmem>>, vector<1x512x128xbf16>
    %60 = vector.shape_cast %59 : vector<1x512x128xbf16> to vector<512x128xbf16>
    %cst_42 = arith.constant dense<0.000000e+00> : vector<4x128xf32>
    %61 = tpu.matmul %58, %60, %cst_42 {dimension_numbers = #tpu.dot_dimension_numbers<[1], [0], [0], [1], [0, 0, 1, 1], [], []>} : vector<4x512xbf16>, vector<512x128xbf16>, vector<4x128xf32> -> vector<4x128xf32>
    %62 = arith.addf %46, %61 : vector<4x128xf32>
    %c0_43 = arith.constant 0 : index
    %c4 = arith.constant 4 : index
    %c0_44 = arith.constant 0 : index
    %63 = vector.load %arg1[%c0_43, %c4, %c0_44] : memref<1x24x512xbf16, #tpu.memory_space<vmem>>, vector<1x4x512xbf16>
    %64 = vector.shape_cast %63 : vector<1x4x512xbf16> to vector<4x512xbf16>
    %65 = arith.extf %64 : vector<4x512xbf16> to vector<4x512xf32>
    %c0_45 = arith.constant 0 : index
    %c0_46 = arith.constant 0 : index
    %66 = vector.load %arg3[%c0_45, %c0_46] : memref<1x512xf32, #tpu.memory_space<vmem>>, vector<1x512xf32>
    %67 = vector.broadcast %66 : vector<1x512xf32> to vector<4x512xf32>
    %68 = arith.mulf %65, %67 : vector<4x512xf32>
    %c0_47 = arith.constant 0 : index
    %c0_48 = arith.constant 0 : index
    %69 = vector.load %arg4[%c0_47, %c0_48] : memref<1x512xf32, #tpu.memory_space<vmem>>, vector<1x512xf32>
    %70 = vector.broadcast %69 : vector<1x512xf32> to vector<4x512xf32>
    %71 = arith.addf %68, %70 : vector<4x512xf32>
    %cst_49 = arith.constant 0.000000e+00 : f32
    %72 = vector.broadcast %cst_49 : f32 to vector<4x512xf32>
    %73 = arith.maximumf %71, %72 : vector<4x512xf32>
    %74 = arith.truncf %73 : vector<4x512xf32> to vector<4x512xbf16>
    %c4_50 = arith.constant 4 : index
    %c0_51 = arith.constant 0 : index
    %c0_52 = arith.constant 0 : index
    %75 = vector.load %arg2[%c4_50, %c0_51, %c0_52] : memref<16x512x128xbf16, #tpu.memory_space<vmem>>, vector<1x512x128xbf16>
    %76 = vector.shape_cast %75 : vector<1x512x128xbf16> to vector<512x128xbf16>
    %cst_53 = arith.constant dense<0.000000e+00> : vector<4x128xf32>
    %77 = tpu.matmul %74, %76, %cst_53 {dimension_numbers = #tpu.dot_dimension_numbers<[1], [0], [0], [1], [0, 0, 1, 1], [], []>} : vector<4x512xbf16>, vector<512x128xbf16>, vector<4x128xf32> -> vector<4x128xf32>
    %78 = arith.addf %62, %77 : vector<4x128xf32>
    %c0_54 = arith.constant 0 : index
    %c5 = arith.constant 5 : index
    %c0_55 = arith.constant 0 : index
    %79 = vector.load %arg1[%c0_54, %c5, %c0_55] : memref<1x24x512xbf16, #tpu.memory_space<vmem>>, vector<1x4x512xbf16>
    %80 = vector.shape_cast %79 : vector<1x4x512xbf16> to vector<4x512xbf16>
    %81 = arith.extf %80 : vector<4x512xbf16> to vector<4x512xf32>
    %c0_56 = arith.constant 0 : index
    %c0_57 = arith.constant 0 : index
    %82 = vector.load %arg3[%c0_56, %c0_57] : memref<1x512xf32, #tpu.memory_space<vmem>>, vector<1x512xf32>
    %83 = vector.broadcast %82 : vector<1x512xf32> to vector<4x512xf32>
    %84 = arith.mulf %81, %83 : vector<4x512xf32>
    %c0_58 = arith.constant 0 : index
    %c0_59 = arith.constant 0 : index
    %85 = vector.load %arg4[%c0_58, %c0_59] : memref<1x512xf32, #tpu.memory_space<vmem>>, vector<1x512xf32>
    %86 = vector.broadcast %85 : vector<1x512xf32> to vector<4x512xf32>
    %87 = arith.addf %84, %86 : vector<4x512xf32>
    %cst_60 = arith.constant 0.000000e+00 : f32
    %88 = vector.broadcast %cst_60 : f32 to vector<4x512xf32>
    %89 = arith.maximumf %87, %88 : vector<4x512xf32>
    %90 = arith.truncf %89 : vector<4x512xf32> to vector<4x512xbf16>
    %c5_61 = arith.constant 5 : index
    %c0_62 = arith.constant 0 : index
    %c0_63 = arith.constant 0 : index
    %91 = vector.load %arg2[%c5_61, %c0_62, %c0_63] : memref<16x512x128xbf16, #tpu.memory_space<vmem>>, vector<1x512x128xbf16>
    %92 = vector.shape_cast %91 : vector<1x512x128xbf16> to vector<512x128xbf16>
    %cst_64 = arith.constant dense<0.000000e+00> : vector<4x128xf32>
    %93 = tpu.matmul %90, %92, %cst_64 {dimension_numbers = #tpu.dot_dimension_numbers<[1], [0], [0], [1], [0, 0, 1, 1], [], []>} : vector<4x512xbf16>, vector<512x128xbf16>, vector<4x128xf32> -> vector<4x128xf32>
    %94 = arith.addf %78, %93 : vector<4x128xf32>
    %c0_65 = arith.constant 0 : index
    %c6 = arith.constant 6 : index
    %c0_66 = arith.constant 0 : index
    %95 = vector.load %arg1[%c0_65, %c6, %c0_66] : memref<1x24x512xbf16, #tpu.memory_space<vmem>>, vector<1x4x512xbf16>
    %96 = vector.shape_cast %95 : vector<1x4x512xbf16> to vector<4x512xbf16>
    %97 = arith.extf %96 : vector<4x512xbf16> to vector<4x512xf32>
    %c0_67 = arith.constant 0 : index
    %c0_68 = arith.constant 0 : index
    %98 = vector.load %arg3[%c0_67, %c0_68] : memref<1x512xf32, #tpu.memory_space<vmem>>, vector<1x512xf32>
    %99 = vector.broadcast %98 : vector<1x512xf32> to vector<4x512xf32>
    %100 = arith.mulf %97, %99 : vector<4x512xf32>
    %c0_69 = arith.constant 0 : index
    %c0_70 = arith.constant 0 : index
    %101 = vector.load %arg4[%c0_69, %c0_70] : memref<1x512xf32, #tpu.memory_space<vmem>>, vector<1x512xf32>
    %102 = vector.broadcast %101 : vector<1x512xf32> to vector<4x512xf32>
    %103 = arith.addf %100, %102 : vector<4x512xf32>
    %cst_71 = arith.constant 0.000000e+00 : f32
    %104 = vector.broadcast %cst_71 : f32 to vector<4x512xf32>
    %105 = arith.maximumf %103, %104 : vector<4x512xf32>
    %106 = arith.truncf %105 : vector<4x512xf32> to vector<4x512xbf16>
    %c6_72 = arith.constant 6 : index
    %c0_73 = arith.constant 0 : index
    %c0_74 = arith.constant 0 : index
    %107 = vector.load %arg2[%c6_72, %c0_73, %c0_74] : memref<16x512x128xbf16, #tpu.memory_space<vmem>>, vector<1x512x128xbf16>
    %108 = vector.shape_cast %107 : vector<1x512x128xbf16> to vector<512x128xbf16>
    %cst_75 = arith.constant dense<0.000000e+00> : vector<4x128xf32>
    %109 = tpu.matmul %106, %108, %cst_75 {dimension_numbers = #tpu.dot_dimension_numbers<[1], [0], [0], [1], [0, 0, 1, 1], [], []>} : vector<4x512xbf16>, vector<512x128xbf16>, vector<4x128xf32> -> vector<4x128xf32>
    %110 = arith.addf %94, %109 : vector<4x128xf32>
    %c0_76 = arith.constant 0 : index
    %c7 = arith.constant 7 : index
    %c0_77 = arith.constant 0 : index
    %111 = vector.load %arg1[%c0_76, %c7, %c0_77] : memref<1x24x512xbf16, #tpu.memory_space<vmem>>, vector<1x4x512xbf16>
    %112 = vector.shape_cast %111 : vector<1x4x512xbf16> to vector<4x512xbf16>
    %113 = arith.extf %112 : vector<4x512xbf16> to vector<4x512xf32>
    %c0_78 = arith.constant 0 : index
    %c0_79 = arith.constant 0 : index
    %114 = vector.load %arg3[%c0_78, %c0_79] : memref<1x512xf32, #tpu.memory_space<vmem>>, vector<1x512xf32>
    %115 = vector.broadcast %114 : vector<1x512xf32> to vector<4x512xf32>
    %116 = arith.mulf %113, %115 : vector<4x512xf32>
    %c0_80 = arith.constant 0 : index
    %c0_81 = arith.constant 0 : index
    %117 = vector.load %arg4[%c0_80, %c0_81] : memref<1x512xf32, #tpu.memory_space<vmem>>, vector<1x512xf32>
    %118 = vector.broadcast %117 : vector<1x512xf32> to vector<4x512xf32>
    %119 = arith.addf %116, %118 : vector<4x512xf32>
    %cst_82 = arith.constant 0.000000e+00 : f32
    %120 = vector.broadcast %cst_82 : f32 to vector<4x512xf32>
    %121 = arith.maximumf %119, %120 : vector<4x512xf32>
    %122 = arith.truncf %121 : vector<4x512xf32> to vector<4x512xbf16>
    %c7_83 = arith.constant 7 : index
    %c0_84 = arith.constant 0 : index
    %c0_85 = arith.constant 0 : index
    %123 = vector.load %arg2[%c7_83, %c0_84, %c0_85] : memref<16x512x128xbf16, #tpu.memory_space<vmem>>, vector<1x512x128xbf16>
    %124 = vector.shape_cast %123 : vector<1x512x128xbf16> to vector<512x128xbf16>
    %cst_86 = arith.constant dense<0.000000e+00> : vector<4x128xf32>
    %125 = tpu.matmul %122, %124, %cst_86 {dimension_numbers = #tpu.dot_dimension_numbers<[1], [0], [0], [1], [0, 0, 1, 1], [], []>} : vector<4x512xbf16>, vector<512x128xbf16>, vector<4x128xf32> -> vector<4x128xf32>
    %126 = arith.addf %110, %125 : vector<4x128xf32>
    %c0_87 = arith.constant 0 : index
    %c8 = arith.constant 8 : index
    %c0_88 = arith.constant 0 : index
    %127 = vector.load %arg1[%c0_87, %c8, %c0_88] : memref<1x24x512xbf16, #tpu.memory_space<vmem>>, vector<1x4x512xbf16>
    %128 = vector.shape_cast %127 : vector<1x4x512xbf16> to vector<4x512xbf16>
    %129 = arith.extf %128 : vector<4x512xbf16> to vector<4x512xf32>
    %c0_89 = arith.constant 0 : index
    %c0_90 = arith.constant 0 : index
    %130 = vector.load %arg3[%c0_89, %c0_90] : memref<1x512xf32, #tpu.memory_space<vmem>>, vector<1x512xf32>
    %131 = vector.broadcast %130 : vector<1x512xf32> to vector<4x512xf32>
    %132 = arith.mulf %129, %131 : vector<4x512xf32>
    %c0_91 = arith.constant 0 : index
    %c0_92 = arith.constant 0 : index
    %133 = vector.load %arg4[%c0_91, %c0_92] : memref<1x512xf32, #tpu.memory_space<vmem>>, vector<1x512xf32>
    %134 = vector.broadcast %133 : vector<1x512xf32> to vector<4x512xf32>
    %135 = arith.addf %132, %134 : vector<4x512xf32>
    %cst_93 = arith.constant 0.000000e+00 : f32
    %136 = vector.broadcast %cst_93 : f32 to vector<4x512xf32>
    %137 = arith.maximumf %135, %136 : vector<4x512xf32>
    %138 = arith.truncf %137 : vector<4x512xf32> to vector<4x512xbf16>
    %c8_94 = arith.constant 8 : index
    %c0_95 = arith.constant 0 : index
    %c0_96 = arith.constant 0 : index
    %139 = vector.load %arg2[%c8_94, %c0_95, %c0_96] : memref<16x512x128xbf16, #tpu.memory_space<vmem>>, vector<1x512x128xbf16>
    %140 = vector.shape_cast %139 : vector<1x512x128xbf16> to vector<512x128xbf16>
    %cst_97 = arith.constant dense<0.000000e+00> : vector<4x128xf32>
    %141 = tpu.matmul %138, %140, %cst_97 {dimension_numbers = #tpu.dot_dimension_numbers<[1], [0], [0], [1], [0, 0, 1, 1], [], []>} : vector<4x512xbf16>, vector<512x128xbf16>, vector<4x128xf32> -> vector<4x128xf32>
    %142 = arith.addf %126, %141 : vector<4x128xf32>
    %c0_98 = arith.constant 0 : index
    %c9 = arith.constant 9 : index
    %c0_99 = arith.constant 0 : index
    %143 = vector.load %arg1[%c0_98, %c9, %c0_99] : memref<1x24x512xbf16, #tpu.memory_space<vmem>>, vector<1x4x512xbf16>
    %144 = vector.shape_cast %143 : vector<1x4x512xbf16> to vector<4x512xbf16>
    %145 = arith.extf %144 : vector<4x512xbf16> to vector<4x512xf32>
    %c0_100 = arith.constant 0 : index
    %c0_101 = arith.constant 0 : index
    %146 = vector.load %arg3[%c0_100, %c0_101] : memref<1x512xf32, #tpu.memory_space<vmem>>, vector<1x512xf32>
    %147 = vector.broadcast %146 : vector<1x512xf32> to vector<4x512xf32>
    %148 = arith.mulf %145, %147 : vector<4x512xf32>
    %c0_102 = arith.constant 0 : index
    %c0_103 = arith.constant 0 : index
    %149 = vector.load %arg4[%c0_102, %c0_103] : memref<1x512xf32, #tpu.memory_space<vmem>>, vector<1x512xf32>
    %150 = vector.broadcast %149 : vector<1x512xf32> to vector<4x512xf32>
    %151 = arith.addf %148, %150 : vector<4x512xf32>
    %cst_104 = arith.constant 0.000000e+00 : f32
    %152 = vector.broadcast %cst_104 : f32 to vector<4x512xf32>
    %153 = arith.maximumf %151, %152 : vector<4x512xf32>
    %154 = arith.truncf %153 : vector<4x512xf32> to vector<4x512xbf16>
    %c9_105 = arith.constant 9 : index
    %c0_106 = arith.constant 0 : index
    %c0_107 = arith.constant 0 : index
    %155 = vector.load %arg2[%c9_105, %c0_106, %c0_107] : memref<16x512x128xbf16, #tpu.memory_space<vmem>>, vector<1x512x128xbf16>
    %156 = vector.shape_cast %155 : vector<1x512x128xbf16> to vector<512x128xbf16>
    %cst_108 = arith.constant dense<0.000000e+00> : vector<4x128xf32>
    %157 = tpu.matmul %154, %156, %cst_108 {dimension_numbers = #tpu.dot_dimension_numbers<[1], [0], [0], [1], [0, 0, 1, 1], [], []>} : vector<4x512xbf16>, vector<512x128xbf16>, vector<4x128xf32> -> vector<4x128xf32>
    %158 = arith.addf %142, %157 : vector<4x128xf32>
    %c0_109 = arith.constant 0 : index
    %c10 = arith.constant 10 : index
    %c0_110 = arith.constant 0 : index
    %159 = vector.load %arg1[%c0_109, %c10, %c0_110] : memref<1x24x512xbf16, #tpu.memory_space<vmem>>, vector<1x4x512xbf16>
    %160 = vector.shape_cast %159 : vector<1x4x512xbf16> to vector<4x512xbf16>
    %161 = arith.extf %160 : vector<4x512xbf16> to vector<4x512xf32>
    %c0_111 = arith.constant 0 : index
    %c0_112 = arith.constant 0 : index
    %162 = vector.load %arg3[%c0_111, %c0_112] : memref<1x512xf32, #tpu.memory_space<vmem>>, vector<1x512xf32>
    %163 = vector.broadcast %162 : vector<1x512xf32> to vector<4x512xf32>
    %164 = arith.mulf %161, %163 : vector<4x512xf32>
    %c0_113 = arith.constant 0 : index
    %c0_114 = arith.constant 0 : index
    %165 = vector.load %arg4[%c0_113, %c0_114] : memref<1x512xf32, #tpu.memory_space<vmem>>, vector<1x512xf32>
    %166 = vector.broadcast %165 : vector<1x512xf32> to vector<4x512xf32>
    %167 = arith.addf %164, %166 : vector<4x512xf32>
    %cst_115 = arith.constant 0.000000e+00 : f32
    %168 = vector.broadcast %cst_115 : f32 to vector<4x512xf32>
    %169 = arith.maximumf %167, %168 : vector<4x512xf32>
    %170 = arith.truncf %169 : vector<4x512xf32> to vector<4x512xbf16>
    %c10_116 = arith.constant 10 : index
    %c0_117 = arith.constant 0 : index
    %c0_118 = arith.constant 0 : index
    %171 = vector.load %arg2[%c10_116, %c0_117, %c0_118] : memref<16x512x128xbf16, #tpu.memory_space<vmem>>, vector<1x512x128xbf16>
    %172 = vector.shape_cast %171 : vector<1x512x128xbf16> to vector<512x128xbf16>
    %cst_119 = arith.constant dense<0.000000e+00> : vector<4x128xf32>
    %173 = tpu.matmul %170, %172, %cst_119 {dimension_numbers = #tpu.dot_dimension_numbers<[1], [0], [0], [1], [0, 0, 1, 1], [], []>} : vector<4x512xbf16>, vector<512x128xbf16>, vector<4x128xf32> -> vector<4x128xf32>
    %174 = arith.addf %158, %173 : vector<4x128xf32>
    %c0_120 = arith.constant 0 : index
    %c11 = arith.constant 11 : index
    %c0_121 = arith.constant 0 : index
    %175 = vector.load %arg1[%c0_120, %c11, %c0_121] : memref<1x24x512xbf16, #tpu.memory_space<vmem>>, vector<1x4x512xbf16>
    %176 = vector.shape_cast %175 : vector<1x4x512xbf16> to vector<4x512xbf16>
    %177 = arith.extf %176 : vector<4x512xbf16> to vector<4x512xf32>
    %c0_122 = arith.constant 0 : index
    %c0_123 = arith.constant 0 : index
    %178 = vector.load %arg3[%c0_122, %c0_123] : memref<1x512xf32, #tpu.memory_space<vmem>>, vector<1x512xf32>
    %179 = vector.broadcast %178 : vector<1x512xf32> to vector<4x512xf32>
    %180 = arith.mulf %177, %179 : vector<4x512xf32>
    %c0_124 = arith.constant 0 : index
    %c0_125 = arith.constant 0 : index
    %181 = vector.load %arg4[%c0_124, %c0_125] : memref<1x512xf32, #tpu.memory_space<vmem>>, vector<1x512xf32>
    %182 = vector.broadcast %181 : vector<1x512xf32> to vector<4x512xf32>
    %183 = arith.addf %180, %182 : vector<4x512xf32>
    %cst_126 = arith.constant 0.000000e+00 : f32
    %184 = vector.broadcast %cst_126 : f32 to vector<4x512xf32>
    %185 = arith.maximumf %183, %184 : vector<4x512xf32>
    %186 = arith.truncf %185 : vector<4x512xf32> to vector<4x512xbf16>
    %c11_127 = arith.constant 11 : index
    %c0_128 = arith.constant 0 : index
    %c0_129 = arith.constant 0 : index
    %187 = vector.load %arg2[%c11_127, %c0_128, %c0_129] : memref<16x512x128xbf16, #tpu.memory_space<vmem>>, vector<1x512x128xbf16>
    %188 = vector.shape_cast %187 : vector<1x512x128xbf16> to vector<512x128xbf16>
    %cst_130 = arith.constant dense<0.000000e+00> : vector<4x128xf32>
    %189 = tpu.matmul %186, %188, %cst_130 {dimension_numbers = #tpu.dot_dimension_numbers<[1], [0], [0], [1], [0, 0, 1, 1], [], []>} : vector<4x512xbf16>, vector<512x128xbf16>, vector<4x128xf32> -> vector<4x128xf32>
    %190 = arith.addf %174, %189 : vector<4x128xf32>
    %c0_131 = arith.constant 0 : index
    %c12 = arith.constant 12 : index
    %c0_132 = arith.constant 0 : index
    %191 = vector.load %arg1[%c0_131, %c12, %c0_132] : memref<1x24x512xbf16, #tpu.memory_space<vmem>>, vector<1x4x512xbf16>
    %192 = vector.shape_cast %191 : vector<1x4x512xbf16> to vector<4x512xbf16>
    %193 = arith.extf %192 : vector<4x512xbf16> to vector<4x512xf32>
    %c0_133 = arith.constant 0 : index
    %c0_134 = arith.constant 0 : index
    %194 = vector.load %arg3[%c0_133, %c0_134] : memref<1x512xf32, #tpu.memory_space<vmem>>, vector<1x512xf32>
    %195 = vector.broadcast %194 : vector<1x512xf32> to vector<4x512xf32>
    %196 = arith.mulf %193, %195 : vector<4x512xf32>
    %c0_135 = arith.constant 0 : index
    %c0_136 = arith.constant 0 : index
    %197 = vector.load %arg4[%c0_135, %c0_136] : memref<1x512xf32, #tpu.memory_space<vmem>>, vector<1x512xf32>
    %198 = vector.broadcast %197 : vector<1x512xf32> to vector<4x512xf32>
    %199 = arith.addf %196, %198 : vector<4x512xf32>
    %cst_137 = arith.constant 0.000000e+00 : f32
    %200 = vector.broadcast %cst_137 : f32 to vector<4x512xf32>
    %201 = arith.maximumf %199, %200 : vector<4x512xf32>
    %202 = arith.truncf %201 : vector<4x512xf32> to vector<4x512xbf16>
    %c12_138 = arith.constant 12 : index
    %c0_139 = arith.constant 0 : index
    %c0_140 = arith.constant 0 : index
    %203 = vector.load %arg2[%c12_138, %c0_139, %c0_140] : memref<16x512x128xbf16, #tpu.memory_space<vmem>>, vector<1x512x128xbf16>
    %204 = vector.shape_cast %203 : vector<1x512x128xbf16> to vector<512x128xbf16>
    %cst_141 = arith.constant dense<0.000000e+00> : vector<4x128xf32>
    %205 = tpu.matmul %202, %204, %cst_141 {dimension_numbers = #tpu.dot_dimension_numbers<[1], [0], [0], [1], [0, 0, 1, 1], [], []>} : vector<4x512xbf16>, vector<512x128xbf16>, vector<4x128xf32> -> vector<4x128xf32>
    %206 = arith.addf %190, %205 : vector<4x128xf32>
    %c0_142 = arith.constant 0 : index
    %c13 = arith.constant 13 : index
    %c0_143 = arith.constant 0 : index
    %207 = vector.load %arg1[%c0_142, %c13, %c0_143] : memref<1x24x512xbf16, #tpu.memory_space<vmem>>, vector<1x4x512xbf16>
    %208 = vector.shape_cast %207 : vector<1x4x512xbf16> to vector<4x512xbf16>
    %209 = arith.extf %208 : vector<4x512xbf16> to vector<4x512xf32>
    %c0_144 = arith.constant 0 : index
    %c0_145 = arith.constant 0 : index
    %210 = vector.load %arg3[%c0_144, %c0_145] : memref<1x512xf32, #tpu.memory_space<vmem>>, vector<1x512xf32>
    %211 = vector.broadcast %210 : vector<1x512xf32> to vector<4x512xf32>
    %212 = arith.mulf %209, %211 : vector<4x512xf32>
    %c0_146 = arith.constant 0 : index
    %c0_147 = arith.constant 0 : index
    %213 = vector.load %arg4[%c0_146, %c0_147] : memref<1x512xf32, #tpu.memory_space<vmem>>, vector<1x512xf32>
    %214 = vector.broadcast %213 : vector<1x512xf32> to vector<4x512xf32>
    %215 = arith.addf %212, %214 : vector<4x512xf32>
    %cst_148 = arith.constant 0.000000e+00 : f32
    %216 = vector.broadcast %cst_148 : f32 to vector<4x512xf32>
    %217 = arith.maximumf %215, %216 : vector<4x512xf32>
    %218 = arith.truncf %217 : vector<4x512xf32> to vector<4x512xbf16>
    %c13_149 = arith.constant 13 : index
    %c0_150 = arith.constant 0 : index
    %c0_151 = arith.constant 0 : index
    %219 = vector.load %arg2[%c13_149, %c0_150, %c0_151] : memref<16x512x128xbf16, #tpu.memory_space<vmem>>, vector<1x512x128xbf16>
    %220 = vector.shape_cast %219 : vector<1x512x128xbf16> to vector<512x128xbf16>
    %cst_152 = arith.constant dense<0.000000e+00> : vector<4x128xf32>
    %221 = tpu.matmul %218, %220, %cst_152 {dimension_numbers = #tpu.dot_dimension_numbers<[1], [0], [0], [1], [0, 0, 1, 1], [], []>} : vector<4x512xbf16>, vector<512x128xbf16>, vector<4x128xf32> -> vector<4x128xf32>
    %222 = arith.addf %206, %221 : vector<4x128xf32>
    %c0_153 = arith.constant 0 : index
    %c14 = arith.constant 14 : index
    %c0_154 = arith.constant 0 : index
    %223 = vector.load %arg1[%c0_153, %c14, %c0_154] : memref<1x24x512xbf16, #tpu.memory_space<vmem>>, vector<1x4x512xbf16>
    %224 = vector.shape_cast %223 : vector<1x4x512xbf16> to vector<4x512xbf16>
    %225 = arith.extf %224 : vector<4x512xbf16> to vector<4x512xf32>
    %c0_155 = arith.constant 0 : index
    %c0_156 = arith.constant 0 : index
    %226 = vector.load %arg3[%c0_155, %c0_156] : memref<1x512xf32, #tpu.memory_space<vmem>>, vector<1x512xf32>
    %227 = vector.broadcast %226 : vector<1x512xf32> to vector<4x512xf32>
    %228 = arith.mulf %225, %227 : vector<4x512xf32>
    %c0_157 = arith.constant 0 : index
    %c0_158 = arith.constant 0 : index
    %229 = vector.load %arg4[%c0_157, %c0_158] : memref<1x512xf32, #tpu.memory_space<vmem>>, vector<1x512xf32>
    %230 = vector.broadcast %229 : vector<1x512xf32> to vector<4x512xf32>
    %231 = arith.addf %228, %230 : vector<4x512xf32>
    %cst_159 = arith.constant 0.000000e+00 : f32
    %232 = vector.broadcast %cst_159 : f32 to vector<4x512xf32>
    %233 = arith.maximumf %231, %232 : vector<4x512xf32>
    %234 = arith.truncf %233 : vector<4x512xf32> to vector<4x512xbf16>
    %c14_160 = arith.constant 14 : index
    %c0_161 = arith.constant 0 : index
    %c0_162 = arith.constant 0 : index
    %235 = vector.load %arg2[%c14_160, %c0_161, %c0_162] : memref<16x512x128xbf16, #tpu.memory_space<vmem>>, vector<1x512x128xbf16>
    %236 = vector.shape_cast %235 : vector<1x512x128xbf16> to vector<512x128xbf16>
    %cst_163 = arith.constant dense<0.000000e+00> : vector<4x128xf32>
    %237 = tpu.matmul %234, %236, %cst_163 {dimension_numbers = #tpu.dot_dimension_numbers<[1], [0], [0], [1], [0, 0, 1, 1], [], []>} : vector<4x512xbf16>, vector<512x128xbf16>, vector<4x128xf32> -> vector<4x128xf32>
    %238 = arith.addf %222, %237 : vector<4x128xf32>
    %c0_164 = arith.constant 0 : index
    %c15 = arith.constant 15 : index
    %c0_165 = arith.constant 0 : index
    %239 = vector.load %arg1[%c0_164, %c15, %c0_165] : memref<1x24x512xbf16, #tpu.memory_space<vmem>>, vector<1x4x512xbf16>
    %240 = vector.shape_cast %239 : vector<1x4x512xbf16> to vector<4x512xbf16>
    %241 = arith.extf %240 : vector<4x512xbf16> to vector<4x512xf32>
    %c0_166 = arith.constant 0 : index
    %c0_167 = arith.constant 0 : index
    %242 = vector.load %arg3[%c0_166, %c0_167] : memref<1x512xf32, #tpu.memory_space<vmem>>, vector<1x512xf32>
    %243 = vector.broadcast %242 : vector<1x512xf32> to vector<4x512xf32>
    %244 = arith.mulf %241, %243 : vector<4x512xf32>
    %c0_168 = arith.constant 0 : index
    %c0_169 = arith.constant 0 : index
    %245 = vector.load %arg4[%c0_168, %c0_169] : memref<1x512xf32, #tpu.memory_space<vmem>>, vector<1x512xf32>
    %246 = vector.broadcast %245 : vector<1x512xf32> to vector<4x512xf32>
    %247 = arith.addf %244, %246 : vector<4x512xf32>
    %cst_170 = arith.constant 0.000000e+00 : f32
    %248 = vector.broadcast %cst_170 : f32 to vector<4x512xf32>
    %249 = arith.maximumf %247, %248 : vector<4x512xf32>
    %250 = arith.truncf %249 : vector<4x512xf32> to vector<4x512xbf16>
    %c15_171 = arith.constant 15 : index
    %c0_172 = arith.constant 0 : index
    %c0_173 = arith.constant 0 : index
    %251 = vector.load %arg2[%c15_171, %c0_172, %c0_173] : memref<16x512x128xbf16, #tpu.memory_space<vmem>>, vector<1x512x128xbf16>
    %252 = vector.shape_cast %251 : vector<1x512x128xbf16> to vector<512x128xbf16>
    %cst_174 = arith.constant dense<0.000000e+00> : vector<4x128xf32>
    %253 = tpu.matmul %250, %252, %cst_174 {dimension_numbers = #tpu.dot_dimension_numbers<[1], [0], [0], [1], [0, 0, 1, 1], [], []>} : vector<4x512xbf16>, vector<512x128xbf16>, vector<4x128xf32> -> vector<4x128xf32>
    %254 = arith.addf %238, %253 : vector<4x128xf32>
    %c0_175 = arith.constant 0 : index
    %c0_176 = arith.constant 0 : index
    %255 = vector.load %arg5[%c0_175, %c0_176] : memref<1x128xf32, #tpu.memory_space<vmem>>, vector<1x128xf32>
    %256 = vector.broadcast %255 : vector<1x128xf32> to vector<4x128xf32>
    %257 = arith.addf %254, %256 : vector<4x128xf32>
    %258 = arith.truncf %257 : vector<4x128xf32> to vector<4x128xbf16>
    %c0_177 = arith.constant 0 : index
    %c0_178 = arith.constant 0 : index
    %c0_179 = arith.constant 0 : index
    %259 = vector.load %arg6[%c0_177, %c0_178, %c0_179] : memref<1x4x128xbf16, #tpu.memory_space<vmem>>, vector<1x4x128xbf16>
    %260 = vector.shape_cast %259 : vector<1x4x128xbf16> to vector<4x128xbf16>
    %261 = vector.shape_cast %258 : vector<4x128xbf16> to vector<1x4x128xbf16>
    tpu.vector_store %arg6[%c0_177, %c0_178, %c0_179], %261 {strides = array<i32>} : memref<1x4x128xbf16, #tpu.memory_space<vmem>>, vector<1x4x128xbf16>,
    return
  }
  func.func @transform_0(%arg0: i32) -> (i32, i32, i32) {
    %c0_i32 = arith.constant 0 : i32
    %c0_i32_0 = arith.constant 0 : i32
    %c0_i32_1 = arith.constant 0 : i32
    return %arg0, %c0_i32, %c0_i32_0 : i32, i32, i32
  }
  func.func @transform_1(%arg0: i32) -> (i32, i32, i32) {
    %c0_i32 = arith.constant 0 : i32
    %c0_i32_0 = arith.constant 0 : i32
    %c0_i32_1 = arith.constant 0 : i32
    %c0_i32_2 = arith.constant 0 : i32
    return %c0_i32, %c0_i32_0, %c0_i32_1 : i32, i32, i32
  }
  func.func @transform_2(%arg0: i32) -> (i32, i32) {
    %c0_i32 = arith.constant 0 : i32
    %c0_i32_0 = arith.constant 0 : i32
    %c0_i32_1 = arith.constant 0 : i32
    return %c0_i32, %c0_i32_0 : i32, i32
  }
  func.func @transform_3(%arg0: i32) -> (i32, i32) {
    %c0_i32 = arith.constant 0 : i32
    %c0_i32_0 = arith.constant 0 : i32
    %c0_i32_1 = arith.constant 0 : i32
    return %c0_i32, %c0_i32_0 : i32, i32
  }
  func.func @transform_4(%arg0: i32) -> (i32, i32) {
    %c0_i32 = arith.constant 0 : i32
    %c0_i32_0 = arith.constant 0 : i32
    %c0_i32_1 = arith.constant 0 : i32
    return %c0_i32, %c0_i32_0 : i32, i32
  }
  func.func @transform_5(%arg0: i32) -> (i32, i32, i32) {
    %c0_i32 = arith.constant 0 : i32
    %c0_i32_0 = arith.constant 0 : i32
    %c0_i32_1 = arith.constant 0 : i32
    return %arg0, %c0_i32, %c0_i32_0 : i32, i32, i32
  }
}

</mosaic_0001>

<bundles_post_ra>
// kernel: tile.23
= control target key start
LH: loop header
LB: loop body
LE: loop exit
PB: predicated region body
PF: predicated region fallthrough
CT: control target
= control target key end

     0   :  { %s22_s0 = inlined_call_operand.vmem [shape: f32[64], index: 0, kind: input, shape index: {}]   ;;  %s23_s1 = inlined_call_operand.vmem [shape: f32[4,64], index: 1, kind: output, shape index: {}]  }
   0x1   :  { %v4_v0 = vld [vmem:[%s22_s0] ss:$0 sm:$0xff] }
   0x2   :  { %5 = vst [vmem:[%s23_s1] sm:$0xf] %v4_v0 }

// kernel: tile.24
= control target key start
LH: loop header
LB: loop body
LE: loop exit
PB: predicated region body
PF: predicated region fallthrough
CT: control target
= control target key end

     0   :  { %s6_s8 = smov 3  ;;  %vm8_vm0 = vcmask 523264   ;;  %s31_s9 = smov 64   ;;  %vm15_vm1 = vcmask 1048064   ;;  %s51_s0 = inlined_call_operand.vmem [shape: f32[4,64], index: 0, kind: input, shape index: {}]   ;;  %s52_s1 = inlined_call_operand.vmem [shape: f32[1,256], index: 1, kind: output, shape index: {}]  }
   0x1   :  { %v4_v0 = vld [vmem:[%s51_s0] sm:$0xf]  ;;  %s11_s0 = smov 3 }
   0x2   :  { %5 = vst [vmem:[#allocation1] sm:$0xf] %v4_v0 }
   0x9   :  { %v12_v1 = vld [vmem:[#allocation1 + $0x1] ss:$2 sm:%s11_s0]   ;;  %v7_v2 = vld [vmem:[#allocation1] ss:$2 sm:%s6_s8]  }
   0xa   :  { %13 = vrot.lane.b32.xlu0 %v12_v1, %s31_s9  ;;  %9 = vst.msk [vmem:[#allocation0] ss:$8 sm:$0x3] %vm8_vm0, %v7_v2  }
  0x7c   :  { %v14_v3 = vpop.permute.xlu0 %13  }
  0x7d   :  { %16 = vst.msk [vmem:[#allocation0] ss:$8 sm:$0x3] %vm15_vm1, %v14_v3  }
  0x84   :  { %v19_v4 = vld [vmem:[#allocation0] sm:$0x1]  ;;  %v24_v5 = vld [vmem:[#allocation0 + $0x8] sm:$0x1] }
  0x85   :  { %22 = vst [vmem:[%s52_s1] sm:$0x1] %v19_v4 }
  0x86   :  { %29 = vst [vmem:[%s52_s1 + $0x1] sm:$0x1] %v24_v5 }

// kernel: discriminator.4
= control target key start
LH: loop header
LB: loop body
LE: loop exit
PB: predicated region body
PF: predicated region fallthrough
CT: control target
= control target key end

     0   :  { %s1021_s15 = smov 0   ;;  %s1168_s0 = inlined_call_operand.vmem [shape: bf16[2,89,32], index: 0, kind: input, shape index: {}]   ;;  %s1169_s1 = inlined_call_operand.vmem [shape: bf16[4,32,64], index: 1, kind: input, shape index: {}]   ;;  %s1170_s2 = inlined_call_operand.vmem [shape: bf16[2,72,64], index: 2, kind: output, shape index: {0}]   ;;  %s1171_s3 = inlined_call_operand.vmem [shape: f32[2,1,8,64], index: 3, kind: output, shape index: {1}]   ;;  %s1172_s4 = inlined_call_operand.vmem [shape: f32[2,1,8,64], index: 4, kind: output, shape index: {2}]  }
   0x1 LB: > { %s852_s16 = sadd.s32 4294967295, %s994_s15   ;;  %p856_p0 = scmp.ge.s32.totalorder %s994_s15, 1  ;;  %s994_s15 = sphi %s1021_s15, %s15_s15  }
   0x2   : > { %p167_p1 = scmp.lt.s32.totalorder %s994_s15, 3 }
   0x4   : > { %p168_p2 = pnand %p856_p0, %p167_p1 }
   0x5   : > { %p201_p3 = scmp.lt.s32.totalorder (!%p168_p2), %s852_s16, 1 }
   0x6   : > { %171 = sbr.rel (%p168_p2) target bundleno = 242 (0xf2), region = 28 }
   0xb   : > { %v964_v0 = vld [vmem:[%s1169_s1 + $0x8] sm:$0xff]  ;;  %v974_v1 = vld [vmem:[%s1169_s1 + $0x38] sm:$0xff]  ;;  %v963_v4 = vld [vmem:[%s1169_s1] sm:$0xff]  ;;  %s1174_s16 = smov (!%p201_p3, %s852_s16), 1  ;;  %vm316_vm0 = vcmask 261120   ;;  %vm579_vm1 = vcmask 1046528  }
   0xc   : > { %v966_v2 = vld [vmem:[%s1169_s1 + $0x18] sm:$0xff]  ;;  %v972_v3 = vld [vmem:[%s1169_s1 + $0x28] sm:$0xff]  ;;  %395 = vmatpush.bf16.msra.mxu1 %v964_v0  ;;  %622 = vmatpush.bf16.msra.mxu3 %v974_v1  ;;  %v973_v5 = vld [vmem:[%s1169_s1 + $0x30] sm:$0xff]  ;;  %s975_s7 = smul.u32 48, %s1174_s16  ;;  %vm264_vm2 = vsmask.f32 7424 }
   0xd   : > { %338 = vmatpush.bf16.msra.mxu0 %v966_v2  ;;  %534 = vmatpush.bf16.msra.mxu2 %v972_v3  ;;  %v965_v6 = vld [vmem:[%s1169_s1 + $0x10] sm:$0xff]  ;;  %v971_v7 = vld [vmem:[%s1169_s1 + $0x20] sm:$0xff]  ;;  %s976_s11 = smul.u32 36, %s1174_s16  ;;  %vm667_vm3 = vcmask 519168   ;;  %vm677_vm4 = vcmask 523264   ;;  %s859_s17 = sshll.u32 %s1174_s16, 3 }
   0xe   : > { %s1059_s10 = scalar_lea.vmem %s1168_s0, %s975_s7  ;;  %s214_s20 = scalar_lea.vmem %s1171_s3, %s859_s17 }
   0xf   : > { %v959_v8 = vld [vmem:[%s1059_s10] sm:$0xff]  ;;  %v985_v10 = vld [vmem:[%s1059_s10 + $0x4] sm:$0xf0]  ;;  %v967_v11 = vld [vmem:[%s1059_s10 + $0xc] sm:$0xff]  ;;  %s1113_s14 = scalar_lea.vmem %s1170_s2, %s976_s11  ;;  %s218_s23 = scalar_lea.vmem %s1172_s4, %s859_s17 }
  0x10   : > { %396 = vmatpush.bf16.msra.mxu1 %v963_v4  ;;  %623 = vmatpush.bf16.msra.mxu3 %v973_v5  ;;  %v423_v9 = vld [vmem:[%s1059_s10 + $0x4] sm:$0xff]   ;;  %v268_v14 = vshll.u32 %v959_v8, 16  ;;  %v266_v15 = vshrl.u32 %v959_v8, 16  ;;  %v470_v17 = vshll.u32 %v967_v11, 16  ;;  %v581_v19 = vrot.slane %v967_v11, 1  ;;  %v961_v31 = vld [vmem:[%s1059_s10 + $0x10] sm:$0xff] }
  0x11   : > { %339 = vmatpush.bf16.msra.mxu0 %v965_v6  ;;  %535 = vmatpush.bf16.msra.mxu2 %v971_v7  ;;  %v986_v12 = vld [vmem:[%s1059_s10 + $0x4] sm:$0xe]  ;;  %v960_v13 = vld [vmem:[%s1059_s10 + $0x8] sm:$0xff]  ;;  %v463_v22 = vshrl.u32 %v423_v9, 16  ;;  %v465_v23 = vshll.u32 %v423_v9, 16  ;;  %v968_v33 = vld [vmem:[%s1059_s10 + $0x14] sm:$0xff] }
  0x12   : > { %v273_v16 = vshll.u32 %v960_v13, 16  ;;  %v987_v18 = vor.u32 %v986_v12, %v985_v10  ;;  %v270_v20 = vrot.slane %v268_v14, 1  ;;  %v472_v27 = vrot.slane %v470_v17, 1  ;;  %v962_v46 = vld [vmem:[%s1059_s10 + $0x18] sm:$0xff]  ;;  %v228_v55 = vld [vmem:[%s1059_s10 + $0x20] sm:$0xf] }
  0x13   : > { %902 = vmatmul.msk.bf16.vlgmr.msra.gmra.mxu1 %vm316_vm0, %v959_v8  ;;  %v467_v26 = vrot.slane %v465_v23, 1  ;;  %v277_v34 = vshrl.u32 %v960_v13, 16  ;;  %v281_v35 = vshll.u32 %v961_v31, 16  ;;  %v474_v36 = vshrl.u32 %v967_v11, 16  ;;  %v969_v47 = vld [vmem:[%s1059_s10 + $0x1c] sm:$0xff] }
  0x14   : > { %v275_v21 = vrot.slane %v273_v16, 1  ;;  %v580_v24 = vrot.slane %v987_v18, 1  ;;  %v271_v25 = vor.u32 %v270_v20, %v266_v15  ;;  %v478_v37 = vshll.u32 %v968_v33, 16  ;;  %v233_v56 = vld [vmem:[%s1059_s10 + $0x24] sm:$0x1] }
  0x15   : > { %v468_v30 = vor.u32 %v467_v26, %v463_v22  ;;  %v583_v38 = vrot.slane %v968_v33, 1  ;;  %v283_v40 = vrot.slane %v281_v35, 1  ;;  %v476_v41 = vor.u32 %v474_v36, %v472_v27  ;;  %v925_v1 = vld [vmem:[%s1059_s10 + $0x24] sm:$0xf]  ;;  %v970_v2 = vld [vmem:[%s1059_s10 + $0x24] sm:$0x10] }
  0x16   : > { %v582_v28 = vsel %vm579_vm1, %v580_v24, %v581_v19  ;;  %v276_v29 = vsel %vm264_vm2, %v271_v25, %v275_v21  ;;  %v279_v39 = vor.u32 %v277_v34, %v275_v21  ;;  %v480_v42 = vrot.slane %v478_v37, 1 }
  0x17   : > { %952 = vmatmul.msk.bf16.vlgmr.msra.gmra.mxu3 %vm316_vm0, %v582_v28  ;;  %889 = vmatmul.msk.bf16.vlgmr.msra.gmra.mxu0 %vm316_vm0, %v276_v29  ;;  %v473_v32 = vsel %vm264_vm2, %v468_v30, %v472_v27  ;;  %v584_v43 = vsel %vm579_vm1, %v581_v19, %v583_v38  ;;  %v285_v48 = vshrl.u32 %v961_v31, 16  ;;  %v289_v49 = vshll.u32 %v962_v46, 16 }
  0x18   : > { %935 = vmatmul.msk.bf16.vlgmr.msra.gmra.mxu2 %vm316_vm0, %v473_v32  ;;  %v284_v44 = vsel %vm264_vm2, %v279_v39, %v283_v40  ;;  %v481_v45 = vsel %vm264_vm2, %v476_v41, %v480_v42  ;;  %v482_v50 = vshrl.u32 %v968_v33, 16  ;;  %v486_v51 = vshll.u32 %v969_v47, 16 }
  0x19   : > { %v585_v52 = vrot.slane %v969_v47, 1  ;;  %v287_v53 = vor.u32 %v285_v48, %v283_v40  ;;  %v291_v54 = vrot.slane %v289_v49, 1  ;;  %v257_v61 = vunpack.c.l.b16 %v228_v55 }
  0x1a   : > { %v484_v57 = vor.u32 %v482_v50, %v480_v42  ;;  %v488_v58 = vrot.slane %v486_v51, 1  ;;  %v258_v62 = vunpack.c.l.b16 %v233_v56  ;;  %v926_v3 = vor.u32 %v970_v2, %v925_v1 }
  0x1b   : > { %v586_v59 = vsel %vm579_vm1, %v583_v38, %v585_v52  ;;  %v292_v60 = vsel %vm264_vm2, %v287_v53, %v291_v54  ;;  %v293_v4 = vshrl.u32 %v962_v46, 16  ;;  %v490_v6 = vshrl.u32 %v969_v47, 16 }
  0x1c   : > { %v489_v63 = vsel %vm264_vm2, %v484_v57, %v488_v58  ;;  %v263_v0 = vpack.c.b16 %v258_v62, %v257_v61  ;;  %v494_v7 = vshll.u32 %v926_v3, 16  ;;  %v587_v8 = vrot.slane %v926_v3, 1 }
  0x1d   : > { %v295_v9 = vor.u32 %v293_v4, %v291_v54  ;;  %v492_v11 = vor.u32 %v490_v6, %v488_v58  ;;  %v365_v16 = vpack.c.b16 %v257_v61, %v257_v61  ;;  %v498_v18 = vshrl.u32 %v926_v3, 16 }
  0x1e   : > { %v297_v5 = vshll.u32 %v263_v0, 16  ;;  %v496_v12 = vrot.slane %v494_v7, 1  ;;  %v301_v17 = vshrl.u32 %v263_v0, 16 }
  0x20   : > { %v299_v10 = vrot.slane %v297_v5, 1  ;;  %v497_v15 = vsel %vm264_vm2, %v492_v11, %v496_v12  ;;  %v500_v20 = vor.u32 %v498_v18, %v496_v12 }
  0x22   : > { %v300_v14 = vsel %vm264_vm2, %v295_v9, %v299_v10  ;;  %v303_v19 = vor.u32 %v301_v17, %v299_v10 }
  0x23   : > { %903 = vmatmul.msk.bf16.gmra.mxu1 %vm316_vm0, %v960_v13  ;;  %v588_v13 = vsel %vm579_vm1, %v585_v52, %v587_v8 }
  0x27   : > { %953 = vmatmul.msk.bf16.gmra.mxu3 %vm316_vm0, %v584_v43  ;;  %890 = vmatmul.msk.bf16.gmra.mxu0 %vm316_vm0, %v284_v44 }
  0x28   : > { %936 = vmatmul.msk.bf16.gmra.mxu2 %vm316_vm0, %v481_v45 }
  0x33   : > { %904 = vmatmul.msk.bf16.gmra.mxu1 %vm316_vm0, %v961_v31 }
  0x37   : > { %954 = vmatmul.msk.bf16.gmra.mxu3 %vm316_vm0, %v586_v59  ;;  %891 = vmatmul.msk.bf16.gmra.mxu0 %vm316_vm0, %v292_v60 }
  0x38   : > { %937 = vmatmul.msk.bf16.gmra.mxu2 %vm316_vm0, %v489_v63 }
  0x43   : > { %905 = vmatmul.msk.bf16.gmra.mxu1 %vm316_vm0, %v962_v46 }
  0x47   : > { %955 = vmatmul.msk.bf16.gmra.mxu3 %vm316_vm0, %v588_v13  ;;  %892 = vmatmul.msk.bf16.gmra.mxu0 %vm316_vm0, %v300_v14 }
  0x48   : > { %938 = vmatmul.msk.bf16.gmra.mxu2 %vm316_vm0, %v497_v15 }
  0x53   : > { %906 = vmatmul.msk.bf16.gmra.mxu1 %vm316_vm0, %v365_v16 }
  0x57   : > { %956 = vmatmul.msk.bf16.gmra.mxu3 %vm316_vm0, %v587_v8  ;;  %893 = vmatmul.msk.bf16.gmra.mxu0 %vm316_vm0, %v303_v19 }
  0x58   : > { %939 = vmatmul.msk.bf16.gmra.mxu2 %vm316_vm0, %v500_v20 }
  0x90   : > { %v398_v21 = vpop.f32.mrf.mxu1 }
  0x94   : > { %v341_v22 = vpop.f32.mrf.mxu0 }
  0x95   : > { %v399_v24 = vadd.f32 %v398_v21, %v341_v22 }
  0x98   : > { %v400_v23 = vpop.f32.mrf.mxu1 }
  0x9a   : > { %v625_v25 = vpop.f32.mrf.mxu3 }
  0x9b   : > { %v537_v27 = vpop.f32.mrf.mxu2 }
  0x9c   : > { %v343_v26 = vpop.f32.mrf.mxu0  ;;  %v561_v29 = vadd.f32 %v537_v27, %v399_v24 }
  0x9d   : > { %v401_v33 = vadd.f32 %v400_v23, %v343_v26 }
  0x9e   : > { %v1108_v30 = vadd.f32 %v625_v25, %v561_v29 }
  0xa0   : > { %v403_v28 = vpop.f32.mrf.mxu1  ;;  %v658_v31 = vpack.c.bf16 %v1108_v30, %v1108_v30  ;;  %v701_v16 = vmul.f32 %v1108_v30, %v1108_v30  ;;  %v678_v21 = vsel %vm677_vm4, %v1108_v30, 0.0 }
  0xa2   : > { %v627_v32 = vpop.f32.mrf.mxu3  ;;  %668 = vst.msk [vmem:[%s1113_s14] sm:$0xf] %vm667_vm3, %v658_v31 }
  0xa3   : > { %v539_v35 = vpop.f32.mrf.mxu2 }
  0xa4   : > { %v346_v34 = vpop.f32.mrf.mxu0  ;;  %v562_v37 = vadd.f32 %v539_v35, %v401_v33 }
  0xa5   : > { %v404_v39 = vadd.f32 %v403_v28, %v346_v34 }
  0xa6   : > { %v650_v38 = vadd.f32 %v627_v32, %v562_v37  ;;  %v710_v32 = vsel %vm677_vm4, %v701_v16, 0.0 }
  0xa8   : > { %v405_v36 = vpop.f32.mrf.mxu1  ;;  %v659_v40 = vpack.c.bf16 %v650_v38, %v650_v38  ;;  %v702_v14 = vmul.f32 %v650_v38, %v650_v38  ;;  %v679_v17 = vsel %vm677_vm4, %v650_v38, 0.0 }
  0xa9   : > { %v680_v27 = vadd.f32 %v679_v17, %v678_v21 }
  0xaa   : > { %v630_v41 = vpop.f32.mrf.mxu3  ;;  %669 = vst.msk [vmem:[%s1113_s14 + $0x4] sm:$0xf] %vm667_vm3, %v659_v40  ;;  %v711_v22 = vsel %vm677_vm4, %v702_v14, 0.0 }
  0xab   : > { %v542_v43 = vpop.f32.mrf.mxu2  ;;  %v712_v35 = vadd.f32 %v711_v22, %v710_v32 }
  0xac   : > { %v348_v42 = vpop.f32.mrf.mxu0  ;;  %v563_v45 = vadd.f32 %v542_v43, %v404_v39 }
  0xad   : > { %v406_v49 = vadd.f32 %v405_v36, %v348_v42 }
  0xae   : > { %v651_v46 = vadd.f32 %v630_v41, %v563_v45 }
  0xb0   : > { %v408_v44 = vpop.f32.mrf.mxu1  ;;  %v660_v47 = vpack.c.bf16 %v651_v46, %v651_v46  ;;  %v703_v18 = vmul.f32 %v651_v46, %v651_v46  ;;  %v681_v23 = vsel %vm677_vm4, %v651_v46, 0.0 }
  0xb1   : > { %v682_v36 = vadd.f32 %v681_v23, %v680_v27 }
  0xb2   : > { %v632_v48 = vpop.f32.mrf.mxu3  ;;  %670 = vst.msk [vmem:[%s1113_s14 + $0x8] sm:$0xf] %vm667_vm3, %v660_v47  ;;  %v713_v33 = vsel %vm677_vm4, %v703_v18, 0.0 }
  0xb3   : > { %v544_v51 = vpop.f32.mrf.mxu2  ;;  %v714_v41 = vadd.f32 %v713_v33, %v712_v35 }
  0xb4   : > { %v351_v50 = vpop.f32.mrf.mxu0  ;;  %v564_v53 = vadd.f32 %v544_v51, %v406_v49 }
  0xb5   : > { %v409_v55 = vadd.f32 %v408_v44, %v351_v50 }
  0xb6   : > { %v652_v54 = vadd.f32 %v632_v48, %v564_v53 }
  0xb8   : > { %v410_v52 = vpop.f32.mrf.mxu1  ;;  %v661_v56 = vpack.c.bf16 %v652_v54, %v652_v54  ;;  %v704_v24 = vmul.f32 %v652_v54, %v652_v54  ;;  %v683_v34 = vsel %vm677_vm4, %v652_v54, 0.0 }
  0xb9   : > { %v684_v42 = vadd.f32 %v683_v34, %v682_v36 }
  0xba   : > { %v635_v57 = vpop.f32.mrf.mxu3  ;;  %671 = vst.msk [vmem:[%s1113_s14 + $0xc] sm:$0xf] %vm667_vm3, %v661_v56  ;;  %v715_v37 = vsel %vm677_vm4, %v704_v24, 0.0 }
  0xbb   : > { %v547_v59 = vpop.f32.mrf.mxu2  ;;  %v716_v49 = vadd.f32 %v715_v37, %v714_v41 }
  0xbc   : > { %v353_v58 = vpop.f32.mrf.mxu0  ;;  %v565_v61 = vadd.f32 %v547_v59, %v409_v55 }
  0xbd   : > { %v411_v1 = vadd.f32 %v410_v52, %v353_v58 }
  0xbe   : > { %v653_v62 = vadd.f32 %v635_v57, %v565_v61 }
  0xc0   : > { %v413_v60 = vpop.f32.mrf.mxu1  ;;  %v662_v63 = vpack.c.bf16 %v653_v62, %v653_v62  ;;  %v705_v28 = vmul.f32 %v653_v62, %v653_v62  ;;  %v685_v38 = vsel %vm677_vm4, %v653_v62, 0.0 }
  0xc1   : > { %v686_v50 = vadd.f32 %v685_v38, %v684_v42 }
  0xc2   : > { %v637_v0 = vpop.f32.mrf.mxu3  ;;  %672 = vst.msk [vmem:[%s1113_s14 + $0x10] sm:$0xf] %vm667_vm3, %v662_v63  ;;  %v717_v43 = vsel %vm677_vm4, %v705_v28, 0.0 }
  0xc3   : > { %v549_v3 = vpop.f32.mrf.mxu2  ;;  %v718_v55 = vadd.f32 %v717_v43, %v716_v49 }
  0xc4   : > { %v356_v2 = vpop.f32.mrf.mxu0  ;;  %v566_v5 = vadd.f32 %v549_v3, %v411_v1 }
  0xc5   : > { %v414_v7 = vadd.f32 %v413_v60, %v356_v2 }
  0xc6   : > { %v654_v6 = vadd.f32 %v637_v0, %v566_v5 }
  0xc8   : > { %v415_v4 = vpop.f32.mrf.mxu1  ;;  %v663_v8 = vpack.c.bf16 %v654_v6, %v654_v6  ;;  %v706_v39 = vmul.f32 %v654_v6, %v654_v6  ;;  %v687_v44 = vsel %vm677_vm4, %v654_v6, 0.0 }
  0xc9   : > { %v688_v56 = vadd.f32 %v687_v44, %v686_v50 }
  0xca   : > { %v640_v9 = vpop.f32.mrf.mxu3  ;;  %673 = vst.msk [vmem:[%s1113_s14 + $0x14] sm:$0xf] %vm667_vm3, %v663_v8  ;;  %v719_v51 = vsel %vm677_vm4, %v706_v39, 0.0 }
  0xcb   : > { %v552_v11 = vpop.f32.mrf.mxu2  ;;  %v720_v61 = vadd.f32 %v719_v51, %v718_v55 }
  0xcc   : > { %v358_v10 = vpop.f32.mrf.mxu0  ;;  %v567_v13 = vadd.f32 %v552_v11, %v414_v7 }
  0xcd   : > { %v416_v25 = vadd.f32 %v415_v4, %v358_v10 }
  0xce   : > { %v655_v15 = vadd.f32 %v640_v9, %v567_v13 }
  0xd0   : > { %v418_v12 = vpop.f32.mrf.mxu1  ;;  %v664_v19 = vpack.c.bf16 %v655_v15, %v655_v15  ;;  %v707_v45 = vmul.f32 %v655_v15, %v655_v15  ;;  %v689_v52 = vsel %vm677_vm4, %v655_v15, 0.0 }
  0xd1   : > { %v690_v62 = vadd.f32 %v689_v52, %v688_v56 }
  0xd2   : > { %v642_v20 = vpop.f32.mrf.mxu3  ;;  %674 = vst.msk [vmem:[%s1113_s14 + $0x18] sm:$0xf] %vm667_vm3, %v664_v19  ;;  %v721_v58 = vsel %vm677_vm4, %v707_v45, 0.0 }
  0xd3   : > { %v554_v29 = vpop.f32.mrf.mxu2  ;;  %v722_v1 = vadd.f32 %v721_v58, %v720_v61 }
  0xd4   : > { %v361_v26 = vpop.f32.mrf.mxu0  ;;  %v568_v30 = vadd.f32 %v554_v29, %v416_v25 }
  0xd5   : > { %v419_v46 = vadd.f32 %v418_v12, %v361_v26 }
  0xd6   : > { %v656_v40 = vadd.f32 %v642_v20, %v568_v30 }
  0xd8   : > { %v420_v31 = vpop.f32.mrf.mxu1  ;;  %v665_v47 = vpack.c.bf16 %v656_v40, %v656_v40  ;;  %v708_v53 = vmul.f32 %v656_v40, %v656_v40  ;;  %v691_v59 = vsel %vm677_vm4, %v656_v40, 0.0 }
  0xd9   : > { %v692_v2 = vadd.f32 %v691_v59, %v690_v62 }
  0xda   : > { %v645_v48 = vpop.f32.mrf.mxu3  ;;  %675 = vst.msk [vmem:[%s1113_s14 + $0x1c] sm:$0xf] %vm667_vm3, %v665_v47  ;;  %v723_v63 = vsel %vm677_vm4, %v708_v53, 0.0 }
  0xdb   : > { %v557_v57 = vpop.f32.mrf.mxu2  ;;  %v724_v7 = vadd.f32 %v723_v63, %v722_v1 }
  0xdc   : > { %v363_v54 = vpop.f32.mrf.mxu0  ;;  %v569_v60 = vadd.f32 %v557_v57, %v419_v46 }
  0xde   : > { %v657_v0 = vadd.f32 %v645_v48, %v569_v60 }
  0xe0   : > { %v666_v3 = vpack.c.bf16 %v657_v0, %v657_v0  ;;  %v693_v4 = vsel %vm677_vm4, %v657_v0, 0.0  ;;  %v709_v5 = vmul.f32 %v657_v0, %v657_v0 }
  0xe1   : > { %v694_v8 = vadd.f32 %v693_v4, %v692_v2 }
  0xe2   : > { %v647_v6 = vpop.f32.mrf.mxu3  ;;  %676 = vst.msk [vmem:[%s1113_s14 + $0x20] sm:$0xf] %vm667_vm3, %v666_v3  ;;  %v725_v9 = vsel %vm677_vm4, %v709_v5, 0.0 }
  0xe3   : > { %v695_v10 = vrot.slane %v694_v8, 4  ;;  %v726_v11 = vadd.f32 %v725_v9, %v724_v7  ;;  %v559_v12 = vpop.f32.mrf.mxu2 }
  0xe5   : > { %v696_v13 = vadd.f32 %v695_v10, %v694_v8  ;;  %v727_v14 = vrot.slane %v726_v11, 4 }
  0xe7   : > { %v697_v15 = vrot.slane %v696_v13, 2  ;;  %v728_v16 = vadd.f32 %v727_v14, %v726_v11 }
  0xe9   : > { %v698_v17 = vadd.f32 %v697_v15, %v696_v13  ;;  %v729_v18 = vrot.slane %v728_v16, 2 }
  0xeb   : > { %v699_v19 = vrot.slane %v698_v17, 1  ;;  %v730_v20 = vadd.f32 %v729_v18, %v728_v16 }
  0xed   : > { %v700_v21 = vadd.f32 %v699_v19, %v698_v17  ;;  %v731_v22 = vrot.slane %v730_v20, 1 }
  0xef   : > { %v732_v23 = vadd.f32 %v731_v22, %v730_v20  ;;  %733 = vst.msk [vmem:[%s214_s20] sm:$0xff] %vm677_vm4, %v700_v21 }
  0xf1   : > { %734 = vst.msk [vmem:[%s218_s23] sm:$0xff] %vm677_vm4, %v732_v23 }
  0xf2 PF: > { %s15_s15 = sadd.s32 1, %s994_s15  }
  0xf3   : > { %p12_p4 = scmp.ge.s32.totalorder %s15_s15, 4  }
  0xf5   :  { %14 = sbr.rel (!%p12_p4) target bundleno = 1 (0x1), region = 85 }

// kernel: tile.33
= control target key start
LH: loop header
LB: loop body
LE: loop exit
PB: predicated region body
PF: predicated region fallthrough
CT: control target
= control target key end

     0   :  { %s22_s0 = inlined_call_operand.vmem [shape: f32[128], index: 0, kind: input, shape index: {}]   ;;  %s23_s1 = inlined_call_operand.vmem [shape: f32[4,128], index: 1, kind: output, shape index: {}]  }
   0x1   :  { %v4_v0 = vld [vmem:[%s22_s0] ss:$0 sm:$0xff] }
   0x2   :  { %5 = vst [vmem:[%s23_s1] sm:$0xf] %v4_v0 }

// kernel: discriminator.5
= control target key start
LH: loop header
LB: loop body
LE: loop exit
PB: predicated region body
PF: predicated region fallthrough
CT: control target
= control target key end

     0   :  { %s1764_s21 = smov 0   ;;  %s2081_s0 = inlined_call_operand.vmem [shape: bf16[2,33,256], index: 0, kind: input, shape index: {}]   ;;  %s2082_s1 = inlined_call_operand.vmem [shape: bf16[4,256,128], index: 1, kind: input, shape index: {}]   ;;  %s2083_s2 = inlined_call_operand.vmem [shape: f32[1,256], index: 2, kind: input, shape index: {}]   ;;  %s2084_s3 = inlined_call_operand.vmem [shape: f32[1,256], index: 3, kind: input, shape index: {}]   ;;  %s2085_s4 = inlined_call_operand.vmem [shape: bf16[2,20,128], index: 4, kind: output, shape index: {0}]   ;;  %s2086_s5 = inlined_call_operand.vmem [shape: f32[2,1,8,128], index: 5, kind: output, shape index: {1}]   ;;  %s2087_s6 = inlined_call_operand.vmem [shape: f32[2,1,8,128], index: 6, kind: output, shape index: {2}]  }
   0x1 LB: > { %s1279_s22 = sadd.s32 4294967295, %s1727_s21   ;;  %p1283_p0 = scmp.ge.s32.totalorder %s1727_s21, 1  ;;  %s1727_s21 = sphi %s1764_s21, %s17_s21  }
   0x2   : > { %p217_p1 = scmp.lt.s32.totalorder %s1727_s21, 3 }
   0x4   : > { %p218_p2 = pnand %p1283_p0, %p217_p1 }
   0x5   : > { %p255_p3 = scmp.lt.s32.totalorder (!%p218_p2), %s1279_s22, 1 }
   0x6   : > { %221 = sbr.rel (%p218_p2) target bundleno = 248 (0xf8), region = 36 }
   0xb   : > { %v1665_v0 = vld [vmem:[%s2082_s1 + $0xb8] sm:$0xff]  ;;  %v1664_v4 = vld [vmem:[%s2082_s1 + $0xb0] sm:$0xff]  ;;  %s2089_s22 = smov (!%p255_p3, %s1279_s22), 1  ;;  %v1663_v8 = vld [vmem:[%s2082_s1 + $0xa8] sm:$0xff]  ;;  %vm392_vm0 = vsmask.f32 7424 }
   0xc   : > { %v1673_v1 = vld [vmem:[%s2082_s1 + $0xf8] sm:$0xff]  ;;  %523 = vmatpush.bf16.msra.mxu0 %v1665_v0  ;;  %v1672_v5 = vld [vmem:[%s2082_s1 + $0xf0] sm:$0xff]  ;;  %s1711_s15 = smul.u32 40, %s2089_s22  ;;  %v1671_v9 = vld [vmem:[%s2082_s1 + $0xe8] sm:$0xff]  ;;  %vm764_vm1 = vsmask.f32 5376 }
   0xd   : > { %v1649_v2 = vld [vmem:[%s2082_s1 + $0x38] sm:$0xff]  ;;  %541 = vmatpush.bf16.msra.mxu1 %v1673_v1  ;;  %v1648_v6 = vld [vmem:[%s2082_s1 + $0x30] sm:$0xff]  ;;  %v1647_v10 = vld [vmem:[%s2082_s1 + $0x28] sm:$0xff]  ;;  %vm986_vm2 = vcmask 1044480   ;;  %s1712_s30 = smul.u32 12, %s2089_s22  ;;  %vm1139_vm3 = vcmask 1043456  }
   0xe   : > { %v1657_v3 = vld [vmem:[%s2082_s1 + $0x78] sm:$0xff]  ;;  %655 = vmatpush.bf16.msra.mxu2 %v1649_v2  ;;  %v1656_v7 = vld [vmem:[%s2082_s1 + $0x70] sm:$0xff]  ;;  %v1655_v11 = vld [vmem:[%s2082_s1 + $0x68] sm:$0xff]  ;;  %s1814_s28 = scalar_lea.vmem %s2081_s0, %s1711_s15 }
   0xf   : > { %673 = vmatpush.bf16.msra.mxu3 %v1657_v3  ;;  %v1662_v12 = vld [vmem:[%s2082_s1 + $0xa0] sm:$0xff]  ;;  %v274_v17 = vld [vmem:[%s1814_s28 + $0x8] sm:$0xff]  ;;  %v348_v25 = vld [vmem:[%s1814_s28 + $0x10] sm:$0x77]  ;;  %s264_s9 = scalar_lea.vmem %s2085_s4, %s1712_s30 }
  0x10   : > { %524 = vmatpush.bf16.msra.mxu0 %v1664_v4  ;;  %v1670_v13 = vld [vmem:[%s2082_s1 + $0xe0] sm:$0xff]  ;;  %v278_v22 = vunpack.c.l.bf16 %v274_v17  ;;  %v279_v26 = vunpack.c.h.bf16 %v274_v17  ;;  %v349_v27 = vunpack.c.l.bf16 %v348_v25  ;;  %v350_v30 = vunpack.c.h.bf16 %v348_v25  ;;  %v1661_v31 = vld [vmem:[%s2082_s1 + $0x98] sm:$0xff]  ;;  %v1660_v46 = vld [vmem:[%s2082_s1 + $0x90] sm:$0xff] }
  0x11   : > { %542 = vmatpush.bf16.msra.mxu1 %v1672_v5  ;;  %v1646_v14 = vld [vmem:[%s2082_s1 + $0x20] sm:$0xff]  ;;  %v1669_v32 = vld [vmem:[%s2082_s1 + $0xd8] sm:$0xff]  ;;  %v1668_v47 = vld [vmem:[%s2082_s1 + $0xd0] sm:$0xff] }
  0x12   : > { %656 = vmatpush.bf16.msra.mxu2 %v1648_v6  ;;  %v1654_v15 = vld [vmem:[%s2082_s1 + $0x60] sm:$0xff]  ;;  %v1645_v35 = vld [vmem:[%s2082_s1 + $0x18] sm:$0xff]  ;;  %v1644_v51 = vld [vmem:[%s2082_s1 + $0x10] sm:$0xff] }
  0x13   : > { %674 = vmatpush.bf16.msra.mxu3 %v1656_v7  ;;  %v273_v16 = vld [vmem:[%s1814_s28] sm:$0xff]  ;;  %v1653_v36 = vld [vmem:[%s2082_s1 + $0x58] sm:$0xff]  ;;  %v1652_v52 = vld [vmem:[%s2082_s1 + $0x50] sm:$0xff] }
  0x14   : > { %525 = vmatpush.bf16.msra.mxu0 %v1663_v8  ;;  %v276_v18 = vunpack.c.l.bf16 %v273_v16  ;;  %v282_v19 = vld [vmem:[%s2083_s2] sm:$0x3]  ;;  %v277_v21 = vunpack.c.h.bf16 %v273_v16  ;;  %v1659_v60 = vld [vmem:[%s2082_s1 + $0x88] sm:$0xff]  ;;  %v693_v16 = vld [vmem:[%s1814_s28 + $0x10] sm:$0xff] }
  0x15   : > { %543 = vmatpush.bf16.msra.mxu1 %v1671_v9  ;;  %v294_v20 = vld [vmem:[%s2084_s3] sm:$0x3]  ;;  %v1836_v23 = vperm.slane %v282_v19, 0  ;;  %v1841_v28 = vperm.slane %v282_v19, 1  ;;  %v1667_v61 = vld [vmem:[%s2082_s1 + $0xc8] sm:$0xff] }
  0x16   : > { %657 = vmatpush.bf16.msra.mxu2 %v1647_v10  ;;  %v1838_v24 = vperm.slane %v294_v20, 0  ;;  %v1843_v29 = vperm.slane %v294_v20, 1  ;;  %v1643_v1 = vld [vmem:[%s2082_s1 + $0x8] sm:$0xff]  ;;  %v1658_v8 = vld [vmem:[%s2082_s1 + $0x80] sm:$0xff]  ;;  %v275_v10 = vld [vmem:[%s1814_s28 + $0x10] sm:$0x33] }
  0x17   : > { %675 = vmatpush.bf16.msra.mxu3 %v1655_v11  ;;  %v288_v33 = vmul.f32 %v1836_v23, %v276_v18  ;;  %v290_v34 = vmul.f32 %v1836_v23, %v278_v22  ;;  %v351_v37 = vmul.f32 %v349_v27, %v1836_v23  ;;  %v289_v38 = vmul.f32 %v1841_v28, %v277_v21  ;;  %v1651_v2 = vld [vmem:[%s2082_s1 + $0x48] sm:$0xff]  ;;  %v1666_v11 = vld [vmem:[%s2082_s1 + $0xc0] sm:$0xff]  ;;  %v694_v20 = vld [vmem:[%s1814_s28 + $0x18] sm:$0x11] }
  0x18   : > { %526 = vmatpush.bf16.msra.mxu0 %v1662_v12  ;;  %v291_v39 = vmul.f32 %v1841_v28, %v279_v26  ;;  %v352_v42 = vmul.f32 %v350_v30, %v1841_v28  ;;  %v1642_v17 = vld [vmem:[%s2082_s1] sm:$0xff]  ;;  %v1697_v21 = vld [vmem:[%s2082_s1 + $0x1b8] sm:$0xff]  ;;  %v280_v25 = vunpack.c.l.bf16 %v275_v10  ;;  %v281_v26 = vunpack.c.h.bf16 %v275_v10 }
  0x19   : > { %544 = vmatpush.bf16.msra.mxu1 %v1670_v13  ;;  %v300_v40 = vadd.f32 %v1838_v24, %v288_v33  ;;  %v302_v41 = vadd.f32 %v1838_v24, %v290_v34  ;;  %v353_v43 = vadd.f32 %v351_v37, %v1838_v24  ;;  %v301_v44 = vadd.f32 %v1843_v29, %v289_v38  ;;  %v1650_v18 = vld [vmem:[%s2082_s1 + $0x40] sm:$0xff]  ;;  %v1705_v22 = vld [vmem:[%s2082_s1 + $0x1f8] sm:$0xff] }
  0x1a   : > { %658 = vmatpush.bf16.msra.mxu2 %v1646_v14  ;;  %v303_v45 = vadd.f32 %v1843_v29, %v291_v39  ;;  %v354_v50 = vadd.f32 %v352_v42, %v1843_v29  ;;  %v699_v30 = vunpack.c.l.bf16 %v693_v16  ;;  %v701_v33 = vunpack.c.l.bf16 %v694_v20  ;;  %v1696_v39 = vld [vmem:[%s2082_s1 + $0x1b0] sm:$0xff] }
  0x1b   : > { %676 = vmatpush.bf16.msra.mxu3 %v1654_v15  ;;  %v306_v48 = vmax.f32 %v300_v40, 0.0  ;;  %v1874_v49 = vmax.f32 %v302_v41, 0.0  ;;  %v355_v53 = vmax.f32 %v353_v43, 0.0  ;;  %v307_v54 = vmax.f32 %v301_v44, 0.0  ;;  %v691_v15 = vld [vmem:[%s1814_s28] sm:$0xcc] }
  0x1c   : > { %527 = vmatpush.bf16.msra.mxu0 %v1661_v31  ;;  %v1883_v55 = vmax.f32 %v303_v45, 0.0  ;;  %v356_v57 = vmax.f32 %v354_v50, 0.0  ;;  %v695_v27 = vunpack.c.l.bf16 %v691_v15  ;;  %v696_v34 = vunpack.c.h.bf16 %v691_v15  ;;  %v1704_v40 = vld [vmem:[%s2082_s1 + $0x1f0] sm:$0xff] }
  0x1d   : > { %545 = vmatpush.bf16.msra.mxu1 %v1669_v32  ;;  %v1886_v56 = vpack.c.bf16 %v1874_v49, %v306_v48  ;;  %v1888_v58 = vpack.c.bf16 %v355_v53, %v355_v53  ;;  %v700_v37 = vunpack.c.h.bf16 %v693_v16  ;;  %v702_v38 = vunpack.c.h.bf16 %v694_v20  ;;  %v1688_v48 = vld [vmem:[%s2082_s1 + $0x170] sm:$0xff]  ;;  %v1703_v53 = vld [vmem:[%s2082_s1 + $0x1e8] sm:$0xff] }
  0x1e   : > { %659 = vmatpush.bf16.msra.mxu2 %v1645_v35  ;;  %v313_v59 = vpack.c.bf16 %v1883_v55, %v307_v54  ;;  %v1899_v0 = vpack.c.bf16 %v356_v57, %v356_v57  ;;  %v1681_v35 = vld [vmem:[%s2082_s1 + $0x138] sm:$0xff]  ;;  %v292_v41 = vmul.f32 %v1836_v23, %v280_v25  ;;  %v293_v42 = vmul.f32 %v1841_v28, %v281_v26 }
  0x1f   : > { %677 = vmatpush.bf16.msra.mxu3 %v1653_v36  ;;  %v394_v62 = vshrl.u32 %v1886_v56, 16  ;;  %v396_v63 = vshll.u32 %v1886_v56, 16  ;;  %v401_v3 = vshll.u32 %v1888_v58, 16  ;;  %v1689_v36 = vld [vmem:[%s2082_s1 + $0x178] sm:$0xff]  ;;  %v703_v43 = vmul.f32 %v695_v27, %v1836_v23 }
  0x20   : > { %528 = vmatpush.bf16.msra.mxu0 %v1660_v46  ;;  %v406_v4 = vshrl.u32 %v313_v59, 16  ;;  %v408_v5 = vshll.u32 %v313_v59, 16  ;;  %v413_v7 = vshll.u32 %v1899_v0, 16  ;;  %v707_v44 = vmul.f32 %v699_v30, %v1836_v23 }
  0x21   : > { %546 = vmatpush.bf16.msra.mxu1 %v1668_v47  ;;  %v398_v6 = vrot.slane %v396_v63, 1  ;;  %v1916_v13 = vrot.slane %v401_v3, 1  ;;  %v709_v45 = vmul.f32 %v701_v33, %v1836_v23  ;;  %v704_v46 = vmul.f32 %v696_v34, %v1841_v28  ;;  %v1680_v47 = vld [vmem:[%s2082_s1 + $0x130] sm:$0xff]  ;;  %v1679_v63 = vld [vmem:[%s2082_s1 + $0x128] sm:$0xff]  ;;  %v1677_v34 = vld [vmem:[%s2082_s1 + $0x118] sm:$0xff] }
  0x22   : > { %660 = vmatpush.bf16.msra.mxu2 %v1644_v51  ;;  %v410_v9 = vrot.slane %v408_v5, 1  ;;  %v1918_v14 = vrot.slane %v413_v7, 1  ;;  %v708_v50 = vmul.f32 %v700_v37, %v1841_v28  ;;  %v710_v51 = vmul.f32 %v702_v38, %v1841_v28  ;;  %v1702_v5 = vld [vmem:[%s2082_s1 + $0x1e0] sm:$0xff] }
  0x23   : > { %678 = vmatpush.bf16.msra.mxu3 %v1652_v52  ;;  %v399_v12 = vor.u32 %v398_v6, %v394_v62  ;;  %v1695_v52 = vld [vmem:[%s2082_s1 + $0x1a8] sm:$0xff]  ;;  %v304_v54 = vadd.f32 %v1838_v24, %v292_v41  ;;  %v711_v57 = vadd.f32 %v703_v43, %v1838_v24  ;;  %v712_v62 = vadd.f32 %v704_v46, %v1843_v29 }
  0x24   : > { %529 = vmatpush.bf16.msra.mxu0 %v1659_v60  ;;  %v411_v19 = vor.u32 %v410_v9, %v406_v4  ;;  %v715_v60 = vadd.f32 %v707_v44, %v1838_v24  ;;  %v718_v3 = vadd.f32 %v710_v51, %v1843_v29  ;;  %v1694_v4 = vld [vmem:[%s2082_s1 + $0x1a0] sm:$0xff]  ;;  %v420_v9 = vshrl.u32 %v1899_v0, 16  ;;  %v1693_v0 = vld [vmem:[%s2082_s1 + $0x198] sm:$0xff]  ;;  %v1691_v46 = vld [vmem:[%s2082_s1 + $0x188] sm:$0xff] }
  0x25   : > { %547 = vmatpush.bf16.msra.mxu1 %v1667_v61  ;;  %v404_v31 = vsel %vm392_vm0, %v399_v12, %v1916_v13  ;;  %v717_v61 = vadd.f32 %v709_v45, %v1838_v24  ;;  %v310_v10 = vmax.f32 %v304_v54, 0.0  ;;  %v719_v12 = vmax.f32 %v711_v57, 0.0  ;;  %v1683_v57 = vld [vmem:[%s2082_s1 + $0x148] sm:$0xff] }
  0x26   : > { %661 = vmatpush.bf16.msra.mxu2 %v1643_v1  ;;  %v416_v32 = vsel %vm392_vm0, %v411_v19, %v1918_v14  ;;  %v1687_v1 = vld [vmem:[%s2082_s1 + $0x168] sm:$0xff]  ;;  %v723_v15 = vmax.f32 %v715_v60, 0.0  ;;  %v720_v19 = vmax.f32 %v712_v62, 0.0  ;;  %v422_v27 = vor.u32 %v420_v9, %v1918_v14  ;;  %v1692_v14 = vld [vmem:[%s2082_s1 + $0x190] sm:$0xff] }
  0x27   : > { %679 = vmatpush.bf16.msra.mxu3 %v1651_v2  ;;  %v716_v2 = vadd.f32 %v708_v50, %v1843_v29  ;;  %v725_v16 = vmax.f32 %v717_v61, 0.0  ;;  %v314_v30 = vpack.c.bf16 %v310_v10, %v310_v10 }
  0x28   : > { %530 = vmatpush.bf16.msra.mxu0 %v1658_v8  ;;  %v417_v8 = vshrl.u32 %v1888_v58, 16  ;;  %v726_v58 = vmax.f32 %v718_v3, 0.0 }
  0x29   : > { %548 = vmatpush.bf16.msra.mxu1 %v1666_v11  ;;  %v724_v20 = vmax.f32 %v716_v2, 0.0  ;;  %v2010_v33 = vpack.c.bf16 %v725_v16, %v723_v15 }
  0x2a   : > { %662 = vmatpush.bf16.msra.mxu2 %v1642_v17  ;;  %v1678_v17 = vld [vmem:[%s2082_s1 + $0x120] sm:$0xff]  ;;  %v419_v26 = vor.u32 %v417_v8, %v1916_v13 }
  0x2b   : > { %680 = vmatpush.bf16.msra.mxu3 %v1650_v18  ;;  %531 = vmatmul.bf16.vlgmr.msra.gmra.mxu0 %v404_v31  ;;  %v1686_v18 = vld [vmem:[%s2082_s1 + $0x160] sm:$0xff]  ;;  %v2019_v13 = vpack.c.bf16 %v726_v58, %v724_v20  ;;  %v777_v41 = vshll.u32 %v2010_v33, 16 }
  0x2c   : > { %549 = vmatmul.bf16.vlgmr.msra.gmra.mxu1 %v416_v32  ;;  %899 = vmatpush.bf16.msrb.mxu0 %v1681_v35  ;;  %v727_v32 = vpack.c.bf16 %v1874_v49, %v719_v12  ;;  %v1700_v35 = vld [vmem:[%s2082_s1 + $0x1d0] sm:$0xff] }
  0x2d   : > { %663 = vmatmul.bf16.vlgmr.msra.gmra.mxu2 %v1886_v56  ;;  %917 = vmatpush.bf16.msrb.mxu1 %v1689_v36  ;;  %v305_v56 = vadd.f32 %v1843_v29, %v293_v42  ;;  %v1676_v42 = vld [vmem:[%s2082_s1 + $0x110] sm:$0xff]  ;;  %v791_v44 = vshrl.u32 %v2019_v13, 16  ;;  %v794_v45 = vshll.u32 %v2019_v13, 16  ;;  %v779_v54 = vrot.slane %v777_v41, 3 }
  0x2e   : > { %1093 = vmatpush.bf16.msrb.mxu2 %v1697_v21  ;;  %681 = vmatmul.bf16.vlgmr.msra.gmra.mxu3 %v313_v59  ;;  %v938_v59 = vld [vmem:[%s1814_s28] sm:$0x88]  ;;  %v1701_v21 = vld [vmem:[%s2082_s1 + $0x1d8] sm:$0xff]  ;;  %v766_v38 = vshrl.u32 %v727_v32, 16  ;;  %s1286_s28 = sshll.u32 %s2089_s22, 3 }
  0x2f   : > { %1111 = vmatpush.bf16.msrb.mxu3 %v1705_v22  ;;  %v939_v6 = vunpack.c.l.bf16 %v938_v59  ;;  %v940_v7 = vunpack.c.h.bf16 %v938_v59  ;;  %v311_v11 = vmax.f32 %v305_v56, 0.0  ;;  %v1675_v56 = vld [vmem:[%s2082_s1 + $0x108] sm:$0xff]  ;;  %v793_v61 = vrot.slane %v791_v44, 2  ;;  %s268_s12 = scalar_lea.vmem %s2086_s5, %s1286_s28  ;;  %s272_s15 = scalar_lea.vmem %s2087_s6, %s1286_s28 }
  0x30   : > { %900 = vmatpush.bf16.msrb.mxu0 %v1680_v47  ;;  %v1699_v47 = vld [vmem:[%s2082_s1 + $0x1c8] sm:$0xff]  ;;  %v768_v51 = vrot.slane %v766_v38, 2  ;;  %v796_v62 = vrot.slane %v794_v45, 3 }
  0x31   : > { %918 = vmatpush.bf16.msrb.mxu1 %v1688_v48  ;;  %v941_v22 = vmul.f32 %v939_v6, %v1836_v23  ;;  %v942_v25 = vmul.f32 %v940_v7, %v1841_v28  ;;  %v315_v31 = vpack.c.bf16 %v311_v11, %v311_v11  ;;  %v1685_v23 = vld [vmem:[%s2082_s1 + $0x158] sm:$0xff]  ;;  %v728_v28 = vpack.c.bf16 %v1883_v55, %v720_v19  ;;  %v1682_v6 = vld [vmem:[%s2082_s1 + $0x140] sm:$0xff] }
  0x32   : > { %1094 = vmatpush.bf16.msrb.mxu2 %v1696_v39  ;;  %v769_v39 = vshll.u32 %v727_v32, 16  ;;  %v797_v9 = vor.u32 %v796_v62, %v793_v61  ;;  %v991_v11 = vrot.slane %v2019_v13, 3 }
  0x33   : > { %1112 = vmatpush.bf16.msrb.mxu3 %v1704_v40  ;;  %v943_v36 = vadd.f32 %v941_v22, %v1838_v24  ;;  %v944_v37 = vadd.f32 %v942_v25, %v1843_v29  ;;  %v774_v40 = vshrl.u32 %v2010_v33, 16  ;;  %v1684_v24 = vld [vmem:[%s2082_s1 + $0x150] sm:$0xff]  ;;  %v783_v29 = vshrl.u32 %v728_v28, 16 }
  0x34   : > { %901 = vmatpush.bf16.msrb.mxu0 %v1679_v63  ;;  %v786_v43 = vshll.u32 %v728_v28, 16  ;;  %v1690_v63 = vld [vmem:[%s2082_s1 + $0x180] sm:$0xff] }
  0x35   : > { %919 = vmatpush.bf16.msrb.mxu1 %v1687_v1  ;;  %v945_v48 = vmax.f32 %v943_v36, 0.0  ;;  %v946_v50 = vmax.f32 %v944_v37, 0.0  ;;  %v785_v59 = vrot.slane %v783_v29, 2  ;;  %v1698_v1 = vld [vmem:[%s2082_s1 + $0x1c0] sm:$0xff] }
  0x36   : > { %1095 = vmatpush.bf16.msrb.mxu2 %v1695_v52  ;;  %v771_v52 = vrot.slane %v769_v39, 3  ;;  %v788_v60 = vrot.slane %v786_v43, 3 }
  0x37   : > { %1113 = vmatpush.bf16.msrb.mxu3 %v1703_v53  ;;  %v776_v53 = vrot.slane %v774_v40, 2  ;;  %v947_v2 = vpack.c.bf16 %v1874_v49, %v945_v48  ;;  %v948_v3 = vpack.c.bf16 %v1883_v55, %v946_v50  ;;  %v988_v55 = vrot.slane %v2010_v33, 3 }
  0x38   : > { %902 = vmatpush.bf16.msrb.mxu0 %v1678_v17  ;;  %v789_v8 = vor.u32 %v788_v60, %v785_v59 }
  0x39   : > { %920 = vmatpush.bf16.msrb.mxu1 %v1686_v18  ;;  %v780_v7 = vor.u32 %v779_v54, %v776_v53  ;;  %v987_v49 = vrot.slane %v947_v2, 3  ;;  %v990_v10 = vrot.slane %v948_v3, 3 }
  0x3a   : > { %1096 = vmatpush.bf16.msrb.mxu2 %v1694_v4  ;;  %v772_v4 = vor.u32 %v771_v52, %v768_v51  ;;  %v798_v15 = vsel %vm764_vm1, %v789_v8, %v797_v9 }
  0x3b   : > { %1114 = vmatpush.bf16.msrb.mxu3 %v1702_v5  ;;  %536 = vmatmul.bf16.gmra.mxu0 %v419_v26  ;;  %v1674_v5 = vld [vmem:[%s2082_s1 + $0x100] sm:$0xff]  ;;  %v989_v16 = vsel %vm986_vm2, %v987_v49, %v988_v55  ;;  %v992_v17 = vsel %vm986_vm2, %v990_v10, %v991_v11 }
  0x3c   : > { %554 = vmatmul.bf16.gmra.mxu1 %v422_v27  ;;  %903 = vmatpush.bf16.msrb.mxu0 %v1677_v34  ;;  %v781_v12 = vsel %vm764_vm1, %v772_v4, %v780_v7 }
  0x3d   : > { %668 = vmatmul.bf16.gmra.mxu2 %v314_v30  ;;  %921 = vmatpush.bf16.msrb.mxu1 %v1685_v23 }
  0x3e   : > { %1097 = vmatpush.bf16.msrb.mxu2 %v1693_v0  ;;  %686 = vmatmul.bf16.gmra.mxu3 %v315_v31 }
  0x3f   : > { %1115 = vmatpush.bf16.msrb.mxu3 %v1701_v21 }
  0x40   : > { %904 = vmatpush.bf16.msrb.mxu0 %v1676_v42 }
  0x41   : > { %922 = vmatpush.bf16.msrb.mxu1 %v1684_v24 }
  0x42   : > { %1098 = vmatpush.bf16.msrb.mxu2 %v1692_v14 }
  0x43   : > { %1116 = vmatpush.bf16.msrb.mxu3 %v1700_v35 }
  0x44   : > { %905 = vmatpush.bf16.msrb.mxu0 %v1675_v56 }
  0x45   : > { %923 = vmatpush.bf16.msrb.mxu1 %v1683_v57 }
  0x46   : > { %1099 = vmatpush.bf16.msrb.mxu2 %v1691_v46 }
  0x47   : > { %1117 = vmatpush.bf16.msrb.mxu3 %v1699_v47 }
  0x48   : > { %906 = vmatpush.bf16.msrb.mxu0 %v1674_v5 }
  0x49   : > { %924 = vmatpush.bf16.msrb.mxu1 %v1682_v6 }
  0x4a   : > { %1100 = vmatpush.bf16.msrb.mxu2 %v1690_v63 }
  0x4b   : > { %1118 = vmatpush.bf16.msrb.mxu3 %v1698_v1  ;;  %907 = vmatmul.bf16.vlgmr.msrb.gmra.mxu0 %v781_v12 }
  0x4c   : > { %925 = vmatmul.bf16.vlgmr.msrb.gmra.mxu1 %v798_v15 }
  0x4d   : > { %1101 = vmatmul.bf16.vlgmr.msrb.gmra.mxu2 %v989_v16 }
  0x4e   : > { %1119 = vmatmul.bf16.vlgmr.msrb.gmra.mxu3 %v992_v17 }
  0x5b   : > { %912 = vmatmul.bf16.gmra.mxu0 %v780_v7 }
  0x5c   : > { %930 = vmatmul.bf16.gmra.mxu1 %v797_v9 }
  0x5d   : > { %1106 = vmatmul.bf16.gmra.mxu2 %v988_v55 }
  0x5e   : > { %1124 = vmatmul.bf16.gmra.mxu3 %v991_v11 }
  0xa8   : > { %v532_v18 = vpop.f32.mrf.mxu0 }
  0xa9   : > { %v550_v19 = vpop.f32.mrf.mxu1 }
  0xaa   : > { %v551_v14 = vadd.f32 %v550_v19, %v532_v18 }
  0xb0   : > { %v664_v20 = vpop.f32.mrf.mxu2  ;;  %v534_v0 = vpop.f32.mrf.mxu0 }
  0xb1   : > { %v682_v58 = vpop.f32.mrf.mxu3  ;;  %v552_v21 = vpop.f32.mrf.mxu1  ;;  %v665_v40 = vadd.f32 %v664_v20, %v551_v14 }
  0xb2   : > { %v553_v37 = vadd.f32 %v552_v21, %v534_v0 }
  0xb3   : > { %v683_v29 = vadd.f32 %v682_v58, %v665_v40 }
  0xb8   : > { %v666_v22 = vpop.f32.mrf.mxu2  ;;  %v537_v26 = vpop.f32.mrf.mxu0 }
  0xb9   : > { %v684_v25 = vpop.f32.mrf.mxu3  ;;  %v555_v27 = vpop.f32.mrf.mxu1  ;;  %v667_v41 = vadd.f32 %v666_v22, %v553_v37 }
  0xba   : > { %v556_v44 = vadd.f32 %v555_v27, %v537_v26 }
  0xbb   : > { %v685_v43 = vadd.f32 %v684_v25, %v667_v41 }
  0xc0   : > { %v669_v30 = vpop.f32.mrf.mxu2  ;;  %v539_v32 = vpop.f32.mrf.mxu0 }
  0xc1   : > { %v687_v31 = vpop.f32.mrf.mxu3  ;;  %v557_v33 = vpop.f32.mrf.mxu1  ;;  %v670_v54 = vadd.f32 %v669_v30, %v556_v44 }
  0xc3   : > { %v688_v61 = vadd.f32 %v687_v31, %v670_v54 }
  0xc8   : > { %v671_v34 = vpop.f32.mrf.mxu2  ;;  %v908_v28 = vpop.f32.mrf.mxu0 }
  0xc9   : > { %v689_v23 = vpop.f32.mrf.mxu3  ;;  %v926_v13 = vpop.f32.mrf.mxu1 }
  0xca   : > { %v927_v42 = vadd.f32 %v926_v13, %v908_v28 }
  0xcc   : > { %v935_v48 = vadd.f32 %v927_v42, %v683_v29 }
  0xd0   : > { %v1102_v35 = vpop.f32.mrf.mxu2  ;;  %v910_v38 = vpop.f32.mrf.mxu0 }
  0xd1   : > { %v1120_v36 = vpop.f32.mrf.mxu3  ;;  %v928_v39 = vpop.f32.mrf.mxu1 }
  0xd2   : > { %v929_v24 = vadd.f32 %v928_v39, %v910_v38  ;;  %v1121_v45 = vadd.f32 %v1120_v36, %v1102_v35 }
  0xd4   : > { %v936_v50 = vadd.f32 %v929_v24, %v685_v43  ;;  %v1129_v56 = vadd.f32 %v1121_v45, %v935_v48 }
  0xd6   : > { %v1148_v7 = vmul.f32 %v1129_v56, %v1129_v56 }
  0xd8   : > { %v1104_v46 = vpop.f32.mrf.mxu2  ;;  %v913_v52 = vpop.f32.mrf.mxu0 }
  0xd9   : > { %v1122_v47 = vpop.f32.mrf.mxu3  ;;  %v931_v53 = vpop.f32.mrf.mxu1 }
  0xda   : > { %v1123_v51 = vadd.f32 %v1122_v47, %v1104_v46  ;;  %v932_v60 = vadd.f32 %v931_v53, %v913_v52 }
  0xdc   : > { %v1130_v57 = vadd.f32 %v1123_v51, %v936_v50  ;;  %v937_v1 = vadd.f32 %v932_v60, %v688_v61 }
  0xde   : > { %v1709_v59 = vpack.c.bf16 %v1130_v57, %v1129_v56  ;;  %v1149_v5 = vmul.f32 %v1130_v57, %v1130_v57  ;;  %v1138_v8 = vadd.f32 %v1130_v57, %v1129_v56 }
  0xe0   : > { %1710 = vst [vmem:[%s264_s9] sm:$0xff] %v1709_v59   ;;  %v1107_v62 = vpop.f32.mrf.mxu2  ;;  %v915_v3 = vpop.f32.mrf.mxu0  ;;  %v1151_v10 = vadd.f32 %v1149_v5, %v1148_v7 }
  0xe1   : > { %v1125_v63 = vpop.f32.mrf.mxu3  ;;  %v933_v4 = vpop.f32.mrf.mxu1 }
  0xe2   : > { %v1126_v2 = vadd.f32 %v1125_v63, %v1107_v62 }
  0xe4   : > { %v1131_v6 = vadd.f32 %v1126_v2, %v937_v1 }
  0xe6   : > { %v1134_v9 = vpack.c.bf16 %v1131_v6, %v1131_v6  ;;  %v1140_v49 = vsel %vm1139_vm3, %v1131_v6, 0.0  ;;  %v1150_v55 = vmul.f32 %v1131_v6, %v1131_v6 }
  0xe7   : > { %v1141_v11 = vadd.f32 %v1140_v49, %v1138_v8 }
  0xe8   : > { %1137 = vst [vmem:[%s264_s9 + $0x8] sm:$0x3] %v1134_v9  ;;  %v1152_v12 = vsel %vm1139_vm3, %v1150_v55, 0.0  ;;  %v1109_v17 = vpop.f32.mrf.mxu2 }
  0xe9   : > { %v1142_v15 = vrot.slane %v1141_v11, 4  ;;  %v1153_v16 = vadd.f32 %v1152_v12, %v1151_v10  ;;  %v1127_v18 = vpop.f32.mrf.mxu3 }
  0xeb   : > { %v1143_v19 = vadd.f32 %v1142_v15, %v1141_v11  ;;  %v1154_v20 = vrot.slane %v1153_v16, 4 }
  0xed   : > { %v1144_v58 = vrot.slane %v1143_v19, 2  ;;  %v1155_v0 = vadd.f32 %v1154_v20, %v1153_v16 }
  0xef   : > { %v1145_v21 = vadd.f32 %v1144_v58, %v1143_v19  ;;  %v1156_v22 = vrot.slane %v1155_v0, 2 }
  0xf1   : > { %v1146_v25 = vrot.slane %v1145_v21, 1  ;;  %v1157_v26 = vadd.f32 %v1156_v22, %v1155_v0 }
  0xf3   : > { %v1147_v27 = vadd.f32 %v1146_v25, %v1145_v21  ;;  %v1158_v30 = vrot.slane %v1157_v26, 1 }
  0xf5   : > { %v1159_v31 = vadd.f32 %v1158_v30, %v1157_v26  ;;  %1160 = vst [vmem:[%s268_s12] sm:$0xff] %v1147_v27 }
  0xf7   : > { %1161 = vst [vmem:[%s272_s15] sm:$0xff] %v1159_v31 }
  0xf8 PF: > { %s17_s21 = sadd.s32 1, %s1727_s21  }
  0xf9   : > { %p14_p4 = scmp.ge.s32.totalorder %s17_s21, 4  }
  0xfb   :  { %16 = sbr.rel (!%p14_p4) target bundleno = 1 (0x1), region = 93 }

// kernel: discriminator.6
= control target key start
LH: loop header
LB: loop body
LE: loop exit
PB: predicated region body
PF: predicated region fallthrough
CT: control target
= control target key end

     0   :  { %s7605_s21 = smov 0   ;;  %s10988_s0 = inlined_call_operand.vmem [shape: bf16[2,17,512], index: 0, kind: input, shape index: {}]   ;;  %s10989_s1 = inlined_call_operand.vmem [shape: bf16[4,512,512], index: 1, kind: input, shape index: {}]   ;;  %s10990_s2 = inlined_call_operand.vmem [shape: f32[1,512], index: 2, kind: input, shape index: {}]   ;;  %s10991_s3 = inlined_call_operand.vmem [shape: f32[1,512], index: 3, kind: input, shape index: {}]   ;;  %s10992_s4 = inlined_call_operand.vmem [shape: bf16[2,6,512], index: 4, kind: output, shape index: {0}]   ;;  %s10993_s5 = inlined_call_operand.vmem [shape: f32[2,1,8,512], index: 5, kind: output, shape index: {1}]   ;;  %s10994_s6 = inlined_call_operand.vmem [shape: f32[2,1,8,512], index: 6, kind: output, shape index: {2}]  }
   0x1 LB: > { %s4592_s22 = sadd.s32 4294967295, %s7568_s21   ;;  %p4596_p0 = scmp.ge.s32.totalorder %s7568_s21, 1  ;;  %s7568_s21 = sphi %s7605_s21, %s17_s21  }
   0x2   : > { %p217_p1 = scmp.lt.s32.totalorder %s7568_s21, 3 }
   0x4   : > { %p218_p2 = pnand %p4596_p0, %p217_p1 }
   0x5   : > { %p257_p3 = scmp.lt.s32.totalorder (!%p218_p2), %s4592_s22, 1 }
   0x6   : > { %221 = sbr.rel (%p218_p2) target bundleno = 681 (0x2a9), region = 36 }
   0xb   : > { %v4846_v0 = vld [vmem:[%s10989_s1 + $0x4e0] sm:$0xf]  ;;  %v7199_v1 = vld [vmem:[%s10989_s1 + $0x4ec] sm:$0xf0]  ;;  %s10996_s22 = smov (!%p257_p3, %s4592_s22), 1  ;;  %vm4402_vm0 = vcmask 1045504  }
   0xc   : > { %v4974_v2 = vld [vmem:[%s10989_s1 + $0x5e0] sm:$0xf]  ;;  %v4847_v3 = vor.u32 %v7199_v1, %v4846_v0  ;;  %v7231_v4 = vld [vmem:[%s10989_s1 + $0x5ec] sm:$0xf0]  ;;  %s7553_s27 = smul.u32 48, %s10996_s22  ;;  %s7039_s8 = sshll.u32 %s10996_s22, 5 }
   0xd   : > { %v5102_v5 = vld [vmem:[%s10989_s1 + $0x6e0] sm:$0xf]  ;;  %v7263_v6 = vld [vmem:[%s10989_s1 + $0x6ec] sm:$0xf0]  ;;  %v4975_v7 = vor.u32 %v7231_v4, %v4974_v2  ;;  %s10953_s11 = scalar_lea.vmem %s10993_s5, %s7039_s8  ;;  %s10958_s14 = scalar_lea.vmem %s10994_s6, %s7039_s8 }
   0xe   : > { %v5103_v8 = vor.u32 %v7263_v6, %v5102_v5  ;;  %v5230_v9 = vld [vmem:[%s10989_s1 + $0x7e0] sm:$0xf]  ;;  %v7295_v10 = vld [vmem:[%s10989_s1 + $0x7ec] sm:$0xf0]  ;;  %1270 = vmatpush.bf16.msra.mxu0 %v4847_v3  ;;  %s7941_s16 = scalar_lea.vmem %s10988_s0, %s7553_s27  ;;  %s7038_s15 = sshll.u32 %s10996_s22, 4 }
   0xf   : > { %v4830_v11 = vld [vmem:[%s10989_s1 + $0x4c0] sm:$0xf]  ;;  %v5231_v12 = vor.u32 %v7295_v10, %v5230_v9  ;;  %v7195_v13 = vld [vmem:[%s10989_s1 + $0x4cc] sm:$0xf0]  ;;  %1283 = vmatpush.bf16.msra.mxu1 %v4975_v7  ;;  %s10967_s19 = scalar_lea.vmem %s10992_s4, %s7038_s15 }
  0x10   : > { %v4958_v14 = vld [vmem:[%s10989_s1 + $0x5c0] sm:$0xf]  ;;  %v7227_v15 = vld [vmem:[%s10989_s1 + $0x5cc] sm:$0xf0]  ;;  %1296 = vmatpush.bf16.msra.mxu2 %v5103_v8  ;;  %v4831_v16 = vor.u32 %v7195_v13, %v4830_v11 }
  0x11   : > { %v4959_v17 = vor.u32 %v7227_v15, %v4958_v14  ;;  %v5086_v18 = vld [vmem:[%s10989_s1 + $0x6c0] sm:$0xf]  ;;  %v7259_v19 = vld [vmem:[%s10989_s1 + $0x6cc] sm:$0xf0]  ;;  %1309 = vmatpush.bf16.msra.mxu3 %v5231_v12 }
  0x12   : > { %v5214_v20 = vld [vmem:[%s10989_s1 + $0x7c0] sm:$0xf]  ;;  %v5087_v21 = vor.u32 %v7259_v19, %v5086_v18  ;;  %v7291_v22 = vld [vmem:[%s10989_s1 + $0x7cc] sm:$0xf0]  ;;  %1271 = vmatpush.bf16.msra.mxu0 %v4831_v16 }
  0x13   : > { %v4814_v23 = vld [vmem:[%s10989_s1 + $0x4a0] sm:$0xf]  ;;  %v7191_v24 = vld [vmem:[%s10989_s1 + $0x4ac] sm:$0xf0]  ;;  %v5215_v25 = vor.u32 %v7291_v22, %v5214_v20  ;;  %1284 = vmatpush.bf16.msra.mxu1 %v4959_v17 }
  0x14   : > { %v4942_v26 = vld [vmem:[%s10989_s1 + $0x5a0] sm:$0xf]  ;;  %v7223_v27 = vld [vmem:[%s10989_s1 + $0x5ac] sm:$0xf0]  ;;  %v4815_v29 = vor.u32 %v7191_v24, %v4814_v23  ;;  %1297 = vmatpush.bf16.msra.mxu2 %v5087_v21 }
  0x15   : > { %v5070_v28 = vld [vmem:[%s10989_s1 + $0x6a0] sm:$0xf]  ;;  %v7255_v30 = vld [vmem:[%s10989_s1 + $0x6ac] sm:$0xf0]  ;;  %v4943_v33 = vor.u32 %v7223_v27, %v4942_v26  ;;  %1310 = vmatpush.bf16.msra.mxu3 %v5215_v25 }
  0x16   : > { %v5198_v31 = vld [vmem:[%s10989_s1 + $0x7a0] sm:$0xf]  ;;  %v7287_v32 = vld [vmem:[%s10989_s1 + $0x7ac] sm:$0xf0]  ;;  %v5071_v34 = vor.u32 %v7255_v30, %v5070_v28  ;;  %1272 = vmatpush.bf16.msra.mxu0 %v4815_v29  ;;  %v7197_v28 = vld [vmem:[%s10989_s1 + $0x4e4] sm:$0xf] }
  0x17   : > { %v4798_v35 = vld [vmem:[%s10989_s1 + $0x480] sm:$0xf]  ;;  %v7187_v36 = vld [vmem:[%s10989_s1 + $0x48c] sm:$0xf0]  ;;  %v5199_v38 = vor.u32 %v7287_v32, %v5198_v31  ;;  %1285 = vmatpush.bf16.msra.mxu1 %v4943_v33  ;;  %v4848_v29 = vld [vmem:[%s10989_s1 + $0x4f0] sm:$0xf0] }
  0x18   : > { %v4926_v37 = vld [vmem:[%s10989_s1 + $0x580] sm:$0xf]  ;;  %v7219_v39 = vld [vmem:[%s10989_s1 + $0x58c] sm:$0xf0]  ;;  %v4799_v44 = vor.u32 %v7187_v36, %v4798_v35  ;;  %1298 = vmatpush.bf16.msra.mxu2 %v5071_v34  ;;  %v7229_v30 = vld [vmem:[%s10989_s1 + $0x5e4] sm:$0xf] }
  0x19   : > { %v5054_v40 = vld [vmem:[%s10989_s1 + $0x680] sm:$0xf]  ;;  %v7251_v41 = vld [vmem:[%s10989_s1 + $0x68c] sm:$0xf0]  ;;  %v4927_v45 = vor.u32 %v7219_v39, %v4926_v37  ;;  %1311 = vmatpush.bf16.msra.mxu3 %v5199_v38  ;;  %v4976_v32 = vld [vmem:[%s10989_s1 + $0x5f0] sm:$0xf0] }
  0x1a   : > { %v5182_v42 = vld [vmem:[%s10989_s1 + $0x780] sm:$0xf]  ;;  %v7283_v43 = vld [vmem:[%s10989_s1 + $0x78c] sm:$0xf0]  ;;  %v5055_v46 = vor.u32 %v7251_v41, %v5054_v40  ;;  %1273 = vmatpush.bf16.msra.mxu0 %v4799_v44  ;;  %v7261_v33 = vld [vmem:[%s10989_s1 + $0x6e4] sm:$0xf]  ;;  %v4851_v40 = vor.u32 %v7197_v28, %v4848_v29  ;;  %v4979_v41 = vor.u32 %v7229_v30, %v4976_v32 }
  0x1b   : > { %v4782_v47 = vld [vmem:[%s10989_s1 + $0x460] sm:$0xf]  ;;  %v7183_v48 = vld [vmem:[%s10989_s1 + $0x46c] sm:$0xf0]  ;;  %v5183_v50 = vor.u32 %v7283_v43, %v5182_v42  ;;  %1286 = vmatpush.bf16.msra.mxu1 %v4927_v45  ;;  %v5104_v34 = vld [vmem:[%s10989_s1 + $0x6f0] sm:$0xf0] }
  0x1c   : > { %v4910_v49 = vld [vmem:[%s10989_s1 + $0x560] sm:$0xf]  ;;  %v7215_v51 = vld [vmem:[%s10989_s1 + $0x56c] sm:$0xf0]  ;;  %v4783_v56 = vor.u32 %v7183_v48, %v4782_v47  ;;  %1299 = vmatpush.bf16.msra.mxu2 %v5055_v46  ;;  %v7293_v37 = vld [vmem:[%s10989_s1 + $0x7e4] sm:$0xf]  ;;  %v5107_v42 = vor.u32 %v7261_v33, %v5104_v34 }
  0x1d   : > { %v5038_v52 = vld [vmem:[%s10989_s1 + $0x660] sm:$0xf]  ;;  %v7247_v53 = vld [vmem:[%s10989_s1 + $0x66c] sm:$0xf0]  ;;  %v4911_v57 = vor.u32 %v7215_v51, %v4910_v49  ;;  %1312 = vmatpush.bf16.msra.mxu3 %v5183_v50  ;;  %v5232_v38 = vld [vmem:[%s10989_s1 + $0x7f0] sm:$0xf0] }
  0x1e   : > { %v5166_v54 = vld [vmem:[%s10989_s1 + $0x760] sm:$0xf]  ;;  %v7279_v55 = vld [vmem:[%s10989_s1 + $0x76c] sm:$0xf0]  ;;  %v5039_v58 = vor.u32 %v7247_v53, %v5038_v52  ;;  %1274 = vmatpush.bf16.msra.mxu0 %v4783_v56  ;;  %v7193_v43 = vld [vmem:[%s10989_s1 + $0x4c4] sm:$0xf]  ;;  %v5235_v46 = vor.u32 %v7293_v37, %v5232_v38 }
  0x1f   : > { %v4766_v59 = vld [vmem:[%s10989_s1 + $0x440] sm:$0xf]  ;;  %v7179_v60 = vld [vmem:[%s10989_s1 + $0x44c] sm:$0xf0]  ;;  %v5167_v62 = vor.u32 %v7279_v55, %v5166_v54  ;;  %1287 = vmatpush.bf16.msra.mxu1 %v4911_v57  ;;  %v4832_v44 = vld [vmem:[%s10989_s1 + $0x4d0] sm:$0xf0] }
  0x20   : > { %v4894_v61 = vld [vmem:[%s10989_s1 + $0x540] sm:$0xf]  ;;  %v7211_v63 = vld [vmem:[%s10989_s1 + $0x54c] sm:$0xf0]  ;;  %v4767_v4 = vor.u32 %v7179_v60, %v4766_v59  ;;  %1300 = vmatpush.bf16.msra.mxu2 %v5039_v58  ;;  %v7225_v45 = vld [vmem:[%s10989_s1 + $0x5c4] sm:$0xf]  ;;  %v4835_v52 = vor.u32 %v7193_v43, %v4832_v44 }
  0x21   : > { %v5022_v0 = vld [vmem:[%s10989_s1 + $0x640] sm:$0xf]  ;;  %v7243_v1 = vld [vmem:[%s10989_s1 + $0x64c] sm:$0xf0]  ;;  %v4895_v5 = vor.u32 %v7211_v63, %v4894_v61  ;;  %1313 = vmatpush.bf16.msra.mxu3 %v5167_v62  ;;  %v4960_v47 = vld [vmem:[%s10989_s1 + $0x5d0] sm:$0xf0] }
  0x22   : > { %v5150_v2 = vld [vmem:[%s10989_s1 + $0x740] sm:$0xf]  ;;  %v7275_v3 = vld [vmem:[%s10989_s1 + $0x74c] sm:$0xf0]  ;;  %v5023_v6 = vor.u32 %v7243_v1, %v5022_v0  ;;  %1275 = vmatpush.bf16.msra.mxu0 %v4767_v4  ;;  %v7257_v48 = vld [vmem:[%s10989_s1 + $0x6c4] sm:$0xf]  ;;  %v4963_v55 = vor.u32 %v7225_v45, %v4960_v47 }
  0x23   : > { %v4750_v7 = vld [vmem:[%s10989_s1 + $0x420] sm:$0xf]  ;;  %v7175_v8 = vld [vmem:[%s10989_s1 + $0x42c] sm:$0xf0]  ;;  %v5151_v10 = vor.u32 %v7275_v3, %v5150_v2  ;;  %1288 = vmatpush.bf16.msra.mxu1 %v4895_v5  ;;  %v5088_v49 = vld [vmem:[%s10989_s1 + $0x6d0] sm:$0xf0] }
  0x24   : > { %v4878_v9 = vld [vmem:[%s10989_s1 + $0x520] sm:$0xf]  ;;  %v7207_v11 = vld [vmem:[%s10989_s1 + $0x52c] sm:$0xf0]  ;;  %v4751_v16 = vor.u32 %v7175_v8, %v4750_v7  ;;  %1301 = vmatpush.bf16.msra.mxu2 %v5023_v6  ;;  %v7289_v50 = vld [vmem:[%s10989_s1 + $0x7c4] sm:$0xf]  ;;  %v5091_v56 = vor.u32 %v7257_v48, %v5088_v49 }
  0x25   : > { %v5006_v12 = vld [vmem:[%s10989_s1 + $0x620] sm:$0xf]  ;;  %v7239_v13 = vld [vmem:[%s10989_s1 + $0x62c] sm:$0xf0]  ;;  %v4879_v19 = vor.u32 %v7207_v11, %v4878_v9  ;;  %1314 = vmatpush.bf16.msra.mxu3 %v5151_v10  ;;  %v5216_v51 = vld [vmem:[%s10989_s1 + $0x7d0] sm:$0xf0] }
  0x26   : > { %v5134_v14 = vld [vmem:[%s10989_s1 + $0x720] sm:$0xf]  ;;  %v7271_v15 = vld [vmem:[%s10989_s1 + $0x72c] sm:$0xf0]  ;;  %v5007_v20 = vor.u32 %v7239_v13, %v5006_v12  ;;  %1276 = vmatpush.bf16.msra.mxu0 %v4751_v16  ;;  %v7189_v53 = vld [vmem:[%s10989_s1 + $0x4a4] sm:$0xf]  ;;  %v5219_v60 = vor.u32 %v7289_v50, %v5216_v51 }
  0x27   : > { %v4734_v17 = vld [vmem:[%s10989_s1 + $0x400] sm:$0xf]  ;;  %v7171_v18 = vld [vmem:[%s10989_s1 + $0x40c] sm:$0xf0]  ;;  %v5135_v24 = vor.u32 %v7271_v15, %v5134_v14  ;;  %1289 = vmatpush.bf16.msra.mxu1 %v4879_v19  ;;  %v4816_v54 = vld [vmem:[%s10989_s1 + $0x4b0] sm:$0xf0] }
  0x28   : > { %v4862_v21 = vld [vmem:[%s10989_s1 + $0x500] sm:$0xf]  ;;  %v7203_v22 = vld [vmem:[%s10989_s1 + $0x50c] sm:$0xf0]  ;;  %v4735_v31 = vor.u32 %v7171_v18, %v4734_v17  ;;  %1302 = vmatpush.bf16.msra.mxu2 %v5007_v20  ;;  %v7221_v57 = vld [vmem:[%s10989_s1 + $0x5a4] sm:$0xf]  ;;  %v4819_v3 = vor.u32 %v7189_v53, %v4816_v54 }
  0x29   : > { %v4990_v23 = vld [vmem:[%s10989_s1 + $0x600] sm:$0xf]  ;;  %v7235_v25 = vld [vmem:[%s10989_s1 + $0x60c] sm:$0xf0]  ;;  %v4863_v35 = vor.u32 %v7203_v22, %v4862_v21  ;;  %1315 = vmatpush.bf16.msra.mxu3 %v5135_v24  ;;  %v4944_v58 = vld [vmem:[%s10989_s1 + $0x5b0] sm:$0xf0] }
  0x2a   : > { %v5118_v26 = vld [vmem:[%s10989_s1 + $0x700] sm:$0xf]  ;;  %v7267_v27 = vld [vmem:[%s10989_s1 + $0x70c] sm:$0xf0]  ;;  %v4991_v36 = vor.u32 %v7235_v25, %v4990_v23  ;;  %1277 = vmatpush.bf16.msra.mxu0 %v4735_v31  ;;  %v7253_v59 = vld [vmem:[%s10989_s1 + $0x6a4] sm:$0xf]  ;;  %v4947_v6 = vor.u32 %v7221_v57, %v4944_v58 }
  0x2b   : > { %v5119_v39 = vor.u32 %v7267_v27, %v5118_v26  ;;  %1290 = vmatpush.bf16.msra.mxu1 %v4863_v35  ;;  %v5072_v61 = vld [vmem:[%s10989_s1 + $0x6b0] sm:$0xf0]  ;;  %v7285_v62 = vld [vmem:[%s10989_s1 + $0x7a4] sm:$0xf]  ;;  %v283_v14 = vld [vmem:[%s10990_s2] sm:$0xf] }
  0x2c   : > { %1303 = vmatpush.bf16.msra.mxu2 %v4991_v36  ;;  %v5200_v63 = vld [vmem:[%s10989_s1 + $0x7b0] sm:$0xf0]  ;;  %v7185_v0 = vld [vmem:[%s10989_s1 + $0x484] sm:$0xf]  ;;  %v5075_v7 = vor.u32 %v7253_v59, %v5072_v61  ;;  %v297_v19 = vld [vmem:[%s10991_s3] sm:$0xf] }
  0x2d   : > { %1316 = vmatpush.bf16.msra.mxu3 %v5119_v39  ;;  %v4800_v1 = vld [vmem:[%s10989_s1 + $0x490] sm:$0xf0]  ;;  %v7217_v2 = vld [vmem:[%s10989_s1 + $0x584] sm:$0xf]  ;;  %v5203_v11 = vor.u32 %v7285_v62, %v5200_v63  ;;  %v7943_v27 = vperm.slane %v283_v14, 2  ;;  %v7945_v28 = vperm.slane %v283_v14, 3 }
  0x2e   : > { %1322 = vmatpush.bf16.msrb.mxu0 %v4851_v40  ;;  %v4928_v4 = vld [vmem:[%s10989_s1 + $0x590] sm:$0xf0]  ;;  %v7249_v5 = vld [vmem:[%s10989_s1 + $0x684] sm:$0xf]  ;;  %v4803_v15 = vor.u32 %v7185_v0, %v4800_v1  ;;  %v7947_v29 = vperm.slane %v283_v14, 0  ;;  %v7949_v30 = vperm.slane %v283_v14, 1 }
  0x2f   : > { %1335 = vmatpush.bf16.msrb.mxu1 %v4979_v41  ;;  %v5056_v8 = vld [vmem:[%s10989_s1 + $0x690] sm:$0xf0]  ;;  %v7281_v9 = vld [vmem:[%s10989_s1 + $0x784] sm:$0xf]  ;;  %v4931_v16 = vor.u32 %v7217_v2, %v4928_v4  ;;  %v7951_v31 = vperm.slane %v297_v19, 2  ;;  %v448_v32 = vld [vmem:[%s7941_s16 + $0x8] sm:$0xff] }
  0x30   : > { %1348 = vmatpush.bf16.msrb.mxu2 %v5107_v42  ;;  %v5184_v10 = vld [vmem:[%s10989_s1 + $0x790] sm:$0xf0]  ;;  %v7181_v12 = vld [vmem:[%s10989_s1 + $0x464] sm:$0xf]  ;;  %v5059_v20 = vor.u32 %v7249_v5, %v5056_v8  ;;  %v7954_v33 = vperm.slane %v297_v19, 3  ;;  %v7956_v34 = vperm.slane %v297_v19, 0  ;;  %v451_v39 = vunpack.c.l.bf16 %v448_v32 }
  0x31   : > { %1361 = vmatpush.bf16.msrb.mxu3 %v5235_v46  ;;  %v4784_v13 = vld [vmem:[%s10989_s1 + $0x470] sm:$0xf0]  ;;  %v7213_v17 = vld [vmem:[%s10989_s1 + $0x564] sm:$0xf]  ;;  %v5187_v21 = vor.u32 %v7281_v9, %v5184_v10  ;;  %v7959_v36 = vperm.slane %v297_v19, 1  ;;  %v452_v40 = vunpack.c.h.bf16 %v448_v32 }
  0x32   : > { %1323 = vmatpush.bf16.msrb.mxu0 %v4835_v52  ;;  %v4912_v18 = vld [vmem:[%s10989_s1 + $0x570] sm:$0xf0]  ;;  %v4787_v22 = vor.u32 %v7181_v12, %v4784_v13  ;;  %v7245_v23 = vld [vmem:[%s10989_s1 + $0x664] sm:$0xf]  ;;  %v455_v52 = vmul.f32 %v451_v39, %v7943_v27 }
  0x33   : > { %1336 = vmatpush.bf16.msrb.mxu1 %v4963_v55  ;;  %v5040_v24 = vld [vmem:[%s10989_s1 + $0x670] sm:$0xf0]  ;;  %v7277_v25 = vld [vmem:[%s10989_s1 + $0x764] sm:$0xf]  ;;  %v4915_v43 = vor.u32 %v7213_v17, %v4912_v18  ;;  %v456_v53 = vmul.f32 %v452_v40, %v7945_v28 }
  0x34   : > { %1349 = vmatpush.bf16.msrb.mxu2 %v5091_v56  ;;  %v5168_v26 = vld [vmem:[%s10989_s1 + $0x770] sm:$0xf0]  ;;  %v447_v35 = vld [vmem:[%s7941_s16] sm:$0xff]  ;;  %v5043_v44 = vor.u32 %v7245_v23, %v5040_v24  ;;  %v459_v58 = vadd.f32 %v455_v52, %v7951_v31  ;;  %v5110_v52 = vld [vmem:[%s10989_s1 + $0x6e8] sm:$0xf] }
  0x35   : > { %1362 = vmatpush.bf16.msrb.mxu3 %v5219_v60  ;;  %v7177_v37 = vld [vmem:[%s10989_s1 + $0x444] sm:$0xf]  ;;  %v4768_v38 = vld [vmem:[%s10989_s1 + $0x450] sm:$0xf0]  ;;  %v449_v41 = vunpack.c.l.bf16 %v447_v35  ;;  %v450_v42 = vunpack.c.h.bf16 %v447_v35  ;;  %v5171_v45 = vor.u32 %v7277_v25, %v5168_v26  ;;  %v460_v59 = vadd.f32 %v456_v53, %v7954_v33 }
  0x36   : > { %1324 = vmatpush.bf16.msrb.mxu0 %v4819_v3  ;;  %v7209_v46 = vld [vmem:[%s10989_s1 + $0x544] sm:$0xf]  ;;  %v4896_v47 = vld [vmem:[%s10989_s1 + $0x550] sm:$0xf0]  ;;  %v4771_v56 = vor.u32 %v7177_v37, %v4768_v38 }
  0x37   : > { %1337 = vmatpush.bf16.msrb.mxu1 %v4947_v6  ;;  %v7241_v48 = vld [vmem:[%s10989_s1 + $0x644] sm:$0xf]  ;;  %v5024_v49 = vld [vmem:[%s10989_s1 + $0x650] sm:$0xf0]  ;;  %v453_v54 = vmul.f32 %v449_v41, %v7947_v29  ;;  %v454_v55 = vmul.f32 %v450_v42, %v7949_v30  ;;  %v4899_v1 = vor.u32 %v7209_v46, %v4896_v47  ;;  %v464_v8 = vmax.f32 %v460_v59, 0.0 }
  0x38   : > { %1350 = vmatpush.bf16.msrb.mxu2 %v5075_v7  ;;  %v7273_v50 = vld [vmem:[%s10989_s1 + $0x744] sm:$0xf]  ;;  %v5152_v51 = vld [vmem:[%s10989_s1 + $0x750] sm:$0xf0]  ;;  %v5027_v2 = vor.u32 %v7241_v48, %v5024_v49  ;;  %v463_v7 = vmax.f32 %v459_v58, 0.0 }
  0x39   : > { %1363 = vmatpush.bf16.msrb.mxu3 %v5203_v11  ;;  %v7173_v57 = vld [vmem:[%s10989_s1 + $0x424] sm:$0xf]  ;;  %v4752_v60 = vld [vmem:[%s10989_s1 + $0x430] sm:$0xf0]  ;;  %v457_v63 = vadd.f32 %v453_v54, %v7956_v34  ;;  %v458_v0 = vadd.f32 %v454_v55, %v7959_v36  ;;  %v5155_v3 = vor.u32 %v7273_v50, %v5152_v51  ;;  %v468_v14 = vpack.c.bf16 %v464_v8, %v464_v8  ;;  %v7200_v47 = vld [vmem:[%s10989_s1 + $0x4f4] sm:$0xf0] }
  0x3a   : > { %1325 = vmatpush.bf16.msrb.mxu0 %v4803_v15  ;;  %v7205_v61 = vld [vmem:[%s10989_s1 + $0x524] sm:$0xf]  ;;  %v4880_v62 = vld [vmem:[%s10989_s1 + $0x530] sm:$0xf0]  ;;  %v4755_v12 = vor.u32 %v7173_v57, %v4752_v60  ;;  %v467_v13 = vpack.c.bf16 %v463_v7, %v463_v7  ;;  %v4982_v48 = vld [vmem:[%s10989_s1 + $0x5e8] sm:$0xf] }
  0x3b   : > { %1338 = vmatpush.bf16.msrb.mxu1 %v4931_v16  ;;  %v7237_v4 = vld [vmem:[%s10989_s1 + $0x624] sm:$0xf]  ;;  %v5008_v5 = vld [vmem:[%s10989_s1 + $0x630] sm:$0xf0]  ;;  %v461_v10 = vmax.f32 %v457_v63, 0.0  ;;  %v462_v11 = vmax.f32 %v458_v0, 0.0  ;;  %v4883_v17 = vor.u32 %v7205_v61, %v4880_v62 }
  0x3c   : > { %1351 = vmatpush.bf16.msrb.mxu2 %v5059_v20  ;;  %v7269_v6 = vld [vmem:[%s10989_s1 + $0x724] sm:$0xf]  ;;  %v5136_v9 = vld [vmem:[%s10989_s1 + $0x730] sm:$0xf0]  ;;  %v5011_v18 = vor.u32 %v7237_v4, %v5008_v5  ;;  %v613_v24 = vshrl.u32 %v467_v13, 16  ;;  %v615_v25 = vshll.u32 %v467_v13, 16 }
  0x3d   : > { %1364 = vmatpush.bf16.msrb.mxu3 %v5187_v21  ;;  %v465_v15 = vpack.c.bf16 %v461_v10, %v461_v10  ;;  %v466_v16 = vpack.c.bf16 %v462_v11, %v462_v11  ;;  %v5139_v19 = vor.u32 %v7269_v6, %v5136_v9  ;;  %v7169_v20 = vld [vmem:[%s10989_s1 + $0x404] sm:$0xf]  ;;  %v4736_v21 = vld [vmem:[%s10989_s1 + $0x410] sm:$0xf0]  ;;  %v620_v26 = vshrl.u32 %v468_v14, 16 }
  0x3e   : > { %1326 = vmatpush.bf16.msrb.mxu0 %v4787_v22  ;;  %v7201_v22 = vld [vmem:[%s10989_s1 + $0x504] sm:$0xf]  ;;  %v4864_v23 = vld [vmem:[%s10989_s1 + $0x510] sm:$0xf0]  ;;  %v622_v32 = vshll.u32 %v468_v14, 16  ;;  %v4739_v55 = vor.u32 %v7169_v20, %v4736_v21 }
  0x3f   : > { %1339 = vmatpush.bf16.msrb.mxu1 %v4915_v43  ;;  %v7233_v35 = vld [vmem:[%s10989_s1 + $0x604] sm:$0xf]  ;;  %v4992_v37 = vld [vmem:[%s10989_s1 + $0x610] sm:$0xf0]  ;;  %v599_v40 = vshrl.u32 %v465_v15, 16  ;;  %v601_v41 = vshll.u32 %v465_v15, 16 }
  0x40   : > { %1352 = vmatpush.bf16.msrb.mxu2 %v5043_v44  ;;  %v7265_v38 = vld [vmem:[%s10989_s1 + $0x704] sm:$0xf]  ;;  %v5120_v39 = vld [vmem:[%s10989_s1 + $0x710] sm:$0xf0]  ;;  %v606_v42 = vshrl.u32 %v466_v16, 16  ;;  %v608_v43 = vshll.u32 %v466_v16, 16  ;;  %v4995_v62 = vor.u32 %v7233_v35, %v4992_v37 }
  0x41   : > { %1365 = vmatpush.bf16.msrb.mxu3 %v5171_v45  ;;  %v4854_v44 = vld [vmem:[%s10989_s1 + $0x4e8] sm:$0xf]  ;;  %v617_v45 = vrot.slane %v615_v25, 1  ;;  %v624_v46 = vrot.slane %v622_v32, 1  ;;  %v603_v49 = vrot.slane %v601_v41, 1  ;;  %v5123_v63 = vor.u32 %v7265_v38, %v5120_v39 }
  0x42   : > { %1327 = vmatpush.bf16.msrb.mxu0 %v4771_v56  ;;  %v610_v50 = vrot.slane %v608_v43, 1  ;;  %v7232_v51 = vld [vmem:[%s10989_s1 + $0x5f4] sm:$0xf0]  ;;  %v4867_v56 = vor.u32 %v7201_v22, %v4864_v23  ;;  %v5238_v58 = vld [vmem:[%s10989_s1 + $0x7e8] sm:$0xf]  ;;  %v4855_v0 = vor.u32 %v7200_v47, %v4854_v44 }
  0x43   : > { %1340 = vmatpush.bf16.msrb.mxu1 %v4899_v1  ;;  %v8056_v53 = vor.u32 %v617_v45, %v613_v24  ;;  %v8058_v54 = vor.u32 %v624_v46, %v620_v26  ;;  %v7264_v57 = vld [vmem:[%s10989_s1 + $0x6f4] sm:$0xf0]  ;;  %v8069_v60 = vor.u32 %v603_v49, %v599_v40  ;;  %v4983_v1 = vor.u32 %v7232_v51, %v4982_v48  ;;  %v4966_v6 = vld [vmem:[%s10989_s1 + $0x5c8] sm:$0xf] }
  0x44   : > { %1353 = vmatpush.bf16.msrb.mxu2 %v5027_v2  ;;  %v7296_v59 = vld [vmem:[%s10989_s1 + $0x7f4] sm:$0xf0]  ;;  %v8071_v61 = vor.u32 %v610_v50, %v606_v42  ;;  %v4838_v2 = vld [vmem:[%s10989_s1 + $0x4c8] sm:$0xf]  ;;  %v5111_v4 = vor.u32 %v7264_v57, %v5110_v52 }
  0x45   : > { %1366 = vmatpush.bf16.msrb.mxu3 %v5155_v3  ;;  %1304 = vmatmul.bf16.vlgmr.msra.gmra.mxu2 %v8056_v53  ;;  %v7196_v3 = vld [vmem:[%s10989_s1 + $0x4d4] sm:$0xf0]  ;;  %v5239_v5 = vor.u32 %v7296_v59, %v5238_v58  ;;  %v5094_v8 = vld [vmem:[%s10989_s1 + $0x6c8] sm:$0xf] }
  0x46   : > { %1328 = vmatpush.bf16.msrb.mxu0 %v4755_v12  ;;  %1317 = vmatmul.bf16.vlgmr.msra.gmra.mxu3 %v8058_v54  ;;  %v7228_v7 = vld [vmem:[%s10989_s1 + $0x5d4] sm:$0xf0]  ;;  %v5222_v10 = vld [vmem:[%s10989_s1 + $0x7c8] sm:$0xf]  ;;  %v4839_v12 = vor.u32 %v7196_v3, %v4838_v2 }
  0x47   : > { %1341 = vmatpush.bf16.msrb.mxu1 %v4883_v17  ;;  %1278 = vmatmul.bf16.vlgmr.msra.gmra.mxu0 %v8069_v60  ;;  %v7260_v9 = vld [vmem:[%s10989_s1 + $0x6d4] sm:$0xf0]  ;;  %v4967_v13 = vor.u32 %v7228_v7, %v4966_v6  ;;  %v4822_v14 = vld [vmem:[%s10989_s1 + $0x4a8] sm:$0xf] }
  0x48   : > { %1354 = vmatpush.bf16.msrb.mxu2 %v5011_v18  ;;  %1291 = vmatmul.bf16.vlgmr.msra.gmra.mxu1 %v8071_v61  ;;  %v7292_v11 = vld [vmem:[%s10989_s1 + $0x7d4] sm:$0xf0]  ;;  %v5095_v16 = vor.u32 %v7260_v9, %v5094_v8  ;;  %v4950_v18 = vld [vmem:[%s10989_s1 + $0x5a8] sm:$0xf] }
  0x49   : > { %1367 = vmatpush.bf16.msrb.mxu3 %v5139_v19  ;;  %v7192_v15 = vld [vmem:[%s10989_s1 + $0x4b4] sm:$0xf0]  ;;  %v5223_v17 = vor.u32 %v7292_v11, %v5222_v10  ;;  %v5078_v20 = vld [vmem:[%s10989_s1 + $0x6a8] sm:$0xf] }
  0x4a   : > { %1329 = vmatpush.bf16.msrb.mxu0 %v4739_v55  ;;  %v7224_v19 = vld [vmem:[%s10989_s1 + $0x5b4] sm:$0xf0]  ;;  %v5206_v22 = vld [vmem:[%s10989_s1 + $0x7a8] sm:$0xf]  ;;  %v4823_v24 = vor.u32 %v7192_v15, %v4822_v14 }
  0x4b   : > { %1342 = vmatpush.bf16.msrb.mxu1 %v4867_v56  ;;  %v7256_v21 = vld [vmem:[%s10989_s1 + $0x6b4] sm:$0xf0]  ;;  %v4951_v25 = vor.u32 %v7224_v19, %v4950_v18  ;;  %v4806_v26 = vld [vmem:[%s10989_s1 + $0x488] sm:$0xf] }
  0x4c   : > { %1355 = vmatpush.bf16.msrb.mxu2 %v4995_v62  ;;  %v7288_v23 = vld [vmem:[%s10989_s1 + $0x7b4] sm:$0xf0]  ;;  %v5079_v35 = vor.u32 %v7256_v21, %v5078_v20  ;;  %v4934_v38 = vld [vmem:[%s10989_s1 + $0x588] sm:$0xf] }
  0x4d   : > { %1368 = vmatpush.bf16.msrb.mxu3 %v5123_v63  ;;  %v7188_v32 = vld [vmem:[%s10989_s1 + $0x494] sm:$0xf0]  ;;  %v5207_v37 = vor.u32 %v7288_v23, %v5206_v22  ;;  %v5062_v40 = vld [vmem:[%s10989_s1 + $0x688] sm:$0xf] }
  0x4e   : > { %1374 = vmatpush.bf16.msra.mxu0 %v4855_v0  ;;  %v7220_v39 = vld [vmem:[%s10989_s1 + $0x594] sm:$0xf0]  ;;  %v5190_v42 = vld [vmem:[%s10989_s1 + $0x788] sm:$0xf]  ;;  %v4807_v44 = vor.u32 %v7188_v32, %v4806_v26 }
  0x4f   : > { %1387 = vmatpush.bf16.msra.mxu1 %v4983_v1  ;;  %v7252_v41 = vld [vmem:[%s10989_s1 + $0x694] sm:$0xf0]  ;;  %v4935_v45 = vor.u32 %v7220_v39, %v4934_v38  ;;  %v4790_v46 = vld [vmem:[%s10989_s1 + $0x468] sm:$0xf] }
  0x50   : > { %1400 = vmatpush.bf16.msra.mxu2 %v5111_v4  ;;  %v7284_v43 = vld [vmem:[%s10989_s1 + $0x794] sm:$0xf0]  ;;  %v5063_v48 = vor.u32 %v7252_v41, %v5062_v40  ;;  %v4918_v50 = vld [vmem:[%s10989_s1 + $0x568] sm:$0xf]  ;;  %v7198_v40 = vld [vmem:[%s10989_s1 + $0x4ec] sm:$0xf] }
  0x51   : > { %1413 = vmatpush.bf16.msra.mxu3 %v5239_v5  ;;  %v7184_v47 = vld [vmem:[%s10989_s1 + $0x474] sm:$0xf0]  ;;  %v5191_v49 = vor.u32 %v7284_v43, %v5190_v42  ;;  %v5046_v52 = vld [vmem:[%s10989_s1 + $0x668] sm:$0xf]  ;;  %v4856_v41 = vld [vmem:[%s10989_s1 + $0x4f8] sm:$0xf0] }
  0x52   : > { %1375 = vmatpush.bf16.msra.mxu0 %v4839_v12  ;;  %v7216_v51 = vld [vmem:[%s10989_s1 + $0x574] sm:$0xf0]  ;;  %v5174_v56 = vld [vmem:[%s10989_s1 + $0x768] sm:$0xf]  ;;  %v4791_v58 = vor.u32 %v7184_v47, %v4790_v46  ;;  %v7230_v42 = vld [vmem:[%s10989_s1 + $0x5ec] sm:$0xf] }
  0x53   : > { %1388 = vmatpush.bf16.msra.mxu1 %v4967_v13  ;;  %v7248_v55 = vld [vmem:[%s10989_s1 + $0x674] sm:$0xf0]  ;;  %v4919_v59 = vor.u32 %v7216_v51, %v4918_v50  ;;  %v4774_v62 = vld [vmem:[%s10989_s1 + $0x448] sm:$0xf]  ;;  %v4984_v43 = vld [vmem:[%s10989_s1 + $0x5f8] sm:$0xf0] }
  0x54   : > { %1401 = vmatpush.bf16.msra.mxu2 %v5095_v16  ;;  %v7280_v57 = vld [vmem:[%s10989_s1 + $0x774] sm:$0xf0]  ;;  %v5047_v0 = vor.u32 %v7248_v55, %v5046_v52  ;;  %v4902_v2 = vld [vmem:[%s10989_s1 + $0x548] sm:$0xf]  ;;  %v5112_v47 = vld [vmem:[%s10989_s1 + $0x6f8] sm:$0xf0]  ;;  %v4859_v52 = vor.u32 %v7198_v40, %v4856_v41  ;;  %v4987_v55 = vor.u32 %v7230_v42, %v4984_v43 }
  0x55   : > { %1414 = vmatpush.bf16.msra.mxu3 %v5223_v17  ;;  %v7180_v63 = vld [vmem:[%s10989_s1 + $0x454] sm:$0xf0]  ;;  %v5175_v1 = vor.u32 %v7280_v57, %v5174_v56  ;;  %v5030_v4 = vld [vmem:[%s10989_s1 + $0x648] sm:$0xf]  ;;  %1356 = vmatmul.bf16.vlgmr.msrb.gmra.mxu2 %v8056_v53  ;;  %v7194_v56 = vld [vmem:[%s10989_s1 + $0x4cc] sm:$0xf] }
  0x56   : > { %1376 = vmatpush.bf16.msra.mxu0 %v4823_v24  ;;  %v7212_v3 = vld [vmem:[%s10989_s1 + $0x554] sm:$0xf0]  ;;  %v5158_v6 = vld [vmem:[%s10989_s1 + $0x748] sm:$0xf]  ;;  %1369 = vmatmul.bf16.vlgmr.msrb.gmra.mxu3 %v8058_v54  ;;  %v4775_v8 = vor.u32 %v7180_v63, %v4774_v62  ;;  %v4840_v57 = vld [vmem:[%s10989_s1 + $0x4d8] sm:$0xf0] }
  0x57   : > { %1389 = vmatpush.bf16.msra.mxu1 %v4951_v25  ;;  %v7244_v5 = vld [vmem:[%s10989_s1 + $0x654] sm:$0xf0]  ;;  %1330 = vmatmul.bf16.vlgmr.msrb.gmra.mxu0 %v8069_v60  ;;  %v4903_v9 = vor.u32 %v7212_v3, %v4902_v2  ;;  %v4758_v10 = vld [vmem:[%s10989_s1 + $0x428] sm:$0xf]  ;;  %v7226_v62 = vld [vmem:[%s10989_s1 + $0x5cc] sm:$0xf] }
  0x58   : > { %1402 = vmatpush.bf16.msra.mxu2 %v5079_v35  ;;  %v7276_v7 = vld [vmem:[%s10989_s1 + $0x754] sm:$0xf0]  ;;  %1343 = vmatmul.bf16.vlgmr.msrb.gmra.mxu1 %v8071_v61  ;;  %v5031_v12 = vor.u32 %v7244_v5, %v5030_v4  ;;  %v4886_v14 = vld [vmem:[%s10989_s1 + $0x528] sm:$0xf]  ;;  %v4968_v63 = vld [vmem:[%s10989_s1 + $0x5d8] sm:$0xf0]  ;;  %v4843_v4 = vor.u32 %v7194_v56, %v4840_v57 }
  0x59   : > { %1415 = vmatpush.bf16.msra.mxu3 %v5207_v37  ;;  %v7176_v11 = vld [vmem:[%s10989_s1 + $0x434] sm:$0xf0]  ;;  %v5159_v13 = vor.u32 %v7276_v7, %v5158_v6  ;;  %v5014_v16 = vld [vmem:[%s10989_s1 + $0x628] sm:$0xf]  ;;  %v7290_v2 = vld [vmem:[%s10989_s1 + $0x7cc] sm:$0xf]  ;;  %v4971_v5 = vor.u32 %v7226_v62, %v4968_v63 }
  0x5a   : > { %1377 = vmatpush.bf16.msra.mxu0 %v4807_v44  ;;  %v7208_v15 = vld [vmem:[%s10989_s1 + $0x534] sm:$0xf0]  ;;  %v5142_v18 = vld [vmem:[%s10989_s1 + $0x728] sm:$0xf]  ;;  %v4759_v21 = vor.u32 %v7176_v11, %v4758_v10  ;;  %v7262_v44 = vld [vmem:[%s10989_s1 + $0x6ec] sm:$0xf] }
  0x5b   : > { %1390 = vmatpush.bf16.msra.mxu1 %v4935_v45  ;;  %v7240_v17 = vld [vmem:[%s10989_s1 + $0x634] sm:$0xf0]  ;;  %v4742_v20 = vld [vmem:[%s10989_s1 + $0x408] sm:$0xf]  ;;  %v4887_v22 = vor.u32 %v7208_v15, %v4886_v14  ;;  %v5224_v3 = vld [vmem:[%s10989_s1 + $0x7d8] sm:$0xf0] }
  0x5c   : > { %1403 = vmatpush.bf16.msra.mxu2 %v5063_v48  ;;  %v7272_v19 = vld [vmem:[%s10989_s1 + $0x734] sm:$0xf0]  ;;  %v4870_v24 = vld [vmem:[%s10989_s1 + $0x508] sm:$0xf]  ;;  %v5015_v26 = vor.u32 %v7240_v17, %v5014_v16  ;;  %v7294_v48 = vld [vmem:[%s10989_s1 + $0x7ec] sm:$0xf] }
  0x5d   : > { %1416 = vmatpush.bf16.msra.mxu3 %v5191_v49  ;;  %v7172_v23 = vld [vmem:[%s10989_s1 + $0x414] sm:$0xf0]  ;;  %v5143_v32 = vor.u32 %v7272_v19, %v5142_v18  ;;  %v4998_v35 = vld [vmem:[%s10989_s1 + $0x608] sm:$0xf]  ;;  %v5240_v49 = vld [vmem:[%s10989_s1 + $0x7f8] sm:$0xf0] }
  0x5e   : > { %1378 = vmatpush.bf16.msra.mxu0 %v4791_v58  ;;  %v7204_v25 = vld [vmem:[%s10989_s1 + $0x514] sm:$0xf0]  ;;  %v5126_v38 = vld [vmem:[%s10989_s1 + $0x708] sm:$0xf]  ;;  %v4743_v45 = vor.u32 %v7172_v23, %v4742_v20  ;;  %v5115_v58 = vor.u32 %v7262_v44, %v5112_v47  ;;  %v7190_v6 = vld [vmem:[%s10989_s1 + $0x4ac] sm:$0xf] }
  0x5f   : > { %1391 = vmatpush.bf16.msra.mxu1 %v4919_v59  ;;  %v7236_v37 = vld [vmem:[%s10989_s1 + $0x614] sm:$0xf0]  ;;  %v4871_v46 = vor.u32 %v7204_v25, %v4870_v24  ;;  %v5243_v59 = vor.u32 %v7294_v48, %v5240_v49  ;;  %v4824_v7 = vld [vmem:[%s10989_s1 + $0x4b8] sm:$0xf0]  ;;  %v7222_v10 = vld [vmem:[%s10989_s1 + $0x5ac] sm:$0xf] }
  0x60   : > { %1404 = vmatpush.bf16.msra.mxu2 %v5047_v0  ;;  %v7268_v39 = vld [vmem:[%s10989_s1 + $0x714] sm:$0xf0]  ;;  %v4999_v50 = vor.u32 %v7236_v37, %v4998_v35  ;;  %v7258_v0 = vld [vmem:[%s10989_s1 + $0x6cc] sm:$0xf]  ;;  %v4952_v11 = vld [vmem:[%s10989_s1 + $0x5b8] sm:$0xf0]  ;;  %v4827_v16 = vor.u32 %v7190_v6, %v4824_v7 }
  0x61   : > { %1417 = vmatpush.bf16.msra.mxu3 %v5175_v1  ;;  %v5127_v51 = vor.u32 %v7268_v39, %v5126_v38  ;;  %v5096_v1 = vld [vmem:[%s10989_s1 + $0x6d8] sm:$0xf0]  ;;  %v7286_v14 = vld [vmem:[%s10989_s1 + $0x7ac] sm:$0xf]  ;;  %v4955_v17 = vor.u32 %v7222_v10, %v4952_v11 }
  0x62   : > { %1379 = vmatpush.bf16.msra.mxu0 %v4775_v8  ;;  %v5099_v8 = vor.u32 %v7258_v0, %v5096_v1  ;;  %v5208_v15 = vld [vmem:[%s10989_s1 + $0x7b8] sm:$0xf0]  ;;  %v7186_v18 = vld [vmem:[%s10989_s1 + $0x48c] sm:$0xf] }
  0x63   : > { %1392 = vmatpush.bf16.msra.mxu1 %v4903_v9  ;;  %v5227_v9 = vor.u32 %v7290_v2, %v5224_v3  ;;  %v4808_v19 = vld [vmem:[%s10989_s1 + $0x498] sm:$0xf0]  ;;  %v7250_v24 = vld [vmem:[%s10989_s1 + $0x68c] sm:$0xf] }
  0x64   : > { %1405 = vmatpush.bf16.msra.mxu2 %v5031_v12  ;;  %v7254_v12 = vld [vmem:[%s10989_s1 + $0x6ac] sm:$0xf]  ;;  %v4936_v23 = vld [vmem:[%s10989_s1 + $0x598] sm:$0xf0]  ;;  %v4811_v35 = vor.u32 %v7186_v18, %v4808_v19 }
  0x65   : > { %1418 = vmatpush.bf16.msra.mxu3 %v5159_v13  ;;  %v5080_v13 = vld [vmem:[%s10989_s1 + $0x6b8] sm:$0xf0]  ;;  %v7182_v38 = vld [vmem:[%s10989_s1 + $0x46c] sm:$0xf] }
  0x66   : > { %1380 = vmatpush.bf16.msra.mxu0 %v4759_v21  ;;  %v5083_v20 = vor.u32 %v7254_v12, %v5080_v13  ;;  %v5211_v21 = vor.u32 %v7286_v14, %v5208_v15  ;;  %v5064_v25 = vld [vmem:[%s10989_s1 + $0x698] sm:$0xf0]  ;;  %v7214_v42 = vld [vmem:[%s10989_s1 + $0x56c] sm:$0xf] }
  0x67   : > { %1393 = vmatpush.bf16.msra.mxu1 %v4887_v22  ;;  %v7218_v22 = vld [vmem:[%s10989_s1 + $0x58c] sm:$0xf]  ;;  %v4792_v39 = vld [vmem:[%s10989_s1 + $0x478] sm:$0xf0]  ;;  %v5067_v40 = vor.u32 %v7250_v24, %v5064_v25  ;;  %v5358_v24 = vld [vmem:[%s10989_s1 + $0xe0] sm:$0xf] }
  0x68   : > { %1406 = vmatpush.bf16.msra.mxu2 %v5015_v26  ;;  %v7282_v26 = vld [vmem:[%s10989_s1 + $0x78c] sm:$0xf]  ;;  %v4939_v37 = vor.u32 %v7218_v22, %v4936_v23  ;;  %v4920_v43 = vld [vmem:[%s10989_s1 + $0x578] sm:$0xf0]  ;;  %v4795_v48 = vor.u32 %v7182_v38, %v4792_v39  ;;  %v7071_v25 = vld [vmem:[%s10989_s1 + $0xec] sm:$0xf0] }
  0x69   : > { %1419 = vmatpush.bf16.msra.mxu3 %v5143_v32  ;;  %v5192_v32 = vld [vmem:[%s10989_s1 + $0x798] sm:$0xf0]  ;;  %v7246_v44 = vld [vmem:[%s10989_s1 + $0x66c] sm:$0xf]  ;;  %v4923_v49 = vor.u32 %v7214_v42, %v4920_v43  ;;  %v7135_v39 = vld [vmem:[%s10989_s1 + $0x2ec] sm:$0xf0] }
  0x6a   : > { %1381 = vmatpush.bf16.msra.mxu0 %v4743_v45  ;;  %v5195_v41 = vor.u32 %v7282_v26, %v5192_v32  ;;  %v5048_v45 = vld [vmem:[%s10989_s1 + $0x678] sm:$0xf0]  ;;  %v7210_v56 = vld [vmem:[%s10989_s1 + $0x54c] sm:$0xf]  ;;  %v5486_v26 = vld [vmem:[%s10989_s1 + $0x1e0] sm:$0xf] }
  0x6b   : > { %1394 = vmatpush.bf16.msra.mxu1 %v4871_v46  ;;  %v7278_v46 = vld [vmem:[%s10989_s1 + $0x76c] sm:$0xf]  ;;  %v5176_v47 = vld [vmem:[%s10989_s1 + $0x778] sm:$0xf0]  ;;  %v7103_v32 = vld [vmem:[%s10989_s1 + $0x1ec] sm:$0xf0] }
  0x6c   : > { %1407 = vmatpush.bf16.msra.mxu2 %v4999_v50  ;;  %v7178_v50 = vld [vmem:[%s10989_s1 + $0x44c] sm:$0xf]  ;;  %v4904_v57 = vld [vmem:[%s10989_s1 + $0x558] sm:$0xf0] }
  0x6d   : > { %1420 = vmatpush.bf16.msra.mxu3 %v5127_v51  ;;  %1382 = vmatmul.bf16.vlgmr.msra.gmra.mxu0 %v8069_v60  ;;  %v4776_v51 = vld [vmem:[%s10989_s1 + $0x458] sm:$0xf0]  ;;  %v7274_v62 = vld [vmem:[%s10989_s1 + $0x74c] sm:$0xf]  ;;  %v4907_v1 = vor.u32 %v7210_v56, %v4904_v57  ;;  %v5726_v56 = vld [vmem:[%s10989_s1 + $0x3c0] sm:$0xf] }
  0x6e   : > { %1426 = vmatpush.bf16.msrb.mxu0 %v4859_v52  ;;  %1395 = vmatmul.bf16.vlgmr.msra.gmra.mxu1 %v8071_v61  ;;  %v5051_v52 = vor.u32 %v7246_v44, %v5048_v45  ;;  %v5160_v63 = vld [vmem:[%s10989_s1 + $0x758] sm:$0xf0]  ;;  %v4779_v0 = vor.u32 %v7178_v50, %v4776_v51  ;;  %v7174_v2 = vld [vmem:[%s10989_s1 + $0x42c] sm:$0xf]  ;;  %v5359_v44 = vor.u32 %v7071_v25, %v5358_v24  ;;  %v5470_v50 = vld [vmem:[%s10989_s1 + $0x1c0] sm:$0xf] }
  0x6f   : > { %1439 = vmatpush.bf16.msrb.mxu1 %v4987_v55  ;;  %1408 = vmatmul.bf16.vlgmr.msra.gmra.mxu2 %v8056_v53  ;;  %v5179_v55 = vor.u32 %v7278_v46, %v5176_v47  ;;  %v4760_v3 = vld [vmem:[%s10989_s1 + $0x438] sm:$0xf0]  ;;  %v7206_v6 = vld [vmem:[%s10989_s1 + $0x52c] sm:$0xf]  ;;  %v5487_v45 = vor.u32 %v7103_v32, %v5486_v26  ;;  %v5342_v46 = vld [vmem:[%s10989_s1 + $0xc0] sm:$0xf] }
  0x70   : > { %1452 = vmatpush.bf16.msrb.mxu2 %v5115_v58  ;;  %1421 = vmatmul.bf16.vlgmr.msra.gmra.mxu3 %v8058_v54  ;;  %v7242_v58 = vld [vmem:[%s10989_s1 + $0x64c] sm:$0xf]  ;;  %v4888_v7 = vld [vmem:[%s10989_s1 + $0x538] sm:$0xf0]  ;;  %v4763_v13 = vor.u32 %v7174_v2, %v4760_v3  ;;  %v7067_v47 = vld [vmem:[%s10989_s1 + $0xcc] sm:$0xf0] }
  0x71   : > { %1465 = vmatpush.bf16.msrb.mxu3 %v5243_v59  ;;  %v5032_v59 = vld [vmem:[%s10989_s1 + $0x658] sm:$0xf0]  ;;  %v7270_v10 = vld [vmem:[%s10989_s1 + $0x72c] sm:$0xf]  ;;  %v4891_v14 = vor.u32 %v7206_v6, %v4888_v7  ;;  %v7099_v51 = vld [vmem:[%s10989_s1 + $0x1cc] sm:$0xf0] }
  0x72   : > { %1427 = vmatpush.bf16.msrb.mxu0 %v4843_v4  ;;  %v5035_v4 = vor.u32 %v7242_v58, %v5032_v59  ;;  %v5144_v11 = vld [vmem:[%s10989_s1 + $0x738] sm:$0xf0]  ;;  %v7170_v12 = vld [vmem:[%s10989_s1 + $0x40c] sm:$0xf]  ;;  %v7163_v57 = vld [vmem:[%s10989_s1 + $0x3cc] sm:$0xf0]  ;;  %v5343_v58 = vor.u32 %v7067_v47, %v5342_v46  ;;  %v5471_v59 = vor.u32 %v7099_v51, %v5470_v50 }
  0x73   : > { %1440 = vmatpush.bf16.msrb.mxu1 %v4971_v5  ;;  %v5163_v5 = vor.u32 %v7274_v62, %v5160_v63  ;;  %v4744_v15 = vld [vmem:[%s10989_s1 + $0x418] sm:$0xf0]  ;;  %v5147_v19 = vor.u32 %v7270_v10, %v5144_v11  ;;  %v7266_v22 = vld [vmem:[%s10989_s1 + $0x70c] sm:$0xf]  ;;  %v5326_v62 = vld [vmem:[%s10989_s1 + $0xa0] sm:$0xf] }
  0x74   : > { %1453 = vmatpush.bf16.msrb.mxu2 %v5099_v8  ;;  %v7238_v8 = vld [vmem:[%s10989_s1 + $0x62c] sm:$0xf]  ;;  %v5128_v23 = vld [vmem:[%s10989_s1 + $0x718] sm:$0xf0]  ;;  %v7063_v63 = vld [vmem:[%s10989_s1 + $0xac] sm:$0xf0] }
  0x75   : > { %1466 = vmatpush.bf16.msrb.mxu3 %v5227_v9  ;;  %v5016_v9 = vld [vmem:[%s10989_s1 + $0x638] sm:$0xf0]  ;;  %v5131_v43 = vor.u32 %v7266_v22, %v5128_v23  ;;  %v5454_v2 = vld [vmem:[%s10989_s1 + $0x1a0] sm:$0xf]  ;;  %v7095_v3 = vld [vmem:[%s10989_s1 + $0x1ac] sm:$0xf0] }
  0x76   : > { %1428 = vmatpush.bf16.msrb.mxu0 %v4827_v16  ;;  %v7202_v16 = vld [vmem:[%s10989_s1 + $0x50c] sm:$0xf]  ;;  %v5019_v18 = vor.u32 %v7238_v8, %v5016_v9  ;;  %v5710_v6 = vld [vmem:[%s10989_s1 + $0x3a0] sm:$0xf]  ;;  %v7159_v7 = vld [vmem:[%s10989_s1 + $0x3ac] sm:$0xf0]  ;;  %v5327_v8 = vor.u32 %v7063_v63, %v5326_v62  ;;  %v5455_v9 = vor.u32 %v7095_v3, %v5454_v2 }
  0x77   : > { %1441 = vmatpush.bf16.msrb.mxu1 %v4955_v17  ;;  %v4872_v17 = vld [vmem:[%s10989_s1 + $0x518] sm:$0xf0]  ;;  %v5310_v10 = vld [vmem:[%s10989_s1 + $0x80] sm:$0xf]  ;;  %v7059_v11 = vld [vmem:[%s10989_s1 + $0x8c] sm:$0xf0] }
  0x78   : > { %1454 = vmatpush.bf16.msrb.mxu2 %v5083_v20  ;;  %v7234_v20 = vld [vmem:[%s10989_s1 + $0x60c] sm:$0xf]  ;;  %v4875_v38 = vor.u32 %v7202_v16, %v4872_v17  ;;  %v5294_v16 = vld [vmem:[%s10989_s1 + $0x60] sm:$0xf]  ;;  %v5311_v17 = vor.u32 %v7059_v11, %v5310_v10  ;;  %v7119_v32 = vld [vmem:[%s10989_s1 + $0x26c] sm:$0xf0] }
  0x79   : > { %1467 = vmatpush.bf16.msrb.mxu3 %v5211_v21  ;;  %v5000_v21 = vld [vmem:[%s10989_s1 + $0x618] sm:$0xf0]  ;;  %v5550_v24 = vld [vmem:[%s10989_s1 + $0x260] sm:$0xf]  ;;  %v278_v26 = vld [vmem:[%s7941_s16 + $0x8] sm:$0x77] }
  0x7a   : > { %1429 = vmatpush.bf16.msrb.mxu0 %v4811_v35  ;;  %v5614_v35 = vld [vmem:[%s10989_s1 + $0x2e0] sm:$0xf]  ;;  %v5003_v42 = vor.u32 %v7234_v20, %v5000_v21  ;;  %v7087_v21 = vld [vmem:[%s10989_s1 + $0x16c] sm:$0xf0]  ;;  %v5551_v46 = vor.u32 %v7119_v32, %v5550_v24  ;;  %v282_v51 = vunpack.c.h.bf16 %v278_v26  ;;  %v7101_v24 = vld [vmem:[%s10989_s1 + $0x1e4] sm:$0xf] }
  0x7b   : > { %1442 = vmatpush.bf16.msrb.mxu1 %v4939_v37  ;;  %v4747_v37 = vor.u32 %v7170_v12, %v4744_v15  ;;  %v5566_v12 = vld [vmem:[%s10989_s1 + $0x280] sm:$0xf]  ;;  %v7155_v15 = vld [vmem:[%s10989_s1 + $0x38c] sm:$0xf0]  ;;  %v5616_v32 = vld [vmem:[%s10989_s1 + $0x2f0] sm:$0xf0] }
  0x7c   : > { %1455 = vmatpush.bf16.msrb.mxu2 %v5067_v40  ;;  %v5742_v40 = vld [vmem:[%s10989_s1 + $0x3e0] sm:$0xf]  ;;  %v7047_v62 = vld [vmem:[%s10989_s1 + $0x2c] sm:$0xf0] }
  0x7d   : > { %1468 = vmatpush.bf16.msrb.mxu3 %v5195_v41  ;;  %v7167_v41 = vld [vmem:[%s10989_s1 + $0x3ec] sm:$0xf0]  ;;  %v5422_v20 = vld [vmem:[%s10989_s1 + $0x160] sm:$0xf] }
  0x7e   : > { %1430 = vmatpush.bf16.msrb.mxu0 %v4795_v48  ;;  %v5615_v48 = vor.u32 %v7135_v39, %v5614_v35  ;;  %v277_v25 = vld [vmem:[%s7941_s16] sm:$0x77] }
  0x7f   : > { %1443 = vmatpush.bf16.msrb.mxu1 %v4923_v49  ;;  %v5743_v49 = vor.u32 %v7167_v41, %v5742_v40  ;;  %v5678_v35 = vld [vmem:[%s10989_s1 + $0x360] sm:$0xf]  ;;  %v5423_v40 = vor.u32 %v7087_v21, %v5422_v20  ;;  %v7051_v41 = vld [vmem:[%s10989_s1 + $0x4c] sm:$0xf0]  ;;  %v280_v50 = vunpack.c.h.bf16 %v277_v25 }
  0x80   : > { %1456 = vmatpush.bf16.msrb.mxu2 %v5051_v52  ;;  %v5598_v52 = vld [vmem:[%s10989_s1 + $0x2c0] sm:$0xf] }
  0x81   : > { %1469 = vmatpush.bf16.msrb.mxu3 %v5179_v55  ;;  %v7131_v55 = vld [vmem:[%s10989_s1 + $0x2cc] sm:$0xf0]  ;;  %v5390_v63 = vld [vmem:[%s10989_s1 + $0x120] sm:$0xf] }
  0x82   : > { %1431 = vmatpush.bf16.msrb.mxu0 %v4779_v0  ;;  %v5599_v0 = vor.u32 %v7131_v55, %v5598_v52  ;;  %v5662_v52 = vld [vmem:[%s10989_s1 + $0x340] sm:$0xf]  ;;  %v7147_v55 = vld [vmem:[%s10989_s1 + $0x34c] sm:$0xf0] }
  0x83   : > { %1444 = vmatpush.bf16.msrb.mxu1 %v4907_v1  ;;  %v5727_v1 = vor.u32 %v7163_v57, %v5726_v56  ;;  %v5663_v3 = vor.u32 %v7147_v55, %v5662_v52  ;;  %v7097_v52 = vld [vmem:[%s10989_s1 + $0x1c4] sm:$0xf]  ;;  %v5472_v55 = vld [vmem:[%s10989_s1 + $0x1d0] sm:$0xf0] }
  0x84   : > { %1457 = vmatpush.bf16.msrb.mxu2 %v5035_v4  ;;  %v5582_v4 = vld [vmem:[%s10989_s1 + $0x2a0] sm:$0xf] }
  0x85   : > { %1470 = vmatpush.bf16.msrb.mxu3 %v5163_v5  ;;  %v7127_v5 = vld [vmem:[%s10989_s1 + $0x2ac] sm:$0xf0] }
  0x86   : > { %1432 = vmatpush.bf16.msrb.mxu0 %v4763_v13  ;;  %v7123_v13 = vld [vmem:[%s10989_s1 + $0x28c] sm:$0xf0] }
  0x87   : > { %1445 = vmatpush.bf16.msrb.mxu1 %v4891_v14  ;;  %v5694_v14 = vld [vmem:[%s10989_s1 + $0x380] sm:$0xf]  ;;  %v5567_v22 = vor.u32 %v7123_v13, %v5566_v12  ;;  %v7075_v12 = vld [vmem:[%s10989_s1 + $0x10c] sm:$0xf0] }
  0x88   : > { %1458 = vmatpush.bf16.msrb.mxu2 %v5019_v18  ;;  %v5695_v23 = vor.u32 %v7155_v15, %v5694_v14  ;;  %v5502_v13 = vld [vmem:[%s10989_s1 + $0x200] sm:$0xf] }
  0x89   : > { %1471 = vmatpush.bf16.msrb.mxu3 %v5147_v19  ;;  %v7055_v19 = vld [vmem:[%s10989_s1 + $0x6c] sm:$0xf0] }
  0x8a   : > { %1433 = vmatpush.bf16.msrb.mxu0 %v4747_v37  ;;  %v7151_v37 = vld [vmem:[%s10989_s1 + $0x36c] sm:$0xf0]  ;;  %v5295_v39 = vor.u32 %v7055_v19, %v5294_v16 }
  0x8b   : > { %1446 = vmatpush.bf16.msrb.mxu1 %v4875_v38  ;;  %v5278_v38 = vld [vmem:[%s10989_s1 + $0x40] sm:$0xf]  ;;  %v5679_v47 = vor.u32 %v7151_v37, %v5678_v35  ;;  %v7139_v19 = vld [vmem:[%s10989_s1 + $0x30c] sm:$0xf0] }
  0x8c   : > { %1459 = vmatpush.bf16.msrb.mxu2 %v5003_v42  ;;  %v5406_v42 = vld [vmem:[%s10989_s1 + $0x140] sm:$0xf]  ;;  %v5279_v56 = vor.u32 %v7051_v41, %v5278_v38  ;;  %v7165_v38 = vld [vmem:[%s10989_s1 + $0x3e4] sm:$0xf] }
  0x8d   : > { %1472 = vmatpush.bf16.msrb.mxu3 %v5131_v43  ;;  %1434 = vmatmul.bf16.vlgmr.msrb.gmra.mxu0 %v8069_v60  ;;  %v5583_v60 = vor.u32 %v7127_v5, %v5582_v4  ;;  %v7083_v43 = vld [vmem:[%s10989_s1 + $0x14c] sm:$0xf0]  ;;  %v5518_v4 = vld [vmem:[%s10989_s1 + $0x220] sm:$0xf] }
  0x8e   : > { %2118 = vmatpush.bf16.msra.mxu0 %v5359_v44  ;;  %1447 = vmatmul.bf16.vlgmr.msrb.gmra.mxu1 %v8071_v61  ;;  %v7091_v61 = vld [vmem:[%s10989_s1 + $0x18c] sm:$0xf0]  ;;  %v279_v44 = vunpack.c.l.bf16 %v277_v25  ;;  %v5407_v57 = vor.u32 %v7083_v43, %v5406_v42  ;;  %v5488_v25 = vld [vmem:[%s10989_s1 + $0x1f0] sm:$0xf0] }
  0x8f   : > { %2131 = vmatpush.bf16.msra.mxu1 %v5487_v45  ;;  %1460 = vmatmul.bf16.vlgmr.msrb.gmra.mxu2 %v8056_v53  ;;  %v5711_v53 = vor.u32 %v7159_v7, %v5710_v6  ;;  %v281_v45 = vunpack.c.l.bf16 %v278_v26  ;;  %v7111_v5 = vld [vmem:[%s10989_s1 + $0x22c] sm:$0xf0]  ;;  %v294_v6 = vmul.f32 %v7949_v30, %v280_v50  ;;  %v296_v7 = vmul.f32 %v7945_v28, %v282_v51  ;;  %v7133_v26 = vld [vmem:[%s10989_s1 + $0x2e4] sm:$0xf] }
  0x90   : > { %2144 = vmatpush.bf16.msra.mxu2 %v5615_v48  ;;  %1473 = vmatmul.bf16.vlgmr.msrb.gmra.mxu3 %v8058_v54  ;;  %v5438_v54 = vld [vmem:[%s10989_s1 + $0x180] sm:$0xf]  ;;  %v5619_v50 = vor.u32 %v7133_v26, %v5616_v32 }
  0x91   : > { %2157 = vmatpush.bf16.msra.mxu3 %v5743_v49  ;;  %v5439_v18 = vor.u32 %v7091_v61, %v5438_v54  ;;  %v5534_v48 = vld [vmem:[%s10989_s1 + $0x240] sm:$0xf]  ;;  %v7115_v49 = vld [vmem:[%s10989_s1 + $0x24c] sm:$0xf0]  ;;  %v295_v2 = vmul.f32 %v7943_v27, %v281_v45  ;;  %v5519_v54 = vor.u32 %v7111_v5, %v5518_v4  ;;  %v308_v20 = vadd.f32 %v7959_v36, %v294_v6  ;;  %v7061_v4 = vld [vmem:[%s10989_s1 + $0xa4] sm:$0xf] }
  0x92   : > { %2119 = vmatpush.bf16.msra.mxu0 %v5343_v58  ;;  %v5262_v58 = vld [vmem:[%s10989_s1 + $0x20] sm:$0xf]  ;;  %v310_v21 = vadd.f32 %v7954_v33, %v296_v7  ;;  %v5328_v5 = vld [vmem:[%s10989_s1 + $0xb0] sm:$0xf0] }
  0x93   : > { %2132 = vmatpush.bf16.msra.mxu1 %v5471_v59  ;;  %v5535_v59 = vor.u32 %v7115_v49, %v5534_v48  ;;  %v5263_v10 = vor.u32 %v7047_v62, %v5262_v58  ;;  %v5374_v61 = vld [vmem:[%s10989_s1 + $0x100] sm:$0xf]  ;;  %v309_v15 = vadd.f32 %v7951_v31, %v295_v2  ;;  %v7065_v48 = vld [vmem:[%s10989_s1 + $0xc4] sm:$0xf]  ;;  %v5344_v49 = vld [vmem:[%s10989_s1 + $0xd0] sm:$0xf0] }
  0x94   : > { %2145 = vmatpush.bf16.msra.mxu2 %v5599_v0  ;;  %v7079_v0 = vld [vmem:[%s10989_s1 + $0x12c] sm:$0xf0]  ;;  %v5375_v37 = vor.u32 %v7075_v12, %v5374_v61  ;;  %v314_v45 = vmax.f32 %v310_v21, 0.0  ;;  %v7161_v62 = vld [vmem:[%s10989_s1 + $0x3c4] sm:$0xf]  ;;  %v5347_v2 = vor.u32 %v7065_v48, %v5344_v49 }
  0x95   : > { %2158 = vmatpush.bf16.msra.mxu3 %v5727_v1  ;;  %v293_v1 = vmul.f32 %v7947_v29, %v279_v44  ;;  %v5391_v11 = vor.u32 %v7079_v0, %v5390_v63  ;;  %v313_v41 = vmax.f32 %v309_v15, 0.0  ;;  %v312_v44 = vmax.f32 %v308_v20, 0.0  ;;  %v5728_v63 = vld [vmem:[%s10989_s1 + $0x3d0] sm:$0xf0]  ;;  %v7057_v12 = vld [vmem:[%s10989_s1 + $0x84] sm:$0xf] }
  0x96   : > { %2120 = vmatpush.bf16.msra.mxu0 %v5327_v8  ;;  %v5646_v8 = vld [vmem:[%s10989_s1 + $0x320] sm:$0xf]  ;;  %v5731_v7 = vor.u32 %v7161_v62, %v5728_v63  ;;  %v7153_v20 = vld [vmem:[%s10989_s1 + $0x384] sm:$0xf]  ;;  %v5696_v21 = vld [vmem:[%s10989_s1 + $0x390] sm:$0xf0] }
  0x97   : > { %2133 = vmatpush.bf16.msra.mxu1 %v5455_v9  ;;  %v7143_v9 = vld [vmem:[%s10989_s1 + $0x32c] sm:$0xf0]  ;;  %v307_v14 = vadd.f32 %v7956_v34, %v293_v1  ;;  %v8692_v58 = vpack.c.bf16 %v313_v41, %v313_v41  ;;  %v8703_v0 = vpack.c.bf16 %v312_v44, %v312_v44  ;;  %v8705_v1 = vpack.c.bf16 %v314_v45, %v314_v45  ;;  %v5680_v41 = vld [vmem:[%s10989_s1 + $0x370] sm:$0xf0]  ;;  %v7049_v44 = vld [vmem:[%s10989_s1 + $0x44] sm:$0xf] }
  0x98   : > { %2146 = vmatpush.bf16.msra.mxu2 %v5583_v60  ;;  %v5246_v60 = vld [vmem:[%s10989_s1] sm:$0xf]  ;;  %v5647_v16 = vor.u32 %v7143_v9, %v5646_v8  ;;  %v7093_v8 = vld [vmem:[%s10989_s1 + $0x1a4] sm:$0xf]  ;;  %v5456_v9 = vld [vmem:[%s10989_s1 + $0x1b0] sm:$0xf0]  ;;  %v5699_v32 = vor.u32 %v7153_v20, %v5696_v21 }
  0x99   : > { %2159 = vmatpush.bf16.msra.mxu3 %v5711_v53  ;;  %v7043_v53 = vld [vmem:[%s10989_s1 + $0xc] sm:$0xf0]  ;;  %v5459_v61 = vor.u32 %v7093_v8, %v5456_v9  ;;  %v5280_v45 = vld [vmem:[%s10989_s1 + $0x50] sm:$0xf0]  ;;  %v7081_v48 = vld [vmem:[%s10989_s1 + $0x144] sm:$0xf] }
  0x9a   : > { %2121 = vmatpush.bf16.msra.mxu0 %v5311_v17  ;;  %v7107_v17 = vld [vmem:[%s10989_s1 + $0x20c] sm:$0xf0]  ;;  %v5247_v35 = vor.u32 %v7043_v53, %v5246_v60  ;;  %v7157_v60 = vld [vmem:[%s10989_s1 + $0x3a4] sm:$0xf]  ;;  %v5712_v53 = vld [vmem:[%s10989_s1 + $0x3b0] sm:$0xf0] }
  0x9b   : > { %2134 = vmatpush.bf16.msra.mxu1 %v5439_v18  ;;  %v5630_v18 = vld [vmem:[%s10989_s1 + $0x300] sm:$0xf]  ;;  %v5503_v42 = vor.u32 %v7107_v17, %v5502_v13  ;;  %v5312_v13 = vld [vmem:[%s10989_s1 + $0x90] sm:$0xf0]  ;;  %v5715_v15 = vor.u32 %v7157_v60, %v5712_v53  ;;  %v7045_v62 = vld [vmem:[%s10989_s1 + $0x24] sm:$0xf] }
  0x9c   : > { %2147 = vmatpush.bf16.msra.mxu2 %v5567_v22  ;;  %v7069_v22 = vld [vmem:[%s10989_s1 + $0xe4] sm:$0xf]  ;;  %v5631_v43 = vor.u32 %v7139_v19, %v5630_v18  ;;  %v5440_v17 = vld [vmem:[%s10989_s1 + $0x190] sm:$0xf0]  ;;  %v5494_v20 = vld [vmem:[%s10989_s1 + $0x1e8] sm:$0xf] }
  0x9d   : > { %2160 = vmatpush.bf16.msra.mxu3 %v5695_v23  ;;  %v5360_v23 = vld [vmem:[%s10989_s1 + $0xf0] sm:$0xf0]  ;;  %v7121_v18 = vld [vmem:[%s10989_s1 + $0x284] sm:$0xf]  ;;  %v7104_v21 = vld [vmem:[%s10989_s1 + $0x1f4] sm:$0xf0] }
  0x9e   : > { %2122 = vmatpush.bf16.msra.mxu0 %v5295_v39  ;;  %v5744_v39 = vld [vmem:[%s10989_s1 + $0x3f0] sm:$0xf0]  ;;  %v7141_v8 = vld [vmem:[%s10989_s1 + $0x324] sm:$0xf] }
  0x9f   : > { %2135 = vmatpush.bf16.msra.mxu1 %v5423_v40  ;;  %v311_v40 = vmax.f32 %v307_v14, 0.0  ;;  %v5747_v51 = vor.u32 %v7165_v38, %v5744_v39  ;;  %v5568_v19 = vld [vmem:[%s10989_s1 + $0x290] sm:$0xf0]  ;;  %v7117_v38 = vld [vmem:[%s10989_s1 + $0x264] sm:$0xf] }
  0xa0   : > { %2148 = vmatpush.bf16.msra.mxu2 %v5551_v46  ;;  %v5363_v46 = vor.u32 %v7069_v22, %v5360_v23  ;;  %v5315_v22 = vor.u32 %v7057_v12, %v5312_v13  ;;  %v5571_v26 = vor.u32 %v7121_v18, %v5568_v19  ;;  %v5552_v39 = vld [vmem:[%s10989_s1 + $0x270] sm:$0xf0]  ;;  %v5366_v18 = vld [vmem:[%s10989_s1 + $0xe8] sm:$0xf]  ;;  %v7072_v19 = vld [vmem:[%s10989_s1 + $0xf4] sm:$0xf0] }
  0xa1   : > { %2161 = vmatpush.bf16.msra.mxu3 %v5679_v47  ;;  %v5491_v47 = vor.u32 %v7101_v24, %v5488_v25  ;;  %v7053_v24 = vld [vmem:[%s10989_s1 + $0x64] sm:$0xf]  ;;  %v5296_v25 = vld [vmem:[%s10989_s1 + $0x70] sm:$0xf0] }
  0xa2   : > { %2123 = vmatpush.bf16.msra.mxu0 %v5279_v56  ;;  %v7129_v56 = vld [vmem:[%s10989_s1 + $0x2c4] sm:$0xf]  ;;  %v5408_v49 = vld [vmem:[%s10989_s1 + $0x150] sm:$0xf0] }
  0xa3   : > { %2136 = vmatpush.bf16.msra.mxu1 %v5407_v57  ;;  %v8690_v57 = vpack.c.bf16 %v311_v40, %v311_v40  ;;  %v7149_v40 = vld [vmem:[%s10989_s1 + $0x364] sm:$0xf]  ;;  %v5264_v63 = vld [vmem:[%s10989_s1 + $0x30] sm:$0xf0] }
  0xa4   : > { %2149 = vmatpush.bf16.msra.mxu2 %v5535_v59  ;;  %v5600_v59 = vld [vmem:[%s10989_s1 + $0x2d0] sm:$0xf0] }
  0xa5   : > { %2162 = vmatpush.bf16.msra.mxu3 %v5663_v3  ;;  %v5475_v3 = vor.u32 %v7097_v52, %v5472_v55  ;;  %v5603_v6 = vor.u32 %v7129_v56, %v5600_v59  ;;  %v7145_v52 = vld [vmem:[%s10989_s1 + $0x344] sm:$0xf]  ;;  %v5664_v55 = vld [vmem:[%s10989_s1 + $0x350] sm:$0xf0]  ;;  %v5283_v56 = vor.u32 %v7049_v44, %v5280_v45  ;;  %v5411_v59 = vor.u32 %v7081_v48, %v5408_v49  ;;  %v5478_v44 = vld [vmem:[%s10989_s1 + $0x1c8] sm:$0xf] }
  0xa6   : > { %2124 = vmatpush.bf16.msra.mxu0 %v5263_v10  ;;  %v7125_v10 = vld [vmem:[%s10989_s1 + $0x2a4] sm:$0xf]  ;;  %v5648_v9 = vld [vmem:[%s10989_s1 + $0x330] sm:$0xf0]  ;;  %v7100_v45 = vld [vmem:[%s10989_s1 + $0x1d4] sm:$0xf0] }
  0xa7   : > { %2137 = vmatpush.bf16.msra.mxu1 %v5391_v11  ;;  %v5584_v11 = vld [vmem:[%s10989_s1 + $0x2b0] sm:$0xf0]  ;;  %v5651_v13 = vor.u32 %v7141_v8, %v5648_v9  ;;  %v5734_v48 = vld [vmem:[%s10989_s1 + $0x3c8] sm:$0xf]  ;;  %v7164_v49 = vld [vmem:[%s10989_s1 + $0x3d4] sm:$0xf0] }
  0xa8   : > { %2150 = vmatpush.bf16.msra.mxu2 %v5519_v54  ;;  %v5331_v54 = vor.u32 %v7061_v4, %v5328_v5  ;;  %v5587_v14 = vor.u32 %v7125_v10, %v5584_v11  ;;  %v7077_v4 = vld [vmem:[%s10989_s1 + $0x124] sm:$0xf]  ;;  %v5392_v5 = vld [vmem:[%s10989_s1 + $0x130] sm:$0xf0]  ;;  %v5267_v11 = vor.u32 %v7045_v62, %v5264_v63  ;;  %v5462_v62 = vld [vmem:[%s10989_s1 + $0x1a8] sm:$0xf] }
  0xa9   : > { %2163 = vmatpush.bf16.msra.mxu3 %v5647_v16  ;;  %v7089_v16 = vld [vmem:[%s10989_s1 + $0x184] sm:$0xf]  ;;  %v5395_v60 = vor.u32 %v7077_v4, %v5392_v5  ;;  %v5248_v53 = vld [vmem:[%s10989_s1 + $0x10] sm:$0xf0]  ;;  %v7096_v63 = vld [vmem:[%s10989_s1 + $0x1b4] sm:$0xf0] }
  0xaa   : > { %2125 = vmatpush.bf16.msra.mxu0 %v5247_v35  ;;  %v5443_v23 = vor.u32 %v7089_v16, %v5440_v17  ;;  %v7085_v35 = vld [vmem:[%s10989_s1 + $0x164] sm:$0xf]  ;;  %v5632_v17 = vld [vmem:[%s10989_s1 + $0x310] sm:$0xf0]  ;;  %v7128_v5 = vld [vmem:[%s10989_s1 + $0x2b4] sm:$0xf0] }
  0xab   : > { %2138 = vmatpush.bf16.msra.mxu1 %v5375_v37  ;;  %v5424_v37 = vld [vmem:[%s10989_s1 + $0x170] sm:$0xf0]  ;;  %v7041_v10 = vld [vmem:[%s10989_s1 + $0x4] sm:$0xf] }
  0xac   : > { %2151 = vmatpush.bf16.msra.mxu2 %v5503_v42  ;;  %v5299_v42 = vor.u32 %v7053_v24, %v5296_v25  ;;  %v7137_v16 = vld [vmem:[%s10989_s1 + $0x304] sm:$0xf]  ;;  %v7136_v25 = vld [vmem:[%s10989_s1 + $0x2f4] sm:$0xf0] }
  0xad   : > { %2164 = vmatpush.bf16.msra.mxu3 %v5631_v43  ;;  %2126 = vmatmul.bf16.vlgmr.msra.gmra.mxu0 %v8690_v57  ;;  %v5427_v43 = vor.u32 %v7085_v35, %v5424_v37  ;;  %v5635_v37 = vor.u32 %v7137_v16, %v5632_v17  ;;  %v7156_v16 = vld [vmem:[%s10989_s1 + $0x394] sm:$0xf0] }
  0xae   : > { %2170 = vmatpush.bf16.msrb.mxu0 %v5363_v46  ;;  %2139 = vmatmul.bf16.vlgmr.msra.gmra.mxu1 %v8703_v0  ;;  %v5555_v46 = vor.u32 %v7117_v38, %v5552_v39  ;;  %v5367_v38 = vor.u32 %v7072_v19, %v5366_v18  ;;  %v5495_v39 = vor.u32 %v7104_v21, %v5494_v20 }
  0xaf   : > { %2183 = vmatpush.bf16.msrb.mxu1 %v5491_v47  ;;  %2152 = vmatmul.bf16.vlgmr.msra.gmra.mxu2 %v8692_v58  ;;  %v5683_v47 = vor.u32 %v7149_v40, %v5680_v41  ;;  %v5350_v40 = vld [vmem:[%s10989_s1 + $0xc8] sm:$0xf]  ;;  %v7068_v41 = vld [vmem:[%s10989_s1 + $0xd4] sm:$0xf0] }
  0xb0   : > { %2196 = vmatpush.bf16.msrb.mxu2 %v5619_v50  ;;  %2165 = vmatmul.bf16.vlgmr.msra.gmra.mxu3 %v8705_v1  ;;  %v7113_v50 = vld [vmem:[%s10989_s1 + $0x244] sm:$0xf] }
  0xb1   : > { %2209 = vmatpush.bf16.msrb.mxu3 %v5747_v51  ;;  %v5536_v51 = vld [vmem:[%s10989_s1 + $0x250] sm:$0xf0] }
  0xb2   : > { %2171 = vmatpush.bf16.msrb.mxu0 %v5347_v2  ;;  %v5539_v2 = vor.u32 %v7113_v50, %v5536_v51  ;;  %v5351_v50 = vor.u32 %v7068_v41, %v5350_v40  ;;  %v5479_v51 = vor.u32 %v7100_v45, %v5478_v44  ;;  %v7120_v40 = vld [vmem:[%s10989_s1 + $0x274] sm:$0xf0]  ;;  %v5686_v41 = vld [vmem:[%s10989_s1 + $0x368] sm:$0xf] }
  0xb3   : > { %2184 = vmatpush.bf16.msrb.mxu1 %v5475_v3  ;;  %v5667_v3 = vor.u32 %v7145_v52, %v5664_v55  ;;  %v5334_v52 = vld [vmem:[%s10989_s1 + $0xa8] sm:$0xf]  ;;  %v7064_v55 = vld [vmem:[%s10989_s1 + $0xb4] sm:$0xf0] }
  0xb4   : > { %2197 = vmatpush.bf16.msrb.mxu2 %v5603_v6  ;;  %v7109_v6 = vld [vmem:[%s10989_s1 + $0x224] sm:$0xf]  ;;  %v5335_v9 = vor.u32 %v7064_v55, %v5334_v52  ;;  %v5286_v45 = vld [vmem:[%s10989_s1 + $0x48] sm:$0xf]  ;;  %v7116_v52 = vld [vmem:[%s10989_s1 + $0x254] sm:$0xf0] }
  0xb5   : > { %2210 = vmatpush.bf16.msrb.mxu3 %v5731_v7  ;;  %v5520_v7 = vld [vmem:[%s10989_s1 + $0x230] sm:$0xf0]  ;;  %v5670_v55 = vld [vmem:[%s10989_s1 + $0x348] sm:$0xf] }
  0xb6   : > { %2172 = vmatpush.bf16.msrb.mxu0 %v5331_v54  ;;  %v7073_v54 = vld [vmem:[%s10989_s1 + $0x104] sm:$0xf]  ;;  %v5523_v12 = vor.u32 %v7109_v6, %v5520_v7  ;;  %v5718_v6 = vld [vmem:[%s10989_s1 + $0x3a8] sm:$0xf]  ;;  %v7160_v7 = vld [vmem:[%s10989_s1 + $0x3b4] sm:$0xf0] }
  0xb7   : > { %2185 = vmatpush.bf16.msrb.mxu1 %v5459_v61  ;;  %v5376_v61 = vld [vmem:[%s10989_s1 + $0x110] sm:$0xf0] }
  0xb8   : > { %2198 = vmatpush.bf16.msrb.mxu2 %v5587_v14  ;;  %v7105_v14 = vld [vmem:[%s10989_s1 + $0x204] sm:$0xf]  ;;  %v5379_v24 = vor.u32 %v7073_v54, %v5376_v61  ;;  %v5719_v54 = vor.u32 %v7160_v7, %v5718_v6  ;;  %v5446_v61 = vld [vmem:[%s10989_s1 + $0x188] sm:$0xf] }
  0xb9   : > { %2211 = vmatpush.bf16.msrb.mxu3 %v5715_v15  ;;  %v5504_v15 = vld [vmem:[%s10989_s1 + $0x210] sm:$0xf0]  ;;  %v5398_v7 = vld [vmem:[%s10989_s1 + $0x128] sm:$0xf] }
  0xba   : > { %2173 = vmatpush.bf16.msrb.mxu0 %v5315_v22  ;;  %v5622_v22 = vld [vmem:[%s10989_s1 + $0x2e8] sm:$0xf]  ;;  %v5507_v35 = vor.u32 %v7105_v14, %v5504_v15  ;;  %v7124_v14 = vld [vmem:[%s10989_s1 + $0x294] sm:$0xf0] }
  0xbb   : > { %2186 = vmatpush.bf16.msrb.mxu1 %v5443_v23  ;;  %v5251_v23 = vor.u32 %v7041_v10, %v5248_v53  ;;  %v5463_v10 = vor.u32 %v7096_v63, %v5462_v62  ;;  %v5702_v15 = vld [vmem:[%s10989_s1 + $0x388] sm:$0xf] }
  0xbc   : > { %2199 = vmatpush.bf16.msrb.mxu2 %v5571_v26  ;;  %v5750_v26 = vld [vmem:[%s10989_s1 + $0x3e8] sm:$0xf] }
  0xbd   : > { %2212 = vmatpush.bf16.msrb.mxu3 %v5699_v32  ;;  %v7168_v32 = vld [vmem:[%s10989_s1 + $0x3f4] sm:$0xf0] }
  0xbe   : > { %2174 = vmatpush.bf16.msrb.mxu0 %v5299_v42  ;;  %v5623_v42 = vor.u32 %v7136_v25, %v5622_v22  ;;  %v5302_v22 = vld [vmem:[%s10989_s1 + $0x68] sm:$0xf]  ;;  %v5703_v25 = vor.u32 %v7156_v16, %v5702_v15 }
  0xbf   : > { %2187 = vmatpush.bf16.msrb.mxu1 %v5427_v43  ;;  %v5751_v43 = vor.u32 %v7168_v32, %v5750_v26  ;;  %v5430_v26 = vld [vmem:[%s10989_s1 + $0x168] sm:$0xf]  ;;  %v7088_v32 = vld [vmem:[%s10989_s1 + $0x174] sm:$0xf0] }
  0xc0   : > { %2200 = vmatpush.bf16.msrb.mxu2 %v5555_v46  ;;  %v5606_v46 = vld [vmem:[%s10989_s1 + $0x2c8] sm:$0xf]  ;;  %v5431_v44 = vor.u32 %v7088_v32, %v5430_v26  ;;  %v7102_v26 = vld [vmem:[%s10989_s1 + $0x1ec] sm:$0xf]  ;;  %v5496_v32 = vld [vmem:[%s10989_s1 + $0x1f8] sm:$0xf0] }
  0xc1   : > { %2213 = vmatpush.bf16.msrb.mxu3 %v5683_v47  ;;  %v7132_v47 = vld [vmem:[%s10989_s1 + $0x2d4] sm:$0xf0] }
  0xc2   : > { %2175 = vmatpush.bf16.msrb.mxu0 %v5283_v56  ;;  %v5607_v56 = vor.u32 %v7132_v47, %v5606_v46  ;;  %v7052_v46 = vld [vmem:[%s10989_s1 + $0x54] sm:$0xf0] }
  0xc3   : > { %2188 = vmatpush.bf16.msrb.mxu1 %v5411_v59  ;;  %v5735_v59 = vor.u32 %v7164_v49, %v5734_v48  ;;  %v5414_v49 = vld [vmem:[%s10989_s1 + $0x148] sm:$0xf]  ;;  %v5287_v63 = vor.u32 %v7052_v46, %v5286_v45 }
  0xc4   : > { %2201 = vmatpush.bf16.msrb.mxu2 %v5539_v2  ;;  %v5590_v2 = vld [vmem:[%s10989_s1 + $0x2a8] sm:$0xf] }
  0xc5   : > { %2214 = vmatpush.bf16.msrb.mxu3 %v5667_v3  ;;  %v1279_v3 = vpop.f32.mrf.mxu0  ;;  %v1292_v4 = vpop.f32.mrf.mxu1  ;;  %v5591_v53 = vor.u32 %v7128_v5, %v5590_v2 }
  0xc6   : > { %2176 = vmatpush.bf16.msrb.mxu0 %v5267_v11  ;;  %v1293_v8 = vadd.f32 %v1292_v4, %v1279_v3  ;;  %v5318_v11 = vld [vmem:[%s10989_s1 + $0x88] sm:$0xf]  ;;  %v7048_v4 = vld [vmem:[%s10989_s1 + $0x34] sm:$0xf0] }
  0xc7   : > { %2189 = vmatpush.bf16.msrb.mxu1 %v5395_v60  ;;  %v7060_v60 = vld [vmem:[%s10989_s1 + $0x94] sm:$0xf0]  ;;  %v5270_v3 = vld [vmem:[%s10989_s1 + $0x28] sm:$0xf] }
  0xc8   : > { %2202 = vmatpush.bf16.msrb.mxu2 %v5523_v12  ;;  %v7092_v12 = vld [vmem:[%s10989_s1 + $0x194] sm:$0xf0]  ;;  %v1305_v17 = vpop.f32.mrf.mxu2  ;;  %v5319_v20 = vor.u32 %v7060_v60, %v5318_v11  ;;  %v5654_v11 = vld [vmem:[%s10989_s1 + $0x328] sm:$0xf] }
  0xc9   : > { %2215 = vmatpush.bf16.msrb.mxu3 %v5651_v13  ;;  %v5574_v13 = vld [vmem:[%s10989_s1 + $0x288] sm:$0xf]  ;;  %v1318_v18 = vpop.f32.mrf.mxu3  ;;  %v1306_v19 = vadd.f32 %v1305_v17, %v1293_v8  ;;  %v5447_v21 = vor.u32 %v7092_v12, %v5446_v61  ;;  %v7080_v8 = vld [vmem:[%s10989_s1 + $0x134] sm:$0xf0] }
  0xca   : > { %2177 = vmatpush.bf16.msrb.mxu0 %v5251_v23  ;;  %v7056_v23 = vld [vmem:[%s10989_s1 + $0x74] sm:$0xf0]  ;;  %v5399_v61 = vor.u32 %v7080_v8, %v5398_v7 }
  0xcb   : > { %2190 = vmatpush.bf16.msrb.mxu1 %v5379_v24  ;;  %v5575_v24 = vor.u32 %v7124_v14, %v5574_v13  ;;  %v7144_v60 = vld [vmem:[%s10989_s1 + $0x334] sm:$0xf0]  ;;  %v5382_v13 = vld [vmem:[%s10989_s1 + $0x108] sm:$0xf] }
  0xcc   : > { %2203 = vmatpush.bf16.msrb.mxu2 %v5507_v35  ;;  %v5558_v35 = vld [vmem:[%s10989_s1 + $0x268] sm:$0xf]  ;;  %v7044_v12 = vld [vmem:[%s10989_s1 + $0x14] sm:$0xf0] }
  0xcd   : > { %2216 = vmatpush.bf16.msrb.mxu3 %v5635_v37  ;;  %2178 = vmatmul.bf16.vlgmr.msrb.gmra.mxu0 %v8690_v57  ;;  %v8970_v37 = vadd.f32 %v1318_v18, %v1306_v19  ;;  %v5559_v47 = vor.u32 %v7120_v40, %v5558_v35  ;;  %v7076_v14 = vld [vmem:[%s10989_s1 + $0x114] sm:$0xf0]  ;;  %v5655_v18 = vor.u32 %v7144_v60, %v5654_v11  ;;  %v5510_v19 = vld [vmem:[%s10989_s1 + $0x208] sm:$0xf]  ;;  %v7134_v35 = vld [vmem:[%s10989_s1 + $0x2ec] sm:$0xf] }
  0xce   : > { %2222 = vmatpush.bf16.msra.mxu0 %v5367_v38  ;;  %2191 = vmatmul.bf16.vlgmr.msrb.gmra.mxu1 %v8703_v0  ;;  %v1281_v38 = vpop.f32.mrf.mxu0  ;;  %v5624_v40 = vld [vmem:[%s10989_s1 + $0x2f8] sm:$0xf0] }
  0xcf   : > { %2235 = vmatpush.bf16.msra.mxu1 %v5495_v39  ;;  %2204 = vmatmul.bf16.vlgmr.msrb.gmra.mxu2 %v8692_v58  ;;  %v1294_v39 = vpop.f32.mrf.mxu1 }
  0xd0   : > { %2248 = vmatpush.bf16.msra.mxu2 %v5623_v42  ;;  %2217 = vmatmul.bf16.vlgmr.msrb.gmra.mxu3 %v8705_v1  ;;  %v7152_v42 = vld [vmem:[%s10989_s1 + $0x374] sm:$0xf0]  ;;  %v5383_v39 = vor.u32 %v7076_v14, %v5382_v13  ;;  %v7158_v13 = vld [vmem:[%s10989_s1 + $0x3ac] sm:$0xf]  ;;  %v5720_v14 = vld [vmem:[%s10989_s1 + $0x3b8] sm:$0xf0] }
  0xd1   : > { %2261 = vmatpush.bf16.msra.mxu3 %v5751_v43  ;;  %v5303_v43 = vor.u32 %v7056_v23, %v5302_v22  ;;  %v5687_v48 = vor.u32 %v7152_v42, %v5686_v41  ;;  %v1320_v62 = vpop.f32.mrf.mxu3  ;;  %v7140_v23 = vld [vmem:[%s10989_s1 + $0x314] sm:$0xf0]  ;;  %v7166_v41 = vld [vmem:[%s10989_s1 + $0x3ec] sm:$0xf]  ;;  %v5752_v42 = vld [vmem:[%s10989_s1 + $0x3f8] sm:$0xf0] }
  0xd2   : > { %2223 = vmatpush.bf16.msra.mxu0 %v5351_v50  ;;  %v7084_v50 = vld [vmem:[%s10989_s1 + $0x154] sm:$0xf0]  ;;  %v7130_v62 = vld [vmem:[%s10989_s1 + $0x2cc] sm:$0xf] }
  0xd3   : > { %2236 = vmatpush.bf16.msra.mxu1 %v5479_v51  ;;  %v5542_v51 = vld [vmem:[%s10989_s1 + $0x248] sm:$0xf]  ;;  %v5415_v2 = vor.u32 %v7084_v50, %v5414_v49  ;;  %v7066_v49 = vld [vmem:[%s10989_s1 + $0xcc] sm:$0xf]  ;;  %v5352_v50 = vld [vmem:[%s10989_s1 + $0xd8] sm:$0xf0] }
  0xd4   : > { %2249 = vmatpush.bf16.msra.mxu2 %v5607_v56  ;;  %v7148_v56 = vld [vmem:[%s10989_s1 + $0x354] sm:$0xf0]  ;;  %v5543_v5 = vor.u32 %v7116_v52, %v5542_v51  ;;  %v5627_v52 = vor.u32 %v7134_v35, %v5624_v40  ;;  %v5355_v7 = vor.u32 %v7066_v49, %v5352_v50  ;;  %v5704_v35 = vld [vmem:[%s10989_s1 + $0x398] sm:$0xf0]  ;;  %v7054_v40 = vld [vmem:[%s10989_s1 + $0x6c] sm:$0xf] }
  0xd5   : > { %2262 = vmatpush.bf16.msra.mxu3 %v5735_v59  ;;  %v1307_v59 = vpop.f32.mrf.mxu2  ;;  %v5671_v6 = vor.u32 %v7148_v56, %v5670_v55  ;;  %v5755_v55 = vor.u32 %v7166_v41, %v5752_v42  ;;  %v7098_v56 = vld [vmem:[%s10989_s1 + $0x1cc] sm:$0xf]  ;;  %v5304_v41 = vld [vmem:[%s10989_s1 + $0x78] sm:$0xf0] }
  0xd6   : > { %2224 = vmatpush.bf16.msra.mxu0 %v5335_v9  ;;  %v5526_v9 = vld [vmem:[%s10989_s1 + $0x228] sm:$0xf]  ;;  %v1331_v15 = vpop.f32.mrf.mxu0  ;;  %v5480_v59 = vld [vmem:[%s10989_s1 + $0x1d8] sm:$0xf0] }
  0xd7   : > { %2237 = vmatpush.bf16.msra.mxu1 %v5463_v10  ;;  %v7112_v10 = vld [vmem:[%s10989_s1 + $0x234] sm:$0xf0]  ;;  %v1344_v16 = vpop.f32.mrf.mxu1  ;;  %v5483_v8 = vor.u32 %v7098_v56, %v5480_v59  ;;  %v5560_v50 = vld [vmem:[%s10989_s1 + $0x278] sm:$0xf0]  ;;  %v7050_v59 = vld [vmem:[%s10989_s1 + $0x4c] sm:$0xf] }
  0xd8   : > { %2250 = vmatpush.bf16.msra.mxu2 %v5591_v53  ;;  %v5254_v53 = vld [vmem:[%s10989_s1 + $0x8] sm:$0xf]  ;;  %v5527_v17 = vor.u32 %v7112_v10, %v5526_v9  ;;  %v1345_v22 = vadd.f32 %v1344_v16, %v1331_v15  ;;  %v7062_v9 = vld [vmem:[%s10989_s1 + $0xac] sm:$0xf]  ;;  %v5336_v10 = vld [vmem:[%s10989_s1 + $0xb8] sm:$0xf0] }
  0xd9   : > { %2263 = vmatpush.bf16.msra.mxu3 %v5719_v54  ;;  %v5271_v54 = vor.u32 %v7048_v4, %v5270_v3  ;;  %v5255_v38 = vor.u32 %v7044_v12, %v5254_v53  ;;  %v1370_v46 = vpop.f32.mrf.mxu3  ;;  %v5736_v3 = vld [vmem:[%s10989_s1 + $0x3d8] sm:$0xf0]  ;;  %v7094_v53 = vld [vmem:[%s10989_s1 + $0x1ac] sm:$0xf] }
  0xda   : > { %2225 = vmatpush.bf16.msra.mxu0 %v5319_v20  ;;  %v7108_v20 = vld [vmem:[%s10989_s1 + $0x214] sm:$0xf0]  ;;  %v5592_v12 = vld [vmem:[%s10989_s1 + $0x2b8] sm:$0xf0] }
  0xdb   : > { %2238 = vmatpush.bf16.msra.mxu1 %v5447_v21  ;;  %v5638_v21 = vld [vmem:[%s10989_s1 + $0x308] sm:$0xf] }
  0xdc   : > { %2251 = vmatpush.bf16.msra.mxu2 %v5575_v24  ;;  %v7070_v24 = vld [vmem:[%s10989_s1 + $0xec] sm:$0xf] }
  0xdd   : > { %2264 = vmatpush.bf16.msra.mxu3 %v5703_v25  ;;  %v5368_v25 = vld [vmem:[%s10989_s1 + $0xf8] sm:$0xf0]  ;;  %v1357_v45 = vpop.f32.mrf.mxu2 }
  0xde   : > { %2226 = vmatpush.bf16.msra.mxu0 %v5303_v43  ;;  %v5511_v43 = vor.u32 %v7108_v20, %v5510_v19  ;;  %v1358_v51 = vadd.f32 %v1357_v45, %v1345_v22  ;;  %v7058_v19 = vld [vmem:[%s10989_s1 + $0x8c] sm:$0xf]  ;;  %v5320_v20 = vld [vmem:[%s10989_s1 + $0x98] sm:$0xf0]  ;;  %v5723_v22 = vor.u32 %v7158_v13, %v5720_v14 }
  0xdf   : > { %2239 = vmatpush.bf16.msra.mxu1 %v5431_v44  ;;  %v5639_v44 = vor.u32 %v7140_v23, %v5638_v21  ;;  %v7090_v23 = vld [vmem:[%s10989_s1 + $0x18c] sm:$0xf] }
  0xe0   : > { %2252 = vmatpush.bf16.msra.mxu2 %v5559_v47  ;;  %v5371_v47 = vor.u32 %v7070_v24, %v5368_v25  ;;  %v9101_v4 = vadd.f32 %v1370_v46, %v1358_v51  ;;  %v5448_v24 = vld [vmem:[%s10989_s1 + $0x198] sm:$0xf0]  ;;  %v7122_v25 = vld [vmem:[%s10989_s1 + $0x28c] sm:$0xf] }
  0xe1   : > { %2265 = vmatpush.bf16.msra.mxu3 %v5687_v48  ;;  %v5499_v48 = vor.u32 %v7102_v26, %v5496_v32  ;;  %v1372_v16 = vpop.f32.mrf.mxu3  ;;  %v5576_v26 = vld [vmem:[%s10989_s1 + $0x298] sm:$0xf0]  ;;  %v7154_v32 = vld [vmem:[%s10989_s1 + $0x38c] sm:$0xf] }
  0xe2   : > { %2227 = vmatpush.bf16.msra.mxu0 %v5287_v63  ;;  %v5608_v63 = vld [vmem:[%s10989_s1 + $0x2d8] sm:$0xf0]  ;;  %v5707_v45 = vor.u32 %v7154_v32, %v5704_v35  ;;  %v7086_v46 = vld [vmem:[%s10989_s1 + $0x16c] sm:$0xf] }
  0xe3   : > { %2240 = vmatpush.bf16.msra.mxu1 %v5415_v2  ;;  %v7162_v2 = vld [vmem:[%s10989_s1 + $0x3cc] sm:$0xf]  ;;  %v5611_v11 = vor.u32 %v7130_v62, %v5608_v63  ;;  %v5288_v62 = vld [vmem:[%s10989_s1 + $0x58] sm:$0xf0] }
  0xe4   : > { %2253 = vmatpush.bf16.msra.mxu2 %v5543_v5  ;;  %v1333_v5 = vpop.f32.mrf.mxu0  ;;  %v5739_v60 = vor.u32 %v7162_v2, %v5736_v3  ;;  %v7150_v51 = vld [vmem:[%s10989_s1 + $0x36c] sm:$0xf] }
  0xe5   : > { %2266 = vmatpush.bf16.msra.mxu3 %v5671_v6  ;;  %v1346_v6 = vpop.f32.mrf.mxu1  ;;  %v1359_v15 = vpop.f32.mrf.mxu2  ;;  %v7082_v3 = vld [vmem:[%s10989_s1 + $0x14c] sm:$0xf]  ;;  %v5416_v5 = vld [vmem:[%s10989_s1 + $0x158] sm:$0xf0] }
  0xe6   : > { %2228 = vmatpush.bf16.msra.mxu0 %v5271_v54  ;;  %v5464_v54 = vld [vmem:[%s10989_s1 + $0x1b8] sm:$0xf0]  ;;  %v7114_v6 = vld [vmem:[%s10989_s1 + $0x24c] sm:$0xf] }
  0xe7   : > { %2241 = vmatpush.bf16.msra.mxu1 %v5399_v61  ;;  %v7126_v61 = vld [vmem:[%s10989_s1 + $0x2ac] sm:$0xf] }
  0xe8   : > { %2254 = vmatpush.bf16.msra.mxu2 %v5527_v17  ;;  %v5339_v17 = vor.u32 %v7062_v9, %v5336_v10  ;;  %v5595_v21 = vor.u32 %v7126_v61, %v5592_v12  ;;  %v5544_v9 = vld [vmem:[%s10989_s1 + $0x258] sm:$0xf0]  ;;  %v7146_v10 = vld [vmem:[%s10989_s1 + $0x34c] sm:$0xf] }
  0xe9   : > { %2267 = vmatpush.bf16.msra.mxu3 %v5655_v18  ;;  %v5467_v18 = vor.u32 %v7094_v53, %v5464_v54  ;;  %v5291_v53 = vor.u32 %v7050_v59, %v5288_v62  ;;  %v5419_v54 = vor.u32 %v7082_v3, %v5416_v5  ;;  %v7046_v61 = vld [vmem:[%s10989_s1 + $0x2c] sm:$0xf]  ;;  %v5272_v12 = vld [vmem:[%s10989_s1 + $0x38] sm:$0xf0]  ;;  %v5547_v16 = vor.u32 %v7114_v6, %v5544_v9  ;;  %v6382_v59 = vld [vmem:[%s10989_s1 + $0xbe0] sm:$0xf] }
  0xea   : > { %2229 = vmatpush.bf16.msra.mxu0 %v5255_v38  ;;  %v5323_v38 = vor.u32 %v7058_v19, %v5320_v20  ;;  %v5400_v19 = vld [vmem:[%s10989_s1 + $0x138] sm:$0xf0]  ;;  %v7110_v20 = vld [vmem:[%s10989_s1 + $0x22c] sm:$0xf]  ;;  %v7423_v62 = vld [vmem:[%s10989_s1 + $0xbec] sm:$0xf0] }
  0xeb   : > { %2242 = vmatpush.bf16.msra.mxu1 %v5383_v39  ;;  %v5451_v39 = vor.u32 %v7090_v23, %v5448_v24  ;;  %v5656_v23 = vld [vmem:[%s10989_s1 + $0x338] sm:$0xf0]  ;;  %v7042_v24 = vld [vmem:[%s10989_s1 + $0xc] sm:$0xf]  ;;  %v7323_v5 = vld [vmem:[%s10989_s1 + $0x8cc] sm:$0xf0] }
  0xec   : > { %2255 = vmatpush.bf16.msra.mxu2 %v5511_v43  ;;  %v1383_v42 = vpop.f32.mrf.mxu0  ;;  %v7074_v35 = vld [vmem:[%s10989_s1 + $0x10c] sm:$0xf]  ;;  %v6110_v6 = vld [vmem:[%s10989_s1 + $0x9c0] sm:$0xf] }
  0xed   : > { %2268 = vmatpush.bf16.msra.mxu3 %v5639_v44  ;;  %2230 = vmatmul.bf16.vlgmr.msra.gmra.mxu0 %v8690_v57  ;;  %v1396_v43 = vpop.f32.mrf.mxu1  ;;  %v5579_v44 = vor.u32 %v7122_v25, %v5576_v26  ;;  %v5256_v25 = vld [vmem:[%s10989_s1 + $0x18] sm:$0xf0]  ;;  %v5275_v26 = vor.u32 %v7046_v61, %v5272_v12  ;;  %v6383_v12 = vor.u32 %v7423_v62, %v6382_v59  ;;  %v7411_v59 = vld [vmem:[%s10989_s1 + $0xb8c] sm:$0xf0] }
  0xee   : > { %2274 = vmatpush.bf16.msrb.mxu0 %v5371_v47  ;;  %2243 = vmatmul.bf16.vlgmr.msra.gmra.mxu1 %v8703_v0  ;;  %v5432_v47 = vld [vmem:[%s10989_s1 + $0x178] sm:$0xf0]  ;;  %v1397_v49 = vadd.f32 %v1396_v43, %v1383_v42  ;;  %v7138_v43 = vld [vmem:[%s10989_s1 + $0x30c] sm:$0xf] }
  0xef   : > { %2287 = vmatpush.bf16.msrb.mxu1 %v5499_v48  ;;  %2256 = vmatmul.bf16.vlgmr.msra.gmra.mxu2 %v8692_v58  ;;  %v7118_v48 = vld [vmem:[%s10989_s1 + $0x26c] sm:$0xf]  ;;  %v5435_v56 = vor.u32 %v7086_v46, %v5432_v47  ;;  %v5512_v42 = vld [vmem:[%s10989_s1 + $0x218] sm:$0xf0]  ;;  %v5998_v47 = vld [vmem:[%s10989_s1 + $0x8e0] sm:$0xf] }
  0xf0   : > { %2300 = vmatpush.bf16.msrb.mxu2 %v5627_v52  ;;  %2269 = vmatmul.bf16.vlgmr.msra.gmra.mxu3 %v8705_v1  ;;  %v5688_v52 = vld [vmem:[%s10989_s1 + $0x378] sm:$0xf0]  ;;  %v5563_v63 = vor.u32 %v7118_v48, %v5560_v50  ;;  %v7327_v48 = vld [vmem:[%s10989_s1 + $0x8ec] sm:$0xf0] }
  0xf1   : > { %2313 = vmatpush.bf16.msrb.mxu3 %v5755_v55  ;;  %v5307_v55 = vor.u32 %v7054_v40, %v5304_v41  ;;  %v5691_v2 = vor.u32 %v7150_v51, %v5688_v52  ;;  %v7359_v50 = vld [vmem:[%s10989_s1 + $0x9ec] sm:$0xf0]  ;;  %v6254_v51 = vld [vmem:[%s10989_s1 + $0xae0] sm:$0xf] }
  0xf2   : > { %2275 = vmatpush.bf16.msrb.mxu0 %v5355_v7  ;;  %v1409_v7 = vpop.f32.mrf.mxu2  ;;  %v7391_v52 = vld [vmem:[%s10989_s1 + $0xaec] sm:$0xf0] }
  0xf3   : > { %2288 = vmatpush.bf16.msrb.mxu1 %v5483_v8  ;;  %v1422_v8 = vpop.f32.mrf.mxu3  ;;  %v6255_v61 = vor.u32 %v7391_v52, %v6254_v51  ;;  %v6206_v51 = vld [vmem:[%s10989_s1 + $0xa80] sm:$0xf]  ;;  %v7379_v52 = vld [vmem:[%s10989_s1 + $0xa8c] sm:$0xf0] }
  0xf4   : > { %2301 = vmatpush.bf16.msrb.mxu2 %v5611_v11  ;;  %v5672_v11 = vld [vmem:[%s10989_s1 + $0x358] sm:$0xf0]  ;;  %v1385_v14 = vpop.f32.mrf.mxu0 }
  0xf5   : > { %2314 = vmatpush.bf16.msrb.mxu3 %v5739_v60  ;;  %v1410_v60 = vadd.f32 %v1409_v7, %v1397_v49  ;;  %v1398_v15 = vpop.f32.mrf.mxu1  ;;  %v6126_v49 = vld [vmem:[%s10989_s1 + $0x9e0] sm:$0xf]  ;;  %v7355_v7 = vld [vmem:[%s10989_s1 + $0x9cc] sm:$0xf0] }
  0xf6   : > { %2276 = vmatpush.bf16.msrb.mxu0 %v5339_v17  ;;  %v5675_v17 = vor.u32 %v7146_v10, %v5672_v11  ;;  %v6127_v9 = vor.u32 %v7359_v50, %v6126_v49  ;;  %v6238_v10 = vld [vmem:[%s10989_s1 + $0xac0] sm:$0xf]  ;;  %v7387_v11 = vld [vmem:[%s10989_s1 + $0xacc] sm:$0xf0] }
  0xf7   : > { %2289 = vmatpush.bf16.msrb.mxu1 %v5467_v18  ;;  %v9209_v13 = vadd.f32 %v1422_v8, %v1410_v60  ;;  %v7078_v18 = vld [vmem:[%s10989_s1 + $0x12c] sm:$0xf]  ;;  %v5999_v8 = vor.u32 %v7327_v48, %v5998_v47  ;;  %v6366_v60 = vld [vmem:[%s10989_s1 + $0xbc0] sm:$0xf]  ;;  %v7419_v14 = vld [vmem:[%s10989_s1 + $0xbcc] sm:$0xf0] }
  0xf8   : > { %2302 = vmatpush.bf16.msrb.mxu2 %v5595_v21  ;;  %v5528_v21 = vld [vmem:[%s10989_s1 + $0x238] sm:$0xf0]  ;;  %v5403_v32 = vor.u32 %v7078_v18, %v5400_v19  ;;  %v2326_v15 = vld [vmem:[%s7941_s16] sm:$0xee]  ;;  %v9315_v18 = vld [vmem:[%s10989_s1 + $0x8ac] sm:$0xf0] }
  0xf9   : > { %2315 = vmatpush.bf16.msrb.mxu3 %v5723_v22  ;;  %v7142_v22 = vld [vmem:[%s10989_s1 + $0x32c] sm:$0xf]  ;;  %v5531_v40 = vor.u32 %v7110_v20, %v5528_v21  ;;  %v9320_v19 = vld [vmem:[%s10989_s1 + $0x9a0] sm:$0xf]  ;;  %v7351_v21 = vld [vmem:[%s10989_s1 + $0x9ac] sm:$0xf0] }
  0xfa   : > { %2277 = vmatpush.bf16.msrb.mxu0 %v5323_v38  ;;  %v5384_v38 = vld [vmem:[%s10989_s1 + $0x118] sm:$0xf0]  ;;  %v5659_v41 = vor.u32 %v7142_v22, %v5656_v23  ;;  %v9329_v22 = vld [vmem:[%s10989_s1 + $0xaa0] sm:$0xf]  ;;  %v9334_v23 = vld [vmem:[%s10989_s1 + $0xaac] sm:$0xf0]  ;;  %v6095_v47 = vor.u32 %v7351_v21, %v9320_v19 }
  0xfb   : > { %2290 = vmatpush.bf16.msrb.mxu1 %v5451_v39  ;;  %v7106_v39 = vld [vmem:[%s10989_s1 + $0x20c] sm:$0xf]  ;;  %v1424_v46 = vpop.f32.mrf.mxu3  ;;  %v6223_v48 = vor.u32 %v9334_v23, %v9329_v22  ;;  %v5950_v49 = vld [vmem:[%s10989_s1 + $0x880] sm:$0xf]  ;;  %v7315_v50 = vld [vmem:[%s10989_s1 + $0x88c] sm:$0xf0] }
  0xfc   : > { %2303 = vmatpush.bf16.msrb.mxu2 %v5579_v44  ;;  %v5640_v44 = vld [vmem:[%s10989_s1 + $0x318] sm:$0xf0]  ;;  %v7407_v19 = vld [vmem:[%s10989_s1 + $0xb6c] sm:$0xf0] }
  0xfd   : > { %2316 = vmatpush.bf16.msrb.mxu3 %v5707_v45  ;;  %v1411_v45 = vpop.f32.mrf.mxu2  ;;  %v5643_v3 = vor.u32 %v7138_v43, %v5640_v44  ;;  %v7415_v43 = vld [vmem:[%s10989_s1 + $0xbac] sm:$0xf0]  ;;  %v2331_v44 = vunpack.c.h.bf16 %v2326_v15 }
  0xfe   : > { %2278 = vmatpush.bf16.msrb.mxu0 %v5307_v55  ;;  %v5259_v55 = vor.u32 %v7042_v24, %v5256_v25 }
  0xff   : > { %2291 = vmatpush.bf16.msrb.mxu1 %v5435_v56  ;;  %v5387_v56 = vor.u32 %v7074_v35, %v5384_v38  ;;  %v2330_v38 = vunpack.c.l.bf16 %v2326_v15 }
 0x100   : > { %2304 = vmatpush.bf16.msrb.mxu2 %v5563_v63  ;;  %v9280_v63 = vld [vmem:[%s10989_s1 + $0x8c0] sm:$0xf] }
 0x101   : > { %2317 = vmatpush.bf16.msrb.mxu3 %v5691_v2  ;;  %v5515_v2 = vor.u32 %v7106_v39, %v5512_v42  ;;  %v5983_v20 = vor.u32 %v7323_v5, %v9280_v63  ;;  %v6350_v42 = vld [vmem:[%s10989_s1 + $0xba0] sm:$0xf]  ;;  %v2338_v63 = vmul.f32 %v2330_v38, %v7947_v29  ;;  %v2339_v5 = vmul.f32 %v2331_v44, %v7949_v30 }
 0x102   : > { %2279 = vmatpush.bf16.msrb.mxu0 %v5291_v53  ;;  %v2327_v53 = vld [vmem:[%s7941_s16 + $0x8] sm:$0xee]  ;;  %v6174_v44 = vld [vmem:[%s10989_s1 + $0xa40] sm:$0xf] }
 0x103   : > { %2292 = vmatpush.bf16.msrb.mxu1 %v5419_v54  ;;  %v2329_v54 = vld [vmem:[%s7941_s16 + $0x18] sm:$0x11]  ;;  %v2332_v24 = vunpack.c.l.bf16 %v2327_v53  ;;  %v2346_v22 = vadd.f32 %v2338_v63, %v7956_v34 }
 0x104   : > { %2305 = vmatpush.bf16.msrb.mxu2 %v5547_v16  ;;  %v2328_v16 = vld [vmem:[%s7941_s16 + $0x10] sm:$0x11]  ;;  %v2336_v25 = vunpack.c.l.bf16 %v2329_v54  ;;  %v2337_v35 = vunpack.c.h.bf16 %v2329_v54 }
 0x105   : > { %2318 = vmatpush.bf16.msrb.mxu3 %v5675_v17  ;;  %v9310_v17 = vld [vmem:[%s10989_s1 + $0x8a0] sm:$0xf]  ;;  %v2334_v39 = vunpack.c.l.bf16 %v2328_v16  ;;  %v2335_v45 = vunpack.c.h.bf16 %v2328_v16  ;;  %v7343_v54 = vld [vmem:[%s10989_s1 + $0x96c] sm:$0xf0] }
 0x106   : > { %2280 = vmatpush.bf16.msrb.mxu0 %v5275_v26  ;;  %v2333_v26 = vunpack.c.h.bf16 %v2327_v53  ;;  %v5967_v46 = vor.u32 %v9315_v18, %v9310_v17  ;;  %v2345_v62 = vmul.f32 %v2337_v35, %v7945_v28  ;;  %v6062_v53 = vld [vmem:[%s10989_s1 + $0x960] sm:$0xf]  ;;  %v7375_v17 = vld [vmem:[%s10989_s1 + $0xa6c] sm:$0xf0] }
 0x107   : > { %2293 = vmatpush.bf16.msrb.mxu1 %v5403_v32  ;;  %v6111_v32 = vor.u32 %v7355_v7, %v6110_v6  ;;  %v2343_v6 = vmul.f32 %v2335_v45, %v7949_v30  ;;  %v5951_v7 = vor.u32 %v7315_v50, %v5950_v49  ;;  %v6318_v18 = vld [vmem:[%s10989_s1 + $0xb60] sm:$0xf]  ;;  %v7307_v35 = vld [vmem:[%s10989_s1 + $0x84c] sm:$0xf0] }
 0x108   : > { %2306 = vmatpush.bf16.msrb.mxu2 %v5531_v40  ;;  %v6239_v40 = vor.u32 %v7387_v11, %v6238_v10  ;;  %v5934_v10 = vld [vmem:[%s10989_s1 + $0x860] sm:$0xf]  ;;  %v7311_v11 = vld [vmem:[%s10989_s1 + $0x86c] sm:$0xf0]  ;;  %v9415_v21 = vadd.f32 %v2345_v62, %v7954_v33 }
 0x109   : > { %2319 = vmatpush.bf16.msrb.mxu3 %v5659_v41  ;;  %v6367_v41 = vor.u32 %v7419_v14, %v6366_v60  ;;  %v5935_v38 = vor.u32 %v7311_v11, %v5934_v10  ;;  %v7371_v45 = vld [vmem:[%s10989_s1 + $0xa4c] sm:$0xf0]  ;;  %v6302_v50 = vld [vmem:[%s10989_s1 + $0xb40] sm:$0xf] }
 0x10a   : > { %2281 = vmatpush.bf16.msrb.mxu0 %v5259_v55  ;;  %v2340_v55 = vmul.f32 %v2332_v24, %v7943_v27  ;;  %v2361_v49 = vmax.f32 %v9415_v21, 0.0  ;;  %v6286_v10 = vld [vmem:[%s10989_s1 + $0xb20] sm:$0xf]  ;;  %v7399_v11 = vld [vmem:[%s10989_s1 + $0xb2c] sm:$0xf0] }
 0x10b   : > { %2294 = vmatpush.bf16.msrb.mxu1 %v5387_v56  ;;  %v2344_v56 = vmul.f32 %v2336_v25, %v7943_v27  ;;  %v2347_v25 = vadd.f32 %v2339_v5, %v7959_v36  ;;  %v6030_v5 = vld [vmem:[%s10989_s1 + $0x920] sm:$0xf]  ;;  %v7481_v21 = vld [vmem:[%s10989_s1 + $0xdc4] sm:$0xf] }
 0x10c   : > { %2307 = vmatpush.bf16.msrb.mxu2 %v5515_v2  ;;  %v2342_v2 = vmul.f32 %v2334_v39, %v7947_v29  ;;  %v2348_v14 = vadd.f32 %v2340_v55, %v7951_v31  ;;  %v6063_v39 = vor.u32 %v7343_v54, %v6062_v53 }
 0x10d   : > { %2320 = vmatpush.bf16.msrb.mxu3 %v5643_v3  ;;  %2282 = vmatmul.bf16.vlgmr.msrb.gmra.mxu0 %v8690_v57  ;;  %v6078_v57 = vld [vmem:[%s10989_s1 + $0x980] sm:$0xf]  ;;  %v6351_v3 = vor.u32 %v7415_v43, %v6350_v42  ;;  %v9402_v15 = vadd.f32 %v2344_v56, %v7951_v31  ;;  %v7339_v43 = vld [vmem:[%s10989_s1 + $0x94c] sm:$0xf0] }
 0x10e   : > { %3171 = vmatpush.bf16.msra.mxu0 %v5999_v8  ;;  %2295 = vmatmul.bf16.vlgmr.msrb.gmra.mxu1 %v8703_v0  ;;  %v2341_v0 = vmul.f32 %v2333_v26, %v7945_v28  ;;  %v9419_v23 = vadd.f32 %v2342_v2, %v7956_v34  ;;  %v9423_v26 = vadd.f32 %v2343_v6, %v7959_v36  ;;  %v6046_v42 = vld [vmem:[%s10989_s1 + $0x940] sm:$0xf]  ;;  %v7403_v56 = vld [vmem:[%s10989_s1 + $0xb4c] sm:$0xf0] }
 0x10f   : > { %3184 = vmatpush.bf16.msra.mxu1 %v6127_v9  ;;  %2308 = vmatmul.bf16.vlgmr.msrb.gmra.mxu2 %v8692_v58  ;;  %v7347_v58 = vld [vmem:[%s10989_s1 + $0x98c] sm:$0xf0]  ;;  %v6207_v9 = vor.u32 %v7379_v52, %v6206_v51  ;;  %v2355_v52 = vmax.f32 %v2347_v25, 0.0  ;;  %v6047_v2 = vor.u32 %v7339_v43, %v6046_v42 }
 0x110   : > { %3197 = vmatpush.bf16.msra.mxu2 %v6255_v61  ;;  %2321 = vmatmul.bf16.vlgmr.msrb.gmra.mxu3 %v8705_v1  ;;  %v6334_v1 = vld [vmem:[%s10989_s1 + $0xb80] sm:$0xf]  ;;  %v6079_v8 = vor.u32 %v7347_v58, %v6078_v57  ;;  %v2349_v16 = vadd.f32 %v2341_v0, %v7954_v33  ;;  %v2354_v58 = vmax.f32 %v2346_v22, 0.0  ;;  %v2358_v51 = vmax.f32 %v9419_v23, 0.0  ;;  %v7335_v6 = vld [vmem:[%s10989_s1 + $0x92c] sm:$0xf0] }
 0x111   : > { %3210 = vmatpush.bf16.msra.mxu3 %v6383_v12  ;;  %v6335_v60 = vor.u32 %v7411_v59, %v6334_v1  ;;  %v9398_v61 = vld [vmem:[%s10989_s1 + $0xa60] sm:$0xf]  ;;  %v1435_v12 = vpop.f32.mrf.mxu0  ;;  %v2359_v55 = vmax.f32 %v9423_v26, 0.0  ;;  %v7303_v1 = vld [vmem:[%s10989_s1 + $0x82c] sm:$0xf0] }
 0x112   : > { %3172 = vmatpush.bf16.msra.mxu0 %v5983_v20  ;;  %v1448_v20 = vpop.f32.mrf.mxu1  ;;  %v1461_v57 = vpop.f32.mrf.mxu2  ;;  %v5902_v0 = vld [vmem:[%s10989_s1 + $0x820] sm:$0xf]  ;;  %v6752_v26 = vld [vmem:[%s10989_s1 + $0xdd0] sm:$0xf0] }
 0x113   : > { %3185 = vmatpush.bf16.msra.mxu1 %v6111_v32  ;;  %v1449_v24 = vadd.f32 %v1448_v20, %v1435_v12  ;;  %v5918_v32 = vld [vmem:[%s10989_s1 + $0x840] sm:$0xf]  ;;  %v1474_v62 = vpop.f32.mrf.mxu3  ;;  %v6303_v12 = vor.u32 %v7403_v56, %v6302_v50  ;;  %v7331_v20 = vld [vmem:[%s10989_s1 + $0x90c] sm:$0xf0]  ;;  %v5903_v22 = vor.u32 %v7303_v1, %v5902_v0  ;;  %v7357_v56 = vld [vmem:[%s10989_s1 + $0x9e4] sm:$0xf] }
 0x114   : > { %3198 = vmatpush.bf16.msra.mxu2 %v6239_v40  ;;  %v6191_v40 = vor.u32 %v7375_v17, %v9398_v61  ;;  %v5919_v63 = vor.u32 %v7307_v35, %v5918_v32  ;;  %v5886_v17 = vld [vmem:[%s10989_s1 + $0x800] sm:$0xf]  ;;  %v6287_v32 = vor.u32 %v7399_v11, %v6286_v10  ;;  %v6128_v0 = vld [vmem:[%s10989_s1 + $0x9f0] sm:$0xf0] }
 0x115   : > { %3211 = vmatpush.bf16.msra.mxu3 %v6367_v41  ;;  %v6319_v41 = vor.u32 %v7407_v19, %v6318_v18  ;;  %v1462_v59 = vadd.f32 %v1461_v57, %v1449_v24  ;;  %v7299_v18 = vld [vmem:[%s10989_s1 + $0x80c] sm:$0xf0]  ;;  %v6014_v19 = vld [vmem:[%s10989_s1 + $0x900] sm:$0xf]  ;;  %v6031_v24 = vor.u32 %v7335_v6, %v6030_v5  ;;  %v6256_v5 = vld [vmem:[%s10989_s1 + $0xaf0] sm:$0xf0] }
 0x116   : > { %3173 = vmatpush.bf16.msra.mxu0 %v5967_v46  ;;  %v2356_v46 = vmax.f32 %v2348_v14, 0.0  ;;  %v2362_v14 = vpack.c.bf16 %v2358_v51, %v2354_v58  ;;  %v6142_v35 = vld [vmem:[%s10989_s1 + $0xa00] sm:$0xf]  ;;  %v7421_v6 = vld [vmem:[%s10989_s1 + $0xbe4] sm:$0xf] }
 0x117   : > { %3186 = vmatpush.bf16.msra.mxu1 %v6095_v47  ;;  %v2360_v47 = vmax.f32 %v9402_v15, 0.0  ;;  %v9480_v53 = vadd.f32 %v1474_v62, %v1462_v59  ;;  %v5887_v59 = vor.u32 %v7299_v18, %v5886_v17  ;;  %v6015_v62 = vor.u32 %v7331_v20, %v6014_v19  ;;  %v7321_v17 = vld [vmem:[%s10989_s1 + $0x8c4] sm:$0xf]  ;;  %v5984_v18 = vld [vmem:[%s10989_s1 + $0x8d0] sm:$0xf0] }
 0x118   : > { %3199 = vmatpush.bf16.msra.mxu2 %v6223_v48  ;;  %v2357_v48 = vmax.f32 %v2349_v16, 0.0  ;;  %v2363_v16 = vpack.c.bf16 %v2359_v55, %v2355_v52  ;;  %v6000_v52 = vld [vmem:[%s10989_s1 + $0x8f0] sm:$0xf0] }
 0x119   : > { %3212 = vmatpush.bf16.msra.mxu3 %v6351_v3  ;;  %v6175_v3 = vor.u32 %v7371_v45, %v6174_v44  ;;  %v7325_v45 = vld [vmem:[%s10989_s1 + $0x8e4] sm:$0xf]  ;;  %v6624_v15 = vld [vmem:[%s10989_s1 + $0xcd0] sm:$0xf0] }
 0x11a   : > { %3174 = vmatpush.bf16.msra.mxu0 %v5951_v7  ;;  %v6158_v7 = vld [vmem:[%s10989_s1 + $0xa20] sm:$0xf]  ;;  %v2365_v54 = vpack.c.bf16 %v2361_v49, %v2357_v48  ;;  %v1450_v61 = vpop.f32.mrf.mxu1  ;;  %v2499_v48 = vshll.u32 %v2362_v14, 16  ;;  %v2504_v50 = vshrl.u32 %v2363_v16, 16  ;;  %v2507_v57 = vshll.u32 %v2363_v16, 16  ;;  %v1463_v58 = vpop.f32.mrf.mxu2 }
 0x11b   : > { %3187 = vmatpush.bf16.msra.mxu1 %v6079_v8  ;;  %v1437_v8 = vpop.f32.mrf.mxu0  ;;  %v1476_v1 = vpop.f32.mrf.mxu3  ;;  %v6131_v16 = vor.u32 %v7357_v56, %v6128_v0  ;;  %v6096_v58 = vld [vmem:[%s10989_s1 + $0x9b0] sm:$0xf0]  ;;  %v7413_v0 = vld [vmem:[%s10989_s1 + $0xba4] sm:$0xf] }
 0x11c   : > { %3200 = vmatpush.bf16.msra.mxu2 %v6207_v9  ;;  %v7367_v9 = vld [vmem:[%s10989_s1 + $0xa2c] sm:$0xf0]  ;;  %v2520_v43 = vshrl.u32 %v2365_v54, 16  ;;  %v2523_v44 = vshll.u32 %v2365_v54, 16  ;;  %v2501_v54 = vrot.slane %v2499_v48, 2  ;;  %v2506_v61 = vrot.slane %v2504_v50, 1 }
 0x11d   : > { %3213 = vmatpush.bf16.msra.mxu3 %v6335_v60  ;;  %v2364_v60 = vpack.c.bf16 %v2360_v47, %v2356_v46  ;;  %v6159_v25 = vor.u32 %v7367_v9, %v6158_v7  ;;  %v2496_v46 = vshrl.u32 %v2362_v14, 16  ;;  %v6384_v7 = vld [vmem:[%s10989_s1 + $0xbf0] sm:$0xf0]  ;;  %v6003_v14 = vor.u32 %v7325_v45, %v6000_v52  ;;  %v7317_v45 = vld [vmem:[%s10989_s1 + $0x8a4] sm:$0xf] }
 0x11e   : > { %3175 = vmatpush.bf16.msra.mxu0 %v5935_v38  ;;  %v7363_v38 = vld [vmem:[%s10989_s1 + $0xa0c] sm:$0xf0]  ;;  %v2522_v10 = vrot.slane %v2520_v43, 1  ;;  %v2525_v11 = vrot.slane %v2523_v44, 2  ;;  %v6387_v20 = vor.u32 %v7421_v6, %v6384_v7  ;;  %v5987_v43 = vor.u32 %v7321_v17, %v5984_v18  ;;  %v7381_v52 = vld [vmem:[%s10989_s1 + $0xaa4] sm:$0xf] }
 0x11f   : > { %3188 = vmatpush.bf16.msra.mxu1 %v6063_v39  ;;  %v6270_v39 = vld [vmem:[%s10989_s1 + $0xb00] sm:$0xf]  ;;  %v2515_v42 = vshll.u32 %v2364_v60, 16  ;;  %v6224_v56 = vld [vmem:[%s10989_s1 + $0xab0] sm:$0xf0] }
 0x120   : > { %3201 = vmatpush.bf16.msra.mxu2 %v6191_v40  ;;  %v7395_v40 = vld [vmem:[%s10989_s1 + $0xb0c] sm:$0xf0]  ;;  %v6352_v1 = vld [vmem:[%s10989_s1 + $0xbb0] sm:$0xf0]  ;;  %v7345_v6 = vld [vmem:[%s10989_s1 + $0x984] sm:$0xf] }
 0x121   : > { %3214 = vmatpush.bf16.msra.mxu3 %v6319_v41  ;;  %v2512_v41 = vshrl.u32 %v2364_v60, 16  ;;  %v2517_v9 = vrot.slane %v2515_v42, 2  ;;  %v2498_v60 = vrot.slane %v2496_v46, 1  ;;  %v5968_v46 = vld [vmem:[%s10989_s1 + $0x8b0] sm:$0xf0] }
 0x122   : > { %3176 = vmatpush.bf16.msra.mxu0 %v5919_v63  ;;  %v6143_v63 = vor.u32 %v7363_v38, %v6142_v35  ;;  %v9553_v35 = vor.u32 %v2525_v11, %v2522_v10  ;;  %v6240_v38 = vld [vmem:[%s10989_s1 + $0xad0] sm:$0xf0]  ;;  %v7409_v10 = vld [vmem:[%s10989_s1 + $0xb84] sm:$0xf] }
 0x123   : > { %3189 = vmatpush.bf16.msra.mxu1 %v6047_v2  ;;  %v6271_v2 = vor.u32 %v7395_v40, %v6270_v39  ;;  %v2514_v8 = vrot.slane %v2512_v41, 1  ;;  %v7417_v39 = vld [vmem:[%s10989_s1 + $0xbc4] sm:$0xf]  ;;  %v6368_v40 = vld [vmem:[%s10989_s1 + $0xbd0] sm:$0xf0]  ;;  %v9564_v41 = vor.u32 %v2501_v54, %v2498_v60 }
 0x124   : > { %3202 = vmatpush.bf16.msra.mxu2 %v6175_v3  ;;  %v7389_v3 = vld [vmem:[%s10989_s1 + $0xae4] sm:$0xf]  ;;  %v6371_v50 = vor.u32 %v7417_v39, %v6368_v40  ;;  %v6080_v7 = vld [vmem:[%s10989_s1 + $0x990] sm:$0xf0] }
 0x125   : > { %3215 = vmatpush.bf16.msra.mxu3 %v6303_v12  ;;  %v2509_v12 = vrot.slane %v2507_v57, 2  ;;  %v6259_v19 = vor.u32 %v7389_v3, %v6256_v5  ;;  %v7349_v57 = vld [vmem:[%s10989_s1 + $0x9a4] sm:$0xf]  ;;  %v6227_v3 = vor.u32 %v7381_v52, %v6224_v56  ;;  %v6355_v5 = vor.u32 %v7413_v0, %v6352_v1  ;;  %v6336_v11 = vld [vmem:[%s10989_s1 + $0xb90] sm:$0xf0] }
 0x126   : > { %3177 = vmatpush.bf16.msra.mxu0 %v5903_v22  ;;  %v7353_v22 = vld [vmem:[%s10989_s1 + $0x9c4] sm:$0xf]  ;;  %v5936_v17 = vld [vmem:[%s10989_s1 + $0x870] sm:$0xf0] }
 0x127   : > { %3190 = vmatpush.bf16.msra.mxu1 %v6031_v24  ;;  %v6112_v24 = vld [vmem:[%s10989_s1 + $0x9d0] sm:$0xf0]  ;;  %v9566_v42 = vor.u32 %v2509_v12, %v2506_v61  ;;  %v6083_v12 = vor.u32 %v7345_v6, %v6080_v7  ;;  %v7369_v52 = vld [vmem:[%s10989_s1 + $0xa44] sm:$0xf] }
 0x128   : > { %3203 = vmatpush.bf16.msra.mxu2 %v6159_v25  ;;  %v7385_v25 = vld [vmem:[%s10989_s1 + $0xac4] sm:$0xf]  ;;  %v6115_v44 = vor.u32 %v7353_v22, %v6112_v24  ;;  %v6320_v39 = vld [vmem:[%s10989_s1 + $0xb70] sm:$0xf0] }
 0x129   : > { %3216 = vmatpush.bf16.msra.mxu3 %v6287_v32  ;;  %v9551_v32 = vor.u32 %v2517_v9, %v2514_v8  ;;  %v6243_v48 = vor.u32 %v7385_v25, %v6240_v38  ;;  %v7377_v8 = vld [vmem:[%s10989_s1 + $0xa84] sm:$0xf]  ;;  %v6208_v9 = vld [vmem:[%s10989_s1 + $0xa90] sm:$0xf0] }
 0x12a   : > { %3178 = vmatpush.bf16.msra.mxu0 %v5887_v59  ;;  %v5971_v59 = vor.u32 %v7317_v45, %v5968_v46  ;;  %v2127_v60 = vpop.f32.mrf.mxu0  ;;  %v6211_v18 = vor.u32 %v7377_v8, %v6208_v9  ;;  %v7373_v22 = vld [vmem:[%s10989_s1 + $0xa64] sm:$0xf]  ;;  %v6192_v25 = vld [vmem:[%s10989_s1 + $0xa70] sm:$0xf0] }
 0x12b   : > { %3191 = vmatpush.bf16.msra.mxu1 %v6015_v62  ;;  %v6099_v62 = vor.u32 %v7349_v57, %v6096_v58  ;;  %v2128_v54 = vadd.f32 %v2127_v60, %v8970_v37  ;;  %v6064_v37 = vld [vmem:[%s10989_s1 + $0x970] sm:$0xf0]  ;;  %v7405_v38 = vld [vmem:[%s10989_s1 + $0xb64] sm:$0xf]  ;;  %v6195_v46 = vor.u32 %v7373_v22, %v6192_v25 }
 0x12c   : > { %3204 = vmatpush.bf16.msra.mxu2 %v6143_v63  ;;  %v7313_v63 = vld [vmem:[%s10989_s1 + $0x884] sm:$0xf]  ;;  %v5920_v45 = vld [vmem:[%s10989_s1 + $0x850] sm:$0xf0] }
 0x12d   : > { %3217 = vmatpush.bf16.msra.mxu3 %v6271_v2  ;;  %3179 = vmatmul.bf16.vlgmr.msra.gmra.mxu0 %v9564_v41  ;;  %v5952_v2 = vld [vmem:[%s10989_s1 + $0x890] sm:$0xf0]  ;;  %v7337_v57 = vld [vmem:[%s10989_s1 + $0x944] sm:$0xf] }
 0x12e   : > { %3223 = vmatpush.bf16.msrb.mxu0 %v6003_v14  ;;  %3192 = vmatmul.bf16.vlgmr.msra.gmra.mxu1 %v9566_v42  ;;  %v5955_v61 = vor.u32 %v7313_v63, %v5952_v2  ;;  %v2140_v14 = vpop.f32.mrf.mxu1  ;;  %v6048_v58 = vld [vmem:[%s10989_s1 + $0x950] sm:$0xf0]  ;;  %v7301_v6 = vld [vmem:[%s10989_s1 + $0x824] sm:$0xf] }
 0x12f   : > { %3236 = vmatpush.bf16.msrb.mxu1 %v6131_v16  ;;  %3205 = vmatmul.bf16.vlgmr.msra.gmra.mxu2 %v9551_v32  ;;  %v7309_v16 = vld [vmem:[%s10989_s1 + $0x864] sm:$0xf]  ;;  %v2141_v24 = vadd.f32 %v2140_v14, %v2128_v54  ;;  %v6176_v1 = vld [vmem:[%s10989_s1 + $0xa50] sm:$0xf0] }
 0x130   : > { %3249 = vmatpush.bf16.msrb.mxu2 %v6259_v19  ;;  %3218 = vmatmul.bf16.vlgmr.msra.gmra.mxu3 %v9553_v35  ;;  %v6339_v19 = vor.u32 %v7409_v10, %v6336_v11  ;;  %v5939_v40 = vor.u32 %v7309_v16, %v5936_v17  ;;  %v5904_v7 = vld [vmem:[%s10989_s1 + $0x830] sm:$0xf0]  ;;  %v6179_v9 = vor.u32 %v7369_v52, %v6176_v1  ;;  %v7333_v11 = vld [vmem:[%s10989_s1 + $0x924] sm:$0xf]  ;;  %v7424_v1 = vld [vmem:[%s10989_s1 + $0xbf4] sm:$0xf0] }
 0x131   : > { %3262 = vmatpush.bf16.msrb.mxu3 %v6387_v20  ;;  %v7341_v20 = vld [vmem:[%s10989_s1 + $0x964] sm:$0xf]  ;;  %v6032_v60 = vld [vmem:[%s10989_s1 + $0x930] sm:$0xf0]  ;;  %v5907_v17 = vor.u32 %v7301_v6, %v5904_v7  ;;  %v7324_v6 = vld [vmem:[%s10989_s1 + $0x8d4] sm:$0xf0] }
 0x132   : > { %3224 = vmatpush.bf16.msrb.mxu0 %v5987_v43  ;;  %v6067_v43 = vor.u32 %v7341_v20, %v6064_v37  ;;  %v2129_v63 = vpop.f32.mrf.mxu0  ;;  %v7365_v54 = vld [vmem:[%s10989_s1 + $0xa24] sm:$0xf]  ;;  %v6288_v14 = vld [vmem:[%s10989_s1 + $0xb30] sm:$0xf0] }
 0x133   : > { %3237 = vmatpush.bf16.msrb.mxu1 %v6115_v44  ;;  %v7305_v44 = vld [vmem:[%s10989_s1 + $0x844] sm:$0xf]  ;;  %v2166_v0 = vpop.f32.mrf.mxu3  ;;  %v6016_v37 = vld [vmem:[%s10989_s1 + $0x910] sm:$0xf0] }
 0x134   : > { %3250 = vmatpush.bf16.msrb.mxu2 %v6243_v48  ;;  %v6323_v48 = vor.u32 %v7405_v38, %v6320_v39  ;;  %v7297_v16 = vld [vmem:[%s10989_s1 + $0x804] sm:$0xf]  ;;  %v6144_v38 = vld [vmem:[%s10989_s1 + $0xa10] sm:$0xf0] }
 0x135   : > { %3263 = vmatpush.bf16.msrb.mxu3 %v6371_v50  ;;  %v2153_v50 = vpop.f32.mrf.mxu2  ;;  %v7329_v20 = vld [vmem:[%s10989_s1 + $0x904] sm:$0xf] }
 0x136   : > { %3225 = vmatpush.bf16.msrb.mxu0 %v5971_v59  ;;  %v2154_v56 = vadd.f32 %v2153_v50, %v2141_v24  ;;  %v7401_v59 = vld [vmem:[%s10989_s1 + $0xb44] sm:$0xf]  ;;  %v2142_v8 = vpop.f32.mrf.mxu1  ;;  %v7360_v50 = vld [vmem:[%s10989_s1 + $0x9f4] sm:$0xf0]  ;;  %v6019_v52 = vor.u32 %v7329_v20, %v6016_v37  ;;  %v6102_v20 = vld [vmem:[%s10989_s1 + $0x9a8] sm:$0xf] }
 0x137   : > { %3238 = vmatpush.bf16.msrb.mxu1 %v6099_v62  ;;  %v6304_v62 = vld [vmem:[%s10989_s1 + $0xb50] sm:$0xf0]  ;;  %v7361_v25 = vld [vmem:[%s10989_s1 + $0xa04] sm:$0xf]  ;;  %v7352_v37 = vld [vmem:[%s10989_s1 + $0x9b4] sm:$0xf0] }
 0x138   : > { %3251 = vmatpush.bf16.msrb.mxu2 %v6227_v3  ;;  %v9669_v2 = vadd.f32 %v2166_v0, %v2154_v56  ;;  %v5923_v3 = vor.u32 %v7305_v44, %v5920_v45  ;;  %v6307_v10 = vor.u32 %v7401_v59, %v6304_v62  ;;  %v7393_v39 = vld [vmem:[%s10989_s1 + $0xb04] sm:$0xf]  ;;  %v6006_v44 = vld [vmem:[%s10989_s1 + $0x8e8] sm:$0xf]  ;;  %v7328_v45 = vld [vmem:[%s10989_s1 + $0x8f4] sm:$0xf0]  ;;  %v6147_v59 = vor.u32 %v7361_v25, %v6144_v38 }
 0x139   : > { %3264 = vmatpush.bf16.msrb.mxu3 %v6355_v5  ;;  %v6051_v5 = vor.u32 %v7337_v57, %v6048_v58  ;;  %v6262_v57 = vld [vmem:[%s10989_s1 + $0xae8] sm:$0xf]  ;;  %v7392_v56 = vld [vmem:[%s10989_s1 + $0xaf4] sm:$0xf0]  ;;  %v6007_v63 = vor.u32 %v7328_v45, %v6006_v44 }
 0x13a   : > { %3226 = vmatpush.bf16.msrb.mxu0 %v5955_v61  ;;  %v6160_v61 = vld [vmem:[%s10989_s1 + $0xa30] sm:$0xf0]  ;;  %v6390_v0 = vld [vmem:[%s10989_s1 + $0xbe8] sm:$0xf]  ;;  %v6263_v7 = vor.u32 %v7392_v56, %v6262_v57  ;;  %v7416_v38 = vld [vmem:[%s10989_s1 + $0xbb4] sm:$0xf0] }
 0x13b   : > { %3239 = vmatpush.bf16.msrb.mxu1 %v6083_v12  ;;  %v7397_v12 = vld [vmem:[%s10989_s1 + $0xb24] sm:$0xf]  ;;  %v6163_v22 = vor.u32 %v7365_v54, %v6160_v61  ;;  %v6391_v8 = vor.u32 %v7424_v1, %v6390_v0  ;;  %v6374_v54 = vld [vmem:[%s10989_s1 + $0xbc8] sm:$0xf]  ;;  %v7420_v61 = vld [vmem:[%s10989_s1 + $0xbd4] sm:$0xf0] }
 0x13c   : > { %3252 = vmatpush.bf16.msrb.mxu2 %v6211_v18  ;;  %v6035_v18 = vor.u32 %v7333_v11, %v6032_v60  ;;  %v6291_v24 = vor.u32 %v7397_v12, %v6288_v14  ;;  %v6246_v11 = vld [vmem:[%s10989_s1 + $0xac8] sm:$0xf]  ;;  %v7388_v60 = vld [vmem:[%s10989_s1 + $0xad4] sm:$0xf0] }
 0x13d   : > { %3265 = vmatpush.bf16.msrb.mxu3 %v6339_v19  ;;  %v5888_v19 = vld [vmem:[%s10989_s1 + $0x810] sm:$0xf0]  ;;  %v6358_v25 = vld [vmem:[%s10989_s1 + $0xba8] sm:$0xf]  ;;  %v7316_v44 = vld [vmem:[%s10989_s1 + $0x894] sm:$0xf0] }
 0x13e   : > { %3227 = vmatpush.bf16.msrb.mxu0 %v5939_v40  ;;  %v2155_v40 = vpop.f32.mrf.mxu2  ;;  %v5891_v58 = vor.u32 %v7297_v16, %v5888_v19  ;;  %v5974_v16 = vld [vmem:[%s10989_s1 + $0x8a8] sm:$0xf]  ;;  %v6375_v19 = vor.u32 %v7420_v61, %v6374_v54  ;;  %v7412_v56 = vld [vmem:[%s10989_s1 + $0xb94] sm:$0xf0] }
 0x13f   : > { %3240 = vmatpush.bf16.msrb.mxu1 %v6067_v43  ;;  %v6272_v43 = vld [vmem:[%s10989_s1 + $0xb10] sm:$0xf0]  ;;  %v6103_v40 = vor.u32 %v7352_v37, %v6102_v20  ;;  %v6214_v57 = vld [vmem:[%s10989_s1 + $0xa88] sm:$0xf]  ;;  %v7408_v54 = vld [vmem:[%s10989_s1 + $0xb74] sm:$0xf0] }
 0x140   : > { %3253 = vmatpush.bf16.msrb.mxu2 %v6195_v46  ;;  %v2168_v46 = vpop.f32.mrf.mxu3  ;;  %v6275_v62 = vor.u32 %v7393_v39, %v6272_v43  ;;  %v5958_v43 = vld [vmem:[%s10989_s1 + $0x888] sm:$0xf]  ;;  %v7340_v37 = vld [vmem:[%s10989_s1 + $0x954] sm:$0xf0] }
 0x141   : > { %3266 = vmatpush.bf16.msrb.mxu3 %v6323_v48  ;;  %v6134_v48 = vld [vmem:[%s10989_s1 + $0x9e8] sm:$0xf]  ;;  %v6359_v46 = vor.u32 %v7416_v38, %v6358_v25  ;;  %v7372_v38 = vld [vmem:[%s10989_s1 + $0xa54] sm:$0xf0] }
 0x142   : > { %3228 = vmatpush.bf16.msrb.mxu0 %v5923_v3  ;;  %v6135_v3 = vor.u32 %v7360_v50, %v6134_v48  ;;  %v6086_v48 = vld [vmem:[%s10989_s1 + $0x988] sm:$0xf]  ;;  %v7348_v50 = vld [vmem:[%s10989_s1 + $0x994] sm:$0xf0] }
 0x143   : > { %3241 = vmatpush.bf16.msrb.mxu1 %v6051_v5  ;;  %v5990_v5 = vld [vmem:[%s10989_s1 + $0x8c8] sm:$0xf] }
 0x144   : > { %3254 = vmatpush.bf16.msrb.mxu2 %v6179_v9  ;;  %v6118_v9 = vld [vmem:[%s10989_s1 + $0x9c8] sm:$0xf]  ;;  %v5991_v12 = vor.u32 %v7324_v6, %v5990_v5  ;;  %v7312_v5 = vld [vmem:[%s10989_s1 + $0x874] sm:$0xf0] }
 0x145   : > { %3267 = vmatpush.bf16.msrb.mxu3 %v6307_v10  ;;  %v7356_v10 = vld [vmem:[%s10989_s1 + $0x9d4] sm:$0xf0]  ;;  %v6054_v20 = vld [vmem:[%s10989_s1 + $0x948] sm:$0xf] }
 0x146   : > { %3229 = vmatpush.bf16.msrb.mxu0 %v5907_v17  ;;  %v6119_v14 = vor.u32 %v7356_v10, %v6118_v9  ;;  %v7320_v17 = vld [vmem:[%s10989_s1 + $0x8b4] sm:$0xf0]  ;;  %v6198_v9 = vld [vmem:[%s10989_s1 + $0xa68] sm:$0xf] }
 0x147   : > { %3242 = vmatpush.bf16.msrb.mxu1 %v6035_v18  ;;  %v6247_v18 = vor.u32 %v7388_v60, %v6246_v11  ;;  %v5975_v39 = vor.u32 %v7320_v17, %v5974_v16  ;;  %v7376_v11 = vld [vmem:[%s10989_s1 + $0xa74] sm:$0xf0]  ;;  %v6326_v60 = vld [vmem:[%s10989_s1 + $0xb68] sm:$0xf] }
 0x148   : > { %3255 = vmatpush.bf16.msrb.mxu2 %v6163_v22  ;;  %v6230_v22 = vld [vmem:[%s10989_s1 + $0xaa8] sm:$0xf]  ;;  %v7308_v16 = vld [vmem:[%s10989_s1 + $0x854] sm:$0xf0]  ;;  %v6199_v17 = vor.u32 %v7376_v11, %v6198_v9 }
 0x149   : > { %3268 = vmatpush.bf16.msrb.mxu3 %v6291_v24  ;;  %v7384_v24 = vld [vmem:[%s10989_s1 + $0xab4] sm:$0xf0]  ;;  %v6150_v11 = vld [vmem:[%s10989_s1 + $0xa08] sm:$0xf] }
 0x14a   : > { %3230 = vmatpush.bf16.msrb.mxu0 %v5891_v58  ;;  %v6231_v45 = vor.u32 %v7384_v24, %v6230_v22  ;;  %v7380_v58 = vld [vmem:[%s10989_s1 + $0xa94] sm:$0xf0]  ;;  %v2179_v0 = vpop.f32.mrf.mxu0  ;;  %v6182_v22 = vld [vmem:[%s10989_s1 + $0xa48] sm:$0xf] }
 0x14b   : > { %3243 = vmatpush.bf16.msrb.mxu1 %v6019_v52  ;;  %v6342_v52 = vld [vmem:[%s10989_s1 + $0xb88] sm:$0xf]  ;;  %v2180_v1 = vadd.f32 %v2179_v0, %v9101_v4  ;;  %v6215_v6 = vor.u32 %v7380_v58, %v6214_v57  ;;  %v7344_v4 = vld [vmem:[%s10989_s1 + $0x974] sm:$0xf0]  ;;  %v6183_v58 = vor.u32 %v7372_v38, %v6182_v22  ;;  %v6392_v38 = vld [vmem:[%s10989_s1 + $0xbf8] sm:$0xf0] }
 0x14c   : > { %3256 = vmatpush.bf16.msrb.mxu2 %v6147_v59  ;;  %v5959_v59 = vor.u32 %v7316_v44, %v5958_v43  ;;  %v7336_v0 = vld [vmem:[%s10989_s1 + $0x934] sm:$0xf0] }
 0x14d   : > { %3269 = vmatpush.bf16.msrb.mxu3 %v6275_v62  ;;  %3231 = vmatmul.bf16.vlgmr.msrb.gmra.mxu0 %v9564_v41  ;;  %v6087_v62 = vor.u32 %v7348_v50, %v6086_v48  ;;  %v5910_v48 = vld [vmem:[%s10989_s1 + $0x828] sm:$0xf]  ;;  %v7304_v50 = vld [vmem:[%s10989_s1 + $0x834] sm:$0xf0] }
 0x14e   : > { %3275 = vmatpush.bf16.msra.mxu0 %v6007_v63  ;;  %3244 = vmatmul.bf16.vlgmr.msrb.gmra.mxu1 %v9566_v42  ;;  %v2192_v63 = vpop.f32.mrf.mxu1 }
 0x14f   : > { %3288 = vmatpush.bf16.msra.mxu1 %v6135_v3  ;;  %3257 = vmatmul.bf16.vlgmr.msrb.gmra.mxu2 %v9551_v32  ;;  %v5942_v3 = vld [vmem:[%s10989_s1 + $0x868] sm:$0xf]  ;;  %v2193_v10 = vadd.f32 %v2192_v63, %v2180_v1  ;;  %v7400_v63 = vld [vmem:[%s10989_s1 + $0xb34] sm:$0xf0] }
 0x150   : > { %3301 = vmatpush.bf16.msra.mxu2 %v6263_v7  ;;  %3270 = vmatmul.bf16.vlgmr.msrb.gmra.mxu3 %v9553_v35  ;;  %v6343_v7 = vor.u32 %v7412_v56, %v6342_v52  ;;  %v5943_v61 = vor.u32 %v7312_v5, %v5942_v3  ;;  %v6038_v56 = vld [vmem:[%s10989_s1 + $0x928] sm:$0xf]  ;;  %v5911_v5 = vor.u32 %v7304_v50, %v5910_v48  ;;  %v5992_v48 = vld [vmem:[%s10989_s1 + $0x8d8] sm:$0xf0] }
 0x151   : > { %3314 = vmatpush.bf16.msra.mxu3 %v6391_v8  ;;  %v6070_v8 = vld [vmem:[%s10989_s1 + $0x968] sm:$0xf] }
 0x152   : > { %3276 = vmatpush.bf16.msra.mxu0 %v5991_v12  ;;  %v6071_v12 = vor.u32 %v7344_v4, %v6070_v8  ;;  %v2181_v43 = vpop.f32.mrf.mxu0  ;;  %v6166_v1 = vld [vmem:[%s10989_s1 + $0xa28] sm:$0xf]  ;;  %v7332_v4 = vld [vmem:[%s10989_s1 + $0x914] sm:$0xf0] }
 0x153   : > { %3289 = vmatpush.bf16.msra.mxu1 %v6119_v14  ;;  %v5926_v14 = vld [vmem:[%s10989_s1 + $0x848] sm:$0xf]  ;;  %v2218_v25 = vpop.f32.mrf.mxu3 }
 0x154   : > { %3302 = vmatpush.bf16.msra.mxu2 %v6247_v18  ;;  %v6327_v18 = vor.u32 %v7408_v54, %v6326_v60  ;;  %v5894_v3 = vld [vmem:[%s10989_s1 + $0x808] sm:$0xf]  ;;  %v7364_v60 = vld [vmem:[%s10989_s1 + $0xa14] sm:$0xf0] }
 0x155   : > { %3315 = vmatpush.bf16.msra.mxu3 %v6375_v19  ;;  %v2205_v19 = vpop.f32.mrf.mxu2  ;;  %v6022_v8 = vld [vmem:[%s10989_s1 + $0x908] sm:$0xf] }
 0x156   : > { %3277 = vmatpush.bf16.msra.mxu0 %v5975_v39  ;;  %v2206_v24 = vadd.f32 %v2205_v19, %v2193_v10  ;;  %v6310_v39 = vld [vmem:[%s10989_s1 + $0xb48] sm:$0xf]  ;;  %v2194_v57 = vpop.f32.mrf.mxu1  ;;  %v6136_v19 = vld [vmem:[%s10989_s1 + $0x9f8] sm:$0xf0]  ;;  %v6023_v22 = vor.u32 %v7332_v4, %v6022_v8  ;;  %v7350_v8 = vld [vmem:[%s10989_s1 + $0x9ac] sm:$0xf] }
 0x157   : > { %3290 = vmatpush.bf16.msra.mxu1 %v6103_v40  ;;  %v7404_v40 = vld [vmem:[%s10989_s1 + $0xb54] sm:$0xf0]  ;;  %v6278_v54 = vld [vmem:[%s10989_s1 + $0xb08] sm:$0xf]  ;;  %v6104_v4 = vld [vmem:[%s10989_s1 + $0x9b8] sm:$0xf0] }
 0x158   : > { %3303 = vmatpush.bf16.msra.mxu2 %v6231_v45  ;;  %v9868_v44 = vadd.f32 %v2218_v25, %v2206_v24  ;;  %v5927_v45 = vor.u32 %v7308_v16, %v5926_v14  ;;  %v6311_v52 = vor.u32 %v7404_v40, %v6310_v39  ;;  %v7326_v14 = vld [vmem:[%s10989_s1 + $0x8ec] sm:$0xf]  ;;  %v6008_v16 = vld [vmem:[%s10989_s1 + $0x8f8] sm:$0xf0]  ;;  %v6151_v39 = vor.u32 %v7364_v60, %v6150_v11 }
 0x159   : > { %3316 = vmatpush.bf16.msra.mxu3 %v6359_v46  ;;  %v6055_v46 = vor.u32 %v7340_v37, %v6054_v20  ;;  %v7390_v20 = vld [vmem:[%s10989_s1 + $0xaec] sm:$0xf]  ;;  %v6264_v24 = vld [vmem:[%s10989_s1 + $0xaf8] sm:$0xf0]  ;;  %v6011_v43 = vor.u32 %v7326_v14, %v6008_v16 }
 0x15a   : > { %3278 = vmatpush.bf16.msra.mxu0 %v5959_v59  ;;  %v7368_v59 = vld [vmem:[%s10989_s1 + $0xa34] sm:$0xf0]  ;;  %v7422_v25 = vld [vmem:[%s10989_s1 + $0xbec] sm:$0xf]  ;;  %v6267_v50 = vor.u32 %v7390_v20, %v6264_v24  ;;  %v6360_v60 = vld [vmem:[%s10989_s1 + $0xbb8] sm:$0xf0] }
 0x15b   : > { %3291 = vmatpush.bf16.msra.mxu1 %v6087_v62  ;;  %v6294_v62 = vld [vmem:[%s10989_s1 + $0xb28] sm:$0xf]  ;;  %v6167_v9 = vor.u32 %v7368_v59, %v6166_v1  ;;  %v6395_v57 = vor.u32 %v7422_v25, %v6392_v38  ;;  %v7418_v1 = vld [vmem:[%s10989_s1 + $0xbcc] sm:$0xf]  ;;  %v6376_v59 = vld [vmem:[%s10989_s1 + $0xbd8] sm:$0xf0] }
 0x15c   : > { %3304 = vmatpush.bf16.msra.mxu2 %v6215_v6  ;;  %v6039_v6 = vor.u32 %v7336_v0, %v6038_v56  ;;  %v6295_v10 = vor.u32 %v7400_v63, %v6294_v62  ;;  %v7386_v56 = vld [vmem:[%s10989_s1 + $0xacc] sm:$0xf]  ;;  %v6248_v0 = vld [vmem:[%s10989_s1 + $0xad8] sm:$0xf0] }
 0x15d   : > { %3317 = vmatpush.bf16.msra.mxu3 %v6343_v7  ;;  %v7300_v7 = vld [vmem:[%s10989_s1 + $0x814] sm:$0xf0]  ;;  %v7414_v11 = vld [vmem:[%s10989_s1 + $0xbac] sm:$0xf]  ;;  %v5960_v14 = vld [vmem:[%s10989_s1 + $0x898] sm:$0xf0] }
 0x15e   : > { %3279 = vmatpush.bf16.msra.mxu0 %v5943_v61  ;;  %v2207_v61 = vpop.f32.mrf.mxu2  ;;  %v5895_v37 = vor.u32 %v7300_v7, %v5894_v3  ;;  %v7318_v3 = vld [vmem:[%s10989_s1 + $0x8ac] sm:$0xf]  ;;  %v6379_v7 = vor.u32 %v7418_v1, %v6376_v59  ;;  %v6344_v24 = vld [vmem:[%s10989_s1 + $0xb98] sm:$0xf0] }
 0x15f   : > { %3292 = vmatpush.bf16.msra.mxu1 %v6071_v12  ;;  %v7396_v12 = vld [vmem:[%s10989_s1 + $0xb14] sm:$0xf0]  ;;  %v6107_v61 = vor.u32 %v7350_v8, %v6104_v4  ;;  %v7378_v20 = vld [vmem:[%s10989_s1 + $0xa8c] sm:$0xf]  ;;  %v6328_v1 = vld [vmem:[%s10989_s1 + $0xb78] sm:$0xf0] }
 0x160   : > { %3305 = vmatpush.bf16.msra.mxu2 %v6199_v17  ;;  %v2220_v17 = vpop.f32.mrf.mxu3  ;;  %v6279_v40 = vor.u32 %v7396_v12, %v6278_v54  ;;  %v7314_v12 = vld [vmem:[%s10989_s1 + $0x88c] sm:$0xf]  ;;  %v6056_v4 = vld [vmem:[%s10989_s1 + $0x958] sm:$0xf0] }
 0x161   : > { %3318 = vmatpush.bf16.msra.mxu3 %v6327_v18  ;;  %v7358_v18 = vld [vmem:[%s10989_s1 + $0x9ec] sm:$0xf]  ;;  %v6363_v17 = vor.u32 %v7414_v11, %v6360_v60  ;;  %v6184_v60 = vld [vmem:[%s10989_s1 + $0xa58] sm:$0xf0] }
 0x162   : > { %3280 = vmatpush.bf16.msra.mxu0 %v5927_v45  ;;  %v6139_v45 = vor.u32 %v7358_v18, %v6136_v19  ;;  %v7346_v18 = vld [vmem:[%s10989_s1 + $0x98c] sm:$0xf]  ;;  %v6088_v19 = vld [vmem:[%s10989_s1 + $0x998] sm:$0xf0] }
 0x163   : > { %3293 = vmatpush.bf16.msra.mxu1 %v6055_v46  ;;  %v7322_v46 = vld [vmem:[%s10989_s1 + $0x8cc] sm:$0xf] }
 0x164   : > { %3306 = vmatpush.bf16.msra.mxu2 %v6183_v58  ;;  %v7354_v58 = vld [vmem:[%s10989_s1 + $0x9cc] sm:$0xf]  ;;  %v5995_v62 = vor.u32 %v7322_v46, %v5992_v48  ;;  %v5944_v46 = vld [vmem:[%s10989_s1 + $0x878] sm:$0xf0] }
 0x165   : > { %3319 = vmatpush.bf16.msra.mxu3 %v6311_v52  ;;  %v6120_v52 = vld [vmem:[%s10989_s1 + $0x9d8] sm:$0xf0]  ;;  %v7338_v8 = vld [vmem:[%s10989_s1 + $0x94c] sm:$0xf] }
 0x166   : > { %3281 = vmatpush.bf16.msra.mxu0 %v5911_v5  ;;  %v6123_v63 = vor.u32 %v7354_v58, %v6120_v52  ;;  %v5976_v5 = vld [vmem:[%s10989_s1 + $0x8b8] sm:$0xf0]  ;;  %v7374_v58 = vld [vmem:[%s10989_s1 + $0xa6c] sm:$0xf] }
 0x167   : > { %3294 = vmatpush.bf16.msra.mxu1 %v6039_v6  ;;  %v6251_v6 = vor.u32 %v7386_v56, %v6248_v0  ;;  %v5979_v54 = vor.u32 %v7318_v3, %v5976_v5  ;;  %v6200_v56 = vld [vmem:[%s10989_s1 + $0xa78] sm:$0xf0]  ;;  %v7406_v0 = vld [vmem:[%s10989_s1 + $0xb6c] sm:$0xf] }
 0x168   : > { %3307 = vmatpush.bf16.msra.mxu2 %v6167_v9  ;;  %v7382_v9 = vld [vmem:[%s10989_s1 + $0xaac] sm:$0xf]  ;;  %v5928_v3 = vld [vmem:[%s10989_s1 + $0x858] sm:$0xf0]  ;;  %v6203_v5 = vor.u32 %v7374_v58, %v6200_v56 }
 0x169   : > { %3320 = vmatpush.bf16.msra.mxu3 %v6295_v10  ;;  %v6232_v10 = vld [vmem:[%s10989_s1 + $0xab8] sm:$0xf0]  ;;  %v7362_v56 = vld [vmem:[%s10989_s1 + $0xa0c] sm:$0xf] }
 0x16a   : > { %3282 = vmatpush.bf16.msra.mxu0 %v5895_v37  ;;  %v6235_v16 = vor.u32 %v7382_v9, %v6232_v10  ;;  %v6216_v37 = vld [vmem:[%s10989_s1 + $0xa98] sm:$0xf0]  ;;  %v2231_v25 = vpop.f32.mrf.mxu0  ;;  %v7370_v9 = vld [vmem:[%s10989_s1 + $0xa4c] sm:$0xf] }
 0x16b   : > { %3295 = vmatpush.bf16.msra.mxu1 %v6023_v22  ;;  %v7410_v22 = vld [vmem:[%s10989_s1 + $0xb8c] sm:$0xf]  ;;  %v2232_v38 = vadd.f32 %v2231_v25, %v9209_v13  ;;  %v6219_v48 = vor.u32 %v7378_v20, %v6216_v37  ;;  %v6072_v13 = vld [vmem:[%s10989_s1 + $0x978] sm:$0xf0]  ;;  %v6187_v37 = vor.u32 %v7370_v9, %v6184_v60  ;;  %v7551_v60 = vld [vmem:[%s10989_s1 + $0xfec] sm:$0xf0] }
 0x16c   : > { %3308 = vmatpush.bf16.msra.mxu2 %v6151_v39  ;;  %v5963_v39 = vor.u32 %v7314_v12, %v5960_v14  ;;  %v6040_v25 = vld [vmem:[%s10989_s1 + $0x938] sm:$0xf0] }
 0x16d   : > { %3321 = vmatpush.bf16.msra.mxu3 %v6279_v40  ;;  %3283 = vmatmul.bf16.vlgmr.msra.gmra.mxu0 %v9564_v41  ;;  %v6091_v40 = vor.u32 %v7346_v18, %v6088_v19  ;;  %v7302_v18 = vld [vmem:[%s10989_s1 + $0x82c] sm:$0xf]  ;;  %v5912_v19 = vld [vmem:[%s10989_s1 + $0x838] sm:$0xf0] }
 0x16e   : > { %3327 = vmatpush.bf16.msrb.mxu0 %v6011_v43  ;;  %3296 = vmatmul.bf16.vlgmr.msra.gmra.mxu1 %v9566_v42  ;;  %v2244_v43 = vpop.f32.mrf.mxu1 }
 0x16f   : > { %3340 = vmatpush.bf16.msrb.mxu1 %v6139_v45  ;;  %3309 = vmatmul.bf16.vlgmr.msra.gmra.mxu2 %v9551_v32  ;;  %v7310_v45 = vld [vmem:[%s10989_s1 + $0x86c] sm:$0xf]  ;;  %v2245_v52 = vadd.f32 %v2244_v43, %v2232_v38  ;;  %v6296_v43 = vld [vmem:[%s10989_s1 + $0xb38] sm:$0xf0] }
 0x170   : > { %3353 = vmatpush.bf16.msrb.mxu2 %v6267_v50  ;;  %3322 = vmatmul.bf16.vlgmr.msra.gmra.mxu3 %v9553_v35  ;;  %v6347_v50 = vor.u32 %v7410_v22, %v6344_v24  ;;  %v5947_v59 = vor.u32 %v7310_v45, %v5944_v46  ;;  %v7334_v24 = vld [vmem:[%s10989_s1 + $0x92c] sm:$0xf]  ;;  %v5915_v46 = vor.u32 %v7302_v18, %v5912_v19  ;;  %v7451_v18 = vld [vmem:[%s10989_s1 + $0xccc] sm:$0xf0] }
 0x171   : > { %3366 = vmatpush.bf16.msrb.mxu3 %v6395_v57  ;;  %v7342_v57 = vld [vmem:[%s10989_s1 + $0x96c] sm:$0xf] }
 0x172   : > { %3328 = vmatpush.bf16.msrb.mxu0 %v5995_v62  ;;  %v6075_v62 = vor.u32 %v7342_v57, %v6072_v13  ;;  %v2233_v12 = vpop.f32.mrf.mxu0  ;;  %v7366_v38 = vld [vmem:[%s10989_s1 + $0xa2c] sm:$0xf]  ;;  %v6024_v13 = vld [vmem:[%s10989_s1 + $0x918] sm:$0xf0] }
 0x173   : > { %3341 = vmatpush.bf16.msrb.mxu1 %v6123_v63  ;;  %v7306_v63 = vld [vmem:[%s10989_s1 + $0x84c] sm:$0xf]  ;;  %v2270_v11 = vpop.f32.mrf.mxu3 }
 0x174   : > { %3354 = vmatpush.bf16.msrb.mxu2 %v6251_v6  ;;  %v6331_v6 = vor.u32 %v7406_v0, %v6328_v1  ;;  %v7298_v45 = vld [vmem:[%s10989_s1 + $0x80c] sm:$0xf]  ;;  %v6152_v0 = vld [vmem:[%s10989_s1 + $0xa18] sm:$0xf0] }
 0x175   : > { %3367 = vmatpush.bf16.msrb.mxu3 %v6379_v7  ;;  %v2257_v7 = vpop.f32.mrf.mxu2  ;;  %v7330_v57 = vld [vmem:[%s10989_s1 + $0x90c] sm:$0xf] }
 0x176   : > { %3329 = vmatpush.bf16.msrb.mxu0 %v5979_v54  ;;  %v2258_v10 = vadd.f32 %v2257_v7, %v2245_v52  ;;  %v7402_v54 = vld [vmem:[%s10989_s1 + $0xb4c] sm:$0xf]  ;;  %v2246_v20 = vpop.f32.mrf.mxu1  ;;  %v7487_v7 = vld [vmem:[%s10989_s1 + $0xdec] sm:$0xf0]  ;;  %v6027_v9 = vor.u32 %v7330_v57, %v6024_v13  ;;  %v6734_v57 = vld [vmem:[%s10989_s1 + $0xda0] sm:$0xf] }
 0x177   : > { %3342 = vmatpush.bf16.msrb.mxu1 %v6107_v61  ;;  %v6312_v61 = vld [vmem:[%s10989_s1 + $0xb58] sm:$0xf0]  ;;  %v7394_v1 = vld [vmem:[%s10989_s1 + $0xb0c] sm:$0xf]  ;;  %v7479_v13 = vld [vmem:[%s10989_s1 + $0xdac] sm:$0xf0] }
 0x178   : > { %3355 = vmatpush.bf16.msrb.mxu2 %v6235_v16  ;;  %v10067_v14 = vadd.f32 %v2270_v11, %v2258_v10  ;;  %v5931_v16 = vor.u32 %v7306_v63, %v5928_v3  ;;  %v6315_v22 = vor.u32 %v7402_v54, %v6312_v61  ;;  %v6638_v63 = vld [vmem:[%s10989_s1 + $0xce0] sm:$0xf]  ;;  %v7455_v3 = vld [vmem:[%s10989_s1 + $0xcec] sm:$0xf0]  ;;  %v6155_v54 = vor.u32 %v7362_v56, %v6152_v0 }
 0x179   : > { %3368 = vmatpush.bf16.msrb.mxu3 %v6363_v17  ;;  %v6059_v17 = vor.u32 %v7338_v8, %v6056_v4  ;;  %v6894_v8 = vld [vmem:[%s10989_s1 + $0xee0] sm:$0xf]  ;;  %v7519_v10 = vld [vmem:[%s10989_s1 + $0xeec] sm:$0xf0]  ;;  %v6639_v12 = vor.u32 %v7455_v3, %v6638_v63 }
 0x17a   : > { %3330 = vmatpush.bf16.msrb.mxu0 %v5963_v39  ;;  %v6168_v39 = vld [vmem:[%s10989_s1 + $0xa38] sm:$0xf0]  ;;  %v7022_v11 = vld [vmem:[%s10989_s1 + $0xfe0] sm:$0xf]  ;;  %v6895_v19 = vor.u32 %v7519_v10, %v6894_v8  ;;  %v7543_v0 = vld [vmem:[%s10989_s1 + $0xfac] sm:$0xf0] }
 0x17b   : > { %3343 = vmatpush.bf16.msrb.mxu1 %v6091_v40  ;;  %v7398_v40 = vld [vmem:[%s10989_s1 + $0xb2c] sm:$0xf]  ;;  %v6171_v58 = vor.u32 %v7366_v38, %v6168_v39  ;;  %v7023_v20 = vor.u32 %v7551_v60, %v7022_v11  ;;  %v7006_v38 = vld [vmem:[%s10989_s1 + $0xfc0] sm:$0xf]  ;;  %v7547_v39 = vld [vmem:[%s10989_s1 + $0xfcc] sm:$0xf0] }
 0x17c   : > { %3356 = vmatpush.bf16.msrb.mxu2 %v6219_v48  ;;  %v6043_v48 = vor.u32 %v7334_v24, %v6040_v25  ;;  %v6299_v52 = vor.u32 %v7398_v40, %v6296_v43  ;;  %v6878_v24 = vld [vmem:[%s10989_s1 + $0xec0] sm:$0xf]  ;;  %v7515_v25 = vld [vmem:[%s10989_s1 + $0xecc] sm:$0xf0] }
 0x17d   : > { %3369 = vmatpush.bf16.msrb.mxu3 %v6347_v50  ;;  %v5896_v50 = vld [vmem:[%s10989_s1 + $0x818] sm:$0xf0]  ;;  %v6990_v56 = vld [vmem:[%s10989_s1 + $0xfa0] sm:$0xf]  ;;  %v7539_v8 = vld [vmem:[%s10989_s1 + $0xf8c] sm:$0xf0] }
 0x17e   : > { %3331 = vmatpush.bf16.msrb.mxu0 %v5947_v59  ;;  %v2259_v59 = vpop.f32.mrf.mxu2  ;;  %v5899_v4 = vor.u32 %v7298_v45, %v5896_v50  ;;  %v6606_v45 = vld [vmem:[%s10989_s1 + $0xca0] sm:$0xf]  ;;  %v7007_v50 = vor.u32 %v7547_v39, %v7006_v38  ;;  %v6991_v63 = vor.u32 %v7543_v0, %v6990_v56 }
 0x17f   : > { %3344 = vmatpush.bf16.msrb.mxu1 %v6075_v62  ;;  %v6280_v62 = vld [vmem:[%s10989_s1 + $0xb18] sm:$0xf0]  ;;  %v7443_v59 = vld [vmem:[%s10989_s1 + $0xc8c] sm:$0xf0]  ;;  %v6846_v3 = vld [vmem:[%s10989_s1 + $0xe80] sm:$0xf] }
 0x180   : > { %3357 = vmatpush.bf16.msrb.mxu2 %v6203_v5  ;;  %v2272_v5 = vpop.f32.mrf.mxu3  ;;  %v6283_v61 = vor.u32 %v7394_v1, %v6280_v62  ;;  %v6735_v1 = vor.u32 %v7479_v13, %v6734_v57  ;;  %v6574_v11 = vld [vmem:[%s10989_s1 + $0xc60] sm:$0xf]  ;;  %v7467_v13 = vld [vmem:[%s10989_s1 + $0xd4c] sm:$0xf0] }
 0x181   : > { %3370 = vmatpush.bf16.msrb.mxu3 %v6331_v6  ;;  %v6766_v6 = vld [vmem:[%s10989_s1 + $0xde0] sm:$0xf]  ;;  %v7507_v5 = vld [vmem:[%s10989_s1 + $0xe8c] sm:$0xf0] }
 0x182   : > { %3332 = vmatpush.bf16.msrb.mxu0 %v5931_v16  ;;  %v6767_v16 = vor.u32 %v7487_v7, %v6766_v6  ;;  %v3384_v6 = vld [vmem:[%s7941_s16 + $0x8] sm:$0xcc]  ;;  %v6974_v7 = vld [vmem:[%s10989_s1 + $0xf80] sm:$0xf] }
 0x183   : > { %3345 = vmatpush.bf16.msrb.mxu1 %v6059_v17  ;;  %v6622_v17 = vld [vmem:[%s10989_s1 + $0xcc0] sm:$0xf] }
 0x184   : > { %3358 = vmatpush.bf16.msrb.mxu2 %v6187_v37  ;;  %v6750_v37 = vld [vmem:[%s10989_s1 + $0xdc0] sm:$0xf]  ;;  %v6623_v40 = vor.u32 %v7451_v18, %v6622_v17  ;;  %v7471_v17 = vld [vmem:[%s10989_s1 + $0xd6c] sm:$0xf0]  ;;  %v3387_v18 = vunpack.c.l.bf16 %v3384_v6 }
 0x185   : > { %3371 = vmatpush.bf16.msrb.mxu3 %v6315_v22  ;;  %v7483_v22 = vld [vmem:[%s10989_s1 + $0xdcc] sm:$0xf0]  ;;  %v6958_v39 = vld [vmem:[%s10989_s1 + $0xf60] sm:$0xf] }
 0x186   : > { %3333 = vmatpush.bf16.msrb.mxu0 %v5915_v46  ;;  %v6751_v43 = vor.u32 %v7483_v22, %v6750_v37  ;;  %v7447_v46 = vld [vmem:[%s10989_s1 + $0xcac] sm:$0xf0]  ;;  %v6830_v37 = vld [vmem:[%s10989_s1 + $0xe60] sm:$0xf]  ;;  %v3391_v56 = vmul.f32 %v3387_v18, %v7943_v27 }
 0x187   : > { %3346 = vmatpush.bf16.msrb.mxu1 %v6043_v48  ;;  %v6879_v48 = vor.u32 %v7515_v25, %v6878_v24  ;;  %v7503_v22 = vld [vmem:[%s10989_s1 + $0xe6c] sm:$0xf0] }
 0x188   : > { %3359 = vmatpush.bf16.msrb.mxu2 %v6171_v58  ;;  %v6862_v58 = vld [vmem:[%s10989_s1 + $0xea0] sm:$0xf]  ;;  %v6831_v57 = vor.u32 %v7503_v22, %v6830_v37  ;;  %v7531_v27 = vld [vmem:[%s10989_s1 + $0xf4c] sm:$0xf0] }
 0x189   : > { %3372 = vmatpush.bf16.msrb.mxu3 %v6299_v52  ;;  %v7511_v52 = vld [vmem:[%s10989_s1 + $0xeac] sm:$0xf0] }
 0x18a   : > { %3334 = vmatpush.bf16.msrb.mxu0 %v5899_v4  ;;  %v6863_v62 = vor.u32 %v7511_v52, %v6862_v58  ;;  %v3383_v4 = vld [vmem:[%s7941_s16] sm:$0xcc]  ;;  %v7499_v52 = vld [vmem:[%s10989_s1 + $0xe4c] sm:$0xf0] }
 0x18b   : > { %3347 = vmatpush.bf16.msrb.mxu1 %v6027_v9  ;;  %v2283_v9 = vpop.f32.mrf.mxu0  ;;  %v3385_v24 = vunpack.c.l.bf16 %v3383_v4  ;;  %v3386_v25 = vunpack.c.h.bf16 %v3383_v4  ;;  %v6814_v58 = vld [vmem:[%s10989_s1 + $0xe40] sm:$0xf] }
 0x18c   : > { %3360 = vmatpush.bf16.msrb.mxu2 %v6155_v54  ;;  %v2284_v60 = vadd.f32 %v2283_v9, %v9480_v53  ;;  %v6975_v53 = vor.u32 %v7539_v8, %v6974_v7  ;;  %v3395_v7 = vadd.f32 %v3391_v56, %v7951_v31  ;;  %v7517_v56 = vld [vmem:[%s10989_s1 + $0xee4] sm:$0xf] }
 0x18d   : > { %3373 = vmatpush.bf16.msrb.mxu3 %v6283_v61  ;;  %3335 = vmatmul.bf16.vlgmr.msrb.gmra.mxu0 %v9564_v41  ;;  %v6718_v41 = vld [vmem:[%s10989_s1 + $0xd80] sm:$0xf]  ;;  %v2296_v61 = vpop.f32.mrf.mxu1 }
 0x18e   : > { %4186 = vmatpush.bf16.msra.mxu0 %v6639_v12  ;;  %3348 = vmatmul.bf16.vlgmr.msrb.gmra.mxu1 %v9566_v42  ;;  %v7475_v42 = vld [vmem:[%s10989_s1 + $0xd8c] sm:$0xf0]  ;;  %v2297_v38 = vadd.f32 %v2296_v61, %v2284_v60  ;;  %v6798_v60 = vld [vmem:[%s10989_s1 + $0xe20] sm:$0xf] }
 0x18f   : > { %4199 = vmatpush.bf16.msra.mxu1 %v6767_v16  ;;  %3361 = vmatmul.bf16.vlgmr.msrb.gmra.mxu2 %v9551_v32  ;;  %v6590_v32 = vld [vmem:[%s10989_s1 + $0xc80] sm:$0xf]  ;;  %v6719_v54 = vor.u32 %v7475_v42, %v6718_v41  ;;  %v7439_v12 = vld [vmem:[%s10989_s1 + $0xc6c] sm:$0xf0] }
 0x190   : > { %4212 = vmatpush.bf16.msra.mxu2 %v6895_v19  ;;  %3374 = vmatmul.bf16.vlgmr.msrb.gmra.mxu3 %v9553_v35  ;;  %v6607_v35 = vor.u32 %v7447_v46, %v6606_v45  ;;  %v6591_v10 = vor.u32 %v7443_v59, %v6590_v32  ;;  %v6702_v16 = vld [vmem:[%s10989_s1 + $0xd60] sm:$0xf]  ;;  %v3388_v19 = vunpack.c.h.bf16 %v3384_v6  ;;  %v3390_v59 = vmul.f32 %v3386_v25, %v7949_v30  ;;  %v7431_v30 = vld [vmem:[%s10989_s1 + $0xc2c] sm:$0xf0] }
 0x191   : > { %4225 = vmatpush.bf16.msra.mxu3 %v7023_v20  ;;  %v6847_v20 = vor.u32 %v7507_v5, %v6846_v3  ;;  %v6703_v45 = vor.u32 %v7471_v17, %v6702_v16  ;;  %v6558_v46 = vld [vmem:[%s10989_s1 + $0xc40] sm:$0xf]  ;;  %v6815_v3 = vor.u32 %v7499_v52, %v6814_v58  ;;  %v7491_v25 = vld [vmem:[%s10989_s1 + $0xe0c] sm:$0xf0]  ;;  %v7485_v58 = vld [vmem:[%s10989_s1 + $0xde4] sm:$0xf] }
 0x192   : > { %4187 = vmatpush.bf16.msra.mxu0 %v6623_v40  ;;  %v7535_v40 = vld [vmem:[%s10989_s1 + $0xf6c] sm:$0xf0]  ;;  %v3392_v0 = vmul.f32 %v3388_v19, %v7945_v28  ;;  %v6926_v61 = vld [vmem:[%s10989_s1 + $0xf20] sm:$0xf]  ;;  %v6768_v52 = vld [vmem:[%s10989_s1 + $0xdf0] sm:$0xf0] }
 0x193   : > { %4200 = vmatpush.bf16.msra.mxu1 %v6751_v43  ;;  %v6575_v43 = vor.u32 %v7439_v12, %v6574_v11  ;;  %v6959_v32 = vor.u32 %v7535_v40, %v6958_v39  ;;  %v2322_v42 = vpop.f32.mrf.mxu3  ;;  %v2285_v5 = vpop.f32.mrf.mxu0  ;;  %v7463_v11 = vld [vmem:[%s10989_s1 + $0xd2c] sm:$0xf0]  ;;  %v6526_v16 = vld [vmem:[%s10989_s1 + $0xc00] sm:$0xf] }
 0x194   : > { %4213 = vmatpush.bf16.msra.mxu2 %v6879_v48  ;;  %v7435_v48 = vld [vmem:[%s10989_s1 + $0xc4c] sm:$0xf0]  ;;  %v3396_v8 = vadd.f32 %v3392_v0, %v7954_v33  ;;  %v3394_v33 = vadd.f32 %v3390_v59, %v7959_v36  ;;  %v6654_v36 = vld [vmem:[%s10989_s1 + $0xd00] sm:$0xf] }
 0x195   : > { %4226 = vmatpush.bf16.msra.mxu3 %v7007_v50  ;;  %v6686_v50 = vld [vmem:[%s10989_s1 + $0xd40] sm:$0xf]  ;;  %v2298_v4 = vpop.f32.mrf.mxu1  ;;  %v7527_v12 = vld [vmem:[%s10989_s1 + $0xf2c] sm:$0xf0] }
 0x196   : > { %4188 = vmatpush.bf16.msra.mxu0 %v6607_v35  ;;  %v2309_v35 = vpop.f32.mrf.mxu2  ;;  %v6687_v28 = vor.u32 %v7467_v13, %v6686_v50  ;;  %v7459_v19 = vld [vmem:[%s10989_s1 + $0xd0c] sm:$0xf0]  ;;  %v3400_v37 = vmax.f32 %v3396_v8, 0.0  ;;  %v3398_v40 = vmax.f32 %v3394_v33, 0.0  ;;  %v7477_v33 = vld [vmem:[%s10989_s1 + $0xda4] sm:$0xf] }
 0x197   : > { %4201 = vmatpush.bf16.msra.mxu1 %v6735_v1  ;;  %v3389_v1 = vmul.f32 %v3385_v24, %v7947_v29  ;;  %v2310_v41 = vadd.f32 %v2309_v35, %v2297_v38  ;;  %v6542_v29 = vld [vmem:[%s10989_s1 + $0xc20] sm:$0xf]  ;;  %v6927_v24 = vor.u32 %v7527_v12, %v6926_v61  ;;  %v6655_v13 = vor.u32 %v7459_v19, %v6654_v36  ;;  %v7549_v35 = vld [vmem:[%s10989_s1 + $0xfe4] sm:$0xf]  ;;  %v6864_v12 = vld [vmem:[%s10989_s1 + $0xeb0] sm:$0xf0] }
 0x198   : > { %4214 = vmatpush.bf16.msra.mxu2 %v6863_v62  ;;  %v6942_v62 = vld [vmem:[%s10989_s1 + $0xf40] sm:$0xf]  ;;  %v6543_v17 = vor.u32 %v7431_v30, %v6542_v29  ;;  %v7545_v29 = vld [vmem:[%s10989_s1 + $0xfc4] sm:$0xf]  ;;  %v7008_v30 = vld [vmem:[%s10989_s1 + $0xfd0] sm:$0xf0] }
 0x199   : > { %4227 = vmatpush.bf16.msra.mxu3 %v6991_v63  ;;  %v6559_v63 = vor.u32 %v7435_v48, %v6558_v46  ;;  %v10272_v6 = vadd.f32 %v2322_v42, %v2310_v41  ;;  %v6943_v9 = vor.u32 %v7531_v27, %v6942_v62  ;;  %v3393_v31 = vadd.f32 %v3389_v1, %v7956_v34  ;;  %v7427_v34 = vld [vmem:[%s10989_s1 + $0xc0c] sm:$0xf0]  ;;  %v6910_v38 = vld [vmem:[%s10989_s1 + $0xf00] sm:$0xf]  ;;  %v7453_v46 = vld [vmem:[%s10989_s1 + $0xce4] sm:$0xf] }
 0x19a   : > { %4189 = vmatpush.bf16.msra.mxu0 %v6591_v10  ;;  %v6670_v10 = vld [vmem:[%s10989_s1 + $0xd20] sm:$0xf]  ;;  %v6640_v48 = vld [vmem:[%s10989_s1 + $0xcf0] sm:$0xf0]  ;;  %v3404_v41 = vpack.c.bf16 %v2361_v49, %v3400_v37  ;;  %v3402_v27 = vpack.c.bf16 %v2359_v55, %v3398_v40  ;;  %v7513_v49 = vld [vmem:[%s10989_s1 + $0xec4] sm:$0xf] }
 0x19b   : > { %4202 = vmatpush.bf16.msra.mxu1 %v6719_v54  ;;  %v7495_v54 = vld [vmem:[%s10989_s1 + $0xe2c] sm:$0xf0]  ;;  %v6671_v18 = vor.u32 %v7463_v11, %v6670_v10  ;;  %v3397_v39 = vmax.f32 %v3393_v31, 0.0  ;;  %v2324_v50 = vpop.f32.mrf.mxu3  ;;  %v7024_v1 = vld [vmem:[%s10989_s1 + $0xff0] sm:$0xf0]  ;;  %v7011_v31 = vor.u32 %v7545_v29, %v7008_v30 }
 0x19c   : > { %4215 = vmatpush.bf16.msra.mxu2 %v6847_v20  ;;  %v6782_v20 = vld [vmem:[%s10989_s1 + $0xe00] sm:$0xf]  ;;  %v6799_v22 = vor.u32 %v7495_v54, %v6798_v60  ;;  %v7027_v23 = vor.u32 %v7549_v35, %v7024_v1  ;;  %v10378_v5 = vrot.slane %v3404_v41, 2  ;;  %v10388_v8 = vrot.slane %v3402_v27, 2  ;;  %v7445_v10 = vld [vmem:[%s10989_s1 + $0xca4] sm:$0xf] }
 0x19d   : > { %4228 = vmatpush.bf16.msra.mxu3 %v6975_v53  ;;  %v3399_v53 = vmax.f32 %v3395_v7, 0.0  ;;  %v6783_v0 = vor.u32 %v7491_v25, %v6782_v20  ;;  %v3401_v62 = vpack.c.bf16 %v2358_v51, %v3397_v39  ;;  %v6880_v51 = vld [vmem:[%s10989_s1 + $0xed0] sm:$0xf0]  ;;  %v7509_v61 = vld [vmem:[%s10989_s1 + $0xea4] sm:$0xf] }
 0x19e   : > { %4190 = vmatpush.bf16.msra.mxu0 %v6575_v43  ;;  %v2311_v43 = vpop.f32.mrf.mxu2  ;;  %v6608_v11 = vld [vmem:[%s10989_s1 + $0xcb0] sm:$0xf0]  ;;  %v6883_v60 = vor.u32 %v7513_v49, %v6880_v51  ;;  %v6867_v20 = vor.u32 %v7509_v61, %v6864_v12  ;;  %v7473_v37 = vld [vmem:[%s10989_s1 + $0xd84] sm:$0xf] }
 0x19f   : > { %4203 = vmatpush.bf16.msra.mxu1 %v6703_v45  ;;  %v7523_v45 = vld [vmem:[%s10989_s1 + $0xf0c] sm:$0xf0]  ;;  %v3403_v59 = vpack.c.bf16 %v2360_v47, %v3399_v53  ;;  %v10386_v7 = vrot.slane %v3401_v62, 2  ;;  %v6736_v54 = vld [vmem:[%s10989_s1 + $0xdb0] sm:$0xf0]  ;;  %v6611_v36 = vor.u32 %v7445_v10, %v6608_v11 }
 0x1a0   : > { %4216 = vmatpush.bf16.msra.mxu2 %v6831_v57  ;;  %v6527_v57 = vor.u32 %v7427_v34, %v6526_v16  ;;  %v6911_v42 = vor.u32 %v7523_v45, %v6910_v38  ;;  %v7541_v16 = vld [vmem:[%s10989_s1 + $0xfa4] sm:$0xf]  ;;  %v6992_v34 = vld [vmem:[%s10989_s1 + $0xfb0] sm:$0xf0] }
 0x1a1   : > { %4229 = vmatpush.bf16.msra.mxu3 %v6959_v32  ;;  %v6896_v32 = vld [vmem:[%s10989_s1 + $0xef0] sm:$0xf0]  ;;  %v10376_v55 = vrot.slane %v3403_v59, 2  ;;  %v6995_v53 = vor.u32 %v7541_v16, %v6992_v34  ;;  %v7537_v38 = vld [vmem:[%s10989_s1 + $0xf84] sm:$0xf] }
 0x1a2   : > { %4191 = vmatpush.bf16.msra.mxu0 %v6559_v63  ;;  %v6643_v63 = vor.u32 %v7453_v46, %v6640_v48  ;;  %v6899_v47 = vor.u32 %v7517_v56, %v6896_v32  ;;  %v6592_v19 = vld [vmem:[%s10989_s1 + $0xc90] sm:$0xf0]  ;;  %v7437_v48 = vld [vmem:[%s10989_s1 + $0xc64] sm:$0xf] }
 0x1a3   : > { %4204 = vmatpush.bf16.msra.mxu1 %v6687_v28  ;;  %v6771_v28 = vor.u32 %v7485_v58, %v6768_v52  ;;  %v6848_v25 = vld [vmem:[%s10989_s1 + $0xe90] sm:$0xf0]  ;;  %v7469_v52 = vld [vmem:[%s10989_s1 + $0xd64] sm:$0xf] }
 0x1a4   : > { %4217 = vmatpush.bf16.msra.mxu2 %v6815_v3  ;;  %v7449_v3 = vld [vmem:[%s10989_s1 + $0xcc4] sm:$0xf]  ;;  %v6976_v39 = vld [vmem:[%s10989_s1 + $0xf90] sm:$0xf0] }
 0x1a5   : > { %4230 = vmatpush.bf16.msra.mxu3 %v6943_v9  ;;  %v6627_v4 = vor.u32 %v7449_v3, %v6624_v15  ;;  %v6755_v9 = vor.u32 %v7481_v21, %v6752_v26  ;;  %v6576_v50 = vld [vmem:[%s10989_s1 + $0xc70] sm:$0xf0]  ;;  %v7533_v35 = vld [vmem:[%s10989_s1 + $0xf64] sm:$0xf] }
 0x1a6   : > { %4192 = vmatpush.bf16.msra.mxu0 %v6543_v17  ;;  %v6739_v17 = vor.u32 %v7477_v33, %v6736_v54  ;;  %v6704_v56 = vld [vmem:[%s10989_s1 + $0xd70] sm:$0xf0]  ;;  %v6579_v59 = vor.u32 %v7437_v48, %v6576_v50  ;;  %v7465_v15 = vld [vmem:[%s10989_s1 + $0xd44] sm:$0xf]  ;;  %v7456_v48 = vld [vmem:[%s10989_s1 + $0xcf4] sm:$0xf0] }
 0x1a7   : > { %4205 = vmatpush.bf16.msra.mxu1 %v6671_v18  ;;  %v7441_v18 = vld [vmem:[%s10989_s1 + $0xc84] sm:$0xf]  ;;  %v6832_v32 = vld [vmem:[%s10989_s1 + $0xe70] sm:$0xf0]  ;;  %v6707_v41 = vor.u32 %v7469_v52, %v6704_v56  ;;  %v6774_v50 = vld [vmem:[%s10989_s1 + $0xde8] sm:$0xf] }
 0x1a8   : > { %4218 = vmatpush.bf16.msra.mxu2 %v6799_v22  ;;  %v6720_v22 = vld [vmem:[%s10989_s1 + $0xd90] sm:$0xf0]  ;;  %v6595_v40 = vor.u32 %v7441_v18, %v6592_v19  ;;  %v7529_v49 = vld [vmem:[%s10989_s1 + $0xf44] sm:$0xf]  ;;  %v7520_v56 = vld [vmem:[%s10989_s1 + $0xef4] sm:$0xf0] }
 0x1a9   : > { %4231 = vmatpush.bf16.msra.mxu3 %v6927_v24  ;;  %v7505_v24 = vld [vmem:[%s10989_s1 + $0xe84] sm:$0xf]  ;;  %v6723_v43 = vor.u32 %v7473_v37, %v6720_v22  ;;  %v6960_v1 = vld [vmem:[%s10989_s1 + $0xf70] sm:$0xf0] }
 0x1aa   : > { %4193 = vmatpush.bf16.msra.mxu0 %v6527_v57  ;;  %v3180_v45 = vpop.f32.mrf.mxu0  ;;  %v6851_v57 = vor.u32 %v7505_v24, %v6848_v25  ;;  %v6560_v62 = vld [vmem:[%s10989_s1 + $0xc50] sm:$0xf0]  ;;  %v7461_v54 = vld [vmem:[%s10989_s1 + $0xd24] sm:$0xf] }
 0x1ab   : > { %4206 = vmatpush.bf16.msra.mxu1 %v6655_v13  ;;  %v3193_v46 = vpop.f32.mrf.mxu1  ;;  %v6979_v13 = vor.u32 %v7537_v38, %v6976_v39  ;;  %v6688_v21 = vld [vmem:[%s10989_s1 + $0xd50] sm:$0xf0]  ;;  %v7493_v12 = vld [vmem:[%s10989_s1 + $0xe24] sm:$0xf] }
 0x1ac   : > { %4219 = vmatpush.bf16.msra.mxu2 %v6783_v0  ;;  %v3194_v58 = vadd.f32 %v3193_v46, %v3180_v45  ;;  %v7501_v0 = vld [vmem:[%s10989_s1 + $0xe64] sm:$0xf]  ;;  %v6816_v26 = vld [vmem:[%s10989_s1 + $0xe50] sm:$0xf0]  ;;  %v6646_v46 = vld [vmem:[%s10989_s1 + $0xce8] sm:$0xf] }
 0x1ad   : > { %4232 = vmatpush.bf16.msra.mxu3 %v6911_v42  ;;  %4194 = vmatmul.bf16.vlgmr.msra.gmra.mxu0 %v10386_v7  ;;  %v7433_v42 = vld [vmem:[%s10989_s1 + $0xc44] sm:$0xf]  ;;  %v6835_v27 = vor.u32 %v7501_v0, %v6832_v32  ;;  %v6944_v51 = vld [vmem:[%s10989_s1 + $0xf50] sm:$0xf0]  ;;  %v7030_v0 = vld [vmem:[%s10989_s1 + $0xfe8] sm:$0xf] }
 0x1ae   : > { %4238 = vmatpush.bf16.msrb.mxu0 %v6643_v63  ;;  %4207 = vmatmul.bf16.vlgmr.msra.gmra.mxu1 %v10388_v8  ;;  %v6963_v63 = vor.u32 %v7533_v35, %v6960_v1  ;;  %v6563_v30 = vor.u32 %v7433_v42, %v6560_v62  ;;  %v6544_v10 = vld [vmem:[%s10989_s1 + $0xc30] sm:$0xf0]  ;;  %v6947_v33 = vor.u32 %v7529_v49, %v6944_v51  ;;  %v7425_v18 = vld [vmem:[%s10989_s1 + $0xc04] sm:$0xf]  ;;  %v7552_v32 = vld [vmem:[%s10989_s1 + $0xff4] sm:$0xf0] }
 0x1af   : > { %4251 = vmatpush.bf16.msrb.mxu1 %v6771_v28  ;;  %4220 = vmatmul.bf16.vlgmr.msra.gmra.mxu2 %v10376_v55  ;;  %v6672_v61 = vld [vmem:[%s10989_s1 + $0xd30] sm:$0xf0]  ;;  %v7489_v25 = vld [vmem:[%s10989_s1 + $0xe04] sm:$0xf]  ;;  %v6630_v42 = vld [vmem:[%s10989_s1 + $0xcc8] sm:$0xf] }
 0x1b0   : > { %4264 = vmatpush.bf16.msrb.mxu2 %v6899_v47  ;;  %4233 = vmatmul.bf16.vlgmr.msra.gmra.mxu3 %v10378_v5  ;;  %v7497_v47 = vld [vmem:[%s10989_s1 + $0xe44] sm:$0xf]  ;;  %v6800_v34 = vld [vmem:[%s10989_s1 + $0xe30] sm:$0xf0]  ;;  %v6675_v19 = vor.u32 %v7461_v54, %v6672_v61  ;;  %v7452_v62 = vld [vmem:[%s10989_s1 + $0xcd4] sm:$0xf0] }
 0x1b1   : > { %4277 = vmatpush.bf16.msrb.mxu3 %v7027_v23  ;;  %v6656_v37 = vld [vmem:[%s10989_s1 + $0xd10] sm:$0xf0]  ;;  %v6803_v22 = vor.u32 %v7493_v12, %v6800_v34  ;;  %v7521_v39 = vld [vmem:[%s10989_s1 + $0xf04] sm:$0xf]  ;;  %v6614_v51 = vld [vmem:[%s10989_s1 + $0xca8] sm:$0xf] }
 0x1b2   : > { %4239 = vmatpush.bf16.msrb.mxu0 %v6627_v4  ;;  %v3206_v28 = vpop.f32.mrf.mxu2  ;;  %v6691_v4 = vor.u32 %v7465_v15, %v6688_v21  ;;  %v3182_v11 = vpop.f32.mrf.mxu0  ;;  %v6784_v38 = vld [vmem:[%s10989_s1 + $0xe10] sm:$0xf0]  ;;  %v6886_v15 = vld [vmem:[%s10989_s1 + $0xec8] sm:$0xf]  ;;  %v7516_v21 = vld [vmem:[%s10989_s1 + $0xed4] sm:$0xf0] }
 0x1b3   : > { %4252 = vmatpush.bf16.msrb.mxu1 %v6755_v9  ;;  %v3219_v3 = vpop.f32.mrf.mxu3  ;;  %v3207_v23 = vadd.f32 %v3206_v28, %v3194_v58  ;;  %v7429_v9 = vld [vmem:[%s10989_s1 + $0xc24] sm:$0xf]  ;;  %v6912_v45 = vld [vmem:[%s10989_s1 + $0xf10] sm:$0xf0]  ;;  %v6787_v35 = vor.u32 %v7489_v25, %v6784_v38  ;;  %v6758_v28 = vld [vmem:[%s10989_s1 + $0xdc8] sm:$0xf] }
 0x1b4   : > { %4265 = vmatpush.bf16.msrb.mxu2 %v6883_v60  ;;  %v3195_v60 = vpop.f32.mrf.mxu1  ;;  %v6915_v1 = vor.u32 %v7521_v39, %v6912_v45  ;;  %v6870_v11 = vld [vmem:[%s10989_s1 + $0xea8] sm:$0xf]  ;;  %v7444_v34 = vld [vmem:[%s10989_s1 + $0xc94] sm:$0xf0] }
 0x1b5   : > { %4278 = vmatpush.bf16.msrb.mxu3 %v7011_v31  ;;  %v3220_v29 = vadd.f32 %v3219_v3, %v3207_v23  ;;  %v6819_v31 = vor.u32 %v7497_v47, %v6816_v26  ;;  %v7484_v3 = vld [vmem:[%s10989_s1 + $0xdd4] sm:$0xf0]  ;;  %v7014_v47 = vld [vmem:[%s10989_s1 + $0xfc8] sm:$0xf]  ;;  %v6631_v26 = vor.u32 %v7452_v62, %v6630_v42 }
 0x1b6   : > { %4240 = vmatpush.bf16.msrb.mxu0 %v6611_v36  ;;  %v7525_v36 = vld [vmem:[%s10989_s1 + $0xf24] sm:$0xf]  ;;  %v7548_v23 = vld [vmem:[%s10989_s1 + $0xfd4] sm:$0xf0]  ;;  %v6759_v49 = vor.u32 %v7484_v3, %v6758_v28  ;;  %v6598_v12 = vld [vmem:[%s10989_s1 + $0xc88] sm:$0xf] }
 0x1b7   : > { %4253 = vmatpush.bf16.msrb.mxu1 %v6739_v17  ;;  %v10506_v16 = vadd.f32 %v3220_v29, %v9669_v2  ;;  %v6928_v17 = vld [vmem:[%s10989_s1 + $0xf30] sm:$0xf0]  ;;  %v6547_v2 = vor.u32 %v7429_v9, %v6544_v10  ;;  %v7448_v29 = vld [vmem:[%s10989_s1 + $0xcb4] sm:$0xf0]  ;;  %v6742_v9 = vld [vmem:[%s10989_s1 + $0xda8] sm:$0xf] }
 0x1b8   : > { %4266 = vmatpush.bf16.msrb.mxu2 %v6867_v20  ;;  %v6528_v20 = vld [vmem:[%s10989_s1 + $0xc10] sm:$0xf0]  ;;  %v6931_v24 = vor.u32 %v7525_v36, %v6928_v17  ;;  %v7480_v10 = vld [vmem:[%s10989_s1 + $0xdb4] sm:$0xf0]  ;;  %v6615_v54 = vor.u32 %v7448_v29, %v6614_v51  ;;  %v6582_v39 = vld [vmem:[%s10989_s1 + $0xc68] sm:$0xf] }
 0x1b9   : > { %4279 = vmatpush.bf16.msrb.mxu3 %v6995_v53  ;;  %v7457_v53 = vld [vmem:[%s10989_s1 + $0xd04] sm:$0xf]  ;;  %v6531_v58 = vor.u32 %v7425_v18, %v6528_v20  ;;  %v7512_v60 = vld [vmem:[%s10989_s1 + $0xeb4] sm:$0xf0]  ;;  %v6743_v61 = vor.u32 %v7480_v10, %v6742_v9  ;;  %v6726_v18 = vld [vmem:[%s10989_s1 + $0xd88] sm:$0xf] }
 0x1ba   : > { %4241 = vmatpush.bf16.msrb.mxu0 %v6595_v40  ;;  %v3208_v40 = vpop.f32.mrf.mxu2  ;;  %v6659_v52 = vor.u32 %v7457_v53, %v6656_v37  ;;  %v6871_v36 = vor.u32 %v7512_v60, %v6870_v11  ;;  %v7508_v20 = vld [vmem:[%s10989_s1 + $0xe94] sm:$0xf0]  ;;  %v6982_v53 = vld [vmem:[%s10989_s1 + $0xf88] sm:$0xf] }
 0x1bb   : > { %4254 = vmatpush.bf16.msrb.mxu1 %v6723_v43  ;;  %v3221_v43 = vpop.f32.mrf.mxu3  ;;  %v7540_v37 = vld [vmem:[%s10989_s1 + $0xf94] sm:$0xf0]  ;;  %v6694_v62 = vld [vmem:[%s10989_s1 + $0xd48] sm:$0xf] }
 0x1bc   : > { %4267 = vmatpush.bf16.msrb.mxu2 %v6851_v57  ;;  %v7488_v57 = vld [vmem:[%s10989_s1 + $0xdf4] sm:$0xf0]  ;;  %v6983_v45 = vor.u32 %v7540_v37, %v6982_v53  ;;  %v6678_v10 = vld [vmem:[%s10989_s1 + $0xd28] sm:$0xf] }
 0x1bd   : > { %4280 = vmatpush.bf16.msrb.mxu3 %v6979_v13  ;;  %v6902_v13 = vld [vmem:[%s10989_s1 + $0xee8] sm:$0xf]  ;;  %v7440_v40 = vld [vmem:[%s10989_s1 + $0xc74] sm:$0xf0] }
 0x1be   : > { %4242 = vmatpush.bf16.msrb.mxu0 %v6579_v59  ;;  %v6647_v59 = vor.u32 %v7456_v48, %v6646_v46  ;;  %v6710_v48 = vld [vmem:[%s10989_s1 + $0xd68] sm:$0xf]  ;;  %v7500_v3 = vld [vmem:[%s10989_s1 + $0xe54] sm:$0xf0] }
 0x1bf   : > { %4255 = vmatpush.bf16.msrb.mxu1 %v6707_v41  ;;  %v6775_v41 = vor.u32 %v7488_v57, %v6774_v50  ;;  %v7472_v50 = vld [vmem:[%s10989_s1 + $0xd74] sm:$0xf0]  ;;  %v6838_v57 = vld [vmem:[%s10989_s1 + $0xe68] sm:$0xf] }
 0x1c0   : > { %4268 = vmatpush.bf16.msrb.mxu2 %v6835_v27  ;;  %v6903_v27 = vor.u32 %v7520_v56, %v6902_v13  ;;  %v7504_v13 = vld [vmem:[%s10989_s1 + $0xe74] sm:$0xf0]  ;;  %v6583_v56 = vor.u32 %v7440_v40, %v6582_v39  ;;  %v6806_v60 = vld [vmem:[%s10989_s1 + $0xe28] sm:$0xf]  ;;  %v6648_v39 = vld [vmem:[%s10989_s1 + $0xcf8] sm:$0xf0] }
 0x1c1   : > { %4281 = vmatpush.bf16.msrb.mxu3 %v6963_v63  ;;  %v7031_v63 = vor.u32 %v7552_v32, %v7030_v0  ;;  %v6711_v0 = vor.u32 %v7472_v50, %v6710_v48  ;;  %v6566_v32 = vld [vmem:[%s10989_s1 + $0xc48] sm:$0xf]  ;;  %v7432_v51 = vld [vmem:[%s10989_s1 + $0xc34] sm:$0xf0]  ;;  %v7486_v40 = vld [vmem:[%s10989_s1 + $0xdec] sm:$0xf] }
 0x1c2   : > { %4243 = vmatpush.bf16.msrb.mxu0 %v6563_v30  ;;  %v6887_v30 = vor.u32 %v7516_v21, %v6886_v15  ;;  %v6950_v15 = vld [vmem:[%s10989_s1 + $0xf48] sm:$0xf]  ;;  %v7532_v21 = vld [vmem:[%s10989_s1 + $0xf54] sm:$0xf0]  ;;  %v6904_v50 = vld [vmem:[%s10989_s1 + $0xef8] sm:$0xf0] }
 0x1c3   : > { %4256 = vmatpush.bf16.msrb.mxu1 %v6691_v4  ;;  %v7015_v4 = vor.u32 %v7548_v23, %v7014_v47  ;;  %v6951_v9 = vor.u32 %v7532_v21, %v6950_v15  ;;  %v7464_v11 = vld [vmem:[%s10989_s1 + $0xd34] sm:$0xf0]  ;;  %v6918_v37 = vld [vmem:[%s10989_s1 + $0xf08] sm:$0xf]  ;;  %v7446_v21 = vld [vmem:[%s10989_s1 + $0xcac] sm:$0xf] }
 0x1c4   : > { %4269 = vmatpush.bf16.msrb.mxu2 %v6819_v31  ;;  %v6998_v31 = vld [vmem:[%s10989_s1 + $0xfa8] sm:$0xf]  ;;  %v7492_v53 = vld [vmem:[%s10989_s1 + $0xe14] sm:$0xf0] }
 0x1c5   : > { %4282 = vmatpush.bf16.msrb.mxu3 %v6947_v33  ;;  %v7544_v33 = vld [vmem:[%s10989_s1 + $0xfb4] sm:$0xf0] }
 0x1c6   : > { %4244 = vmatpush.bf16.msrb.mxu0 %v6547_v2  ;;  %v6999_v17 = vor.u32 %v7544_v33, %v6998_v31  ;;  %v7476_v2 = vld [vmem:[%s10989_s1 + $0xd94] sm:$0xf0] }
 0x1c7   : > { %4257 = vmatpush.bf16.msrb.mxu1 %v6675_v19  ;;  %v6854_v19 = vld [vmem:[%s10989_s1 + $0xe88] sm:$0xf]  ;;  %v7496_v33 = vld [vmem:[%s10989_s1 + $0xe34] sm:$0xf0] }
 0x1c8   : > { %4270 = vmatpush.bf16.msrb.mxu2 %v6803_v22  ;;  %v6599_v22 = vor.u32 %v7444_v34, %v6598_v12  ;;  %v6855_v43 = vor.u32 %v7508_v20, %v6854_v19  ;;  %v6534_v12 = vld [vmem:[%s10989_s1 + $0xc08] sm:$0xf]  ;;  %v6679_v34 = vor.u32 %v7464_v11, %v6678_v10 }
 0x1c9   : > { %4283 = vmatpush.bf16.msrb.mxu3 %v6931_v24  ;;  %v6727_v24 = vor.u32 %v7476_v2, %v6726_v18  ;;  %v7460_v18 = vld [vmem:[%s10989_s1 + $0xd14] sm:$0xf0]  ;;  %v6807_v2 = vor.u32 %v7496_v33, %v6806_v60  ;;  %v6790_v20 = vld [vmem:[%s10989_s1 + $0xe08] sm:$0xf]  ;;  %v7442_v60 = vld [vmem:[%s10989_s1 + $0xc8c] sm:$0xf] }
 0x1ca   : > { %4245 = vmatpush.bf16.msrb.mxu0 %v6531_v58  ;;  %v3232_v25 = vpop.f32.mrf.mxu0  ;;  %v6966_v58 = vld [vmem:[%s10989_s1 + $0xf68] sm:$0xf]  ;;  %v6600_v33 = vld [vmem:[%s10989_s1 + $0xc98] sm:$0xf0] }
 0x1cb   : > { %4258 = vmatpush.bf16.msrb.mxu1 %v6659_v52  ;;  %v3245_v38 = vpop.f32.mrf.mxu1  ;;  %v7536_v52 = vld [vmem:[%s10989_s1 + $0xf74] sm:$0xf0] }
 0x1cc   : > { %4271 = vmatpush.bf16.msrb.mxu2 %v6787_v35  ;;  %v3246_v46 = vadd.f32 %v3245_v38, %v3232_v25  ;;  %v7436_v35 = vld [vmem:[%s10989_s1 + $0xc54] sm:$0xf0]  ;;  %v7454_v38 = vld [vmem:[%s10989_s1 + $0xcec] sm:$0xf] }
 0x1cd   : > { %4284 = vmatpush.bf16.msrb.mxu3 %v6915_v1  ;;  %4246 = vmatmul.bf16.vlgmr.msrb.gmra.mxu0 %v10386_v7  ;;  %v6839_v1 = vor.u32 %v7504_v13, %v6838_v57  ;;  %v6567_v23 = vor.u32 %v7436_v35, %v6566_v32  ;;  %v7524_v25 = vld [vmem:[%s10989_s1 + $0xf14] sm:$0xf0]  ;;  %v7550_v57 = vld [vmem:[%s10989_s1 + $0xfec] sm:$0xf]  ;;  %v7032_v13 = vld [vmem:[%s10989_s1 + $0xff8] sm:$0xf0] }
 0x1ce   : > { %4290 = vmatpush.bf16.msra.mxu0 %v6647_v59  ;;  %4259 = vmatmul.bf16.vlgmr.msrb.gmra.mxu1 %v10388_v8  ;;  %v6967_v59 = vor.u32 %v7536_v52, %v6966_v58  ;;  %v6791_v58 = vor.u32 %v7492_v53, %v6790_v20  ;;  %v6919_v52 = vor.u32 %v7524_v25, %v6918_v37  ;;  %v7450_v32 = vld [vmem:[%s10989_s1 + $0xccc] sm:$0xf]  ;;  %v6632_v35 = vld [vmem:[%s10989_s1 + $0xcd8] sm:$0xf0] }
 0x1cf   : > { %4303 = vmatpush.bf16.msra.mxu1 %v6775_v41  ;;  %4272 = vmatmul.bf16.vlgmr.msrb.gmra.mxu2 %v10376_v55  ;;  %v7438_v37 = vld [vmem:[%s10989_s1 + $0xc6c] sm:$0xf] }
 0x1d0   : > { %4316 = vmatpush.bf16.msra.mxu2 %v6903_v27  ;;  %4285 = vmatmul.bf16.vlgmr.msrb.gmra.mxu3 %v10378_v5  ;;  %v7468_v27 = vld [vmem:[%s10989_s1 + $0xd54] sm:$0xf0] }
 0x1d1   : > { %4329 = vmatpush.bf16.msra.mxu3 %v7031_v63  ;;  %v6822_v63 = vld [vmem:[%s10989_s1 + $0xe48] sm:$0xf] }
 0x1d2   : > { %4291 = vmatpush.bf16.msra.mxu0 %v6631_v26  ;;  %v3258_v41 = vpop.f32.mrf.mxu2  ;;  %v6695_v26 = vor.u32 %v7468_v27, %v6694_v62  ;;  %v3234_v29 = vpop.f32.mrf.mxu0  ;;  %v7514_v62 = vld [vmem:[%s10989_s1 + $0xecc] sm:$0xf]  ;;  %v6888_v27 = vld [vmem:[%s10989_s1 + $0xed8] sm:$0xf0] }
 0x1d3   : > { %4304 = vmatpush.bf16.msra.mxu1 %v6759_v49  ;;  %v3271_v42 = vpop.f32.mrf.mxu3  ;;  %v3259_v28 = vadd.f32 %v3258_v41, %v3246_v46  ;;  %v6550_v49 = vld [vmem:[%s10989_s1 + $0xc28] sm:$0xf]  ;;  %v7482_v41 = vld [vmem:[%s10989_s1 + $0xdcc] sm:$0xf] }
 0x1d4   : > { %4317 = vmatpush.bf16.msra.mxu2 %v6887_v30  ;;  %v3247_v30 = vpop.f32.mrf.mxu1  ;;  %v7510_v29 = vld [vmem:[%s10989_s1 + $0xeac] sm:$0xf] }
 0x1d5   : > { %4330 = vmatpush.bf16.msra.mxu3 %v7015_v4  ;;  %v3272_v47 = vadd.f32 %v3271_v42, %v3259_v28  ;;  %v6823_v4 = vor.u32 %v7500_v3, %v6822_v63  ;;  %v6760_v42 = vld [vmem:[%s10989_s1 + $0xdd8] sm:$0xf0]  ;;  %v7546_v63 = vld [vmem:[%s10989_s1 + $0xfcc] sm:$0xf]  ;;  %v6635_v3 = vor.u32 %v7450_v32, %v6632_v35 }
 0x1d6   : > { %4292 = vmatpush.bf16.msra.mxu0 %v6615_v54  ;;  %v6934_v54 = vld [vmem:[%s10989_s1 + $0xf28] sm:$0xf]  ;;  %v7016_v28 = vld [vmem:[%s10989_s1 + $0xfd8] sm:$0xf0]  ;;  %v6763_v15 = vor.u32 %v7482_v41, %v6760_v42  ;;  %v7466_v35 = vld [vmem:[%s10989_s1 + $0xd4c] sm:$0xf] }
 0x1d7   : > { %4305 = vmatpush.bf16.msra.mxu1 %v6743_v61  ;;  %v10705_v31 = vadd.f32 %v3272_v47, %v9868_v44  ;;  %v7528_v61 = vld [vmem:[%s10989_s1 + $0xf34] sm:$0xf0]  ;;  %v6551_v44 = vor.u32 %v7432_v51, %v6550_v49  ;;  %v6616_v47 = vld [vmem:[%s10989_s1 + $0xcb8] sm:$0xf0]  ;;  %v7478_v49 = vld [vmem:[%s10989_s1 + $0xdac] sm:$0xf] }
 0x1d8   : > { %4318 = vmatpush.bf16.msra.mxu2 %v6871_v36  ;;  %v7428_v36 = vld [vmem:[%s10989_s1 + $0xc14] sm:$0xf0]  ;;  %v6935_v19 = vor.u32 %v7528_v61, %v6934_v54  ;;  %v6744_v51 = vld [vmem:[%s10989_s1 + $0xdb8] sm:$0xf0]  ;;  %v6619_v10 = vor.u32 %v7446_v21, %v6616_v47 }
 0x1d9   : > { %4331 = vmatpush.bf16.msra.mxu3 %v6999_v17  ;;  %v6662_v17 = vld [vmem:[%s10989_s1 + $0xd08] sm:$0xf]  ;;  %v6535_v46 = vor.u32 %v7428_v36, %v6534_v12  ;;  %v6872_v30 = vld [vmem:[%s10989_s1 + $0xeb8] sm:$0xf0]  ;;  %v6747_v11 = vor.u32 %v7478_v49, %v6744_v51  ;;  %v7474_v12 = vld [vmem:[%s10989_s1 + $0xd8c] sm:$0xf] }
 0x1da   : > { %4293 = vmatpush.bf16.msra.mxu0 %v6599_v22  ;;  %v3260_v22 = vpop.f32.mrf.mxu2  ;;  %v6663_v48 = vor.u32 %v7460_v18, %v6662_v17  ;;  %v6875_v54 = vor.u32 %v7510_v29, %v6872_v30  ;;  %v6856_v36 = vld [vmem:[%s10989_s1 + $0xe98] sm:$0xf0]  ;;  %v7538_v17 = vld [vmem:[%s10989_s1 + $0xf8c] sm:$0xf] }
 0x1db   : > { %4306 = vmatpush.bf16.msra.mxu1 %v6727_v24  ;;  %v3273_v24 = vpop.f32.mrf.mxu3  ;;  %v6984_v18 = vld [vmem:[%s10989_s1 + $0xf98] sm:$0xf0]  ;;  %v7462_v51 = vld [vmem:[%s10989_s1 + $0xd2c] sm:$0xf] }
 0x1dc   : > { %4319 = vmatpush.bf16.msra.mxu2 %v6855_v43  ;;  %v6776_v43 = vld [vmem:[%s10989_s1 + $0xdf8] sm:$0xf0]  ;;  %v6987_v25 = vor.u32 %v7538_v17, %v6984_v18  ;;  %v7494_v30 = vld [vmem:[%s10989_s1 + $0xe2c] sm:$0xf] }
 0x1dd   : > { %4332 = vmatpush.bf16.msra.mxu3 %v6983_v45  ;;  %v7518_v45 = vld [vmem:[%s10989_s1 + $0xeec] sm:$0xf]  ;;  %v6584_v22 = vld [vmem:[%s10989_s1 + $0xc78] sm:$0xf0] }
 0x1de   : > { %4294 = vmatpush.bf16.msra.mxu0 %v6583_v56  ;;  %v6651_v56 = vor.u32 %v7454_v38, %v6648_v39  ;;  %v7470_v39 = vld [vmem:[%s10989_s1 + $0xd6c] sm:$0xf]  ;;  %v6824_v42 = vld [vmem:[%s10989_s1 + $0xe58] sm:$0xf0] }
 0x1df   : > { %4307 = vmatpush.bf16.msra.mxu1 %v6711_v0  ;;  %v6779_v0 = vor.u32 %v7486_v40, %v6776_v43  ;;  %v6712_v40 = vld [vmem:[%s10989_s1 + $0xd78] sm:$0xf0]  ;;  %v7502_v43 = vld [vmem:[%s10989_s1 + $0xe6c] sm:$0xf] }
 0x1e0   : > { %4320 = vmatpush.bf16.msra.mxu2 %v6839_v1  ;;  %v6907_v1 = vor.u32 %v7518_v45, %v6904_v50  ;;  %v6840_v45 = vld [vmem:[%s10989_s1 + $0xe78] sm:$0xf0]  ;;  %v6587_v50 = vor.u32 %v7438_v37, %v6584_v22 }
 0x1e1   : > { %4333 = vmatpush.bf16.msra.mxu3 %v6967_v59  ;;  %v7035_v59 = vor.u32 %v7550_v57, %v7032_v13  ;;  %v6715_v57 = vor.u32 %v7470_v39, %v6712_v40  ;;  %v7434_v13 = vld [vmem:[%s10989_s1 + $0xc4c] sm:$0xf]  ;;  %v6552_v21 = vld [vmem:[%s10989_s1 + $0xc38] sm:$0xf0] }
 0x1e2   : > { %4295 = vmatpush.bf16.msra.mxu0 %v6567_v23  ;;  %v6891_v23 = vor.u32 %v7514_v62, %v6888_v27  ;;  %v7530_v62 = vld [vmem:[%s10989_s1 + $0xf4c] sm:$0xf]  ;;  %v6952_v27 = vld [vmem:[%s10989_s1 + $0xf58] sm:$0xf0] }
 0x1e3   : > { %4308 = vmatpush.bf16.msra.mxu1 %v6695_v26  ;;  %v7019_v26 = vor.u32 %v7546_v63, %v7016_v28  ;;  %v6955_v49 = vor.u32 %v7530_v62, %v6952_v27  ;;  %v6680_v29 = vld [vmem:[%s10989_s1 + $0xd38] sm:$0xf0] }
 0x1e4   : > { %4321 = vmatpush.bf16.msra.mxu2 %v6823_v4  ;;  %v7542_v4 = vld [vmem:[%s10989_s1 + $0xfac] sm:$0xf] }
 0x1e5   : > { %4334 = vmatpush.bf16.msra.mxu3 %v6951_v9  ;;  %v7000_v9 = vld [vmem:[%s10989_s1 + $0xfb8] sm:$0xf0] }
 0x1e6   : > { %4296 = vmatpush.bf16.msra.mxu0 %v6551_v44  ;;  %v7003_v61 = vor.u32 %v7542_v4, %v7000_v9  ;;  %v6728_v44 = vld [vmem:[%s10989_s1 + $0xd98] sm:$0xf0] }
 0x1e7   : > { %4309 = vmatpush.bf16.msra.mxu1 %v6679_v34  ;;  %v7506_v34 = vld [vmem:[%s10989_s1 + $0xe8c] sm:$0xf]  ;;  %v6808_v9 = vld [vmem:[%s10989_s1 + $0xe38] sm:$0xf0] }
 0x1e8   : > { %4322 = vmatpush.bf16.msra.mxu2 %v6807_v2  ;;  %v6603_v2 = vor.u32 %v7442_v60, %v6600_v33  ;;  %v6859_v24 = vor.u32 %v7506_v34, %v6856_v36  ;;  %v6683_v33 = vor.u32 %v7462_v51, %v6680_v29  ;;  %v6664_v34 = vld [vmem:[%s10989_s1 + $0xd18] sm:$0xf0]  ;;  %v7490_v36 = vld [vmem:[%s10989_s1 + $0xe0c] sm:$0xf] }
 0x1e9   : > { %4335 = vmatpush.bf16.msra.mxu3 %v6935_v19  ;;  %v6731_v19 = vor.u32 %v7474_v12, %v6728_v44  ;;  %v7458_v44 = vld [vmem:[%s10989_s1 + $0xd0c] sm:$0xf] }
 0x1ea   : > { %4297 = vmatpush.bf16.msra.mxu0 %v6535_v46  ;;  %v3284_v20 = vpop.f32.mrf.mxu0  ;;  %v7534_v46 = vld [vmem:[%s10989_s1 + $0xf6c] sm:$0xf]  ;;  %v6667_v37 = vor.u32 %v7458_v44, %v6664_v34 }
 0x1eb   : > { %4310 = vmatpush.bf16.msra.mxu1 %v6663_v48  ;;  %v3297_v53 = vpop.f32.mrf.mxu1  ;;  %v6968_v48 = vld [vmem:[%s10989_s1 + $0xf78] sm:$0xf0] }
 0x1ec   : > { %4323 = vmatpush.bf16.msra.mxu2 %v6791_v58  ;;  %v3298_v38 = vadd.f32 %v3297_v53, %v3284_v20  ;;  %v6568_v58 = vld [vmem:[%s10989_s1 + $0xc58] sm:$0xf0] }
 0x1ed   : > { %4336 = vmatpush.bf16.msra.mxu3 %v6919_v52  ;;  %4298 = vmatmul.bf16.vlgmr.msra.gmra.mxu0 %v10386_v7  ;;  %v6843_v52 = vor.u32 %v7502_v43, %v6840_v45  ;;  %v6571_v28 = vor.u32 %v7434_v13, %v6568_v58  ;;  %v6920_v20 = vld [vmem:[%s10989_s1 + $0xf18] sm:$0xf0] }
 0x1ee   : > { %4342 = vmatpush.bf16.msrb.mxu0 %v6651_v56  ;;  %4311 = vmatmul.bf16.vlgmr.msra.gmra.mxu1 %v10388_v8  ;;  %v6971_v56 = vor.u32 %v7534_v46, %v6968_v48 }
 0x1ef   : > { %4355 = vmatpush.bf16.msrb.mxu1 %v6779_v0  ;;  %4324 = vmatmul.bf16.vlgmr.msra.gmra.mxu2 %v10376_v55 }
 0x1f0   : > { %4368 = vmatpush.bf16.msrb.mxu2 %v6907_v1  ;;  %4337 = vmatmul.bf16.vlgmr.msra.gmra.mxu3 %v10378_v5  ;;  %v6696_v1 = vld [vmem:[%s10989_s1 + $0xd58] sm:$0xf0] }
 0x1f1   : > { %4381 = vmatpush.bf16.msrb.mxu3 %v7035_v59  ;;  %v7498_v59 = vld [vmem:[%s10989_s1 + $0xe4c] sm:$0xf] }
 0x1f2   : > { %4343 = vmatpush.bf16.msrb.mxu0 %v6635_v3  ;;  %v3310_v0 = vpop.f32.mrf.mxu2  ;;  %v6699_v3 = vor.u32 %v7466_v35, %v6696_v1  ;;  %v3286_v47 = vpop.f32.mrf.mxu0 }
 0x1f3   : > { %4356 = vmatpush.bf16.msrb.mxu1 %v6763_v15  ;;  %v3323_v32 = vpop.f32.mrf.mxu3  ;;  %v3311_v41 = vadd.f32 %v3310_v0, %v3298_v38  ;;  %v7430_v15 = vld [vmem:[%s10989_s1 + $0xc2c] sm:$0xf] }
 0x1f4   : > { %4369 = vmatpush.bf16.msrb.mxu2 %v6891_v23  ;;  %v3299_v23 = vpop.f32.mrf.mxu1  ;;  %v6555_v60 = vor.u32 %v7430_v15, %v6552_v21 }
 0x1f5   : > { %4382 = vmatpush.bf16.msrb.mxu3 %v7019_v26  ;;  %v3324_v63 = vadd.f32 %v3323_v32, %v3311_v41  ;;  %v6827_v26 = vor.u32 %v7498_v59, %v6824_v42 }
 0x1f6   : > { %4344 = vmatpush.bf16.msrb.mxu0 %v6619_v10  ;;  %v7526_v10 = vld [vmem:[%s10989_s1 + $0xf2c] sm:$0xf] }
 0x1f7   : > { %4357 = vmatpush.bf16.msrb.mxu1 %v6747_v11  ;;  %v10904_v4 = vadd.f32 %v3324_v63, %v10067_v14  ;;  %v6936_v11 = vld [vmem:[%s10989_s1 + $0xf38] sm:$0xf0]  ;;  %v7426_v14 = vld [vmem:[%s10989_s1 + $0xc0c] sm:$0xf] }
 0x1f8   : > { %4370 = vmatpush.bf16.msrb.mxu2 %v6875_v54  ;;  %v6536_v54 = vld [vmem:[%s10989_s1 + $0xc18] sm:$0xf0]  ;;  %v6939_v12 = vor.u32 %v7526_v10, %v6936_v11 }
 0x1f9   : > { %4383 = vmatpush.bf16.msrb.mxu3 %v7003_v61  ;;  %v6811_v61 = vor.u32 %v7494_v30, %v6808_v9  ;;  %v6539_v53 = vor.u32 %v7426_v14, %v6536_v54 }
 0x1fa   : > { %4345 = vmatpush.bf16.msrb.mxu0 %v6603_v2  ;;  %v3312_v17 = vpop.f32.mrf.mxu2  ;;  %v6792_v2 = vld [vmem:[%s10989_s1 + $0xe18] sm:$0xf0] }
 0x1fb   : > { %4358 = vmatpush.bf16.msrb.mxu1 %v6731_v19  ;;  %v3325_v18 = vpop.f32.mrf.mxu3  ;;  %v7522_v19 = vld [vmem:[%s10989_s1 + $0xf0c] sm:$0xf]  ;;  %v6795_v22 = vor.u32 %v7490_v36, %v6792_v2 }
 0x1fc   : > { %4371 = vmatpush.bf16.msrb.mxu2 %v6859_v24  ;;  %v6923_v24 = vor.u32 %v7522_v19, %v6920_v20 }
 0x1fd   : > { %4384 = vmatpush.bf16.msrb.mxu3 %v6987_v25 }
 0x1fe   : > { %4346 = vmatpush.bf16.msrb.mxu0 %v6587_v50 }
 0x1ff   : > { %4359 = vmatpush.bf16.msrb.mxu1 %v6715_v57 }
 0x200   : > { %4372 = vmatpush.bf16.msrb.mxu2 %v6843_v52 }
 0x201   : > { %4385 = vmatpush.bf16.msrb.mxu3 %v6971_v56 }
 0x202   : > { %4347 = vmatpush.bf16.msrb.mxu0 %v6571_v28 }
 0x203   : > { %4360 = vmatpush.bf16.msrb.mxu1 %v6699_v3 }
 0x204   : > { %4373 = vmatpush.bf16.msrb.mxu2 %v6827_v26 }
 0x205   : > { %4386 = vmatpush.bf16.msrb.mxu3 %v6955_v49 }
 0x206   : > { %4348 = vmatpush.bf16.msrb.mxu0 %v6555_v60 }
 0x207   : > { %4361 = vmatpush.bf16.msrb.mxu1 %v6683_v33 }
 0x208   : > { %4374 = vmatpush.bf16.msrb.mxu2 %v6811_v61 }
 0x209   : > { %4387 = vmatpush.bf16.msrb.mxu3 %v6939_v12 }
 0x20a   : > { %4349 = vmatpush.bf16.msrb.mxu0 %v6539_v53  ;;  %v3336_v25 = vpop.f32.mrf.mxu0 }
 0x20b   : > { %4362 = vmatpush.bf16.msrb.mxu1 %v6667_v37  ;;  %v3349_v38 = vpop.f32.mrf.mxu1 }
 0x20c   : > { %4375 = vmatpush.bf16.msrb.mxu2 %v6795_v22  ;;  %v3350_v39 = vadd.f32 %v3349_v38, %v3336_v25 }
 0x20d   : > { %4388 = vmatpush.bf16.msrb.mxu3 %v6923_v24  ;;  %4350 = vmatmul.bf16.vlgmr.msrb.gmra.mxu0 %v10386_v7 }
 0x20e   : > { %4363 = vmatmul.bf16.vlgmr.msrb.gmra.mxu1 %v10388_v8 }
 0x20f   : > { %4376 = vmatmul.bf16.vlgmr.msrb.gmra.mxu2 %v10376_v55 }
 0x210   : > { %4389 = vmatmul.bf16.vlgmr.msrb.gmra.mxu3 %v10378_v5 }
 0x212   : > { %v3362_v40 = vpop.f32.mrf.mxu2  ;;  %v3338_v48 = vpop.f32.mrf.mxu0 }
 0x213   : > { %v3375_v43 = vpop.f32.mrf.mxu3  ;;  %v3363_v45 = vadd.f32 %v3362_v40, %v3350_v39  ;;  %v3351_v50 = vpop.f32.mrf.mxu1 }
 0x215   : > { %v3376_v46 = vadd.f32 %v3375_v43, %v3363_v45 }
 0x217   : > { %v10944_v57 = vadd.f32 %v3376_v46, %v10272_v6 }
 0x21a   : > { %v3364_v13 = vpop.f32.mrf.mxu2 }
 0x21b   : > { %v3377_v7 = vpop.f32.mrf.mxu3 }
 0x22a   : > { %v4195_v58 = vpop.f32.mrf.mxu0 }
 0x22b   : > { %v4208_v8 = vpop.f32.mrf.mxu1 }
 0x22c   : > { %v4209_v52 = vadd.f32 %v4208_v8, %v4195_v58 }
 0x232   : > { %v4221_v55 = vpop.f32.mrf.mxu2  ;;  %v4197_v32 = vpop.f32.mrf.mxu0 }
 0x233   : > { %v4234_v56 = vpop.f32.mrf.mxu3  ;;  %v4222_v5 = vadd.f32 %v4221_v55, %v4209_v52  ;;  %v4210_v35 = vpop.f32.mrf.mxu1 }
 0x235   : > { %v4235_v0 = vadd.f32 %v4234_v56, %v4222_v5 }
 0x237   : > { %v4394_v1 = vadd.f32 %v4235_v0, %v10506_v16 }
 0x239   : > { %v4403_v59 = vsel %vm4402_vm0, %v4394_v1, 0.0  ;;  %v4431_v41 = vmul.f32 %v4394_v1, %v4394_v1 }
 0x23a   : > { %v4404_v6 = vrot.slane %v4403_v59, 4  ;;  %v4223_v42 = vpop.f32.mrf.mxu2 }
 0x23b   : > { %v4236_v62 = vpop.f32.mrf.mxu3  ;;  %v4435_v27 = vsel %vm4402_vm0, %v4431_v41, 0.0 }
 0x23c   : > { %v4405_v63 = vadd.f32 %v4404_v6, %v4403_v59  ;;  %v4436_v28 = vrot.slane %v4435_v27, 4 }
 0x23e   : > { %v4406_v3 = vrot.slane %v4405_v63, 2  ;;  %v4437_v15 = vadd.f32 %v4436_v28, %v4435_v27 }
 0x240   : > { %v4407_v21 = vadd.f32 %v4406_v3, %v4405_v63  ;;  %v4438_v47 = vrot.slane %v4437_v15, 2 }
 0x242   : > { %v4408_v23 = vrot.slane %v4407_v21, 1  ;;  %v4439_v26 = vadd.f32 %v4438_v47, %v4437_v15 }
 0x244   : > { %v4409_v16 = vadd.f32 %v4408_v23, %v4407_v21  ;;  %v4440_v49 = vrot.slane %v4439_v26, 1 }
 0x246   : > { %v4441_v51 = vadd.f32 %v4440_v49, %v4439_v26  ;;  %4463 = vst [vmem:[%s10953_s11] sm:$0xff] %v4409_v16 }
 0x248   : > { %4467 = vst [vmem:[%s10958_s14] sm:$0xff] %v4441_v51 }
 0x24a   : > { %v4247_v29 = vpop.f32.mrf.mxu0 }
 0x24b   : > { %v4260_v30 = vpop.f32.mrf.mxu1 }
 0x24c   : > { %v4261_v9 = vadd.f32 %v4260_v30, %v4247_v29 }
 0x252   : > { %v4273_v10 = vpop.f32.mrf.mxu2  ;;  %v4249_v14 = vpop.f32.mrf.mxu0 }
 0x253   : > { %v4286_v11 = vpop.f32.mrf.mxu3  ;;  %v4274_v60 = vadd.f32 %v4273_v10, %v4261_v9  ;;  %v4262_v54 = vpop.f32.mrf.mxu1 }
 0x255   : > { %v4287_v33 = vadd.f32 %v4286_v11, %v4274_v60 }
 0x257   : > { %v4395_v61 = vadd.f32 %v4287_v33, %v10705_v31 }
 0x259   : > { %v4398_v12 = vpack.c.bf16 %v4395_v61, %v4394_v1  ;;  %v4410_v44 = vsel %vm4402_vm0, %v4395_v61, 0.0  ;;  %v4432_v34 = vmul.f32 %v4395_v61, %v4395_v61 }
 0x25a   : > { %v4411_v36 = vrot.slane %v4410_v44, 4  ;;  %v4275_v17 = vpop.f32.mrf.mxu2 }
 0x25b   : > { %v4288_v18 = vpop.f32.mrf.mxu3  ;;  %4400 = vst [vmem:[%s10967_s19] sm:$0x77] %v4398_v12  ;;  %v4442_v2 = vsel %vm4402_vm0, %v4432_v34, 0.0 }
 0x25c   : > { %v4412_v19 = vadd.f32 %v4411_v36, %v4410_v44  ;;  %v4443_v31 = vrot.slane %v4442_v2, 4 }
 0x25e   : > { %v4413_v20 = vrot.slane %v4412_v19, 2  ;;  %v4444_v53 = vadd.f32 %v4443_v31, %v4442_v2 }
 0x260   : > { %v4414_v37 = vadd.f32 %v4413_v20, %v4412_v19  ;;  %v4445_v22 = vrot.slane %v4444_v53, 2 }
 0x262   : > { %v4415_v24 = vrot.slane %v4414_v37, 1  ;;  %v4446_v25 = vadd.f32 %v4445_v22, %v4444_v53 }
 0x264   : > { %v4416_v38 = vadd.f32 %v4415_v24, %v4414_v37  ;;  %v4447_v39 = vrot.slane %v4446_v25, 1 }
 0x266   : > { %v4448_v40 = vadd.f32 %v4447_v39, %v4446_v25  ;;  %4464 = vst [vmem:[%s10953_s11 + $0x8] sm:$0xff] %v4416_v38 }
 0x268   : > { %4468 = vst [vmem:[%s10958_s14 + $0x8] sm:$0xff] %v4448_v40 }
 0x26a   : > { %v4299_v43 = vpop.f32.mrf.mxu0 }
 0x26b   : > { %v4312_v45 = vpop.f32.mrf.mxu1 }
 0x26c   : > { %v4313_v46 = vadd.f32 %v4312_v45, %v4299_v43 }
 0x272   : > { %v4325_v48 = vpop.f32.mrf.mxu2  ;;  %v4301_v58 = vpop.f32.mrf.mxu0 }
 0x273   : > { %v4338_v50 = vpop.f32.mrf.mxu3  ;;  %v4326_v13 = vadd.f32 %v4325_v48, %v4313_v46  ;;  %v4314_v8 = vpop.f32.mrf.mxu1 }
 0x275   : > { %v4339_v7 = vadd.f32 %v4338_v50, %v4326_v13 }
 0x277   : > { %v4396_v52 = vadd.f32 %v4339_v7, %v10904_v4 }
 0x279   : > { %v4417_v55 = vsel %vm4402_vm0, %v4396_v52, 0.0  ;;  %v4433_v56 = vmul.f32 %v4396_v52, %v4396_v52 }
 0x27a   : > { %v4418_v5 = vrot.slane %v4417_v55, 4  ;;  %v4327_v0 = vpop.f32.mrf.mxu2 }
 0x27b   : > { %v4340_v32 = vpop.f32.mrf.mxu3  ;;  %v4449_v35 = vsel %vm4402_vm0, %v4433_v56, 0.0 }
 0x27c   : > { %v4419_v1 = vadd.f32 %v4418_v5, %v4417_v55  ;;  %v4450_v59 = vrot.slane %v4449_v35, 4 }
 0x27e   : > { %v4420_v41 = vrot.slane %v4419_v1, 2  ;;  %v4451_v6 = vadd.f32 %v4450_v59, %v4449_v35 }
 0x280   : > { %v4421_v42 = vadd.f32 %v4420_v41, %v4419_v1  ;;  %v4452_v62 = vrot.slane %v4451_v6, 2 }
 0x282   : > { %v4422_v27 = vrot.slane %v4421_v42, 1  ;;  %v4453_v63 = vadd.f32 %v4452_v62, %v4451_v6 }
 0x284   : > { %v4423_v28 = vadd.f32 %v4422_v27, %v4421_v42  ;;  %v4454_v4 = vrot.slane %v4453_v63, 1 }
 0x286   : > { %v4455_v3 = vadd.f32 %v4454_v4, %v4453_v63  ;;  %4465 = vst [vmem:[%s10953_s11 + $0x10] sm:$0xff] %v4423_v28 }
 0x288   : > { %4469 = vst [vmem:[%s10958_s14 + $0x10] sm:$0xff] %v4455_v3 }
 0x28a   : > { %v4351_v15 = vpop.f32.mrf.mxu0 }
 0x28b   : > { %v4364_v21 = vpop.f32.mrf.mxu1 }
 0x28c   : > { %v4365_v47 = vadd.f32 %v4364_v21, %v4351_v15 }
 0x292   : > { %v4377_v23 = vpop.f32.mrf.mxu2  ;;  %v4353_v49 = vpop.f32.mrf.mxu0 }
 0x293   : > { %v4390_v26 = vpop.f32.mrf.mxu3  ;;  %v4378_v16 = vadd.f32 %v4377_v23, %v4365_v47  ;;  %v4366_v51 = vpop.f32.mrf.mxu1 }
 0x295   : > { %v4391_v29 = vadd.f32 %v4390_v26, %v4378_v16 }
 0x297   : > { %v4397_v30 = vadd.f32 %v4391_v29, %v10944_v57 }
 0x299   : > { %v4399_v9 = vpack.c.bf16 %v4397_v30, %v4396_v52  ;;  %v4424_v10 = vsel %vm4402_vm0, %v4397_v30, 0.0  ;;  %v4434_v11 = vmul.f32 %v4397_v30, %v4397_v30 }
 0x29a   : > { %v4425_v60 = vrot.slane %v4424_v10, 4  ;;  %v4379_v33 = vpop.f32.mrf.mxu2 }
 0x29b   : > { %v4392_v14 = vpop.f32.mrf.mxu3  ;;  %4401 = vst [vmem:[%s10967_s19 + $0x8] sm:$0x77] %v4399_v9  ;;  %v4456_v54 = vsel %vm4402_vm0, %v4434_v11, 0.0 }
 0x29c   : > { %v4426_v61 = vadd.f32 %v4425_v60, %v4424_v10  ;;  %v4457_v12 = vrot.slane %v4456_v54, 4 }
 0x29e   : > { %v4427_v44 = vrot.slane %v4426_v61, 2  ;;  %v4458_v34 = vadd.f32 %v4457_v12, %v4456_v54 }
 0x2a0   : > { %v4428_v36 = vadd.f32 %v4427_v44, %v4426_v61  ;;  %v4459_v17 = vrot.slane %v4458_v34, 2 }
 0x2a2   : > { %v4429_v18 = vrot.slane %v4428_v36, 1  ;;  %v4460_v57 = vadd.f32 %v4459_v17, %v4458_v34 }
 0x2a4   : > { %v4430_v2 = vadd.f32 %v4429_v18, %v4428_v36  ;;  %v4461_v19 = vrot.slane %v4460_v57, 1 }
 0x2a6   : > { %v4462_v31 = vadd.f32 %v4461_v19, %v4460_v57  ;;  %4466 = vst [vmem:[%s10953_s11 + $0x18] sm:$0xff] %v4430_v2 }
 0x2a8   : > { %4470 = vst [vmem:[%s10958_s14 + $0x18] sm:$0xff] %v4462_v31 }
 0x2a9 PF: > { %s17_s21 = sadd.s32 1, %s7568_s21  }
 0x2aa   : > { %p14_p4 = scmp.ge.s32.totalorder %s17_s21, 4  }
 0x2ac   :  { %16 = sbr.rel (!%p14_p4) target bundleno = 1 (0x1), region = 93 }

// kernel: discriminator.7
= control target key start
LH: loop header
LB: loop body
LE: loop exit
PB: predicated region body
PF: predicated region fallthrough
CT: control target
= control target key end

     0   :  { %s9559_s18 = smov 0   ;;  %s11475_s0 = inlined_call_operand.vmem [shape: bf16[2,24,512], index: 0, kind: input, shape index: {}]   ;;  %s11476_s1 = inlined_call_operand.vmem [shape: bf16[16,512,128], index: 1, kind: input, shape index: {}]   ;;  %s11477_s2 = inlined_call_operand.vmem [shape: f32[1,512], index: 2, kind: input, shape index: {}]   ;;  %s11478_s3 = inlined_call_operand.vmem [shape: f32[1,512], index: 3, kind: input, shape index: {}]   ;;  %s11479_s4 = inlined_call_operand.vmem [shape: f32[1,128], index: 4, kind: input, shape index: {}]   ;;  %s11480_s5 = inlined_call_operand.vmem [shape: bf16[2,4,128], index: 5, kind: output, shape index: {}]  }
   0x1 LB: > { %s5982_s19 = sadd.s32 4294967295, %s9527_s18   ;;  %p5986_p0 = scmp.ge.s32.totalorder %s9527_s18, 1  ;;  %s9527_s18 = sphi %s9559_s18, %s15_s18  }
   0x2   : > { %p187_p1 = scmp.lt.s32.totalorder %s9527_s18, 3 }
   0x4   : > { %p188_p2 = pnand %p5986_p0, %p187_p1 }
   0x5   : > { %p214_p3 = scmp.lt.s32.totalorder (!%p188_p2), %s5982_s19, 1 }
   0x6   : > { %191 = sbr.rel (%p188_p2) target bundleno = 668 (0x29c), region = 40 }
   0xb   : > { %v9038_v0 = vld [vmem:[%s11476_s1 + $0x138] sm:$0xff]  ;;  %v9037_v4 = vld [vmem:[%s11476_s1 + $0x130] sm:$0xff]  ;;  %v9036_v8 = vld [vmem:[%s11476_s1 + $0x128] sm:$0xff]  ;;  %s11482_s19 = smov (!%p214_p3, %s5982_s19), 1 }
   0xc   : > { %v9046_v1 = vld [vmem:[%s11476_s1 + $0x178] sm:$0xff]  ;;  %640 = vmatpush.bf16.msra.mxu0 %v9038_v0  ;;  %v9045_v5 = vld [vmem:[%s11476_s1 + $0x170] sm:$0xff]  ;;  %v9044_v9 = vld [vmem:[%s11476_s1 + $0x168] sm:$0xff]  ;;  %s9511_s29 = smul.u32 48, %s11482_s19  ;;  %s5988_s12 = sshll.u32 %s11482_s19, 1 }
   0xd   : > { %v9054_v2 = vld [vmem:[%s11476_s1 + $0x1b8] sm:$0xff]  ;;  %653 = vmatpush.bf16.msra.mxu1 %v9046_v1  ;;  %v9053_v6 = vld [vmem:[%s11476_s1 + $0x1b0] sm:$0xff]  ;;  %v9052_v10 = vld [vmem:[%s11476_s1 + $0x1a8] sm:$0xff]  ;;  %s222_s16 = scalar_lea.vmem %s11480_s5, %s5988_s12 }
   0xe   : > { %v9062_v3 = vld [vmem:[%s11476_s1 + $0x1f8] sm:$0xff]  ;;  %666 = vmatpush.bf16.msra.mxu2 %v9054_v2  ;;  %v9061_v7 = vld [vmem:[%s11476_s1 + $0x1f0] sm:$0xff]  ;;  %v9060_v11 = vld [vmem:[%s11476_s1 + $0x1e8] sm:$0xff]  ;;  %s9633_s15 = scalar_lea.vmem %s11475_s0, %s9511_s29 }
   0xf   : > { %679 = vmatpush.bf16.msra.mxu3 %v9062_v3  ;;  %v9035_v12 = vld [vmem:[%s11476_s1 + $0x120] sm:$0xff]  ;;  %v9034_v16 = vld [vmem:[%s11476_s1 + $0x118] sm:$0xff]  ;;  %v9033_v20 = vld [vmem:[%s11476_s1 + $0x110] sm:$0xff] }
  0x10   : > { %641 = vmatpush.bf16.msra.mxu0 %v9037_v4  ;;  %v9043_v13 = vld [vmem:[%s11476_s1 + $0x160] sm:$0xff]  ;;  %v9042_v17 = vld [vmem:[%s11476_s1 + $0x158] sm:$0xff]  ;;  %v9041_v22 = vld [vmem:[%s11476_s1 + $0x150] sm:$0xff] }
  0x11   : > { %654 = vmatpush.bf16.msra.mxu1 %v9045_v5  ;;  %v9051_v14 = vld [vmem:[%s11476_s1 + $0x1a0] sm:$0xff]  ;;  %v9050_v18 = vld [vmem:[%s11476_s1 + $0x198] sm:$0xff]  ;;  %v330_v25 = vld [vmem:[%s9633_s15 + $0x8] sm:$0x77] }
  0x12   : > { %667 = vmatpush.bf16.msra.mxu2 %v9053_v6  ;;  %v9059_v15 = vld [vmem:[%s11476_s1 + $0x1e0] sm:$0xff]  ;;  %v9058_v19 = vld [vmem:[%s11476_s1 + $0x1d8] sm:$0xff]  ;;  %v9049_v26 = vld [vmem:[%s11476_s1 + $0x190] sm:$0xff]  ;;  %v333_v29 = vunpack.c.l.bf16 %v330_v25  ;;  %v334_v35 = vunpack.c.h.bf16 %v330_v25 }
  0x13   : > { %680 = vmatpush.bf16.msra.mxu3 %v9061_v7  ;;  %v229_v21 = vld [vmem:[%s11477_s2] sm:$0xf]  ;;  %v9057_v27 = vld [vmem:[%s11476_s1 + $0x1d0] sm:$0xff]  ;;  %v9032_v41 = vld [vmem:[%s11476_s1 + $0x108] sm:$0xff] }
  0x14   : > { %642 = vmatpush.bf16.msra.mxu0 %v9036_v8  ;;  %v9644_v23 = vperm.slane %v229_v21, 2  ;;  %v243_v24 = vld [vmem:[%s11478_s3] sm:$0xf]  ;;  %v9658_v30 = vperm.slane %v229_v21, 0  ;;  %v9660_v31 = vperm.slane %v229_v21, 3  ;;  %v9667_v36 = vperm.slane %v229_v21, 1 }
  0x15   : > { %655 = vmatpush.bf16.msra.mxu1 %v9044_v9  ;;  %v9656_v28 = vperm.slane %v243_v24, 2  ;;  %v9662_v32 = vperm.slane %v243_v24, 0  ;;  %v329_v33 = vld [vmem:[%s9633_s15] sm:$0x77]  ;;  %v9665_v34 = vperm.slane %v243_v24, 3  ;;  %v9670_v39 = vperm.slane %v243_v24, 1 }
  0x16   : > { %668 = vmatpush.bf16.msra.mxu2 %v9052_v10  ;;  %v337_v37 = vmul.f32 %v333_v29, %v9644_v23  ;;  %v331_v38 = vunpack.c.l.bf16 %v329_v33  ;;  %v332_v40 = vunpack.c.h.bf16 %v329_v33  ;;  %v9040_v42 = vld [vmem:[%s11476_s1 + $0x148] sm:$0xff]  ;;  %v338_v43 = vmul.f32 %v334_v35, %v9660_v31  ;;  %v9031_v53 = vld [vmem:[%s11476_s1 + $0x100] sm:$0xff]  ;;  %v9006_v61 = vld [vmem:[%s11476_s1 + $0x38] sm:$0xff] }
  0x17   : > { %681 = vmatpush.bf16.msra.mxu3 %v9060_v11  ;;  %v9048_v44 = vld [vmem:[%s11476_s1 + $0x188] sm:$0xff]  ;;  %v9039_v54 = vld [vmem:[%s11476_s1 + $0x140] sm:$0xff]  ;;  %v9014_v62 = vld [vmem:[%s11476_s1 + $0x78] sm:$0xff] }
  0x18   : > { %643 = vmatpush.bf16.msra.mxu0 %v9035_v12  ;;  %v9056_v45 = vld [vmem:[%s11476_s1 + $0x1c8] sm:$0xff]  ;;  %v341_v46 = vadd.f32 %v337_v37, %v9656_v28  ;;  %v335_v47 = vmul.f32 %v331_v38, %v9658_v30  ;;  %v336_v48 = vmul.f32 %v332_v40, %v9667_v36  ;;  %v342_v49 = vadd.f32 %v338_v43, %v9665_v34  ;;  %v9047_v56 = vld [vmem:[%s11476_s1 + $0x180] sm:$0xff]  ;;  %v9022_v0 = vld [vmem:[%s11476_s1 + $0xb8] sm:$0xff] }
  0x19   : > { %656 = vmatpush.bf16.msra.mxu1 %v9043_v13  ;;  %v9055_v57 = vld [vmem:[%s11476_s1 + $0x1c0] sm:$0xff]  ;;  %v9030_v1 = vld [vmem:[%s11476_s1 + $0xf8] sm:$0xff]  ;;  %v9005_v11 = vld [vmem:[%s11476_s1 + $0x30] sm:$0xff] }
  0x1a   : > { %669 = vmatpush.bf16.msra.mxu2 %v9051_v14  ;;  %v345_v50 = vmax.f32 %v341_v46, 0.0  ;;  %v339_v51 = vadd.f32 %v335_v47, %v9662_v32  ;;  %v340_v52 = vadd.f32 %v336_v48, %v9670_v39  ;;  %v346_v55 = vmax.f32 %v342_v49, 0.0  ;;  %v9013_v12 = vld [vmem:[%s11476_s1 + $0x70] sm:$0xff]  ;;  %v9004_v24 = vld [vmem:[%s11476_s1 + $0x28] sm:$0xff]  ;;  %v9003_v33 = vld [vmem:[%s11476_s1 + $0x20] sm:$0xff] }
  0x1b   : > { %682 = vmatpush.bf16.msra.mxu3 %v9059_v15  ;;  %v9012_v25 = vld [vmem:[%s11476_s1 + $0x68] sm:$0xff]  ;;  %v9011_v35 = vld [vmem:[%s11476_s1 + $0x60] sm:$0xff]  ;;  %v9010_v43 = vld [vmem:[%s11476_s1 + $0x58] sm:$0xff] }
  0x1c   : > { %644 = vmatpush.bf16.msra.mxu0 %v9034_v16  ;;  %v349_v58 = vpack.c.bf16 %v345_v50, %v345_v50  ;;  %v343_v59 = vmax.f32 %v339_v51, 0.0  ;;  %v344_v60 = vmax.f32 %v340_v52, 0.0  ;;  %v350_v63 = vpack.c.bf16 %v346_v55, %v346_v55  ;;  %v9021_v16 = vld [vmem:[%s11476_s1 + $0xb0] sm:$0xff]  ;;  %v9028_v29 = vld [vmem:[%s11476_s1 + $0xe8] sm:$0xff]  ;;  %v9019_v37 = vld [vmem:[%s11476_s1 + $0xa0] sm:$0xff] }
  0x1d   : > { %657 = vmatpush.bf16.msra.mxu1 %v9042_v17  ;;  %v9029_v17 = vld [vmem:[%s11476_s1 + $0xf0] sm:$0xff]  ;;  %v9027_v38 = vld [vmem:[%s11476_s1 + $0xe0] sm:$0xff]  ;;  %v224_v40 = vld [vmem:[%s9633_s15 + $0x8] sm:$0x33] }
  0x1e   : > { %670 = vmatpush.bf16.msra.mxu2 %v9050_v18  ;;  %v431_v2 = vshrl.u32 %v349_v58, 16  ;;  %v433_v3 = vshll.u32 %v349_v58, 16  ;;  %v347_v4 = vpack.c.bf16 %v343_v59, %v343_v59  ;;  %v348_v5 = vpack.c.bf16 %v344_v60, %v344_v60  ;;  %v9018_v46 = vld [vmem:[%s11476_s1 + $0x98] sm:$0xff]  ;;  %v9001_v50 = vld [vmem:[%s11476_s1 + $0x10] sm:$0xff]  ;;  %v9000_v58 = vld [vmem:[%s11476_s1 + $0x8] sm:$0xff] }
  0x1f   : > { %683 = vmatpush.bf16.msra.mxu3 %v9058_v19  ;;  %v438_v6 = vshrl.u32 %v350_v63, 16  ;;  %v440_v7 = vshll.u32 %v350_v63, 16  ;;  %v9026_v47 = vld [vmem:[%s11476_s1 + $0xd8] sm:$0xff]  ;;  %v228_v48 = vunpack.c.h.bf16 %v224_v40  ;;  %v9009_v51 = vld [vmem:[%s11476_s1 + $0x50] sm:$0xff]  ;;  %v9008_v59 = vld [vmem:[%s11476_s1 + $0x48] sm:$0xff] }
  0x20   : > { %645 = vmatpush.bf16.msra.mxu0 %v9033_v20  ;;  %v435_v8 = vrot.slane %v433_v3, 1  ;;  %v417_v9 = vshrl.u32 %v347_v4, 16  ;;  %v419_v10 = vshll.u32 %v347_v4, 16  ;;  %v424_v14 = vshrl.u32 %v348_v5, 16  ;;  %v9025_v55 = vld [vmem:[%s11476_s1 + $0xd0] sm:$0xff]  ;;  %v9024_v63 = vld [vmem:[%s11476_s1 + $0xc8] sm:$0xff] }
  0x21   : > { %658 = vmatpush.bf16.msra.mxu1 %v9041_v22  ;;  %v442_v13 = vrot.slane %v440_v7, 1  ;;  %v426_v15 = vshll.u32 %v348_v5, 16  ;;  %v9007_v3 = vld [vmem:[%s11476_s1 + $0x40] sm:$0xff] }
  0x22   : > { %671 = vmatpush.bf16.msra.mxu2 %v9049_v26  ;;  %v436_v18 = vor.u32 %v435_v8, %v431_v2  ;;  %v421_v19 = vrot.slane %v419_v10, 1  ;;  %v8999_v2 = vld [vmem:[%s11476_s1] sm:$0xff]  ;;  %v9070_v10 = vld [vmem:[%s11476_s1 + $0x238] sm:$0xff] }
  0x23   : > { %684 = vmatpush.bf16.msra.mxu3 %v9057_v27  ;;  %v443_v20 = vor.u32 %v442_v13, %v438_v6  ;;  %v428_v21 = vrot.slane %v426_v15, 1  ;;  %v9020_v27 = vld [vmem:[%s11476_s1 + $0xa8] sm:$0xff]  ;;  %v9015_v6 = vld [vmem:[%s11476_s1 + $0x80] sm:$0xff]  ;;  %v9094_v13 = vld [vmem:[%s11476_s1 + $0x2f8] sm:$0xff] }
  0x24   : > { %646 = vmatpush.bf16.msra.mxu0 %v9032_v41  ;;  %v422_v22 = vor.u32 %v421_v19, %v417_v9  ;;  %v223_v41 = vld [vmem:[%s9633_s15] sm:$0x33]  ;;  %v9077_v19 = vld [vmem:[%s11476_s1 + $0x270] sm:$0xff] }
  0x25   : > { %659 = vmatpush.bf16.msra.mxu1 %v9040_v42  ;;  %v429_v26 = vor.u32 %v428_v21, %v424_v14  ;;  %v9002_v42 = vld [vmem:[%s11476_s1 + $0x18] sm:$0xff]  ;;  %v226_v49 = vunpack.c.h.bf16 %v223_v41  ;;  %v9023_v7 = vld [vmem:[%s11476_s1 + $0xc0] sm:$0xff]  ;;  %v9093_v21 = vld [vmem:[%s11476_s1 + $0x2f0] sm:$0xff] }
  0x26   : > { %672 = vmatpush.bf16.msra.mxu2 %v9048_v44  ;;  %v227_v44 = vunpack.c.l.bf16 %v224_v40  ;;  %v9083_v40 = vld [vmem:[%s11476_s1 + $0x2a0] sm:$0xff] }
  0x27   : > { %685 = vmatpush.bf16.msra.mxu3 %v9056_v45  ;;  %v225_v45 = vunpack.c.l.bf16 %v223_v41  ;;  %v9091_v41 = vld [vmem:[%s11476_s1 + $0x2e0] sm:$0xff] }
  0x28   : > { %647 = vmatpush.bf16.msra.mxu0 %v9031_v53  ;;  %v241_v52 = vmul.f32 %v9644_v23, %v227_v44  ;;  %v9066_v44 = vld [vmem:[%s11476_s1 + $0x218] sm:$0xff] }
  0x29   : > { %660 = vmatpush.bf16.msra.mxu1 %v9039_v54  ;;  %v239_v53 = vmul.f32 %v9658_v30, %v225_v45  ;;  %v9017_v54 = vld [vmem:[%s11476_s1 + $0x90] sm:$0xff]  ;;  %v9074_v45 = vld [vmem:[%s11476_s1 + $0x258] sm:$0xff] }
  0x2a   : > { %673 = vmatpush.bf16.msra.mxu2 %v9047_v56  ;;  %v242_v56 = vmul.f32 %v9660_v31, %v228_v48  ;;  %v255_v60 = vadd.f32 %v9656_v28, %v241_v52  ;;  %v9082_v48 = vld [vmem:[%s11476_s1 + $0x298] sm:$0xff]  ;;  %v9065_v52 = vld [vmem:[%s11476_s1 + $0x210] sm:$0xff] }
  0x2b   : > { %686 = vmatpush.bf16.msra.mxu3 %v9055_v57  ;;  %648 = vmatmul.bf16.vlgmr.msra.gmra.mxu0 %v422_v22  ;;  %v240_v57 = vmul.f32 %v9667_v36, %v226_v49  ;;  %v9068_v22 = vld [vmem:[%s11476_s1 + $0x228] sm:$0xff]  ;;  %v9090_v49 = vld [vmem:[%s11476_s1 + $0x2d8] sm:$0xff] }
  0x2c   : > { %884 = vmatpush.bf16.msrb.mxu0 %v9006_v61  ;;  %661 = vmatmul.bf16.vlgmr.msra.gmra.mxu1 %v429_v26  ;;  %v253_v61 = vadd.f32 %v9662_v32, %v239_v53  ;;  %v259_v4 = vmax.f32 %v255_v60, 0.0  ;;  %v9092_v26 = vld [vmem:[%s11476_s1 + $0x2e8] sm:$0xff]  ;;  %v9073_v53 = vld [vmem:[%s11476_s1 + $0x250] sm:$0xff] }
  0x2d   : > { %897 = vmatpush.bf16.msrb.mxu1 %v9014_v62  ;;  %674 = vmatmul.bf16.vlgmr.msra.gmra.mxu2 %v436_v18  ;;  %v9016_v62 = vld [vmem:[%s11476_s1 + $0x88] sm:$0xff]  ;;  %v9069_v18 = vld [vmem:[%s11476_s1 + $0x230] sm:$0xff] }
  0x2e   : > { %910 = vmatpush.bf16.msrb.mxu2 %v9022_v0  ;;  %687 = vmatmul.bf16.vlgmr.msra.gmra.mxu3 %v443_v20  ;;  %v256_v0 = vadd.f32 %v9665_v34, %v242_v56  ;;  %v257_v5 = vmax.f32 %v253_v61, 0.0  ;;  %v263_v14 = vpack.c.bf16 %v259_v4, %v259_v4  ;;  %v9085_v20 = vld [vmem:[%s11476_s1 + $0x2b0] sm:$0xff]  ;;  %v9064_v60 = vld [vmem:[%s11476_s1 + $0x208] sm:$0xff]  ;;  %v9063_v4 = vld [vmem:[%s11476_s1 + $0x200] sm:$0xff] }
  0x2f   : > { %923 = vmatpush.bf16.msrb.mxu3 %v9030_v1  ;;  %v254_v1 = vadd.f32 %v9670_v39, %v240_v57  ;;  %v9081_v56 = vld [vmem:[%s11476_s1 + $0x290] sm:$0xff]  ;;  %v9072_v61 = vld [vmem:[%s11476_s1 + $0x248] sm:$0xff] }
  0x30   : > { %885 = vmatpush.bf16.msrb.mxu0 %v9005_v11  ;;  %v260_v8 = vmax.f32 %v256_v0, 0.0  ;;  %v9078_v11 = vld [vmem:[%s11476_s1 + $0x278] sm:$0xff]  ;;  %v261_v15 = vpack.c.bf16 %v257_v5, %v257_v5  ;;  %v9089_v57 = vld [vmem:[%s11476_s1 + $0x2d0] sm:$0xff]  ;;  %v9080_v0 = vld [vmem:[%s11476_s1 + $0x288] sm:$0xff] }
  0x31   : > { %898 = vmatpush.bf16.msrb.mxu1 %v9013_v12  ;;  %v258_v9 = vmax.f32 %v254_v1, 0.0  ;;  %v9086_v12 = vld [vmem:[%s11476_s1 + $0x2b8] sm:$0xff]  ;;  %v9088_v1 = vld [vmem:[%s11476_s1 + $0x2c8] sm:$0xff]  ;;  %v9071_v5 = vld [vmem:[%s11476_s1 + $0x240] sm:$0xff] }
  0x32   : > { %911 = vmatpush.bf16.msrb.mxu2 %v9021_v16  ;;  %v264_v16 = vpack.c.bf16 %v260_v8, %v260_v8  ;;  %v9079_v8 = vld [vmem:[%s11476_s1 + $0x280] sm:$0xff] }
  0x33   : > { %924 = vmatpush.bf16.msrb.mxu3 %v9029_v17  ;;  %v262_v17 = vpack.c.bf16 %v258_v9, %v258_v9  ;;  %v9087_v9 = vld [vmem:[%s11476_s1 + $0x2c0] sm:$0xff] }
  0x34   : > { %886 = vmatpush.bf16.msrb.mxu0 %v9004_v24  ;;  %v9076_v24 = vld [vmem:[%s11476_s1 + $0x268] sm:$0xff] }
  0x35   : > { %899 = vmatpush.bf16.msrb.mxu1 %v9012_v25  ;;  %v9084_v25 = vld [vmem:[%s11476_s1 + $0x2a8] sm:$0xff] }
  0x36   : > { %912 = vmatpush.bf16.msrb.mxu2 %v9020_v27  ;;  %v937_v27 = vld [vmem:[%s9633_s15 + $0x8] sm:$0x66] }
  0x37   : > { %925 = vmatpush.bf16.msrb.mxu3 %v9028_v29  ;;  %v936_v29 = vld [vmem:[%s9633_s15] sm:$0x66] }
  0x38   : > { %887 = vmatpush.bf16.msrb.mxu0 %v9003_v33  ;;  %v9067_v33 = vld [vmem:[%s11476_s1 + $0x220] sm:$0xff] }
  0x39   : > { %900 = vmatpush.bf16.msrb.mxu1 %v9011_v35  ;;  %v9075_v35 = vld [vmem:[%s11476_s1 + $0x260] sm:$0xff] }
  0x3a   : > { %913 = vmatpush.bf16.msrb.mxu2 %v9019_v37  ;;  %v940_v37 = vunpack.c.l.bf16 %v937_v27 }
  0x3b   : > { %926 = vmatpush.bf16.msrb.mxu3 %v9027_v38  ;;  %v941_v38 = vunpack.c.h.bf16 %v937_v27  ;;  %v9117_v27 = vld [vmem:[%s11476_s1 + $0x3b0] sm:$0xff] }
  0x3c   : > { %888 = vmatpush.bf16.msrb.mxu0 %v9002_v42  ;;  %v938_v42 = vunpack.c.l.bf16 %v936_v29 }
  0x3d   : > { %901 = vmatpush.bf16.msrb.mxu1 %v9010_v43  ;;  %v939_v43 = vunpack.c.h.bf16 %v936_v29  ;;  %v9125_v29 = vld [vmem:[%s11476_s1 + $0x3f0] sm:$0xff] }
  0x3e   : > { %914 = vmatpush.bf16.msrb.mxu2 %v9018_v46  ;;  %v944_v46 = vmul.f32 %v940_v37, %v9644_v23  ;;  %v9100_v37 = vld [vmem:[%s11476_s1 + $0x328] sm:$0xff] }
  0x3f   : > { %927 = vmatpush.bf16.msrb.mxu3 %v9026_v47  ;;  %v945_v47 = vmul.f32 %v941_v38, %v9660_v31  ;;  %v9108_v38 = vld [vmem:[%s11476_s1 + $0x368] sm:$0xff] }
  0x40   : > { %889 = vmatpush.bf16.msrb.mxu0 %v9001_v50  ;;  %v942_v50 = vmul.f32 %v938_v42, %v9658_v30  ;;  %v9116_v42 = vld [vmem:[%s11476_s1 + $0x3a8] sm:$0xff] }
  0x41   : > { %902 = vmatpush.bf16.msrb.mxu1 %v9009_v51  ;;  %v943_v51 = vmul.f32 %v939_v43, %v9667_v36  ;;  %v9124_v43 = vld [vmem:[%s11476_s1 + $0x3e8] sm:$0xff] }
  0x42   : > { %915 = vmatpush.bf16.msrb.mxu2 %v9017_v54  ;;  %v948_v54 = vadd.f32 %v944_v46, %v9656_v28  ;;  %v9099_v46 = vld [vmem:[%s11476_s1 + $0x320] sm:$0xff] }
  0x43   : > { %928 = vmatpush.bf16.msrb.mxu3 %v9025_v55  ;;  %v949_v55 = vadd.f32 %v945_v47, %v9665_v34  ;;  %v9107_v47 = vld [vmem:[%s11476_s1 + $0x360] sm:$0xff] }
  0x44   : > { %890 = vmatpush.bf16.msrb.mxu0 %v9000_v58  ;;  %v946_v58 = vadd.f32 %v942_v50, %v9662_v32  ;;  %v9115_v50 = vld [vmem:[%s11476_s1 + $0x3a0] sm:$0xff] }
  0x45   : > { %903 = vmatpush.bf16.msrb.mxu1 %v9008_v59  ;;  %v947_v59 = vadd.f32 %v943_v51, %v9670_v39  ;;  %v9123_v51 = vld [vmem:[%s11476_s1 + $0x3e0] sm:$0xff] }
  0x46   : > { %916 = vmatpush.bf16.msrb.mxu2 %v9016_v62  ;;  %v952_v62 = vmax.f32 %v948_v54, 0.0  ;;  %v9098_v54 = vld [vmem:[%s11476_s1 + $0x318] sm:$0xff] }
  0x47   : > { %929 = vmatpush.bf16.msrb.mxu3 %v9024_v63  ;;  %v953_v63 = vmax.f32 %v949_v55, 0.0  ;;  %v9106_v55 = vld [vmem:[%s11476_s1 + $0x358] sm:$0xff] }
  0x48   : > { %891 = vmatpush.bf16.msrb.mxu0 %v8999_v2  ;;  %v950_v2 = vmax.f32 %v946_v58, 0.0  ;;  %v9114_v58 = vld [vmem:[%s11476_s1 + $0x398] sm:$0xff] }
  0x49   : > { %904 = vmatpush.bf16.msrb.mxu1 %v9007_v3  ;;  %v951_v3 = vmax.f32 %v947_v59, 0.0  ;;  %v9122_v59 = vld [vmem:[%s11476_s1 + $0x3d8] sm:$0xff] }
  0x4a   : > { %917 = vmatpush.bf16.msrb.mxu2 %v9015_v6  ;;  %v956_v6 = vpack.c.bf16 %v952_v62, %v952_v62  ;;  %v9097_v62 = vld [vmem:[%s11476_s1 + $0x310] sm:$0xff] }
  0x4b   : > { %930 = vmatpush.bf16.msrb.mxu3 %v9023_v7  ;;  %892 = vmatmul.bf16.vlgmr.msrb.gmra.mxu0 %v261_v15  ;;  %v957_v7 = vpack.c.bf16 %v953_v63, %v953_v63  ;;  %v9126_v15 = vld [vmem:[%s11476_s1 + $0x3f8] sm:$0xff]  ;;  %v9105_v63 = vld [vmem:[%s11476_s1 + $0x350] sm:$0xff] }
  0x4c   : > { %1227 = vmatpush.bf16.msra.mxu0 %v9070_v10  ;;  %905 = vmatmul.bf16.vlgmr.msrb.gmra.mxu1 %v262_v17  ;;  %v954_v10 = vpack.c.bf16 %v950_v2, %v950_v2  ;;  %v1029_v17 = vrot.slane %v956_v6, 1  ;;  %v9113_v2 = vld [vmem:[%s11476_s1 + $0x390] sm:$0xff]  ;;  %v9096_v6 = vld [vmem:[%s11476_s1 + $0x308] sm:$0xff] }
  0x4d   : > { %1240 = vmatpush.bf16.msra.mxu1 %v9078_v11  ;;  %918 = vmatmul.bf16.vlgmr.msrb.gmra.mxu2 %v263_v14  ;;  %v955_v11 = vpack.c.bf16 %v951_v3, %v951_v3  ;;  %v9118_v14 = vld [vmem:[%s11476_s1 + $0x3b8] sm:$0xff]  ;;  %v9121_v3 = vld [vmem:[%s11476_s1 + $0x3d0] sm:$0xff] }
  0x4e   : > { %1253 = vmatpush.bf16.msra.mxu2 %v9086_v12  ;;  %931 = vmatmul.bf16.vlgmr.msrb.gmra.mxu3 %v264_v16  ;;  %v9102_v12 = vld [vmem:[%s11476_s1 + $0x338] sm:$0xff]  ;;  %v1281_v16 = vld [vmem:[%s9633_s15 + $0x8] sm:$0xee] }
  0x4f   : > { %1266 = vmatpush.bf16.msra.mxu3 %v9094_v13  ;;  %v9110_v13 = vld [vmem:[%s11476_s1 + $0x378] sm:$0xff] }
  0x50   : > { %1228 = vmatpush.bf16.msra.mxu0 %v9069_v18  ;;  %v1030_v18 = vrot.slane %v957_v7, 1  ;;  %v9104_v7 = vld [vmem:[%s11476_s1 + $0x348] sm:$0xff] }
  0x51   : > { %1241 = vmatpush.bf16.msra.mxu1 %v9077_v19  ;;  %v1280_v19 = vld [vmem:[%s9633_s15] sm:$0xee] }
  0x52   : > { %1254 = vmatpush.bf16.msra.mxu2 %v9085_v20  ;;  %v1027_v20 = vrot.slane %v954_v10, 1 }
  0x53   : > { %1267 = vmatpush.bf16.msra.mxu3 %v9093_v21  ;;  %v1028_v21 = vrot.slane %v955_v11, 1 }
  0x54   : > { %1229 = vmatpush.bf16.msra.mxu0 %v9068_v22  ;;  %v9101_v22 = vld [vmem:[%s11476_s1 + $0x330] sm:$0xff] }
  0x55   : > { %1242 = vmatpush.bf16.msra.mxu1 %v9076_v24  ;;  %v9109_v24 = vld [vmem:[%s11476_s1 + $0x370] sm:$0xff] }
  0x56   : > { %1255 = vmatpush.bf16.msra.mxu2 %v9084_v25  ;;  %v1284_v25 = vunpack.c.l.bf16 %v1281_v16 }
  0x57   : > { %1268 = vmatpush.bf16.msra.mxu3 %v9092_v26  ;;  %v1285_v26 = vunpack.c.h.bf16 %v1281_v16 }
  0x58   : > { %1230 = vmatpush.bf16.msra.mxu0 %v9067_v33  ;;  %v1282_v33 = vunpack.c.l.bf16 %v1280_v19 }
  0x59   : > { %1243 = vmatpush.bf16.msra.mxu1 %v9075_v35  ;;  %v1283_v35 = vunpack.c.h.bf16 %v1280_v19  ;;  %v9103_v19 = vld [vmem:[%s11476_s1 + $0x340] sm:$0xff] }
  0x5a   : > { %1256 = vmatpush.bf16.msra.mxu2 %v9083_v40  ;;  %v1288_v40 = vmul.f32 %v1284_v25, %v9644_v23  ;;  %v9111_v25 = vld [vmem:[%s11476_s1 + $0x380] sm:$0xff] }
  0x5b   : > { %1269 = vmatpush.bf16.msra.mxu3 %v9091_v41  ;;  %v1289_v41 = vmul.f32 %v1285_v26, %v9660_v31  ;;  %v9119_v26 = vld [vmem:[%s11476_s1 + $0x3c0] sm:$0xff] }
  0x5c   : > { %1231 = vmatpush.bf16.msra.mxu0 %v9066_v44  ;;  %v1286_v44 = vmul.f32 %v1282_v33, %v9658_v30 }
  0x5d   : > { %1244 = vmatpush.bf16.msra.mxu1 %v9074_v45  ;;  %v1287_v45 = vmul.f32 %v1283_v35, %v9667_v36 }
  0x5e   : > { %1257 = vmatpush.bf16.msra.mxu2 %v9082_v48  ;;  %v1292_v48 = vadd.f32 %v1288_v40, %v9656_v28  ;;  %v9150_v40 = vld [vmem:[%s11476_s1 + $0x4b8] sm:$0xff] }
  0x5f   : > { %1270 = vmatpush.bf16.msra.mxu3 %v9090_v49  ;;  %v1293_v49 = vadd.f32 %v1289_v41, %v9665_v34  ;;  %v9158_v41 = vld [vmem:[%s11476_s1 + $0x4f8] sm:$0xff] }
  0x60   : > { %1232 = vmatpush.bf16.msra.mxu0 %v9065_v52  ;;  %v1290_v52 = vadd.f32 %v1286_v44, %v9662_v32 }
  0x61   : > { %1245 = vmatpush.bf16.msra.mxu1 %v9073_v53  ;;  %v1291_v53 = vadd.f32 %v1287_v45, %v9670_v39 }
  0x62   : > { %1258 = vmatpush.bf16.msra.mxu2 %v9081_v56  ;;  %v1296_v56 = vmax.f32 %v1292_v48, 0.0  ;;  %v9149_v48 = vld [vmem:[%s11476_s1 + $0x4b0] sm:$0xff] }
  0x63   : > { %1271 = vmatpush.bf16.msra.mxu3 %v9089_v57  ;;  %v1297_v57 = vmax.f32 %v1293_v49, 0.0  ;;  %v9157_v49 = vld [vmem:[%s11476_s1 + $0x4f0] sm:$0xff] }
  0x64   : > { %1233 = vmatpush.bf16.msra.mxu0 %v9064_v60  ;;  %v1294_v60 = vmax.f32 %v1290_v52, 0.0  ;;  %v9148_v52 = vld [vmem:[%s11476_s1 + $0x4a8] sm:$0xff] }
  0x65   : > { %1246 = vmatpush.bf16.msra.mxu1 %v9072_v61  ;;  %v1295_v61 = vmax.f32 %v1291_v53, 0.0  ;;  %v9156_v53 = vld [vmem:[%s11476_s1 + $0x4e8] sm:$0xff] }
  0x66   : > { %1259 = vmatpush.bf16.msra.mxu2 %v9080_v0  ;;  %v1300_v0 = vpack.c.bf16 %v1296_v56, %v1296_v56  ;;  %v9131_v56 = vld [vmem:[%s11476_s1 + $0x420] sm:$0xff] }
  0x67   : > { %1272 = vmatpush.bf16.msra.mxu3 %v9088_v1  ;;  %v1301_v1 = vpack.c.bf16 %v1297_v57, %v1297_v57  ;;  %v9139_v57 = vld [vmem:[%s11476_s1 + $0x460] sm:$0xff] }
  0x68   : > { %1234 = vmatpush.bf16.msra.mxu0 %v9063_v4  ;;  %v1298_v4 = vpack.c.bf16 %v1294_v60, %v1294_v60  ;;  %v9147_v60 = vld [vmem:[%s11476_s1 + $0x4a0] sm:$0xff] }
  0x69   : > { %1247 = vmatpush.bf16.msra.mxu1 %v9071_v5  ;;  %v1299_v5 = vpack.c.bf16 %v1295_v61, %v1295_v61  ;;  %v1392_v10 = vshrl.u32 %v1301_v1, 16  ;;  %v1395_v11 = vshll.u32 %v1301_v1, 16  ;;  %v9155_v61 = vld [vmem:[%s11476_s1 + $0x4e0] sm:$0xff]  ;;  %v9138_v1 = vld [vmem:[%s11476_s1 + $0x458] sm:$0xff] }
  0x6a   : > { %1260 = vmatpush.bf16.msra.mxu2 %v9079_v8  ;;  %v1384_v8 = vshrl.u32 %v1300_v0, 16 }
  0x6b   : > { %1273 = vmatpush.bf16.msra.mxu3 %v9087_v9  ;;  %1235 = vmatmul.bf16.vlgmr.msra.gmra.mxu0 %v1027_v20  ;;  %v1387_v9 = vshll.u32 %v1300_v0, 16  ;;  %v1376_v16 = vshrl.u32 %v1299_v5, 16  ;;  %v9130_v0 = vld [vmem:[%s11476_s1 + $0x418] sm:$0xff] }
  0x6c   : > { %1595 = vmatpush.bf16.msrb.mxu0 %v9102_v12  ;;  %1248 = vmatmul.bf16.vlgmr.msra.gmra.mxu1 %v1028_v21  ;;  %v9112_v12 = vld [vmem:[%s11476_s1 + $0x388] sm:$0xff]  ;;  %v1386_v20 = vrot.slane %v1384_v8, 1  ;;  %v9129_v8 = vld [vmem:[%s11476_s1 + $0x410] sm:$0xff] }
  0x6d   : > { %1608 = vmatpush.bf16.msrb.mxu1 %v9110_v13  ;;  %1261 = vmatmul.bf16.vlgmr.msra.gmra.mxu2 %v1029_v17  ;;  %v9120_v13 = vld [vmem:[%s11476_s1 + $0x3c8] sm:$0xff]  ;;  %v1379_v17 = vshll.u32 %v1299_v5, 16  ;;  %v1389_v21 = vrot.slane %v1387_v9, 2  ;;  %v1378_v33 = vrot.slane %v1376_v16, 1  ;;  %v9154_v5 = vld [vmem:[%s11476_s1 + $0x4d8] sm:$0xff]  ;;  %v9137_v9 = vld [vmem:[%s11476_s1 + $0x450] sm:$0xff] }
  0x6e   : > { %1621 = vmatpush.bf16.msrb.mxu2 %v9118_v14  ;;  %1274 = vmatmul.bf16.vlgmr.msra.gmra.mxu3 %v1030_v18  ;;  %v1368_v14 = vshrl.u32 %v1298_v4, 16  ;;  %v9095_v18 = vld [vmem:[%s11476_s1 + $0x300] sm:$0xff]  ;;  %v9128_v16 = vld [vmem:[%s11476_s1 + $0x408] sm:$0xff] }
  0x6f   : > { %1634 = vmatpush.bf16.msrb.mxu3 %v9126_v15  ;;  %v1371_v15 = vshll.u32 %v1298_v4, 16  ;;  %v1381_v35 = vrot.slane %v1379_v17, 2  ;;  %v9146_v4 = vld [vmem:[%s11476_s1 + $0x498] sm:$0xff]  ;;  %v9136_v17 = vld [vmem:[%s11476_s1 + $0x448] sm:$0xff] }
  0x70   : > { %1596 = vmatpush.bf16.msrb.mxu0 %v9101_v22  ;;  %v1394_v22 = vrot.slane %v1392_v10, 1 }
  0x71   : > { %1609 = vmatpush.bf16.msrb.mxu1 %v9109_v24  ;;  %v1397_v24 = vrot.slane %v1395_v11, 2  ;;  %v1382_v45 = vor.u32 %v1381_v35, %v1378_v33  ;;  %v9143_v33 = vld [vmem:[%s11476_s1 + $0x480] sm:$0xff] }
  0x72   : > { %1622 = vmatpush.bf16.msrb.mxu2 %v9117_v27  ;;  %v1370_v27 = vrot.slane %v1368_v14, 1  ;;  %v9151_v35 = vld [vmem:[%s11476_s1 + $0x4c0] sm:$0xff] }
  0x73   : > { %1635 = vmatpush.bf16.msrb.mxu3 %v9125_v29  ;;  %v1373_v29 = vrot.slane %v1371_v15, 2 }
  0x74   : > { %1597 = vmatpush.bf16.msrb.mxu0 %v9100_v37  ;;  %v9134_v37 = vld [vmem:[%s11476_s1 + $0x438] sm:$0xff] }
  0x75   : > { %1610 = vmatpush.bf16.msrb.mxu1 %v9108_v38  ;;  %v9142_v38 = vld [vmem:[%s11476_s1 + $0x478] sm:$0xff]  ;;  %v1374_v44 = vor.u32 %v1373_v29, %v1370_v27 }
  0x76   : > { %1623 = vmatpush.bf16.msrb.mxu2 %v9116_v42  ;;  %v1390_v42 = vor.u32 %v1389_v21, %v1386_v20  ;;  %v9144_v20 = vld [vmem:[%s11476_s1 + $0x488] sm:$0xff] }
  0x77   : > { %1636 = vmatpush.bf16.msrb.mxu3 %v9124_v43  ;;  %v1398_v43 = vor.u32 %v1397_v24, %v1394_v22  ;;  %v9152_v21 = vld [vmem:[%s11476_s1 + $0x4c8] sm:$0xff] }
  0x78   : > { %1598 = vmatpush.bf16.msrb.mxu0 %v9099_v46  ;;  %v9133_v46 = vld [vmem:[%s11476_s1 + $0x430] sm:$0xff] }
  0x79   : > { %1611 = vmatpush.bf16.msrb.mxu1 %v9107_v47  ;;  %v9141_v47 = vld [vmem:[%s11476_s1 + $0x470] sm:$0xff] }
  0x7a   : > { %1624 = vmatpush.bf16.msrb.mxu2 %v9115_v50  ;;  %v9132_v50 = vld [vmem:[%s11476_s1 + $0x428] sm:$0xff] }
  0x7b   : > { %1637 = vmatpush.bf16.msrb.mxu3 %v9123_v51  ;;  %v9140_v51 = vld [vmem:[%s11476_s1 + $0x468] sm:$0xff] }
  0x7c   : > { %1599 = vmatpush.bf16.msrb.mxu0 %v9098_v54  ;;  %v1649_v54 = vld [vmem:[%s9633_s15 + $0x8] sm:$0xcc] }
  0x7d   : > { %1612 = vmatpush.bf16.msrb.mxu1 %v9106_v55  ;;  %v1648_v55 = vld [vmem:[%s9633_s15] sm:$0xcc] }
  0x7e   : > { %1625 = vmatpush.bf16.msrb.mxu2 %v9114_v58  ;;  %v1652_v58 = vunpack.c.l.bf16 %v1649_v54 }
  0x7f   : > { %1638 = vmatpush.bf16.msrb.mxu3 %v9122_v59  ;;  %v1653_v59 = vunpack.c.h.bf16 %v1649_v54  ;;  %v9165_v54 = vld [vmem:[%s11476_s1 + $0x530] sm:$0xff] }
  0x80   : > { %1600 = vmatpush.bf16.msrb.mxu0 %v9097_v62  ;;  %v1650_v62 = vunpack.c.l.bf16 %v1648_v55 }
  0x81   : > { %1613 = vmatpush.bf16.msrb.mxu1 %v9105_v63  ;;  %v1651_v63 = vunpack.c.h.bf16 %v1648_v55  ;;  %v9173_v55 = vld [vmem:[%s11476_s1 + $0x570] sm:$0xff] }
  0x82   : > { %1626 = vmatpush.bf16.msrb.mxu2 %v9113_v2  ;;  %v1656_v2 = vmul.f32 %v1652_v58, %v9644_v23 }
  0x83   : > { %1639 = vmatpush.bf16.msrb.mxu3 %v9121_v3  ;;  %v1657_v3 = vmul.f32 %v1653_v59, %v9660_v31  ;;  %v9181_v59 = vld [vmem:[%s11476_s1 + $0x5b0] sm:$0xff] }
  0x84   : > { %1601 = vmatpush.bf16.msrb.mxu0 %v9096_v6  ;;  %v1654_v6 = vmul.f32 %v1650_v62, %v9658_v30  ;;  %v1660_v10 = vadd.f32 %v1656_v2, %v9656_v28  ;;  %v9164_v2 = vld [vmem:[%s11476_s1 + $0x528] sm:$0xff] }
  0x85   : > { %1614 = vmatpush.bf16.msrb.mxu1 %v9104_v7  ;;  %v1655_v7 = vmul.f32 %v1651_v63, %v9667_v36  ;;  %v1661_v11 = vadd.f32 %v1657_v3, %v9665_v34  ;;  %v9172_v3 = vld [vmem:[%s11476_s1 + $0x568] sm:$0xff] }
  0x86   : > { %1627 = vmatpush.bf16.msrb.mxu2 %v9112_v12  ;;  %v9145_v12 = vld [vmem:[%s11476_s1 + $0x490] sm:$0xff]  ;;  %v1658_v14 = vadd.f32 %v1654_v6, %v9662_v32 }
  0x87   : > { %1640 = vmatpush.bf16.msrb.mxu3 %v9120_v13  ;;  %v9153_v13 = vld [vmem:[%s11476_s1 + $0x4d0] sm:$0xff]  ;;  %v1659_v15 = vadd.f32 %v1655_v7, %v9670_v39  ;;  %v9180_v7 = vld [vmem:[%s11476_s1 + $0x5a8] sm:$0xff] }
  0x88   : > { %1602 = vmatpush.bf16.msrb.mxu0 %v9095_v18  ;;  %v1664_v18 = vmax.f32 %v1660_v10, 0.0  ;;  %v1662_v22 = vmax.f32 %v1658_v14, 0.0  ;;  %v9163_v14 = vld [vmem:[%s11476_s1 + $0x520] sm:$0xff] }
  0x89   : > { %1615 = vmatpush.bf16.msrb.mxu1 %v9103_v19  ;;  %v1665_v19 = vmax.f32 %v1661_v11, 0.0  ;;  %v1663_v24 = vmax.f32 %v1659_v15, 0.0  ;;  %v9171_v15 = vld [vmem:[%s11476_s1 + $0x560] sm:$0xff] }
  0x8a   : > { %1628 = vmatpush.bf16.msrb.mxu2 %v9111_v25  ;;  %v9127_v25 = vld [vmem:[%s11476_s1 + $0x400] sm:$0xff]  ;;  %v1668_v27 = vpack.c.bf16 %v1664_v18, %v1664_v18 }
  0x8b   : > { %1641 = vmatpush.bf16.msrb.mxu3 %v9119_v26  ;;  %1603 = vmatmul.bf16.vlgmr.msrb.gmra.mxu0 %v1374_v44  ;;  %v9135_v26 = vld [vmem:[%s11476_s1 + $0x440] sm:$0xff]  ;;  %v1669_v29 = vpack.c.bf16 %v1665_v19, %v1665_v19  ;;  %v9182_v44 = vld [vmem:[%s11476_s1 + $0x5b8] sm:$0xff] }
  0x8c   : > { %1939 = vmatpush.bf16.msra.mxu0 %v9134_v37  ;;  %1616 = vmatmul.bf16.vlgmr.msrb.gmra.mxu1 %v1382_v45  ;;  %v9166_v37 = vld [vmem:[%s11476_s1 + $0x538] sm:$0xff]  ;;  %v9179_v19 = vld [vmem:[%s11476_s1 + $0x5a0] sm:$0xff] }
  0x8d   : > { %1952 = vmatpush.bf16.msra.mxu1 %v9142_v38  ;;  %1629 = vmatmul.bf16.vlgmr.msrb.gmra.mxu2 %v1390_v42  ;;  %v1666_v38 = vpack.c.bf16 %v1662_v22, %v1662_v22  ;;  %v1993_v42 = vld [vmem:[%s9633_s15 + $0x8] sm:$0xcc]  ;;  %v9190_v45 = vld [vmem:[%s11476_s1 + $0x5f8] sm:$0xff] }
  0x8e   : > { %1965 = vmatpush.bf16.msra.mxu2 %v9150_v40  ;;  %1642 = vmatmul.bf16.vlgmr.msrb.gmra.mxu3 %v1398_v43  ;;  %v1667_v40 = vpack.c.bf16 %v1663_v24, %v1663_v24  ;;  %v1995_v43 = vld [vmem:[%s9633_s15 + $0x18] sm:$0x11] }
  0x8f   : > { %1978 = vmatpush.bf16.msra.mxu3 %v9158_v41  ;;  %v9174_v41 = vld [vmem:[%s11476_s1 + $0x578] sm:$0xff] }
  0x90   : > { %1940 = vmatpush.bf16.msra.mxu0 %v9133_v46  ;;  %v1992_v46 = vld [vmem:[%s9633_s15] sm:$0xcc] }
  0x91   : > { %1953 = vmatpush.bf16.msra.mxu1 %v9141_v47  ;;  %v1741_v47 = vrot.slane %v1668_v27, 2  ;;  %v1996_v58 = vunpack.c.l.bf16 %v1992_v46  ;;  %v1997_v62 = vunpack.c.h.bf16 %v1992_v46  ;;  %v9162_v27 = vld [vmem:[%s11476_s1 + $0x518] sm:$0xff] }
  0x92   : > { %1966 = vmatpush.bf16.msra.mxu2 %v9149_v48  ;;  %v1742_v48 = vrot.slane %v1669_v29, 2  ;;  %v9170_v29 = vld [vmem:[%s11476_s1 + $0x558] sm:$0xff] }
  0x93   : > { %1979 = vmatpush.bf16.msra.mxu3 %v9157_v49  ;;  %v1994_v49 = vld [vmem:[%s9633_s15 + $0x10] sm:$0x11]  ;;  %v2004_v6 = vmul.f32 %v1996_v58, %v9658_v30  ;;  %v2005_v10 = vmul.f32 %v1997_v62, %v9667_v36 }
  0x94   : > { %1941 = vmatpush.bf16.msra.mxu0 %v9132_v50  ;;  %v1739_v50 = vrot.slane %v1666_v38, 2  ;;  %v2001_v63 = vunpack.c.h.bf16 %v1994_v49 }
  0x95   : > { %1954 = vmatpush.bf16.msra.mxu1 %v9140_v51  ;;  %v1740_v51 = vrot.slane %v1667_v40, 2  ;;  %v2012_v18 = vadd.f32 %v2004_v6, %v9662_v32  ;;  %v2013_v22 = vadd.f32 %v2005_v10, %v9670_v39  ;;  %v9159_v10 = vld [vmem:[%s11476_s1 + $0x500] sm:$0xff] }
  0x96   : > { %1967 = vmatpush.bf16.msra.mxu2 %v9148_v52  ;;  %v1998_v52 = vunpack.c.l.bf16 %v1993_v42  ;;  %v2009_v11 = vmul.f32 %v2001_v63, %v9667_v36 }
  0x97   : > { %1980 = vmatpush.bf16.msra.mxu3 %v9156_v53  ;;  %v2002_v53 = vunpack.c.l.bf16 %v1995_v43  ;;  %v2020_v40 = vmax.f32 %v2012_v18, 0.0  ;;  %v9175_v18 = vld [vmem:[%s11476_s1 + $0x580] sm:$0xff] }
  0x98   : > { %1942 = vmatpush.bf16.msra.mxu0 %v9131_v56  ;;  %v1999_v56 = vunpack.c.h.bf16 %v1993_v42  ;;  %v10201_v24 = vadd.f32 %v2009_v11, %v9670_v39  ;;  %v9186_v42 = vld [vmem:[%s11476_s1 + $0x5d8] sm:$0xff]  ;;  %v9167_v11 = vld [vmem:[%s11476_s1 + $0x540] sm:$0xff] }
  0x99   : > { %1955 = vmatpush.bf16.msra.mxu1 %v9139_v57  ;;  %v2003_v57 = vunpack.c.h.bf16 %v1995_v43 }
  0x9a   : > { %1968 = vmatpush.bf16.msra.mxu2 %v9147_v60  ;;  %v9189_v60 = vld [vmem:[%s11476_s1 + $0x5f0] sm:$0xff]  ;;  %v2025_v46 = vmax.f32 %v10201_v24, 0.0 }
  0x9b   : > { %1981 = vmatpush.bf16.msra.mxu3 %v9155_v61  ;;  %v2000_v61 = vunpack.c.l.bf16 %v1994_v49  ;;  %v9161_v49 = vld [vmem:[%s11476_s1 + $0x510] sm:$0xff] }
  0x9c   : > { %1943 = vmatpush.bf16.msra.mxu0 %v9130_v0  ;;  %v2006_v0 = vmul.f32 %v1998_v52, %v9644_v23 }
  0x9d   : > { %1956 = vmatpush.bf16.msra.mxu1 %v9138_v1  ;;  %v2010_v1 = vmul.f32 %v2002_v53, %v9644_v23  ;;  %v9177_v53 = vld [vmem:[%s11476_s1 + $0x590] sm:$0xff] }
  0x9e   : > { %1969 = vmatpush.bf16.msra.mxu2 %v9146_v4  ;;  %v2007_v4 = vmul.f32 %v1999_v56, %v9660_v31 }
  0x9f   : > { %1982 = vmatpush.bf16.msra.mxu3 %v9154_v5  ;;  %v2011_v5 = vmul.f32 %v2003_v57, %v9660_v31 }
  0xa0   : > { %1944 = vmatpush.bf16.msra.mxu0 %v9129_v8  ;;  %v9188_v8 = vld [vmem:[%s11476_s1 + $0x5e8] sm:$0xff] }
  0xa1   : > { %1957 = vmatpush.bf16.msra.mxu1 %v9137_v9  ;;  %v2008_v9 = vmul.f32 %v2000_v61, %v9658_v30  ;;  %v9168_v61 = vld [vmem:[%s11476_s1 + $0x548] sm:$0xff] }
  0xa2   : > { %1970 = vmatpush.bf16.msra.mxu2 %v9145_v12  ;;  %v2014_v12 = vadd.f32 %v2006_v0, %v9656_v28 }
  0xa3   : > { %1983 = vmatpush.bf16.msra.mxu3 %v9153_v13  ;;  %v10177_v13 = vadd.f32 %v2010_v1, %v9656_v28 }
  0xa4   : > { %1945 = vmatpush.bf16.msra.mxu0 %v9128_v16  ;;  %v2015_v16 = vadd.f32 %v2007_v4, %v9665_v34  ;;  %v9184_v4 = vld [vmem:[%s11476_s1 + $0x5c8] sm:$0xff] }
  0xa5   : > { %1958 = vmatpush.bf16.msra.mxu1 %v9136_v17  ;;  %v10187_v17 = vadd.f32 %v2011_v5, %v9665_v34 }
  0xa6   : > { %1971 = vmatpush.bf16.msra.mxu2 %v9144_v20  ;;  %v9187_v20 = vld [vmem:[%s11476_s1 + $0x5e0] sm:$0xff] }
  0xa7   : > { %1984 = vmatpush.bf16.msra.mxu3 %v9152_v21  ;;  %v10197_v21 = vadd.f32 %v2008_v9, %v9662_v32 }
  0xa8   : > { %1946 = vmatpush.bf16.msra.mxu0 %v9127_v25  ;;  %v2022_v25 = vmax.f32 %v2014_v12, 0.0 }
  0xa9   : > { %1959 = vmatpush.bf16.msra.mxu1 %v9135_v26  ;;  %v649_v26 = vpop.f32.mrf.mxu0  ;;  %v662_v38 = vpop.f32.mrf.mxu1 }
  0xaa   : > { %1972 = vmatpush.bf16.msra.mxu2 %v9143_v33  ;;  %v2026_v33 = vmax.f32 %v10177_v13, 0.0  ;;  %v663_v43 = vadd.f32 %v662_v38, %v649_v26  ;;  %v9214_v38 = vld [vmem:[%s11476_s1 + $0x6b8] sm:$0xff] }
  0xab   : > { %1985 = vmatpush.bf16.msra.mxu3 %v9151_v35  ;;  %1947 = vmatmul.bf16.vlgmr.msra.gmra.mxu0 %v1739_v50  ;;  %v2023_v35 = vmax.f32 %v2015_v16, 0.0  ;;  %v9169_v50 = vld [vmem:[%s11476_s1 + $0x550] sm:$0xff] }
  0xac   : > { %2325 = vmatpush.bf16.msrb.mxu0 %v9166_v37  ;;  %1960 = vmatmul.bf16.vlgmr.msra.gmra.mxu1 %v1740_v51  ;;  %v2027_v37 = vmax.f32 %v10187_v17, 0.0  ;;  %v2030_v51 = vpack.c.bf16 %v2026_v33, %v2022_v25 }
  0xad   : > { %2338 = vmatpush.bf16.msrb.mxu1 %v9174_v41  ;;  %1973 = vmatmul.bf16.vlgmr.msra.gmra.mxu2 %v1741_v47  ;;  %v9178_v41 = vld [vmem:[%s11476_s1 + $0x598] sm:$0xff] }
  0xae   : > { %2351 = vmatpush.bf16.msrb.mxu2 %v9182_v44  ;;  %1986 = vmatmul.bf16.vlgmr.msra.gmra.mxu3 %v1742_v48  ;;  %v2024_v44 = vmax.f32 %v10197_v21, 0.0  ;;  %v2031_v52 = vpack.c.bf16 %v2027_v37, %v2023_v35  ;;  %v2114_v62 = vshrl.u32 %v2030_v51, 16  ;;  %v2117_v63 = vshll.u32 %v2030_v51, 16  ;;  %v9206_v35 = vld [vmem:[%s11476_s1 + $0x678] sm:$0xff]  ;;  %v9196_v51 = vld [vmem:[%s11476_s1 + $0x628] sm:$0xff] }
  0xaf   : > { %2364 = vmatpush.bf16.msrb.mxu3 %v9190_v45  ;;  %v2021_v45 = vmax.f32 %v2013_v22, 0.0  ;;  %v9254_v21 = vld [vmem:[%s11476_s1 + $0x7f8] sm:$0xff] }
  0xb0   : > { %2326 = vmatpush.bf16.msrb.mxu0 %v9165_v54  ;;  %v675_v47 = vpop.f32.mrf.mxu2  ;;  %v9185_v54 = vld [vmem:[%s11476_s1 + $0x5d0] sm:$0xff]  ;;  %v2122_v0 = vshrl.u32 %v2031_v52, 16  ;;  %v2125_v1 = vshll.u32 %v2031_v52, 16  ;;  %v2116_v12 = vrot.slane %v2114_v62, 2  ;;  %v9204_v52 = vld [vmem:[%s11476_s1 + $0x668] sm:$0xff] }
  0xb1   : > { %2339 = vmatpush.bf16.msrb.mxu1 %v9173_v55  ;;  %v676_v48 = vadd.f32 %v675_v47, %v663_v43  ;;  %v2028_v55 = vpack.c.bf16 %v2024_v44, %v2020_v40  ;;  %v2029_v56 = vpack.c.bf16 %v2025_v46, %v2021_v45  ;;  %v688_v57 = vpop.f32.mrf.mxu3  ;;  %v9222_v40 = vld [vmem:[%s11476_s1 + $0x6f8] sm:$0xff]  ;;  %v9197_v47 = vld [vmem:[%s11476_s1 + $0x630] sm:$0xff] }
  0xb2   : > { %2352 = vmatpush.bf16.msrb.mxu2 %v9181_v59  ;;  %v651_v59 = vpop.f32.mrf.mxu0  ;;  %v2127_v16 = vrot.slane %v2125_v1, 3  ;;  %v9211_v1 = vld [vmem:[%s11476_s1 + $0x6a0] sm:$0xff] }
  0xb3   : > { %2365 = vmatpush.bf16.msrb.mxu3 %v9189_v60  ;;  %v10239_v58 = vadd.f32 %v688_v57, %v676_v48  ;;  %v9160_v60 = vld [vmem:[%s11476_s1 + $0x508] sm:$0xff]  ;;  %v2098_v5 = vshrl.u32 %v2028_v55, 16  ;;  %v2101_v6 = vshll.u32 %v2028_v55, 16  ;;  %v9205_v48 = vld [vmem:[%s11476_s1 + $0x670] sm:$0xff]  ;;  %v9195_v59 = vld [vmem:[%s11476_s1 + $0x620] sm:$0xff] }
  0xb4   : > { %2327 = vmatpush.bf16.msrb.mxu0 %v9164_v2  ;;  %v664_v2 = vpop.f32.mrf.mxu1  ;;  %v2379_v55 = vld [vmem:[%s9633_s15 + $0x8] sm:$0x88] }
  0xb5   : > { %2340 = vmatpush.bf16.msrb.mxu1 %v9172_v3  ;;  %v9176_v3 = vld [vmem:[%s11476_s1 + $0x588] sm:$0xff]  ;;  %v2103_v22 = vrot.slane %v2101_v6, 3  ;;  %v9219_v2 = vld [vmem:[%s11476_s1 + $0x6e0] sm:$0xff]  ;;  %v9202_v6 = vld [vmem:[%s11476_s1 + $0x658] sm:$0xff] }
  0xb6   : > { %2353 = vmatpush.bf16.msrb.mxu2 %v9180_v7  ;;  %v2106_v7 = vshrl.u32 %v2029_v56, 16 }
  0xb7   : > { %2366 = vmatpush.bf16.msrb.mxu3 %v9188_v8  ;;  %v2109_v8 = vshll.u32 %v2029_v56, 16  ;;  %v2378_v56 = vld [vmem:[%s9633_s15] sm:$0x88] }
  0xb8   : > { %2328 = vmatpush.bf16.msrb.mxu0 %v9163_v14  ;;  %v677_v9 = vpop.f32.mrf.mxu2  ;;  %v2119_v14 = vrot.slane %v2117_v63, 3  ;;  %v2108_v25 = vrot.slane %v2106_v7, 2  ;;  %v2382_v63 = vunpack.c.l.bf16 %v2379_v55 }
  0xb9   : > { %2341 = vmatpush.bf16.msrb.mxu1 %v9171_v15  ;;  %v2124_v15 = vrot.slane %v2122_v0, 2  ;;  %v2111_v26 = vrot.slane %v2109_v8, 3  ;;  %v2383_v0 = vunpack.c.h.bf16 %v2379_v55  ;;  %v9210_v9 = vld [vmem:[%s11476_s1 + $0x698] sm:$0xff] }
  0xba   : > { %2354 = vmatpush.bf16.msrb.mxu2 %v9179_v19  ;;  %v9183_v19 = vld [vmem:[%s11476_s1 + $0x5c0] sm:$0xff]  ;;  %v2386_v7 = vmul.f32 %v2382_v63, %v9644_v23 }
  0xbb   : > { %2367 = vmatpush.bf16.msrb.mxu3 %v9187_v20  ;;  %v2100_v20 = vrot.slane %v2098_v5, 2  ;;  %v2112_v45 = vor.u32 %v2111_v26, %v2108_v25  ;;  %v2387_v8 = vmul.f32 %v2383_v0, %v9660_v31  ;;  %v9229_v0 = vld [vmem:[%s11476_s1 + $0x730] sm:$0xff] }
  0xbc   : > { %2329 = vmatpush.bf16.msrb.mxu0 %v9162_v27  ;;  %v690_v27 = vpop.f32.mrf.mxu3  ;;  %v10341_v25 = vadd.f32 %v2386_v7, %v9656_v28  ;;  %v9228_v7 = vld [vmem:[%s11476_s1 + $0x728] sm:$0xff] }
  0xbd   : > { %2342 = vmatpush.bf16.msrb.mxu1 %v9170_v29  ;;  %v9198_v29 = vld [vmem:[%s11476_s1 + $0x638] sm:$0xff]  ;;  %v2104_v43 = vor.u32 %v2103_v22, %v2100_v20  ;;  %v9201_v20 = vld [vmem:[%s11476_s1 + $0x650] sm:$0xff]  ;;  %v10344_v26 = vadd.f32 %v2387_v8, %v9665_v34  ;;  %v9236_v8 = vld [vmem:[%s11476_s1 + $0x768] sm:$0xff] }
  0xbe   : > { %2355 = vmatpush.bf16.msrb.mxu2 %v9178_v41  ;;  %v2120_v41 = vor.u32 %v2119_v14, %v2116_v12 }
  0xbf   : > { %2368 = vmatpush.bf16.msrb.mxu3 %v9186_v42  ;;  %v2128_v42 = vor.u32 %v2127_v16, %v2124_v15 }
  0xc0   : > { %2330 = vmatpush.bf16.msrb.mxu0 %v9161_v49  ;;  %v9213_v49 = vld [vmem:[%s11476_s1 + $0x6b0] sm:$0xff] }
  0xc1   : > { %2343 = vmatpush.bf16.msrb.mxu1 %v9169_v50  ;;  %v9221_v50 = vld [vmem:[%s11476_s1 + $0x6f0] sm:$0xff] }
  0xc2   : > { %2356 = vmatpush.bf16.msrb.mxu2 %v9177_v53  ;;  %v9212_v53 = vld [vmem:[%s11476_s1 + $0x6a8] sm:$0xff] }
  0xc3   : > { %2369 = vmatpush.bf16.msrb.mxu3 %v9185_v54  ;;  %v9220_v54 = vld [vmem:[%s11476_s1 + $0x6e8] sm:$0xff] }
  0xc4   : > { %2331 = vmatpush.bf16.msrb.mxu0 %v9160_v60  ;;  %v9203_v60 = vld [vmem:[%s11476_s1 + $0x660] sm:$0xff] }
  0xc5   : > { %2344 = vmatpush.bf16.msrb.mxu1 %v9168_v61 }
  0xc6   : > { %2357 = vmatpush.bf16.msrb.mxu2 %v9176_v3  ;;  %v2380_v3 = vunpack.c.l.bf16 %v2378_v56 }
  0xc7   : > { %2370 = vmatpush.bf16.msrb.mxu3 %v9184_v4  ;;  %v2381_v4 = vunpack.c.h.bf16 %v2378_v56 }
  0xc8   : > { %2332 = vmatpush.bf16.msrb.mxu0 %v9159_v10  ;;  %v893_v57 = vpop.f32.mrf.mxu0  ;;  %v9218_v10 = vld [vmem:[%s11476_s1 + $0x6d8] sm:$0xff]  ;;  %v2384_v12 = vmul.f32 %v2380_v3, %v9658_v30 }
  0xc9   : > { %2345 = vmatpush.bf16.msrb.mxu1 %v9167_v11  ;;  %v894_v61 = vadd.f32 %v893_v57, %v10239_v58  ;;  %v906_v62 = vpop.f32.mrf.mxu1  ;;  %v9194_v58 = vld [vmem:[%s11476_s1 + $0x618] sm:$0xff]  ;;  %v2385_v14 = vmul.f32 %v2381_v4, %v9667_v36  ;;  %v9207_v57 = vld [vmem:[%s11476_s1 + $0x680] sm:$0xff]  ;;  %v9245_v4 = vld [vmem:[%s11476_s1 + $0x7b0] sm:$0xff] }
  0xca   : > { %2358 = vmatpush.bf16.msrb.mxu2 %v9175_v18 }
  0xcb   : > { %2371 = vmatpush.bf16.msrb.mxu3 %v9183_v19  ;;  %2333 = vmatmul.bf16.vlgmr.msrb.gmra.mxu0 %v2104_v43  ;;  %v907_v5 = vadd.f32 %v906_v62, %v894_v61  ;;  %v9193_v19 = vld [vmem:[%s11476_s1 + $0x610] sm:$0xff]  ;;  %v2394_v43 = vmax.f32 %v10341_v25, 0.0 }
  0xcc   : > { %2669 = vmatpush.bf16.msra.mxu0 %v9198_v29  ;;  %2346 = vmatmul.bf16.vlgmr.msrb.gmra.mxu1 %v2112_v45  ;;  %v9209_v29 = vld [vmem:[%s11476_s1 + $0x690] sm:$0xff]  ;;  %v2395_v45 = vmax.f32 %v10344_v26, 0.0 }
  0xcd   : > { %2682 = vmatpush.bf16.msra.mxu1 %v9206_v35  ;;  %2359 = vmatmul.bf16.vlgmr.msrb.gmra.mxu2 %v2120_v41  ;;  %v9217_v35 = vld [vmem:[%s11476_s1 + $0x6d0] sm:$0xff]  ;;  %v9192_v41 = vld [vmem:[%s11476_s1 + $0x608] sm:$0xff]  ;;  %v2398_v55 = vpack.c.bf16 %v2026_v33, %v2394_v43  ;;  %v9230_v33 = vld [vmem:[%s11476_s1 + $0x738] sm:$0xff] }
  0xce   : > { %2695 = vmatpush.bf16.msra.mxu2 %v9214_v38  ;;  %2372 = vmatmul.bf16.vlgmr.msrb.gmra.mxu3 %v2128_v42  ;;  %v10353_v38 = vadd.f32 %v2384_v12, %v9662_v32  ;;  %v9200_v42 = vld [vmem:[%s11476_s1 + $0x648] sm:$0xff]  ;;  %v2399_v56 = vpack.c.bf16 %v2027_v37, %v2395_v45  ;;  %v9238_v37 = vld [vmem:[%s11476_s1 + $0x778] sm:$0xff]  ;;  %v2722_v61 = vld [vmem:[%s9633_s15 + $0x10] sm:$0x33] }
  0xcf   : > { %2708 = vmatpush.bf16.msra.mxu3 %v9222_v40  ;;  %v10356_v40 = vadd.f32 %v2385_v14, %v9670_v39  ;;  %v2471_v24 = vrot.slane %v2398_v55, 3  ;;  %v9252_v12 = vld [vmem:[%s11476_s1 + $0x7e8] sm:$0xff]  ;;  %v9242_v55 = vld [vmem:[%s11476_s1 + $0x798] sm:$0xff] }
  0xd0   : > { %2670 = vmatpush.bf16.msra.mxu0 %v9197_v47  ;;  %v919_v11 = vpop.f32.mrf.mxu2  ;;  %v895_v18 = vpop.f32.mrf.mxu0  ;;  %v9208_v47 = vld [vmem:[%s11476_s1 + $0x688] sm:$0xff] }
  0xd1   : > { %2683 = vmatpush.bf16.msra.mxu1 %v9205_v48  ;;  %v920_v15 = vadd.f32 %v919_v11, %v907_v5  ;;  %v932_v16 = vpop.f32.mrf.mxu3  ;;  %v908_v27 = vpop.f32.mrf.mxu1  ;;  %v9216_v48 = vld [vmem:[%s11476_s1 + $0x6c8] sm:$0xff]  ;;  %v9253_v5 = vld [vmem:[%s11476_s1 + $0x7f0] sm:$0xff]  ;;  %v9235_v18 = vld [vmem:[%s11476_s1 + $0x760] sm:$0xff] }
  0xd2   : > { %2696 = vmatpush.bf16.msra.mxu2 %v9213_v49  ;;  %v2392_v49 = vmax.f32 %v10353_v38, 0.0  ;;  %v9244_v11 = vld [vmem:[%s11476_s1 + $0x7a8] sm:$0xff] }
  0xd3   : > { %2709 = vmatpush.bf16.msra.mxu3 %v9221_v50  ;;  %v10338_v22 = vadd.f32 %v932_v16, %v920_v15  ;;  %v2393_v50 = vmax.f32 %v10356_v40, 0.0  ;;  %v9227_v16 = vld [vmem:[%s11476_s1 + $0x720] sm:$0xff]  ;;  %v9248_v40 = vld [vmem:[%s11476_s1 + $0x7c8] sm:$0xff] }
  0xd4   : > { %2671 = vmatpush.bf16.msra.mxu0 %v9196_v51  ;;  %v2396_v13 = vpack.c.bf16 %v2024_v44, %v2392_v49  ;;  %v2723_v44 = vld [vmem:[%s9633_s15 + $0x18] sm:$0x33] }
  0xd5   : > { %2684 = vmatpush.bf16.msra.mxu1 %v9204_v52  ;;  %v2397_v17 = vpack.c.bf16 %v2025_v46, %v2393_v50  ;;  %v2472_v46 = vrot.slane %v2399_v56, 3  ;;  %v2727_v3 = vunpack.c.h.bf16 %v2723_v44  ;;  %v9250_v56 = vld [vmem:[%s11476_s1 + $0x7d8] sm:$0xff] }
  0xd6   : > { %2697 = vmatpush.bf16.msra.mxu2 %v9212_v53  ;;  %v9191_v53 = vld [vmem:[%s11476_s1 + $0x600] sm:$0xff]  ;;  %v2469_v62 = vrot.slane %v2396_v13, 3 }
  0xd7   : > { %2710 = vmatpush.bf16.msra.mxu3 %v9220_v54  ;;  %v9199_v54 = vld [vmem:[%s11476_s1 + $0x640] sm:$0xff]  ;;  %v2470_v63 = vrot.slane %v2397_v17, 3 }
  0xd8   : > { %2672 = vmatpush.bf16.msra.mxu0 %v9195_v59  ;;  %v921_v51 = vpop.f32.mrf.mxu2  ;;  %v9215_v59 = vld [vmem:[%s11476_s1 + $0x6c0] sm:$0xff] }
  0xd9   : > { %2685 = vmatpush.bf16.msra.mxu1 %v9203_v60  ;;  %v934_v52 = vpop.f32.mrf.mxu3  ;;  %v9246_v60 = vld [vmem:[%s11476_s1 + $0x7b8] sm:$0xff] }
  0xda   : > { %2698 = vmatpush.bf16.msra.mxu2 %v9211_v1  ;;  %v9237_v1 = vld [vmem:[%s11476_s1 + $0x770] sm:$0xff]  ;;  %v9226_v51 = vld [vmem:[%s11476_s1 + $0x718] sm:$0xff] }
  0xdb   : > { %2711 = vmatpush.bf16.msra.mxu3 %v9219_v2  ;;  %v2726_v2 = vunpack.c.l.bf16 %v2723_v44  ;;  %v9234_v52 = vld [vmem:[%s11476_s1 + $0x758] sm:$0xff] }
  0xdc   : > { %2673 = vmatpush.bf16.msra.mxu0 %v9194_v58  ;;  %v2724_v58 = vunpack.c.l.bf16 %v2722_v61 }
  0xdd   : > { %2686 = vmatpush.bf16.msra.mxu1 %v9202_v6  ;;  %v2725_v6 = vunpack.c.h.bf16 %v2722_v61 }
  0xde   : > { %2699 = vmatpush.bf16.msra.mxu2 %v9210_v9  ;;  %v2730_v9 = vmul.f32 %v2726_v2, %v9644_v23  ;;  %v2728_v14 = vmul.f32 %v2724_v58, %v9658_v30 }
  0xdf   : > { %2712 = vmatpush.bf16.msra.mxu3 %v9218_v10  ;;  %v2731_v10 = vmul.f32 %v2727_v3, %v9660_v31  ;;  %v2729_v15 = vmul.f32 %v2725_v6, %v9667_v36 }
  0xe0   : > { %2674 = vmatpush.bf16.msra.mxu0 %v9193_v19  ;;  %v2734_v27 = vadd.f32 %v2730_v9, %v9656_v28 }
  0xe1   : > { %2687 = vmatpush.bf16.msra.mxu1 %v9201_v20 }
  0xe2   : > { %2700 = vmatpush.bf16.msra.mxu2 %v9209_v29  ;;  %v2735_v29 = vadd.f32 %v2731_v10, %v9665_v34 }
  0xe3   : > { %2713 = vmatpush.bf16.msra.mxu3 %v9217_v35  ;;  %v9243_v35 = vld [vmem:[%s11476_s1 + $0x7a0] sm:$0xff] }
  0xe4   : > { %2675 = vmatpush.bf16.msra.mxu0 %v9192_v41  ;;  %v9251_v41 = vld [vmem:[%s11476_s1 + $0x7e0] sm:$0xff] }
  0xe5   : > { %2688 = vmatpush.bf16.msra.mxu1 %v9200_v42 }
  0xe6   : > { %2701 = vmatpush.bf16.msra.mxu2 %v9208_v47  ;;  %v2732_v47 = vadd.f32 %v2728_v14, %v9662_v32  ;;  %v9239_v14 = vld [vmem:[%s11476_s1 + $0x780] sm:$0xff] }
  0xe7   : > { %2714 = vmatpush.bf16.msra.mxu3 %v9216_v48  ;;  %v2733_v48 = vadd.f32 %v2729_v15, %v9670_v39  ;;  %v9247_v15 = vld [vmem:[%s11476_s1 + $0x7c0] sm:$0xff] }
  0xe8   : > { %2676 = vmatpush.bf16.msra.mxu0 %v9191_v53  ;;  %v1236_v19 = vpop.f32.mrf.mxu0  ;;  %v10466_v53 = vmax.f32 %v2734_v27, 0.0  ;;  %v10476_v13 = vmax.f32 %v2732_v47, 0.0  ;;  %v9262_v27 = vld [vmem:[%s11476_s1 + $0x838] sm:$0xff] }
  0xe9   : > { %2689 = vmatpush.bf16.msra.mxu1 %v9199_v54  ;;  %v1249_v20 = vpop.f32.mrf.mxu1  ;;  %v10468_v54 = vmax.f32 %v2735_v29, 0.0  ;;  %v10478_v17 = vmax.f32 %v2733_v48, 0.0  ;;  %v9270_v29 = vld [vmem:[%s11476_s1 + $0x878] sm:$0xff] }
  0xea   : > { %2702 = vmatpush.bf16.msra.mxu2 %v9207_v57  ;;  %v1250_v42 = vadd.f32 %v1249_v20, %v1236_v19  ;;  %v2742_v44 = vpack.c.bf16 %v10466_v53, %v2394_v43  ;;  %v2740_v25 = vpack.c.bf16 %v10476_v13, %v2392_v49 }
  0xeb   : > { %2715 = vmatpush.bf16.msra.mxu3 %v9215_v59  ;;  %2677 = vmatmul.bf16.vlgmr.msra.gmra.mxu0 %v2469_v62  ;;  %v9241_v62 = vld [vmem:[%s11476_s1 + $0x790] sm:$0xff]  ;;  %v2741_v26 = vpack.c.bf16 %v10478_v17, %v2393_v50 }
  0xec   : > { %3037 = vmatpush.bf16.msrb.mxu0 %v9230_v33  ;;  %2690 = vmatmul.bf16.vlgmr.msra.gmra.mxu1 %v2470_v63  ;;  %v9249_v63 = vld [vmem:[%s11476_s1 + $0x7d0] sm:$0xff]  ;;  %v2826_v38 = vshrl.u32 %v2742_v44, 16  ;;  %v2810_v50 = vshrl.u32 %v2740_v25, 16  ;;  %v2813_v3 = vshll.u32 %v2740_v25, 16  ;;  %v9258_v25 = vld [vmem:[%s11476_s1 + $0x818] sm:$0xff] }
  0xed   : > { %3050 = vmatpush.bf16.msrb.mxu1 %v9238_v37  ;;  %2703 = vmatmul.bf16.vlgmr.msra.gmra.mxu2 %v2471_v24  ;;  %v2743_v24 = vpack.c.bf16 %v10468_v54, %v2395_v45  ;;  %v9224_v45 = vld [vmem:[%s11476_s1 + $0x708] sm:$0xff] }
  0xee   : > { %3063 = vmatpush.bf16.msrb.mxu2 %v9246_v60  ;;  %2716 = vmatmul.bf16.vlgmr.msra.gmra.mxu3 %v2472_v46  ;;  %v9225_v60 = vld [vmem:[%s11476_s1 + $0x710] sm:$0xff]  ;;  %v2828_v9 = vrot.slane %v2826_v38, 3 }
  0xef   : > { %3076 = vmatpush.bf16.msrb.mxu3 %v9254_v21  ;;  %v9233_v21 = vld [vmem:[%s11476_s1 + $0x750] sm:$0xff]  ;;  %v2834_v49 = vshrl.u32 %v2743_v24, 16  ;;  %v2837_v2 = vshll.u32 %v2743_v24, 16 }
  0xf0   : > { %3038 = vmatpush.bf16.msrb.mxu0 %v9229_v0  ;;  %v1262_v57 = vpop.f32.mrf.mxu2  ;;  %v1238_v46 = vpop.f32.mrf.mxu0  ;;  %v9232_v0 = vld [vmem:[%s11476_s1 + $0x748] sm:$0xff] }
  0xf1   : > { %3051 = vmatpush.bf16.msrb.mxu1 %v9237_v1  ;;  %v1275_v59 = vpop.f32.mrf.mxu3  ;;  %v1263_v33 = vadd.f32 %v1262_v57, %v1250_v42  ;;  %v1251_v61 = vpop.f32.mrf.mxu1  ;;  %v2829_v1 = vshll.u32 %v2742_v44, 16  ;;  %v9285_v57 = vld [vmem:[%s11476_s1 + $0x8f0] sm:$0xff]  ;;  %v9267_v44 = vld [vmem:[%s11476_s1 + $0x860] sm:$0xff] }
  0xf2   : > { %3064 = vmatpush.bf16.msrb.mxu2 %v9245_v4  ;;  %v2818_v4 = vshrl.u32 %v2741_v26, 16  ;;  %v9275_v61 = vld [vmem:[%s11476_s1 + $0x8a0] sm:$0xff] }
  0xf3   : > { %3077 = vmatpush.bf16.msrb.mxu3 %v9253_v5  ;;  %v1276_v37 = vadd.f32 %v1275_v59, %v1263_v33  ;;  %v2821_v5 = vshll.u32 %v2741_v26, 16  ;;  %v2831_v10 = vrot.slane %v2829_v1, 4  ;;  %v9260_v59 = vld [vmem:[%s11476_s1 + $0x828] sm:$0xff]  ;;  %v9266_v26 = vld [vmem:[%s11476_s1 + $0x858] sm:$0xff] }
  0xf4   : > { %3039 = vmatpush.bf16.msrb.mxu0 %v9228_v7  ;;  %v9223_v7 = vld [vmem:[%s11476_s1 + $0x700] sm:$0xff]  ;;  %v2820_v19 = vrot.slane %v2818_v4, 3  ;;  %v9268_v33 = vld [vmem:[%s11476_s1 + $0x868] sm:$0xff]  ;;  %v9273_v4 = vld [vmem:[%s11476_s1 + $0x890] sm:$0xff] }
  0xf5   : > { %3052 = vmatpush.bf16.msrb.mxu1 %v9236_v8  ;;  %v10505_v43 = vadd.f32 %v1276_v37, %v10338_v22  ;;  %v9240_v22 = vld [vmem:[%s11476_s1 + $0x788] sm:$0xff]  ;;  %v9231_v8 = vld [vmem:[%s11476_s1 + $0x740] sm:$0xff]  ;;  %v2823_v20 = vrot.slane %v2821_v5, 4  ;;  %v2832_v42 = vor.u32 %v2831_v10, %v2828_v9  ;;  %v9281_v5 = vld [vmem:[%s11476_s1 + $0x8d0] sm:$0xff] }
  0xf6   : > { %3065 = vmatpush.bf16.msrb.mxu2 %v9244_v11  ;;  %v2836_v11 = vrot.slane %v2834_v49, 3  ;;  %v9276_v37 = vld [vmem:[%s11476_s1 + $0x8a8] sm:$0xff] }
  0xf7   : > { %3078 = vmatpush.bf16.msrb.mxu3 %v9252_v12  ;;  %v2839_v12 = vrot.slane %v2837_v2, 4 }
  0xf8   : > { %3040 = vmatpush.bf16.msrb.mxu0 %v9227_v16  ;;  %v1264_v58 = vpop.f32.mrf.mxu2  ;;  %v2812_v16 = vrot.slane %v2810_v50, 3 }
  0xf9   : > { %3053 = vmatpush.bf16.msrb.mxu1 %v9235_v18  ;;  %v1277_v6 = vpop.f32.mrf.mxu3  ;;  %v2815_v18 = vrot.slane %v2813_v3, 4  ;;  %v2840_v47 = vor.u32 %v2839_v12, %v2836_v11  ;;  %v9255_v11 = vld [vmem:[%s11476_s1 + $0x800] sm:$0xff] }
  0xfa   : > { %3066 = vmatpush.bf16.msrb.mxu2 %v9243_v35  ;;  %v9278_v35 = vld [vmem:[%s11476_s1 + $0x8b8] sm:$0xff]  ;;  %v9256_v6 = vld [vmem:[%s11476_s1 + $0x808] sm:$0xff]  ;;  %v9263_v12 = vld [vmem:[%s11476_s1 + $0x840] sm:$0xff] }
  0xfb   : > { %3079 = vmatpush.bf16.msrb.mxu3 %v9251_v41  ;;  %v9286_v41 = vld [vmem:[%s11476_s1 + $0x8f8] sm:$0xff]  ;;  %v2816_v48 = vor.u32 %v2815_v18, %v2812_v16 }
  0xfc   : > { %3041 = vmatpush.bf16.msrb.mxu0 %v9226_v51  ;;  %v2824_v51 = vor.u32 %v2823_v20, %v2820_v19  ;;  %v9294_v16 = vld [vmem:[%s11476_s1 + $0x938] sm:$0xff] }
  0xfd   : > { %3054 = vmatpush.bf16.msrb.mxu1 %v9234_v52  ;;  %v9261_v52 = vld [vmem:[%s11476_s1 + $0x830] sm:$0xff]  ;;  %v9302_v18 = vld [vmem:[%s11476_s1 + $0x978] sm:$0xff] }
  0xfe   : > { %3067 = vmatpush.bf16.msrb.mxu2 %v9242_v55  ;;  %v9269_v55 = vld [vmem:[%s11476_s1 + $0x870] sm:$0xff]  ;;  %v9310_v19 = vld [vmem:[%s11476_s1 + $0x9b8] sm:$0xff] }
  0xff   : > { %3080 = vmatpush.bf16.msrb.mxu3 %v9250_v56  ;;  %v9277_v56 = vld [vmem:[%s11476_s1 + $0x8b0] sm:$0xff]  ;;  %v9318_v20 = vld [vmem:[%s11476_s1 + $0x9f8] sm:$0xff] }
 0x100   : > { %3042 = vmatpush.bf16.msrb.mxu0 %v9225_v60  ;;  %v9284_v60 = vld [vmem:[%s11476_s1 + $0x8e8] sm:$0xff] }
 0x101   : > { %3055 = vmatpush.bf16.msrb.mxu1 %v9233_v21  ;;  %v9259_v21 = vld [vmem:[%s11476_s1 + $0x820] sm:$0xff] }
 0x102   : > { %3068 = vmatpush.bf16.msrb.mxu2 %v9241_v62  ;;  %v9283_v62 = vld [vmem:[%s11476_s1 + $0x8e0] sm:$0xff] }
 0x103   : > { %3081 = vmatpush.bf16.msrb.mxu3 %v9249_v63 }
 0x104   : > { %3043 = vmatpush.bf16.msrb.mxu0 %v9224_v45  ;;  %v9274_v45 = vld [vmem:[%s11476_s1 + $0x898] sm:$0xff] }
 0x105   : > { %3056 = vmatpush.bf16.msrb.mxu1 %v9232_v0  ;;  %v9282_v0 = vld [vmem:[%s11476_s1 + $0x8d8] sm:$0xff] }
 0x106   : > { %3069 = vmatpush.bf16.msrb.mxu2 %v9240_v22  ;;  %v9257_v22 = vld [vmem:[%s11476_s1 + $0x810] sm:$0xff] }
 0x107   : > { %3082 = vmatpush.bf16.msrb.mxu3 %v9248_v40  ;;  %v9265_v40 = vld [vmem:[%s11476_s1 + $0x850] sm:$0xff] }
 0x108   : > { %3044 = vmatpush.bf16.msrb.mxu0 %v9223_v7  ;;  %v1604_v24 = vpop.f32.mrf.mxu0  ;;  %v9264_v7 = vld [vmem:[%s11476_s1 + $0x848] sm:$0xff] }
 0x109   : > { %3057 = vmatpush.bf16.msrb.mxu1 %v9231_v8  ;;  %v1617_v46 = vpop.f32.mrf.mxu1  ;;  %v9272_v8 = vld [vmem:[%s11476_s1 + $0x888] sm:$0xff] }
 0x10a   : > { %3070 = vmatpush.bf16.msrb.mxu2 %v9239_v14  ;;  %v1618_v63 = vadd.f32 %v1617_v46, %v1604_v24  ;;  %v9271_v14 = vld [vmem:[%s11476_s1 + $0x880] sm:$0xff] }
 0x10b   : > { %3083 = vmatpush.bf16.msrb.mxu3 %v9247_v15  ;;  %3045 = vmatmul.bf16.vlgmr.msrb.gmra.mxu0 %v2816_v48  ;;  %v9279_v15 = vld [vmem:[%s11476_s1 + $0x8c0] sm:$0xff]  ;;  %v9293_v48 = vld [vmem:[%s11476_s1 + $0x930] sm:$0xff] }
 0x10c   : > { %3351 = vmatpush.bf16.msra.mxu0 %v9262_v27  ;;  %3058 = vmatmul.bf16.vlgmr.msrb.gmra.mxu1 %v2824_v51  ;;  %v3405_v27 = vld [vmem:[%s9633_s15 + $0x18] sm:$0x77]  ;;  %v9291_v24 = vld [vmem:[%s11476_s1 + $0x920] sm:$0xff] }
 0x10d   : > { %3364 = vmatpush.bf16.msra.mxu1 %v9270_v29  ;;  %3071 = vmatmul.bf16.vlgmr.msrb.gmra.mxu2 %v2832_v42  ;;  %v3092_v29 = vpack.c.bf16 %v10466_v53, %v10466_v53  ;;  %v3090_v42 = vpack.c.bf16 %v10476_v13, %v10476_v13  ;;  %v9301_v53 = vld [vmem:[%s11476_s1 + $0x970] sm:$0xff]  ;;  %v3409_v51 = vunpack.c.h.bf16 %v3405_v27  ;;  %v9299_v46 = vld [vmem:[%s11476_s1 + $0x960] sm:$0xff] }
 0x10e   : > { %3377 = vmatpush.bf16.msra.mxu2 %v9278_v35  ;;  %3084 = vmatmul.bf16.vlgmr.msrb.gmra.mxu3 %v2840_v47  ;;  %v3093_v35 = vpack.c.bf16 %v10468_v54, %v10468_v54  ;;  %v3091_v47 = vpack.c.bf16 %v10478_v17, %v10478_v17  ;;  %v3408_v54 = vunpack.c.l.bf16 %v3405_v27  ;;  %v9309_v13 = vld [vmem:[%s11476_s1 + $0x9b0] sm:$0xff] }
 0x10f   : > { %3390 = vmatpush.bf16.msra.mxu3 %v9286_v41  ;;  %v3404_v41 = vld [vmem:[%s9633_s15 + $0x10] sm:$0x77] }
 0x110   : > { %3352 = vmatpush.bf16.msra.mxu0 %v9261_v52  ;;  %v1630_v38 = vpop.f32.mrf.mxu2  ;;  %v1606_v50 = vpop.f32.mrf.mxu0  ;;  %v9317_v17 = vld [vmem:[%s11476_s1 + $0x9f0] sm:$0xff]  ;;  %v3406_v52 = vunpack.c.l.bf16 %v3404_v41 }
 0x111   : > { %3365 = vmatpush.bf16.msra.mxu1 %v9269_v55  ;;  %v1643_v1 = vpop.f32.mrf.mxu3  ;;  %v1631_v49 = vadd.f32 %v1630_v38, %v1618_v63  ;;  %v1619_v3 = vpop.f32.mrf.mxu1  ;;  %v3407_v55 = vunpack.c.h.bf16 %v3404_v41  ;;  %v9306_v50 = vld [vmem:[%s11476_s1 + $0x998] sm:$0xff] }
 0x112   : > { %3378 = vmatpush.bf16.msra.mxu2 %v9277_v56  ;;  %v9292_v56 = vld [vmem:[%s11476_s1 + $0x928] sm:$0xff]  ;;  %v9314_v3 = vld [vmem:[%s11476_s1 + $0x9d8] sm:$0xff] }
 0x113   : > { %3391 = vmatpush.bf16.msra.mxu3 %v9285_v57  ;;  %v1644_v2 = vadd.f32 %v1643_v1, %v1631_v49  ;;  %v9300_v57 = vld [vmem:[%s11476_s1 + $0x968] sm:$0xff]  ;;  %v9290_v49 = vld [vmem:[%s11476_s1 + $0x918] sm:$0xff] }
 0x114   : > { %3353 = vmatpush.bf16.msra.mxu0 %v9260_v59  ;;  %v3412_v59 = vmul.f32 %v3408_v54, %v9644_v23 }
 0x115   : > { %3366 = vmatpush.bf16.msra.mxu1 %v9268_v33  ;;  %v10604_v58 = vadd.f32 %v1644_v2, %v10505_v43  ;;  %v9280_v43 = vld [vmem:[%s11476_s1 + $0x8c8] sm:$0xff]  ;;  %v3413_v33 = vmul.f32 %v3409_v51, %v9660_v31  ;;  %v9298_v2 = vld [vmem:[%s11476_s1 + $0x958] sm:$0xff] }
 0x116   : > { %3379 = vmatpush.bf16.msra.mxu2 %v9276_v37  ;;  %v9308_v37 = vld [vmem:[%s11476_s1 + $0x9a8] sm:$0xff]  ;;  %v3416_v63 = vadd.f32 %v3412_v59, %v9656_v28  ;;  %v9303_v59 = vld [vmem:[%s11476_s1 + $0x980] sm:$0xff] }
 0x117   : > { %3392 = vmatpush.bf16.msra.mxu3 %v9284_v60  ;;  %v9316_v60 = vld [vmem:[%s11476_s1 + $0x9e8] sm:$0xff] }
 0x118   : > { %3354 = vmatpush.bf16.msra.mxu0 %v9259_v21  ;;  %v1632_v9 = vpop.f32.mrf.mxu2  ;;  %v3410_v21 = vmul.f32 %v3406_v52, %v9658_v30 }
 0x119   : > { %3367 = vmatpush.bf16.msra.mxu1 %v9267_v44  ;;  %v1645_v10 = vpop.f32.mrf.mxu3  ;;  %v3411_v44 = vmul.f32 %v3407_v55, %v9667_v36  ;;  %v9289_v9 = vld [vmem:[%s11476_s1 + $0x910] sm:$0xff] }
 0x11a   : > { %3380 = vmatpush.bf16.msra.mxu2 %v9275_v61  ;;  %v3414_v38 = vadd.f32 %v3410_v21, %v9662_v32  ;;  %v9297_v10 = vld [vmem:[%s11476_s1 + $0x950] sm:$0xff] }
 0x11b   : > { %3393 = vmatpush.bf16.msra.mxu3 %v9283_v62  ;;  %v3415_v1 = vadd.f32 %v3411_v44, %v9670_v39 }
 0x11c   : > { %3355 = vmatpush.bf16.msra.mxu0 %v9258_v25  ;;  %v3417_v25 = vadd.f32 %v3413_v33, %v9665_v34  ;;  %v9311_v33 = vld [vmem:[%s11476_s1 + $0x9c0] sm:$0xff] }
 0x11d   : > { %3368 = vmatpush.bf16.msra.mxu1 %v9266_v26  ;;  %v9307_v26 = vld [vmem:[%s11476_s1 + $0x9a0] sm:$0xff] }
 0x11e   : > { %3381 = vmatpush.bf16.msra.mxu2 %v9274_v45  ;;  %v9315_v45 = vld [vmem:[%s11476_s1 + $0x9e0] sm:$0xff] }
 0x11f   : > { %3394 = vmatpush.bf16.msra.mxu3 %v9282_v0 }
 0x120   : > { %3356 = vmatpush.bf16.msra.mxu0 %v9257_v22  ;;  %v3420_v22 = vmax.f32 %v3416_v63, 0.0 }
 0x121   : > { %3369 = vmatpush.bf16.msra.mxu1 %v9265_v40  ;;  %v3421_v40 = vmax.f32 %v3417_v25, 0.0 }
 0x122   : > { %3382 = vmatpush.bf16.msra.mxu2 %v9273_v4 }
 0x123   : > { %3395 = vmatpush.bf16.msra.mxu3 %v9281_v5 }
 0x124   : > { %3357 = vmatpush.bf16.msra.mxu0 %v9256_v6  ;;  %v3418_v6 = vmax.f32 %v3414_v38, 0.0  ;;  %v9333_v38 = vld [vmem:[%s11476_s1 + $0xa70] sm:$0xff] }
 0x125   : > { %3370 = vmatpush.bf16.msra.mxu1 %v9264_v7  ;;  %v3419_v7 = vmax.f32 %v3415_v1, 0.0  ;;  %v9341_v1 = vld [vmem:[%s11476_s1 + $0xab0] sm:$0xff] }
 0x126   : > { %3383 = vmatpush.bf16.msra.mxu2 %v9272_v8 }
 0x127   : > { %3396 = vmatpush.bf16.msra.mxu3 %v9280_v43 }
 0x128   : > { %3358 = vmatpush.bf16.msra.mxu0 %v9255_v11  ;;  %v1948_v61 = vpop.f32.mrf.mxu0  ;;  %v3424_v11 = vpack.c.bf16 %v3420_v22, %v3420_v22  ;;  %v9332_v22 = vld [vmem:[%s11476_s1 + $0xa68] sm:$0xff] }
 0x129   : > { %3371 = vmatpush.bf16.msra.mxu1 %v9263_v12  ;;  %v1961_v62 = vpop.f32.mrf.mxu1  ;;  %v3425_v12 = vpack.c.bf16 %v3421_v40, %v3421_v40  ;;  %v9340_v40 = vld [vmem:[%s11476_s1 + $0xaa8] sm:$0xff] }
 0x12a   : > { %3384 = vmatpush.bf16.msra.mxu2 %v9271_v14  ;;  %v1962_v0 = vadd.f32 %v1961_v62, %v1948_v61  ;;  %v3508_v41 = vshll.u32 %v3424_v11, 16  ;;  %v3506_v52 = vshrl.u32 %v3424_v11, 16  ;;  %v9342_v61 = vld [vmem:[%s11476_s1 + $0xab8] sm:$0xff]  ;;  %v9347_v11 = vld [vmem:[%s11476_s1 + $0xae0] sm:$0xff] }
 0x12b   : > { %3397 = vmatpush.bf16.msra.mxu3 %v9279_v15  ;;  %3359 = vmatmul.bf16.vlgmr.msra.gmra.mxu0 %v3090_v42  ;;  %v3515_v42 = vshll.u32 %v3425_v12, 16  ;;  %v9350_v62 = vld [vmem:[%s11476_s1 + $0xaf8] sm:$0xff] }
 0x12c   : > { %3715 = vmatpush.bf16.msrb.mxu0 %v9294_v16  ;;  %3372 = vmatmul.bf16.vlgmr.msra.gmra.mxu1 %v3091_v47  ;;  %v9305_v16 = vld [vmem:[%s11476_s1 + $0x990] sm:$0xff]  ;;  %v9304_v47 = vld [vmem:[%s11476_s1 + $0x988] sm:$0xff]  ;;  %v3510_v55 = vrot.slane %v3508_v41, 1 }
 0x12d   : > { %3728 = vmatpush.bf16.msrb.mxu1 %v9302_v18  ;;  %3385 = vmatmul.bf16.vlgmr.msra.gmra.mxu2 %v3092_v29  ;;  %v9313_v18 = vld [vmem:[%s11476_s1 + $0x9d0] sm:$0xff]  ;;  %v9288_v29 = vld [vmem:[%s11476_s1 + $0x908] sm:$0xff] }
 0x12e   : > { %3741 = vmatpush.bf16.msrb.mxu2 %v9310_v19  ;;  %3398 = vmatmul.bf16.vlgmr.msra.gmra.mxu3 %v3093_v35  ;;  %v3422_v19 = vpack.c.bf16 %v3418_v6, %v3418_v6  ;;  %v9296_v35 = vld [vmem:[%s11476_s1 + $0x948] sm:$0xff]  ;;  %v3511_v63 = vor.u32 %v3510_v55, %v3506_v52  ;;  %v9331_v6 = vld [vmem:[%s11476_s1 + $0xa60] sm:$0xff] }
 0x12f   : > { %3754 = vmatpush.bf16.msrb.mxu3 %v9318_v20  ;;  %v3423_v20 = vpack.c.bf16 %v3419_v7, %v3419_v7 }
 0x130   : > { %3716 = vmatpush.bf16.msrb.mxu0 %v9293_v48  ;;  %v1974_v4 = vpop.f32.mrf.mxu2  ;;  %v1950_v14 = vpop.f32.mrf.mxu0  ;;  %v3494_v48 = vshll.u32 %v3422_v19, 16 }
 0x131   : > { %3729 = vmatpush.bf16.msrb.mxu1 %v9301_v53  ;;  %v1987_v5 = vpop.f32.mrf.mxu3  ;;  %v1975_v8 = vadd.f32 %v1974_v4, %v1962_v0  ;;  %v1963_v15 = vpop.f32.mrf.mxu1  ;;  %v3501_v53 = vshll.u32 %v3423_v20, 16  ;;  %v3499_v21 = vshrl.u32 %v3423_v20, 16  ;;  %v9325_v0 = vld [vmem:[%s11476_s1 + $0xa30] sm:$0xff] }
 0x132   : > { %3742 = vmatpush.bf16.msrb.mxu2 %v9309_v13  ;;  %v9287_v13 = vld [vmem:[%s11476_s1 + $0x900] sm:$0xff]  ;;  %v3768_v4 = vld [vmem:[%s9633_s15 + $0x10] sm:$0x66] }
 0x133   : > { %3755 = vmatpush.bf16.msrb.mxu3 %v9317_v17  ;;  %v1988_v43 = vadd.f32 %v1987_v5, %v1975_v8  ;;  %v9295_v17 = vld [vmem:[%s11476_s1 + $0x940] sm:$0xff]  ;;  %v3503_v44 = vrot.slane %v3501_v53, 1  ;;  %v3770_v14 = vunpack.c.l.bf16 %v3768_v4  ;;  %v3771_v15 = vunpack.c.h.bf16 %v3768_v4  ;;  %v9382_v4 = vld [vmem:[%s11476_s1 + $0xbf8] sm:$0xff] }
 0x134   : > { %3717 = vmatpush.bf16.msrb.mxu0 %v9292_v56  ;;  %v3513_v56 = vshrl.u32 %v3425_v12, 16  ;;  %v9323_v5 = vld [vmem:[%s11476_s1 + $0xa20] sm:$0xff] }
 0x135   : > { %3730 = vmatpush.bf16.msrb.mxu1 %v9300_v57  ;;  %v10721_v27 = vadd.f32 %v1988_v43, %v10604_v58  ;;  %v9312_v58 = vld [vmem:[%s11476_s1 + $0x9c8] sm:$0xff]  ;;  %v3517_v57 = vrot.slane %v3515_v42, 1 }
 0x136   : > { %3743 = vmatpush.bf16.msrb.mxu2 %v9308_v37  ;;  %v3492_v37 = vshrl.u32 %v3422_v19, 16 }
 0x137   : > { %3756 = vmatpush.bf16.msrb.mxu3 %v9316_v60  ;;  %v3496_v60 = vrot.slane %v3494_v48, 1  ;;  %v3518_v25 = vor.u32 %v3517_v57, %v3513_v56  ;;  %v9337_v56 = vld [vmem:[%s11476_s1 + $0xa90] sm:$0xff] }
 0x138   : > { %3718 = vmatpush.bf16.msrb.mxu0 %v9291_v24  ;;  %v1976_v54 = vpop.f32.mrf.mxu2  ;;  %v9326_v24 = vld [vmem:[%s11476_s1 + $0xa38] sm:$0xff]  ;;  %v9345_v57 = vld [vmem:[%s11476_s1 + $0xad0] sm:$0xff] }
 0x139   : > { %3731 = vmatpush.bf16.msrb.mxu1 %v9299_v46  ;;  %v1989_v51 = vpop.f32.mrf.mxu3  ;;  %v9334_v46 = vld [vmem:[%s11476_s1 + $0xa78] sm:$0xff]  ;;  %v9321_v54 = vld [vmem:[%s11476_s1 + $0xa10] sm:$0xff] }
 0x13a   : > { %3744 = vmatpush.bf16.msrb.mxu2 %v9307_v26  ;;  %v3497_v26 = vor.u32 %v3496_v60, %v3492_v37  ;;  %v9329_v51 = vld [vmem:[%s11476_s1 + $0xa50] sm:$0xff]  ;;  %v9320_v60 = vld [vmem:[%s11476_s1 + $0xa08] sm:$0xff] }
 0x13b   : > { %3757 = vmatpush.bf16.msrb.mxu3 %v9315_v45  ;;  %v3504_v45 = vor.u32 %v3503_v44, %v3499_v21  ;;  %v9328_v21 = vld [vmem:[%s11476_s1 + $0xa48] sm:$0xff] }
 0x13c   : > { %3719 = vmatpush.bf16.msrb.mxu0 %v9290_v49  ;;  %v9349_v49 = vld [vmem:[%s11476_s1 + $0xaf0] sm:$0xff] }
 0x13d   : > { %3732 = vmatpush.bf16.msrb.mxu1 %v9298_v2  ;;  %v9324_v2 = vld [vmem:[%s11476_s1 + $0xa28] sm:$0xff] }
 0x13e   : > { %3745 = vmatpush.bf16.msrb.mxu2 %v9306_v50  ;;  %v9348_v50 = vld [vmem:[%s11476_s1 + $0xae8] sm:$0xff] }
 0x13f   : > { %3758 = vmatpush.bf16.msrb.mxu3 %v9314_v3  ;;  %v3769_v3 = vld [vmem:[%s9633_s15 + $0x18] sm:$0x66] }
 0x140   : > { %3720 = vmatpush.bf16.msrb.mxu0 %v9289_v9  ;;  %v3772_v43 = vunpack.c.l.bf16 %v3769_v3  ;;  %v3773_v9 = vunpack.c.h.bf16 %v3769_v3  ;;  %v9374_v3 = vld [vmem:[%s11476_s1 + $0xbb8] sm:$0xff] }
 0x141   : > { %3733 = vmatpush.bf16.msrb.mxu1 %v9297_v10  ;;  %v9339_v10 = vld [vmem:[%s11476_s1 + $0xaa0] sm:$0xff] }
 0x142   : > { %3746 = vmatpush.bf16.msrb.mxu2 %v9305_v16  ;;  %v9322_v16 = vld [vmem:[%s11476_s1 + $0xa18] sm:$0xff]  ;;  %v3776_v19 = vmul.f32 %v3772_v43, %v9644_v23  ;;  %v3777_v20 = vmul.f32 %v3773_v9, %v9660_v31 }
 0x143   : > { %3759 = vmatpush.bf16.msrb.mxu3 %v9313_v18  ;;  %v9330_v18 = vld [vmem:[%s11476_s1 + $0xa58] sm:$0xff] }
 0x144   : > { %3721 = vmatpush.bf16.msrb.mxu0 %v9288_v29  ;;  %v9338_v29 = vld [vmem:[%s11476_s1 + $0xa98] sm:$0xff] }
 0x145   : > { %3734 = vmatpush.bf16.msrb.mxu1 %v9296_v35  ;;  %v9346_v35 = vld [vmem:[%s11476_s1 + $0xad8] sm:$0xff] }
 0x146   : > { %3747 = vmatpush.bf16.msrb.mxu2 %v9304_v47  ;;  %v3774_v47 = vmul.f32 %v3770_v14, %v9658_v30 }
 0x147   : > { %3760 = vmatpush.bf16.msrb.mxu3 %v9312_v58  ;;  %v3775_v58 = vmul.f32 %v3771_v15, %v9667_v36  ;;  %v9373_v15 = vld [vmem:[%s11476_s1 + $0xbb0] sm:$0xff] }
 0x148   : > { %3722 = vmatpush.bf16.msrb.mxu0 %v9287_v13  ;;  %v2334_v7 = vpop.f32.mrf.mxu0  ;;  %v3780_v13 = vadd.f32 %v3776_v19, %v9656_v28 }
 0x149   : > { %3735 = vmatpush.bf16.msrb.mxu1 %v9295_v17  ;;  %v2347_v8 = vpop.f32.mrf.mxu1  ;;  %v3781_v17 = vadd.f32 %v3777_v20, %v9665_v34  ;;  %v9356_v20 = vld [vmem:[%s11476_s1 + $0xb28] sm:$0xff] }
 0x14a   : > { %3748 = vmatpush.bf16.msrb.mxu2 %v9303_v59  ;;  %v2348_v12 = vadd.f32 %v2347_v8, %v2334_v7  ;;  %v3778_v59 = vadd.f32 %v3774_v47, %v9662_v32  ;;  %v3784_v44 = vmax.f32 %v3780_v13, 0.0  ;;  %v4112_v8 = vld [vmem:[%s9633_s15 + $0x10] sm:$0xee]  ;;  %v9380_v47 = vld [vmem:[%s11476_s1 + $0xbe8] sm:$0xff] }
 0x14b   : > { %3761 = vmatpush.bf16.msrb.mxu3 %v9311_v33  ;;  %3723 = vmatmul.bf16.vlgmr.msrb.gmra.mxu0 %v3497_v26  ;;  %v3779_v33 = vadd.f32 %v3775_v58, %v9670_v39  ;;  %v9319_v26 = vld [vmem:[%s11476_s1 + $0xa00] sm:$0xff]  ;;  %v4115_v19 = vunpack.c.h.bf16 %v4112_v8 }
 0x14c   : > { %4059 = vmatpush.bf16.msra.mxu0 %v9326_v24  ;;  %3736 = vmatmul.bf16.vlgmr.msrb.gmra.mxu1 %v3504_v45  ;;  %v3785_v24 = vmax.f32 %v3781_v17, 0.0  ;;  %v9327_v45 = vld [vmem:[%s11476_s1 + $0xa40] sm:$0xff] }
 0x14d   : > { %4072 = vmatpush.bf16.msra.mxu1 %v9334_v46  ;;  %3749 = vmatmul.bf16.vlgmr.msrb.gmra.mxu2 %v3511_v63  ;;  %v9336_v46 = vld [vmem:[%s11476_s1 + $0xa88] sm:$0xff] }
 0x14e   : > { %4085 = vmatpush.bf16.msra.mxu2 %v9342_v61  ;;  %3762 = vmatmul.bf16.vlgmr.msrb.gmra.mxu3 %v3518_v25  ;;  %v3782_v61 = vmax.f32 %v3778_v59, 0.0 }
 0x14f   : > { %4098 = vmatpush.bf16.msra.mxu3 %v9350_v62  ;;  %v3783_v62 = vmax.f32 %v3779_v33, 0.0 }
 0x150   : > { %4060 = vmatpush.bf16.msra.mxu0 %v9325_v0  ;;  %v2360_v41 = vpop.f32.mrf.mxu2  ;;  %v2336_v52 = vpop.f32.mrf.mxu0  ;;  %v3788_v0 = vpack.c.bf16 %v3784_v44, %v3784_v44 }
 0x151   : > { %4073 = vmatpush.bf16.msra.mxu1 %v9333_v38  ;;  %v2373_v42 = vpop.f32.mrf.mxu3  ;;  %v2361_v48 = vadd.f32 %v2360_v41, %v2348_v12  ;;  %v2349_v55 = vpop.f32.mrf.mxu1  ;;  %v3789_v38 = vpack.c.bf16 %v3785_v24, %v3785_v24 }
 0x152   : > { %4086 = vmatpush.bf16.msra.mxu2 %v9341_v1  ;;  %v9335_v1 = vld [vmem:[%s11476_s1 + $0xa80] sm:$0xff] }
 0x153   : > { %4099 = vmatpush.bf16.msra.mxu3 %v9349_v49  ;;  %v2374_v53 = vadd.f32 %v2373_v42, %v2361_v48  ;;  %v9343_v49 = vld [vmem:[%s11476_s1 + $0xac0] sm:$0xff]  ;;  %v3862_v7 = vrot.slane %v3789_v38, 1  ;;  %v9372_v42 = vld [vmem:[%s11476_s1 + $0xba8] sm:$0xff]  ;;  %v4119_v48 = vmul.f32 %v4115_v19, %v9667_v36  ;;  %v9361_v38 = vld [vmem:[%s11476_s1 + $0xb50] sm:$0xff] }
 0x154   : > { %4061 = vmatpush.bf16.msra.mxu0 %v9324_v2  ;;  %v3786_v2 = vpack.c.bf16 %v3782_v61, %v3782_v61  ;;  %v9371_v55 = vld [vmem:[%s11476_s1 + $0xba0] sm:$0xff] }
 0x155   : > { %4074 = vmatpush.bf16.msra.mxu1 %v9332_v22  ;;  %v10830_v37 = vadd.f32 %v2374_v53, %v10721_v27  ;;  %v9344_v27 = vld [vmem:[%s11476_s1 + $0xac8] sm:$0xff]  ;;  %v3787_v22 = vpack.c.bf16 %v3783_v62, %v3783_v62  ;;  %v9355_v53 = vld [vmem:[%s11476_s1 + $0xb20] sm:$0xff]  ;;  %v4123_v33 = vadd.f32 %v4119_v48, %v9670_v39 }
 0x156   : > { %4087 = vmatpush.bf16.msra.mxu2 %v9340_v40  ;;  %v9358_v40 = vld [vmem:[%s11476_s1 + $0xb38] sm:$0xff]  ;;  %v3859_v43 = vrot.slane %v3786_v2, 1  ;;  %v9375_v48 = vld [vmem:[%s11476_s1 + $0xbc0] sm:$0xff] }
 0x157   : > { %4100 = vmatpush.bf16.msra.mxu3 %v9348_v50  ;;  %v9366_v50 = vld [vmem:[%s11476_s1 + $0xb78] sm:$0xff]  ;;  %v3860_v9 = vrot.slane %v3787_v22, 1 }
 0x158   : > { %4062 = vmatpush.bf16.msra.mxu0 %v9323_v5  ;;  %v2362_v63 = vpop.f32.mrf.mxu2  ;;  %v4113_v5 = vld [vmem:[%s9633_s15 + $0x18] sm:$0xee] }
 0x159   : > { %4075 = vmatpush.bf16.msra.mxu1 %v9331_v6  ;;  %v2375_v25 = vpop.f32.mrf.mxu3  ;;  %v3861_v6 = vrot.slane %v3788_v0, 1  ;;  %v4116_v12 = vunpack.c.l.bf16 %v4113_v5  ;;  %v4117_v14 = vunpack.c.h.bf16 %v4113_v5  ;;  %v9353_v0 = vld [vmem:[%s11476_s1 + $0xb10] sm:$0xff] }
 0x15a   : > { %4088 = vmatpush.bf16.msra.mxu2 %v9339_v10  ;;  %v9357_v10 = vld [vmem:[%s11476_s1 + $0xb30] sm:$0xff]  ;;  %v4127_v25 = vmax.f32 %v4123_v33, 0.0 }
 0x15b   : > { %4101 = vmatpush.bf16.msra.mxu3 %v9347_v11  ;;  %v9365_v11 = vld [vmem:[%s11476_s1 + $0xb70] sm:$0xff]  ;;  %v4121_v41 = vmul.f32 %v4117_v14, %v9660_v31 }
 0x15c   : > { %4063 = vmatpush.bf16.msra.mxu0 %v9322_v16  ;;  %v9381_v16 = vld [vmem:[%s11476_s1 + $0xbf0] sm:$0xff] }
 0x15d   : > { %4076 = vmatpush.bf16.msra.mxu1 %v9330_v18  ;;  %v4114_v18 = vunpack.c.l.bf16 %v4112_v8  ;;  %v4125_v52 = vadd.f32 %v4121_v41, %v9665_v34 }
 0x15e   : > { %4089 = vmatpush.bf16.msra.mxu2 %v9338_v29  ;;  %v9364_v29 = vld [vmem:[%s11476_s1 + $0xb68] sm:$0xff] }
 0x15f   : > { %4102 = vmatpush.bf16.msra.mxu3 %v9346_v35  ;;  %v4120_v35 = vmul.f32 %v4116_v12, %v9644_v23  ;;  %v4118_v58 = vmul.f32 %v4114_v18, %v9658_v30  ;;  %v4129_v24 = vmax.f32 %v4125_v52, 0.0  ;;  %v9398_v52 = vld [vmem:[%s11476_s1 + $0xc78] sm:$0xff] }
 0x160   : > { %4064 = vmatpush.bf16.msra.mxu0 %v9321_v54  ;;  %v9363_v54 = vld [vmem:[%s11476_s1 + $0xb60] sm:$0xff] }
 0x161   : > { %4077 = vmatpush.bf16.msra.mxu1 %v9329_v51  ;;  %v4124_v17 = vadd.f32 %v4120_v35, %v9656_v28  ;;  %v4122_v59 = vadd.f32 %v4118_v58, %v9662_v32  ;;  %v9367_v58 = vld [vmem:[%s11476_s1 + $0xb80] sm:$0xff] }
 0x162   : > { %4090 = vmatpush.bf16.msra.mxu2 %v9337_v56  ;;  %v9379_v56 = vld [vmem:[%s11476_s1 + $0xbe0] sm:$0xff] }
 0x163   : > { %4103 = vmatpush.bf16.msra.mxu3 %v9345_v57  ;;  %v4128_v44 = vmax.f32 %v4124_v17, 0.0  ;;  %v4126_v63 = vmax.f32 %v4122_v59, 0.0  ;;  %v9390_v17 = vld [vmem:[%s11476_s1 + $0xc38] sm:$0xff] }
 0x164   : > { %4065 = vmatpush.bf16.msra.mxu0 %v9320_v60  ;;  %v9354_v60 = vld [vmem:[%s11476_s1 + $0xb18] sm:$0xff] }
 0x165   : > { %4078 = vmatpush.bf16.msra.mxu1 %v9328_v21  ;;  %v9362_v21 = vld [vmem:[%s11476_s1 + $0xb58] sm:$0xff] }
 0x166   : > { %4091 = vmatpush.bf16.msra.mxu2 %v9336_v46  ;;  %v9370_v46 = vld [vmem:[%s11476_s1 + $0xb98] sm:$0xff] }
 0x167   : > { %4104 = vmatpush.bf16.msra.mxu3 %v9344_v27  ;;  %v9378_v27 = vld [vmem:[%s11476_s1 + $0xbd8] sm:$0xff] }
 0x168   : > { %4066 = vmatpush.bf16.msra.mxu0 %v9319_v26  ;;  %v2678_v51 = vpop.f32.mrf.mxu0 }
 0x169   : > { %4079 = vmatpush.bf16.msra.mxu1 %v9327_v45  ;;  %v2691_v13 = vpop.f32.mrf.mxu1 }
 0x16a   : > { %4092 = vmatpush.bf16.msra.mxu2 %v9335_v1  ;;  %v2692_v57 = vadd.f32 %v2691_v13, %v2678_v51  ;;  %v4132_v1 = vpack.c.bf16 %v4128_v44, %v4128_v44  ;;  %v9397_v44 = vld [vmem:[%s11476_s1 + $0xc70] sm:$0xff] }
 0x16b   : > { %4105 = vmatpush.bf16.msra.mxu3 %v9343_v49  ;;  %4067 = vmatmul.bf16.vlgmr.msra.gmra.mxu0 %v3859_v43  ;;  %v4133_v49 = vpack.c.bf16 %v4129_v24, %v4129_v24  ;;  %v9405_v24 = vld [vmem:[%s11476_s1 + $0xcb0] sm:$0xff] }
 0x16c   : > { %4427 = vmatpush.bf16.msrb.mxu0 %v9358_v40  ;;  %4080 = vmatmul.bf16.vlgmr.msra.gmra.mxu1 %v3860_v9  ;;  %v9369_v40 = vld [vmem:[%s11476_s1 + $0xb90] sm:$0xff]  ;;  %v4216_v8 = vshrl.u32 %v4132_v1, 16  ;;  %v4219_v43 = vshll.u32 %v4132_v1, 16 }
 0x16d   : > { %4440 = vmatpush.bf16.msrb.mxu1 %v9366_v50  ;;  %4093 = vmatmul.bf16.vlgmr.msra.gmra.mxu2 %v3861_v6  ;;  %v9377_v50 = vld [vmem:[%s11476_s1 + $0xbd0] sm:$0xff]  ;;  %v9352_v6 = vld [vmem:[%s11476_s1 + $0xb08] sm:$0xff]  ;;  %v4224_v9 = vshrl.u32 %v4133_v49, 16 }
 0x16e   : > { %4453 = vmatpush.bf16.msrb.mxu2 %v9374_v3  ;;  %4106 = vmatmul.bf16.vlgmr.msra.gmra.mxu3 %v3862_v7  ;;  %v4130_v3 = vpack.c.bf16 %v4126_v63, %v4126_v63  ;;  %v9360_v7 = vld [vmem:[%s11476_s1 + $0xb48] sm:$0xff]  ;;  %v4218_v35 = vrot.slane %v4216_v8, 1  ;;  %v4221_v41 = vrot.slane %v4219_v43, 2  ;;  %v9394_v8 = vld [vmem:[%s11476_s1 + $0xc58] sm:$0xff] }
 0x16f   : > { %4466 = vmatpush.bf16.msrb.mxu3 %v9382_v4  ;;  %v4131_v4 = vpack.c.bf16 %v4127_v25, %v4127_v25  ;;  %v9404_v63 = vld [vmem:[%s11476_s1 + $0xca8] sm:$0xff] }
 0x170   : > { %4428 = vmatpush.bf16.msrb.mxu0 %v9357_v10  ;;  %v2704_v61 = vpop.f32.mrf.mxu2  ;;  %v2680_v2 = vpop.f32.mrf.mxu0  ;;  %v4227_v10 = vshll.u32 %v4133_v49, 16  ;;  %v4200_v12 = vshrl.u32 %v4130_v3, 16  ;;  %v4203_v14 = vshll.u32 %v4130_v3, 16  ;;  %v9412_v25 = vld [vmem:[%s11476_s1 + $0xce8] sm:$0xff] }
 0x171   : > { %4441 = vmatpush.bf16.msrb.mxu1 %v9365_v11  ;;  %v2717_v62 = vpop.f32.mrf.mxu3  ;;  %v2705_v26 = vadd.f32 %v2704_v61, %v2692_v57  ;;  %v2693_v22 = vpop.f32.mrf.mxu1  ;;  %v9376_v11 = vld [vmem:[%s11476_s1 + $0xbc8] sm:$0xff]  ;;  %v4222_v57 = vor.u32 %v4221_v41, %v4218_v35 }
 0x172   : > { %4454 = vmatpush.bf16.msrb.mxu2 %v9373_v15  ;;  %v4208_v15 = vshrl.u32 %v4131_v4, 16  ;;  %v9396_v61 = vld [vmem:[%s11476_s1 + $0xc68] sm:$0xff] }
 0x173   : > { %4467 = vmatpush.bf16.msrb.mxu3 %v9381_v16  ;;  %v2718_v45 = vadd.f32 %v2717_v62, %v2705_v26  ;;  %v4211_v16 = vshll.u32 %v4131_v4, 16  ;;  %v4481_v62 = vld [vmem:[%s9633_s15 + $0x18] sm:$0xcc]  ;;  %v4480_v26 = vld [vmem:[%s9633_s15 + $0x10] sm:$0xcc] }
 0x174   : > { %4429 = vmatpush.bf16.msrb.mxu0 %v9356_v20  ;;  %v9351_v20 = vld [vmem:[%s11476_s1 + $0xb00] sm:$0xff]  ;;  %v4210_v51 = vrot.slane %v4208_v15, 1  ;;  %v4485_v2 = vunpack.c.h.bf16 %v4481_v62  ;;  %v4482_v22 = vunpack.c.l.bf16 %v4480_v26  ;;  %v4483_v4 = vunpack.c.h.bf16 %v4480_v26  ;;  %v4825_v26 = vld [vmem:[%s9633_s15 + $0x18] sm:$0xcc] }
 0x175   : > { %4442 = vmatpush.bf16.msrb.mxu1 %v9364_v29  ;;  %v10939_v5 = vadd.f32 %v2718_v45, %v10830_v37  ;;  %v9368_v37 = vld [vmem:[%s11476_s1 + $0xb88] sm:$0xff]  ;;  %v9359_v29 = vld [vmem:[%s11476_s1 + $0xb40] sm:$0xff]  ;;  %v4213_v13 = vrot.slane %v4211_v16, 2  ;;  %v4484_v45 = vunpack.c.l.bf16 %v4481_v62  ;;  %v9430_v62 = vld [vmem:[%s11476_s1 + $0xd78] sm:$0xff] }
 0x176   : > { %4455 = vmatpush.bf16.msrb.mxu2 %v9372_v42  ;;  %v4226_v42 = vrot.slane %v4224_v9, 1  ;;  %v4489_v43 = vmul.f32 %v4485_v2, %v9660_v31  ;;  %v4486_v9 = vmul.f32 %v4482_v22, %v9658_v30 }
 0x177   : > { %4468 = vmatpush.bf16.msrb.mxu3 %v9380_v47  ;;  %v4229_v47 = vrot.slane %v4227_v10, 2  ;;  %v9402_v10 = vld [vmem:[%s11476_s1 + $0xc98] sm:$0xff] }
 0x178   : > { %4430 = vmatpush.bf16.msrb.mxu0 %v9355_v53  ;;  %v2706_v18 = vpop.f32.mrf.mxu2  ;;  %v4202_v53 = vrot.slane %v4200_v12, 1  ;;  %v4490_v35 = vadd.f32 %v4486_v9, %v9662_v32 }
 0x179   : > { %4443 = vmatpush.bf16.msrb.mxu1 %v9363_v54  ;;  %v2719_v19 = vpop.f32.mrf.mxu3  ;;  %v4205_v54 = vrot.slane %v4203_v14, 2  ;;  %v4230_v59 = vor.u32 %v4229_v47, %v4226_v42  ;;  %v4487_v14 = vmul.f32 %v4483_v4, %v9667_v36  ;;  %v9401_v47 = vld [vmem:[%s11476_s1 + $0xc90] sm:$0xff]  ;;  %v4831_v4 = vunpack.c.h.bf16 %v4825_v26 }
 0x17a   : > { %4456 = vmatpush.bf16.msrb.mxu2 %v9371_v55  ;;  %v9406_v55 = vld [vmem:[%s11476_s1 + $0xcb8] sm:$0xff]  ;;  %v9385_v19 = vld [vmem:[%s11476_s1 + $0xc10] sm:$0xff] }
 0x17b   : > { %4469 = vmatpush.bf16.msrb.mxu3 %v9379_v56  ;;  %v9414_v56 = vld [vmem:[%s11476_s1 + $0xcf8] sm:$0xff]  ;;  %v4206_v33 = vor.u32 %v4205_v54, %v4202_v53  ;;  %v9384_v54 = vld [vmem:[%s11476_s1 + $0xc08] sm:$0xff] }
 0x17c   : > { %4431 = vmatpush.bf16.msrb.mxu0 %v9354_v60  ;;  %v4214_v60 = vor.u32 %v4213_v13, %v4210_v51  ;;  %v9392_v51 = vld [vmem:[%s11476_s1 + $0xc48] sm:$0xff] }
 0x17d   : > { %4444 = vmatpush.bf16.msrb.mxu1 %v9362_v21  ;;  %v9389_v21 = vld [vmem:[%s11476_s1 + $0xc30] sm:$0xff] }
 0x17e   : > { %4457 = vmatpush.bf16.msrb.mxu2 %v9370_v46  ;;  %v9413_v46 = vld [vmem:[%s11476_s1 + $0xcf0] sm:$0xff] }
 0x17f   : > { %4470 = vmatpush.bf16.msrb.mxu3 %v9378_v27  ;;  %v9388_v27 = vld [vmem:[%s11476_s1 + $0xc28] sm:$0xff] }
 0x180   : > { %4432 = vmatpush.bf16.msrb.mxu0 %v9353_v0  ;;  %v9387_v0 = vld [vmem:[%s11476_s1 + $0xc20] sm:$0xff] }
 0x181   : > { %4445 = vmatpush.bf16.msrb.mxu1 %v9361_v38  ;;  %v9395_v38 = vld [vmem:[%s11476_s1 + $0xc60] sm:$0xff] }
 0x182   : > { %4458 = vmatpush.bf16.msrb.mxu2 %v9369_v40  ;;  %v9403_v40 = vld [vmem:[%s11476_s1 + $0xca0] sm:$0xff] }
 0x183   : > { %4471 = vmatpush.bf16.msrb.mxu3 %v9377_v50  ;;  %v9411_v50 = vld [vmem:[%s11476_s1 + $0xce0] sm:$0xff] }
 0x184   : > { %4433 = vmatpush.bf16.msrb.mxu0 %v9352_v6  ;;  %v4488_v6 = vmul.f32 %v4484_v45, %v9644_v23  ;;  %v4827_v45 = vld [vmem:[%s9633_s15 + $0x28] sm:$0x11] }
 0x185   : > { %4446 = vmatpush.bf16.msrb.mxu1 %v9360_v7  ;;  %v9386_v7 = vld [vmem:[%s11476_s1 + $0xc18] sm:$0xff] }
 0x186   : > { %4459 = vmatpush.bf16.msrb.mxu2 %v9368_v37  ;;  %v9410_v37 = vld [vmem:[%s11476_s1 + $0xcd8] sm:$0xff]  ;;  %v4492_v16 = vadd.f32 %v4488_v6, %v9656_v28  ;;  %v9421_v6 = vld [vmem:[%s11476_s1 + $0xd30] sm:$0xff] }
 0x187   : > { %4472 = vmatpush.bf16.msrb.mxu3 %v9376_v11 }
 0x188   : > { %4434 = vmatpush.bf16.msrb.mxu0 %v9351_v20  ;;  %v3046_v1 = vpop.f32.mrf.mxu0  ;;  %v9393_v20 = vld [vmem:[%s11476_s1 + $0xc50] sm:$0xff]  ;;  %v4496_v13 = vmax.f32 %v4492_v16, 0.0  ;;  %v4839_v16 = vmul.f32 %v4831_v4, %v9660_v31 }
 0x189   : > { %4447 = vmatpush.bf16.msrb.mxu1 %v9359_v29  ;;  %v3059_v49 = vpop.f32.mrf.mxu1  ;;  %v4493_v29 = vadd.f32 %v4489_v43, %v9665_v34 }
 0x18a   : > { %4460 = vmatpush.bf16.msrb.mxu2 %v9367_v58  ;;  %v3060_v3 = vadd.f32 %v3059_v49, %v3046_v1  ;;  %v9409_v58 = vld [vmem:[%s11476_s1 + $0xcd0] sm:$0xff]  ;;  %v4826_v1 = vld [vmem:[%s9633_s15 + $0x20] sm:$0x11] }
 0x18b   : > { %4473 = vmatpush.bf16.msrb.mxu3 %v9375_v48  ;;  %4435 = vmatmul.bf16.vlgmr.msrb.gmra.mxu0 %v4206_v33  ;;  %v4491_v48 = vadd.f32 %v4487_v14, %v9670_v39  ;;  %v9383_v33 = vld [vmem:[%s11476_s1 + $0xc00] sm:$0xff]  ;;  %v4832_v9 = vunpack.c.l.bf16 %v4826_v1 }
 0x18c   : > { %4771 = vmatpush.bf16.msra.mxu0 %v9390_v17  ;;  %4448 = vmatmul.bf16.vlgmr.msrb.gmra.mxu1 %v4214_v60  ;;  %v4497_v17 = vmax.f32 %v4493_v29, 0.0  ;;  %v9391_v60 = vld [vmem:[%s11476_s1 + $0xc40] sm:$0xff] }
 0x18d   : > { %4784 = vmatpush.bf16.msra.mxu1 %v9398_v52  ;;  %4461 = vmatmul.bf16.vlgmr.msrb.gmra.mxu2 %v4222_v57  ;;  %v4494_v52 = vmax.f32 %v4490_v35, 0.0  ;;  %v4840_v35 = vmul.f32 %v4832_v9, %v9658_v30  ;;  %v9441_v9 = vld [vmem:[%s11476_s1 + $0xdd0] sm:$0xff] }
 0x18e   : > { %4797 = vmatpush.bf16.msra.mxu2 %v9406_v55  ;;  %4474 = vmatmul.bf16.vlgmr.msrb.gmra.mxu3 %v4230_v59  ;;  %v9408_v55 = vld [vmem:[%s11476_s1 + $0xcc8] sm:$0xff] }
 0x18f   : > { %4810 = vmatpush.bf16.msra.mxu3 %v9414_v56  ;;  %v4495_v56 = vmax.f32 %v4491_v48, 0.0 }
 0x190   : > { %4772 = vmatpush.bf16.msra.mxu0 %v9389_v21  ;;  %v3072_v11 = vpop.f32.mrf.mxu2  ;;  %v3048_v41 = vpop.f32.mrf.mxu0  ;;  %v9399_v21 = vld [vmem:[%s11476_s1 + $0xc80] sm:$0xff] }
 0x191   : > { %4785 = vmatpush.bf16.msra.mxu1 %v9397_v44  ;;  %v3085_v12 = vpop.f32.mrf.mxu3  ;;  %v3073_v15 = vadd.f32 %v3072_v11, %v3060_v3  ;;  %v3061_v42 = vpop.f32.mrf.mxu1  ;;  %v4500_v44 = vpack.c.bf16 %v4496_v13, %v4496_v13  ;;  %v4834_v3 = vunpack.c.l.bf16 %v4827_v45  ;;  %v9436_v41 = vld [vmem:[%s11476_s1 + $0xda8] sm:$0xff]  ;;  %v9419_v13 = vld [vmem:[%s11476_s1 + $0xd20] sm:$0xff] }
 0x192   : > { %4798 = vmatpush.bf16.msra.mxu2 %v9405_v24  ;;  %v4501_v24 = vpack.c.bf16 %v4497_v17, %v4497_v17  ;;  %v9444_v42 = vld [vmem:[%s11476_s1 + $0xde8] sm:$0xff]  ;;  %v9427_v17 = vld [vmem:[%s11476_s1 + $0xd60] sm:$0xff] }
 0x193   : > { %4811 = vmatpush.bf16.msra.mxu3 %v9413_v46  ;;  %v3086_v18 = vadd.f32 %v3085_v12, %v3073_v15  ;;  %v4498_v46 = vpack.c.bf16 %v4494_v52, %v4494_v52  ;;  %v4573_v49 = vrot.slane %v4500_v44, 2  ;;  %v4833_v12 = vunpack.c.h.bf16 %v4826_v1 }
 0x194   : > { %4773 = vmatpush.bf16.msra.mxu0 %v9388_v27  ;;  %v9407_v27 = vld [vmem:[%s11476_s1 + $0xcc0] sm:$0xff]  ;;  %v4574_v2 = vrot.slane %v4501_v24, 2  ;;  %v4842_v15 = vmul.f32 %v4834_v3, %v9644_v23  ;;  %v9418_v24 = vld [vmem:[%s11476_s1 + $0xd18] sm:$0xff]  ;;  %v9425_v3 = vld [vmem:[%s11476_s1 + $0xd50] sm:$0xff] }
 0x195   : > { %4786 = vmatpush.bf16.msra.mxu1 %v9396_v61  ;;  %v11048_v53 = vadd.f32 %v3086_v18, %v10939_v5  ;;  %v9400_v5 = vld [vmem:[%s11476_s1 + $0xc88] sm:$0xff]  ;;  %v9422_v61 = vld [vmem:[%s11476_s1 + $0xd38] sm:$0xff]  ;;  %v4571_v22 = vrot.slane %v4498_v46, 2 }
 0x196   : > { %4799 = vmatpush.bf16.msra.mxu2 %v9404_v63  ;;  %v4499_v63 = vpack.c.bf16 %v4495_v56, %v4495_v56  ;;  %v9420_v18 = vld [vmem:[%s11476_s1 + $0xd28] sm:$0xff]  ;;  %v9426_v46 = vld [vmem:[%s11476_s1 + $0xd58] sm:$0xff] }
 0x197   : > { %4812 = vmatpush.bf16.msra.mxu3 %v9412_v25  ;;  %v9438_v25 = vld [vmem:[%s11476_s1 + $0xdb8] sm:$0xff] }
 0x198   : > { %4774 = vmatpush.bf16.msra.mxu0 %v9387_v0  ;;  %v3074_v57 = vpop.f32.mrf.mxu2  ;;  %v9446_v0 = vld [vmem:[%s11476_s1 + $0xdf8] sm:$0xff] }
 0x199   : > { %4787 = vmatpush.bf16.msra.mxu1 %v9395_v38  ;;  %v3087_v59 = vpop.f32.mrf.mxu3  ;;  %v4824_v38 = vld [vmem:[%s9633_s15 + $0x10] sm:$0xcc]  ;;  %v11138_v57 = vadd.f32 %v4840_v35, %v9662_v32 }
 0x19a   : > { %4800 = vmatpush.bf16.msra.mxu2 %v9403_v40  ;;  %v4572_v40 = vrot.slane %v4499_v63, 2  ;;  %v4828_v43 = vunpack.c.l.bf16 %v4824_v38  ;;  %v4829_v11 = vunpack.c.h.bf16 %v4824_v38  ;;  %v9435_v59 = vld [vmem:[%s11476_s1 + $0xda0] sm:$0xff] }
 0x19b   : > { %4813 = vmatpush.bf16.msra.mxu3 %v9411_v50  ;;  %v4830_v50 = vunpack.c.l.bf16 %v4825_v26  ;;  %v9442_v26 = vld [vmem:[%s11476_s1 + $0xdd8] sm:$0xff]  ;;  %v4856_v1 = vmax.f32 %v11138_v57, 0.0 }
 0x19c   : > { %4775 = vmatpush.bf16.msra.mxu0 %v9386_v7  ;;  %v9429_v7 = vld [vmem:[%s11476_s1 + $0xd70] sm:$0xff]  ;;  %v4836_v29 = vmul.f32 %v4828_v43, %v9658_v30  ;;  %v9510_v57 = vld [vmem:[%s11476_s1 + $0xff8] sm:$0xff] }
 0x19d   : > { %4788 = vmatpush.bf16.msra.mxu1 %v9394_v8  ;;  %v4835_v8 = vunpack.c.h.bf16 %v4827_v45  ;;  %v4838_v14 = vmul.f32 %v4830_v50, %v9644_v23  ;;  %v9417_v50 = vld [vmem:[%s11476_s1 + $0xd10] sm:$0xff] }
 0x19e   : > { %4801 = vmatpush.bf16.msra.mxu2 %v9402_v10  ;;  %v9437_v10 = vld [vmem:[%s11476_s1 + $0xdb0] sm:$0xff]  ;;  %v4844_v56 = vadd.f32 %v4836_v29, %v9662_v32 }
 0x19f   : > { %4814 = vmatpush.bf16.msra.mxu3 %v9410_v37  ;;  %v9445_v37 = vld [vmem:[%s11476_s1 + $0xdf0] sm:$0xff]  ;;  %v4846_v48 = vadd.f32 %v4838_v14, %v9656_v28  ;;  %v9424_v14 = vld [vmem:[%s11476_s1 + $0xd48] sm:$0xff] }
 0x1a0   : > { %4776 = vmatpush.bf16.msra.mxu0 %v9385_v19  ;;  %v9428_v19 = vld [vmem:[%s11476_s1 + $0xd68] sm:$0xff]  ;;  %v4852_v38 = vmax.f32 %v4844_v56, 0.0  ;;  %v9433_v43 = vld [vmem:[%s11476_s1 + $0xd90] sm:$0xff]  ;;  %v9431_v56 = vld [vmem:[%s11476_s1 + $0xd80] sm:$0xff] }
 0x1a1   : > { %4789 = vmatpush.bf16.msra.mxu1 %v9393_v20  ;;  %v4843_v20 = vmul.f32 %v4835_v8, %v9660_v31 }
 0x1a2   : > { %4802 = vmatpush.bf16.msra.mxu2 %v9401_v47  ;;  %v4837_v47 = vmul.f32 %v4829_v11, %v9667_v36 }
 0x1a3   : > { %4815 = vmatpush.bf16.msra.mxu3 %v9409_v58  ;;  %v4841_v58 = vmul.f32 %v4833_v12, %v9667_v36  ;;  %v9416_v12 = vld [vmem:[%s11476_s1 + $0xd08] sm:$0xff] }
 0x1a4   : > { %4777 = vmatpush.bf16.msra.mxu0 %v9384_v54  ;;  %v11124_v54 = vadd.f32 %v4842_v15, %v9656_v28 }
 0x1a5   : > { %4790 = vmatpush.bf16.msra.mxu1 %v9392_v51  ;;  %v4847_v51 = vadd.f32 %v4839_v16, %v9665_v34  ;;  %v11148_v44 = vadd.f32 %v4841_v58, %v9670_v39 }
 0x1a6   : > { %4803 = vmatpush.bf16.msra.mxu2 %v9400_v5 }
 0x1a7   : > { %4816 = vmatpush.bf16.msra.mxu3 %v9408_v55  ;;  %v11134_v55 = vadd.f32 %v4843_v20, %v9665_v34  ;;  %v9440_v20 = vld [vmem:[%s11476_s1 + $0xdc8] sm:$0xff] }
 0x1a8   : > { %4778 = vmatpush.bf16.msra.mxu0 %v9383_v33  ;;  %v3360_v52 = vpop.f32.mrf.mxu0  ;;  %v9443_v33 = vld [vmem:[%s11476_s1 + $0xde0] sm:$0xff] }
 0x1a9   : > { %4791 = vmatpush.bf16.msra.mxu1 %v9391_v60  ;;  %v3373_v5 = vpop.f32.mrf.mxu1  ;;  %v4859_v63 = vmax.f32 %v11134_v55, 0.0 }
 0x1aa   : > { %4804 = vmatpush.bf16.msra.mxu2 %v9399_v21  ;;  %v3374_v60 = vadd.f32 %v3373_v5, %v3360_v52  ;;  %v4845_v21 = vadd.f32 %v4837_v47, %v9670_v39 }
 0x1ab   : > { %4817 = vmatpush.bf16.msra.mxu3 %v9407_v27  ;;  %4779 = vmatmul.bf16.vlgmr.msra.gmra.mxu0 %v4571_v22  ;;  %v4854_v27 = vmax.f32 %v4846_v48, 0.0  ;;  %v9415_v48 = vld [vmem:[%s11476_s1 + $0xd00] sm:$0xff] }
 0x1ac   : > { %5157 = vmatpush.bf16.msrb.mxu0 %v9422_v61  ;;  %4792 = vmatmul.bf16.vlgmr.msra.gmra.mxu1 %v4572_v40  ;;  %v4858_v61 = vmax.f32 %v11124_v54, 0.0 }
 0x1ad   : > { %5170 = vmatpush.bf16.msrb.mxu1 %v9430_v62  ;;  %4805 = vmatmul.bf16.vlgmr.msra.gmra.mxu2 %v4573_v49  ;;  %v4855_v62 = vmax.f32 %v4847_v51, 0.0  ;;  %v4853_v49 = vmax.f32 %v4845_v21, 0.0  ;;  %v9423_v51 = vld [vmem:[%s11476_s1 + $0xd40] sm:$0xff] }
 0x1ae   : > { %5183 = vmatpush.bf16.msrb.mxu2 %v9438_v25  ;;  %4818 = vmatmul.bf16.vlgmr.msra.gmra.mxu3 %v4574_v2  ;;  %v9434_v25 = vld [vmem:[%s11476_s1 + $0xd98] sm:$0xff]  ;;  %v4857_v2 = vmax.f32 %v11148_v44, 0.0  ;;  %v4862_v4 = vpack.c.bf16 %v4858_v61, %v4854_v27 }
 0x1af   : > { %5196 = vmatpush.bf16.msrb.mxu3 %v9446_v0  ;;  %v9462_v27 = vld [vmem:[%s11476_s1 + $0xe78] sm:$0xff] }
 0x1b0   : > { %5158 = vmatpush.bf16.msrb.mxu0 %v9421_v6  ;;  %v3386_v45 = vpop.f32.mrf.mxu2  ;;  %v4863_v6 = vpack.c.bf16 %v4859_v63, %v4855_v62  ;;  %v4946_v15 = vshrl.u32 %v4862_v4, 16  ;;  %v4949_v16 = vshll.u32 %v4862_v4, 16  ;;  %v9470_v62 = vld [vmem:[%s11476_s1 + $0xeb8] sm:$0xff]  ;;  %v9460_v4 = vld [vmem:[%s11476_s1 + $0xe68] sm:$0xff] }
 0x1b1   : > { %5171 = vmatpush.bf16.msrb.mxu1 %v9429_v7  ;;  %v3399_v0 = vpop.f32.mrf.mxu3  ;;  %v3387_v22 = vadd.f32 %v3386_v45, %v3374_v60  ;;  %v3362_v7 = vpop.f32.mrf.mxu0 }
 0x1b2   : > { %5184 = vmatpush.bf16.msrb.mxu2 %v9437_v10  ;;  %v3375_v8 = vpop.f32.mrf.mxu1  ;;  %v4860_v10 = vpack.c.bf16 %v4856_v1, %v4852_v38  ;;  %v9476_v7 = vld [vmem:[%s11476_s1 + $0xee8] sm:$0xff] }
 0x1b3   : > { %5197 = vmatpush.bf16.msrb.mxu3 %v9445_v37  ;;  %v3400_v40 = vadd.f32 %v3399_v0, %v3387_v22  ;;  %v4861_v37 = vpack.c.bf16 %v4857_v2, %v4853_v49  ;;  %v9453_v49 = vld [vmem:[%s11476_s1 + $0xe30] sm:$0xff]  ;;  %v5211_v8 = vld [vmem:[%s9633_s15 + $0x18] sm:$0x88] }
 0x1b4   : > { %5159 = vmatpush.bf16.msrb.mxu0 %v9420_v18  ;;  %v4954_v18 = vshrl.u32 %v4863_v6, 16  ;;  %v4930_v29 = vshrl.u32 %v4860_v10, 16  ;;  %v4933_v35 = vshll.u32 %v4860_v10, 16  ;;  %v9461_v22 = vld [vmem:[%s11476_s1 + $0xe70] sm:$0xff]  ;;  %v9459_v10 = vld [vmem:[%s11476_s1 + $0xe60] sm:$0xff] }
 0x1b5   : > { %5172 = vmatpush.bf16.msrb.mxu1 %v9428_v19  ;;  %v11187_v11 = vadd.f32 %v3400_v40, %v11048_v53  ;;  %v4957_v19 = vshll.u32 %v4863_v6, 16  ;;  %v9432_v53 = vld [vmem:[%s11476_s1 + $0xd88] sm:$0xff]  ;;  %v9469_v40 = vld [vmem:[%s11476_s1 + $0xeb0] sm:$0xff] }
 0x1b6   : > { %5185 = vmatpush.bf16.msrb.mxu2 %v9436_v41  ;;  %v4938_v41 = vshrl.u32 %v4861_v37, 16  ;;  %v4956_v52 = vrot.slane %v4954_v18, 2  ;;  %v4935_v60 = vrot.slane %v4933_v35, 3  ;;  %v9468_v6 = vld [vmem:[%s11476_s1 + $0xea8] sm:$0xff]  ;;  %v9475_v18 = vld [vmem:[%s11476_s1 + $0xee0] sm:$0xff]  ;;  %v9458_v35 = vld [vmem:[%s11476_s1 + $0xe58] sm:$0xff] }
 0x1b7   : > { %5198 = vmatpush.bf16.msrb.mxu3 %v9444_v42  ;;  %v4941_v42 = vshll.u32 %v4861_v37, 16  ;;  %v4959_v5 = vrot.slane %v4957_v19, 3 }
 0x1b8   : > { %5160 = vmatpush.bf16.msrb.mxu0 %v9419_v13  ;;  %v3388_v47 = vpop.f32.mrf.mxu2  ;;  %v4948_v13 = vrot.slane %v4946_v15, 2  ;;  %v4940_v21 = vrot.slane %v4938_v41, 2  ;;  %v5215_v15 = vunpack.c.h.bf16 %v5211_v8 }
 0x1b9   : > { %5173 = vmatpush.bf16.msrb.mxu1 %v9427_v17  ;;  %v3401_v58 = vpop.f32.mrf.mxu3  ;;  %v4951_v17 = vrot.slane %v4949_v16, 3  ;;  %v4960_v45 = vor.u32 %v4959_v5, %v4956_v52  ;;  %v9467_v16 = vld [vmem:[%s11476_s1 + $0xea0] sm:$0xff]  ;;  %v9466_v47 = vld [vmem:[%s11476_s1 + $0xe98] sm:$0xff] }
 0x1ba   : > { %5186 = vmatpush.bf16.msrb.mxu2 %v9435_v59  ;;  %v9439_v59 = vld [vmem:[%s11476_s1 + $0xdc0] sm:$0xff]  ;;  %v9474_v58 = vld [vmem:[%s11476_s1 + $0xed8] sm:$0xff] }
 0x1bb   : > { %5199 = vmatpush.bf16.msrb.mxu3 %v9443_v33  ;;  %v4932_v33 = vrot.slane %v4930_v29, 2  ;;  %v9450_v29 = vld [vmem:[%s11476_s1 + $0xe18] sm:$0xff] }
 0x1bc   : > { %5161 = vmatpush.bf16.msrb.mxu0 %v9418_v24  ;;  %v4943_v24 = vrot.slane %v4941_v42, 3  ;;  %v5219_v42 = vmul.f32 %v5215_v15, %v9660_v31 }
 0x1bd   : > { %5174 = vmatpush.bf16.msrb.mxu1 %v9426_v46  ;;  %v9454_v46 = vld [vmem:[%s11476_s1 + $0xe38] sm:$0xff]  ;;  %v4936_v0 = vor.u32 %v4935_v60, %v4932_v33 }
 0x1be   : > { %5187 = vmatpush.bf16.msrb.mxu2 %v9434_v25  ;;  %v9478_v25 = vld [vmem:[%s11476_s1 + $0xef8] sm:$0xff]  ;;  %v4944_v38 = vor.u32 %v4943_v24, %v4940_v21  ;;  %v11289_v60 = vadd.f32 %v5219_v42, %v9665_v34 }
 0x1bf   : > { %5200 = vmatpush.bf16.msrb.mxu3 %v9442_v26  ;;  %v4952_v26 = vor.u32 %v4951_v17, %v4948_v13 }
 0x1c0   : > { %5162 = vmatpush.bf16.msrb.mxu0 %v9417_v50  ;;  %v9477_v50 = vld [vmem:[%s11476_s1 + $0xef0] sm:$0xff] }
 0x1c1   : > { %5175 = vmatpush.bf16.msrb.mxu1 %v9425_v3  ;;  %v9452_v3 = vld [vmem:[%s11476_s1 + $0xe28] sm:$0xff] }
 0x1c2   : > { %5188 = vmatpush.bf16.msrb.mxu2 %v9433_v43  ;;  %v5210_v43 = vld [vmem:[%s9633_s15 + $0x10] sm:$0x88] }
 0x1c3   : > { %5201 = vmatpush.bf16.msrb.mxu3 %v9441_v9  ;;  %v9451_v9 = vld [vmem:[%s11476_s1 + $0xe20] sm:$0xff] }
 0x1c4   : > { %5163 = vmatpush.bf16.msrb.mxu0 %v9416_v12 }
 0x1c5   : > { %5176 = vmatpush.bf16.msrb.mxu1 %v9424_v14  ;;  %v5214_v14 = vunpack.c.l.bf16 %v5211_v8 }
 0x1c6   : > { %5189 = vmatpush.bf16.msrb.mxu2 %v9432_v53  ;;  %v5212_v53 = vunpack.c.l.bf16 %v5210_v43 }
 0x1c7   : > { %5202 = vmatpush.bf16.msrb.mxu3 %v9440_v20  ;;  %v5213_v20 = vunpack.c.h.bf16 %v5210_v43  ;;  %v5218_v41 = vmul.f32 %v5214_v14, %v9644_v23 }
 0x1c8   : > { %5164 = vmatpush.bf16.msrb.mxu0 %v9415_v48  ;;  %v3724_v37 = vpop.f32.mrf.mxu0  ;;  %v5216_v13 = vmul.f32 %v5212_v53, %v9658_v30  ;;  %v9493_v53 = vld [vmem:[%s11476_s1 + $0xf70] sm:$0xff] }
 0x1c9   : > { %5177 = vmatpush.bf16.msrb.mxu1 %v9423_v51  ;;  %v3737_v12 = vpop.f32.mrf.mxu1  ;;  %v5217_v17 = vmul.f32 %v5213_v20, %v9667_v36  ;;  %v11286_v33 = vadd.f32 %v5218_v41, %v9656_v28  ;;  %v9509_v41 = vld [vmem:[%s11476_s1 + $0xff0] sm:$0xff] }
 0x1ca   : > { %5190 = vmatpush.bf16.msrb.mxu2 %v9431_v56  ;;  %v3738_v19 = vadd.f32 %v3737_v12, %v3724_v37  ;;  %v9449_v56 = vld [vmem:[%s11476_s1 + $0xe10] sm:$0xff]  ;;  %v5554_v37 = vld [vmem:[%s9633_s15 + $0x20] sm:$0x33]  ;;  %v9502_v12 = vld [vmem:[%s11476_s1 + $0xfb8] sm:$0xff] }
 0x1cb   : > { %5203 = vmatpush.bf16.msrb.mxu3 %v9439_v59  ;;  %5165 = vmatmul.bf16.vlgmr.msrb.gmra.mxu0 %v4936_v0  ;;  %v9457_v59 = vld [vmem:[%s11476_s1 + $0xe50] sm:$0xff]  ;;  %v9456_v0 = vld [vmem:[%s11476_s1 + $0xe48] sm:$0xff] }
 0x1cc   : > { %5501 = vmatpush.bf16.msra.mxu0 %v9454_v46  ;;  %5178 = vmatmul.bf16.vlgmr.msrb.gmra.mxu1 %v4944_v38  ;;  %v9465_v46 = vld [vmem:[%s11476_s1 + $0xe90] sm:$0xff]  ;;  %v5226_v38 = vmax.f32 %v11286_v33, 0.0 }
 0x1cd   : > { %5514 = vmatpush.bf16.msra.mxu1 %v9462_v27  ;;  %5191 = vmatmul.bf16.vlgmr.msrb.gmra.mxu2 %v4952_v26  ;;  %v9473_v27 = vld [vmem:[%s11476_s1 + $0xed0] sm:$0xff] }
 0x1ce   : > { %5527 = vmatpush.bf16.msra.mxu2 %v9470_v62  ;;  %5204 = vmatmul.bf16.vlgmr.msrb.gmra.mxu3 %v4960_v45  ;;  %v11298_v62 = vadd.f32 %v5216_v13, %v9662_v32  ;;  %v9448_v45 = vld [vmem:[%s11476_s1 + $0xe08] sm:$0xff]  ;;  %v5230_v8 = vpack.c.bf16 %v4858_v61, %v5226_v38  ;;  %v9486_v61 = vld [vmem:[%s11476_s1 + $0xf38] sm:$0xff] }
 0x1cf   : > { %5540 = vmatpush.bf16.msra.mxu3 %v9478_v25  ;;  %v11301_v25 = vadd.f32 %v5217_v17, %v9670_v39 }
 0x1d0   : > { %5502 = vmatpush.bf16.msra.mxu0 %v9453_v49  ;;  %v3750_v48 = vpop.f32.mrf.mxu2  ;;  %v3726_v21 = vpop.f32.mrf.mxu0  ;;  %v5227_v49 = vmax.f32 %v11289_v60, 0.0  ;;  %v5303_v44 = vrot.slane %v5230_v8, 3  ;;  %v9480_v60 = vld [vmem:[%s11476_s1 + $0xf08] sm:$0xff] }
 0x1d1   : > { %5515 = vmatpush.bf16.msra.mxu1 %v9461_v22  ;;  %v3763_v51 = vpop.f32.mrf.mxu3  ;;  %v3751_v52 = vadd.f32 %v3750_v48, %v3738_v19  ;;  %v3739_v24 = vpop.f32.mrf.mxu1  ;;  %v9472_v22 = vld [vmem:[%s11476_s1 + $0xec8] sm:$0xff]  ;;  %v9485_v19 = vld [vmem:[%s11476_s1 + $0xf30] sm:$0xff] }
 0x1d2   : > { %5528 = vmatpush.bf16.msra.mxu2 %v9469_v40  ;;  %v5224_v40 = vmax.f32 %v11298_v62, 0.0  ;;  %v5231_v43 = vpack.c.bf16 %v4859_v63, %v5227_v49  ;;  %v9494_v63 = vld [vmem:[%s11476_s1 + $0xf78] sm:$0xff]  ;;  %v9492_v48 = vld [vmem:[%s11476_s1 + $0xf68] sm:$0xff] }
 0x1d3   : > { %5541 = vmatpush.bf16.msra.mxu3 %v9477_v50  ;;  %v3764_v5 = vadd.f32 %v3763_v51, %v3751_v52  ;;  %v5225_v50 = vmax.f32 %v11301_v25, 0.0 }
 0x1d4   : > { %5503 = vmatpush.bf16.msra.mxu0 %v9452_v3  ;;  %v5228_v54 = vpack.c.bf16 %v4856_v1, %v5224_v40  ;;  %v5555_v1 = vld [vmem:[%s9633_s15 + $0x28] sm:$0x33] }
 0x1d5   : > { %5516 = vmatpush.bf16.msra.mxu1 %v9460_v4  ;;  %v11304_v26 = vadd.f32 %v3764_v5, %v11187_v11  ;;  %v9464_v11 = vld [vmem:[%s11476_s1 + $0xe88] sm:$0xff]  ;;  %v5229_v55 = vpack.c.bf16 %v4857_v2, %v5225_v50  ;;  %v5304_v2 = vrot.slane %v5231_v43, 3  ;;  %v5558_v20 = vunpack.c.l.bf16 %v5555_v1 }
 0x1d6   : > { %5529 = vmatpush.bf16.msra.mxu2 %v9468_v6  ;;  %v9447_v6 = vld [vmem:[%s11476_s1 + $0xe00] sm:$0xff]  ;;  %v5301_v14 = vrot.slane %v5228_v54, 3 }
 0x1d7   : > { %5542 = vmatpush.bf16.msra.mxu3 %v9476_v7  ;;  %v9455_v7 = vld [vmem:[%s11476_s1 + $0xe40] sm:$0xff]  ;;  %v5302_v15 = vrot.slane %v5229_v55, 3  ;;  %v5562_v51 = vmul.f32 %v5558_v20, %v9644_v23  ;;  %v9505_v55 = vld [vmem:[%s11476_s1 + $0xfd0] sm:$0xff] }
 0x1d8   : > { %5504 = vmatpush.bf16.msra.mxu0 %v9451_v9  ;;  %v3752_v3 = vpop.f32.mrf.mxu2  ;;  %v9463_v9 = vld [vmem:[%s11476_s1 + $0xe80] sm:$0xff] }
 0x1d9   : > { %5517 = vmatpush.bf16.msra.mxu1 %v9459_v10  ;;  %v3765_v4 = vpop.f32.mrf.mxu3  ;;  %v9471_v10 = vld [vmem:[%s11476_s1 + $0xec0] sm:$0xff] }
 0x1da   : > { %5530 = vmatpush.bf16.msra.mxu2 %v9467_v16  ;;  %v5556_v16 = vunpack.c.l.bf16 %v5554_v37  ;;  %v9483_v23 = vld [vmem:[%s11476_s1 + $0xf20] sm:$0xff] }
 0x1db   : > { %5543 = vmatpush.bf16.msra.mxu3 %v9475_v18  ;;  %v5557_v18 = vunpack.c.h.bf16 %v5554_v37  ;;  %v9479_v20 = vld [vmem:[%s11476_s1 + $0xf00] sm:$0xff] }
 0x1dc   : > { %5505 = vmatpush.bf16.msra.mxu0 %v9450_v29  ;;  %v5559_v29 = vunpack.c.h.bf16 %v5555_v1  ;;  %v5560_v42 = vmul.f32 %v5556_v16, %v9658_v30  ;;  %v9500_v30 = vld [vmem:[%s11476_s1 + $0xfa8] sm:$0xff] }
 0x1dd   : > { %5518 = vmatpush.bf16.msra.mxu1 %v9458_v35  ;;  %v9501_v35 = vld [vmem:[%s11476_s1 + $0xfb0] sm:$0xff] }
 0x1de   : > { %5531 = vmatpush.bf16.msra.mxu2 %v9466_v47  ;;  %v5561_v47 = vmul.f32 %v5557_v18, %v9667_v36  ;;  %v5563_v13 = vmul.f32 %v5559_v29, %v9660_v31  ;;  %v9508_v36 = vld [vmem:[%s11476_s1 + $0xfe8] sm:$0xff]  ;;  %v5564_v17 = vadd.f32 %v5560_v42, %v9662_v32  ;;  %v9491_v31 = vld [vmem:[%s11476_s1 + $0xf60] sm:$0xff] }
 0x1df   : > { %5544 = vmatpush.bf16.msra.mxu3 %v9474_v58  ;;  %v9484_v58 = vld [vmem:[%s11476_s1 + $0xf28] sm:$0xff]  ;;  %v9499_v32 = vld [vmem:[%s11476_s1 + $0xfa0] sm:$0xff] }
 0x1e0   : > { %5506 = vmatpush.bf16.msra.mxu0 %v9449_v56  ;;  %v5565_v52 = vadd.f32 %v5561_v47, %v9670_v39  ;;  %v5567_v21 = vadd.f32 %v5563_v13, %v9665_v34  ;;  %v9507_v39 = vld [vmem:[%s11476_s1 + $0xfe0] sm:$0xff]  ;;  %v9490_v34 = vld [vmem:[%s11476_s1 + $0xf58] sm:$0xff] }
 0x1e1   : > { %5519 = vmatpush.bf16.msra.mxu1 %v9457_v59  ;;  %v5566_v59 = vadd.f32 %v5562_v51, %v9656_v28  ;;  %v9482_v28 = vld [vmem:[%s11476_s1 + $0xf18] sm:$0xff]  ;;  %v9487_v29 = vld [vmem:[%s11476_s1 + $0xf40] sm:$0xff] }
 0x1e2   : > { %5532 = vmatpush.bf16.msra.mxu2 %v9465_v46  ;;  %v5568_v46 = vmax.f32 %v5564_v17, 0.0 }
 0x1e3   : > { %5545 = vmatpush.bf16.msra.mxu3 %v9473_v27  ;;  %v5569_v27 = vmax.f32 %v5565_v52, 0.0 }
 0x1e4   : > { %5507 = vmatpush.bf16.msra.mxu0 %v9448_v45  ;;  %v5570_v45 = vmax.f32 %v5566_v59, 0.0 }
 0x1e5   : > { %5520 = vmatpush.bf16.msra.mxu1 %v9456_v0  ;;  %v5571_v0 = vmax.f32 %v5567_v21, 0.0  ;;  %v5573_v8 = vpack.c.bf16 %v5569_v27, %v5225_v50  ;;  %v9497_v50 = vld [vmem:[%s11476_s1 + $0xf90] sm:$0xff] }
 0x1e6   : > { %5533 = vmatpush.bf16.msra.mxu2 %v9464_v11  ;;  %v9498_v11 = vld [vmem:[%s11476_s1 + $0xf98] sm:$0xff]  ;;  %v5574_v54 = vpack.c.bf16 %v5570_v45, %v5226_v38 }
 0x1e7   : > { %5546 = vmatpush.bf16.msra.mxu3 %v9472_v22  ;;  %v9506_v22 = vld [vmem:[%s11476_s1 + $0xfd8] sm:$0xff]  ;;  %v5575_v62 = vpack.c.bf16 %v5571_v0, %v5227_v49  ;;  %v5650_v38 = vshrl.u32 %v5573_v8, 16  ;;  %v5653_v37 = vshll.u32 %v5573_v8, 16  ;;  %v9488_v49 = vld [vmem:[%s11476_s1 + $0xf48] sm:$0xff] }
 0x1e8   : > { %5508 = vmatpush.bf16.msra.mxu0 %v9447_v6  ;;  %v4068_v5 = vpop.f32.mrf.mxu0 }
 0x1e9   : > { %5521 = vmatpush.bf16.msra.mxu1 %v9455_v7  ;;  %v4081_v56 = vpop.f32.mrf.mxu1  ;;  %v5572_v7 = vpack.c.bf16 %v5568_v46, %v5224_v40  ;;  %v5666_v1 = vshrl.u32 %v5575_v62, 16 }
 0x1ea   : > { %5534 = vmatpush.bf16.msra.mxu2 %v9463_v9  ;;  %v4082_v24 = vadd.f32 %v4081_v56, %v4068_v5  ;;  %v9481_v9 = vld [vmem:[%s11476_s1 + $0xf10] sm:$0xff] }
 0x1eb   : > { %5547 = vmatpush.bf16.msra.mxu3 %v9471_v10  ;;  %5509 = vmatmul.bf16.vlgmr.msra.gmra.mxu0 %v5301_v14  ;;  %v9489_v10 = vld [vmem:[%s11476_s1 + $0xf50] sm:$0xff]  ;;  %v5645_v33 = vshll.u32 %v5572_v7, 16  ;;  %v5668_v42 = vrot.slane %v5666_v1, 3 }
 0x1ec   : > { %5869 = vmatpush.bf16.msrb.mxu0 %v9486_v61  ;;  %5522 = vmatmul.bf16.vlgmr.msra.gmra.mxu1 %v5302_v15 }
 0x1ed   : > { %5882 = vmatpush.bf16.msrb.mxu1 %v9494_v63  ;;  %5535 = vmatmul.bf16.vlgmr.msra.gmra.mxu2 %v5303_v44  ;;  %v5642_v63 = vshrl.u32 %v5572_v7, 16  ;;  %v5669_v44 = vshll.u32 %v5575_v62, 16  ;;  %v5647_v18 = vrot.slane %v5645_v33, 4 }
 0x1ee   : > { %5895 = vmatpush.bf16.msrb.mxu2 %v9502_v12  ;;  %5548 = vmatmul.bf16.vlgmr.msra.gmra.mxu3 %v5304_v2  ;;  %v5658_v12 = vshrl.u32 %v5574_v54, 16  ;;  %v9504_v2 = vld [vmem:[%s11476_s1 + $0xfc8] sm:$0xff] }
 0x1ef   : > { %5908 = vmatpush.bf16.msrb.mxu3 %v9510_v57  ;;  %v5661_v57 = vshll.u32 %v5574_v54, 16  ;;  %v5644_v16 = vrot.slane %v5642_v63, 3  ;;  %v5671_v47 = vrot.slane %v5669_v44, 4 }
 0x1f0   : > { %5870 = vmatpush.bf16.msrb.mxu0 %v9485_v19  ;;  %v4094_v3 = vpop.f32.mrf.mxu2  ;;  %v4070_v40 = vpop.f32.mrf.mxu0  ;;  %v5652_v19 = vrot.slane %v5650_v38, 3 }
 0x1f1   : > { %5883 = vmatpush.bf16.msrb.mxu1 %v9493_v53  ;;  %v4107_v4 = vpop.f32.mrf.mxu3  ;;  %v4095_v6 = vadd.f32 %v4094_v3, %v4082_v24  ;;  %v4083_v25 = vpop.f32.mrf.mxu1  ;;  %v5655_v53 = vrot.slane %v5653_v37, 4  ;;  %v5648_v51 = vor.u32 %v5647_v18, %v5644_v16 }
 0x1f2   : > { %5896 = vmatpush.bf16.msrb.mxu2 %v9501_v35  ;;  %v5660_v35 = vrot.slane %v5658_v12, 3 }
 0x1f3   : > { %5909 = vmatpush.bf16.msrb.mxu3 %v9509_v41  ;;  %v4108_v43 = vadd.f32 %v4107_v4, %v4095_v6  ;;  %v5663_v41 = vrot.slane %v5661_v57, 4  ;;  %v5656_v13 = vor.u32 %v5655_v53, %v5652_v19 }
 0x1f4   : > { %5871 = vmatpush.bf16.msrb.mxu0 %v9484_v58  ;;  %v9495_v58 = vld [vmem:[%s11476_s1 + $0xf80] sm:$0xff] }
 0x1f5   : > { %5884 = vmatpush.bf16.msrb.mxu1 %v9492_v48  ;;  %v4111_v61 = vadd.f32 %v4108_v43, %v11304_v26  ;;  %v9496_v26 = vld [vmem:[%s11476_s1 + $0xf88] sm:$0xff]  ;;  %v9503_v48 = vld [vmem:[%s11476_s1 + $0xfc0] sm:$0xff] }
 0x1f6   : > { %5897 = vmatpush.bf16.msrb.mxu2 %v9500_v30  ;;  %v5664_v30 = vor.u32 %v5663_v41, %v5660_v35 }
 0x1f7   : > { %5910 = vmatpush.bf16.msrb.mxu3 %v9508_v36  ;;  %v5672_v36 = vor.u32 %v5671_v47, %v5668_v42  ;;  %v9520_v47 = vld [vmem:[%s11479_s4] ss:$0 sm:$0xff] }
 0x1f8   : > { %5872 = vmatpush.bf16.msrb.mxu0 %v9483_v23  ;;  %v4096_v14 = vpop.f32.mrf.mxu2 }
 0x1f9   : > { %5885 = vmatpush.bf16.msrb.mxu1 %v9491_v31  ;;  %v4109_v15 = vpop.f32.mrf.mxu3 }
 0x1fa   : > { %5898 = vmatpush.bf16.msrb.mxu2 %v9499_v32 }
 0x1fb   : > { %5911 = vmatpush.bf16.msrb.mxu3 %v9507_v39 }
 0x1fc   : > { %5873 = vmatpush.bf16.msrb.mxu0 %v9482_v28 }
 0x1fd   : > { %5886 = vmatpush.bf16.msrb.mxu1 %v9490_v34 }
 0x1fe   : > { %5899 = vmatpush.bf16.msrb.mxu2 %v9498_v11 }
 0x1ff   : > { %5912 = vmatpush.bf16.msrb.mxu3 %v9506_v22 }
 0x200   : > { %5874 = vmatpush.bf16.msrb.mxu0 %v9481_v9 }
 0x201   : > { %5887 = vmatpush.bf16.msrb.mxu1 %v9489_v10 }
 0x202   : > { %5900 = vmatpush.bf16.msrb.mxu2 %v9497_v50 }
 0x203   : > { %5913 = vmatpush.bf16.msrb.mxu3 %v9505_v55 }
 0x204   : > { %5875 = vmatpush.bf16.msrb.mxu0 %v9480_v60 }
 0x205   : > { %5888 = vmatpush.bf16.msrb.mxu1 %v9488_v49 }
 0x206   : > { %5901 = vmatpush.bf16.msrb.mxu2 %v9496_v26 }
 0x207   : > { %5914 = vmatpush.bf16.msrb.mxu3 %v9504_v2 }
 0x208   : > { %5876 = vmatpush.bf16.msrb.mxu0 %v9479_v20  ;;  %v4436_v17 = vpop.f32.mrf.mxu0 }
 0x209   : > { %5889 = vmatpush.bf16.msrb.mxu1 %v9487_v29  ;;  %v4449_v52 = vpop.f32.mrf.mxu1 }
 0x20a   : > { %5902 = vmatpush.bf16.msrb.mxu2 %v9495_v58  ;;  %v4450_v23 = vadd.f32 %v4449_v52, %v4436_v17 }
 0x20b   : > { %5915 = vmatpush.bf16.msrb.mxu3 %v9503_v48  ;;  %5877 = vmatmul.bf16.vlgmr.msrb.gmra.mxu0 %v5648_v51 }
 0x20c   : > { %5890 = vmatmul.bf16.vlgmr.msrb.gmra.mxu1 %v5656_v13 }
 0x20d   : > { %5903 = vmatmul.bf16.vlgmr.msrb.gmra.mxu2 %v5664_v30 }
 0x20e   : > { %5916 = vmatmul.bf16.vlgmr.msrb.gmra.mxu3 %v5672_v36 }
 0x210   : > { %v4462_v31 = vpop.f32.mrf.mxu2  ;;  %v4438_v21 = vpop.f32.mrf.mxu0 }
 0x211   : > { %v4475_v5 = vpop.f32.mrf.mxu3  ;;  %v4463_v56 = vadd.f32 %v4462_v31, %v4450_v23  ;;  %v4451_v32 = vpop.f32.mrf.mxu1 }
 0x213   : > { %v4476_v59 = vadd.f32 %v4475_v5, %v4463_v56 }
 0x215   : > { %v4479_v39 = vadd.f32 %v4476_v59, %v4111_v61 }
 0x218   : > { %v4464_v24 = vpop.f32.mrf.mxu2 }
 0x219   : > { %v4477_v46 = vpop.f32.mrf.mxu3 }
 0x228   : > { %v4780_v27 = vpop.f32.mrf.mxu0 }
 0x229   : > { %v4793_v28 = vpop.f32.mrf.mxu1 }
 0x22a   : > { %v4794_v34 = vadd.f32 %v4793_v28, %v4780_v27 }
 0x230   : > { %v4806_v45 = vpop.f32.mrf.mxu2  ;;  %v4782_v3 = vpop.f32.mrf.mxu0 }
 0x231   : > { %v4819_v0 = vpop.f32.mrf.mxu3  ;;  %v4807_v11 = vadd.f32 %v4806_v45, %v4794_v34  ;;  %v4795_v4 = vpop.f32.mrf.mxu1 }
 0x233   : > { %v4820_v22 = vadd.f32 %v4819_v0, %v4807_v11 }
 0x235   : > { %v4823_v6 = vadd.f32 %v4820_v22, %v4479_v39 }
 0x238   : > { %v4808_v7 = vpop.f32.mrf.mxu2 }
 0x239   : > { %v4821_v8 = vpop.f32.mrf.mxu3 }
 0x248   : > { %v5166_v43 = vpop.f32.mrf.mxu0 }
 0x249   : > { %v5179_v9 = vpop.f32.mrf.mxu1 }
 0x24a   : > { %v5180_v12 = vadd.f32 %v5179_v9, %v5166_v43 }
 0x250   : > { %v5192_v10 = vpop.f32.mrf.mxu2  ;;  %v5168_v62 = vpop.f32.mrf.mxu0 }
 0x251   : > { %v5205_v54 = vpop.f32.mrf.mxu3  ;;  %v5181_v40 = vpop.f32.mrf.mxu1  ;;  %v5193_v1 = vadd.f32 %v5192_v10, %v5180_v12 }
 0x253   : > { %v5206_v14 = vadd.f32 %v5205_v54, %v5193_v1 }
 0x255   : > { %v5209_v53 = vadd.f32 %v5206_v14, %v4823_v6 }
 0x258   : > { %v5194_v25 = vpop.f32.mrf.mxu2 }
 0x259   : > { %v5207_v50 = vpop.f32.mrf.mxu3 }
 0x268   : > { %v5510_v55 = vpop.f32.mrf.mxu0 }
 0x269   : > { %v5523_v61 = vpop.f32.mrf.mxu1 }
 0x26a   : > { %v5524_v57 = vadd.f32 %v5523_v61, %v5510_v55 }
 0x270   : > { %v5536_v63 = vpop.f32.mrf.mxu2  ;;  %v5512_v38 = vpop.f32.mrf.mxu0 }
 0x271   : > { %v5549_v33 = vpop.f32.mrf.mxu3  ;;  %v5525_v37 = vpop.f32.mrf.mxu1  ;;  %v5537_v2 = vadd.f32 %v5536_v63, %v5524_v57 }
 0x273   : > { %v5550_v16 = vadd.f32 %v5549_v33, %v5537_v2 }
 0x275   : > { %v5553_v41 = vadd.f32 %v5550_v16, %v5209_v53 }
 0x278   : > { %v5538_v60 = vpop.f32.mrf.mxu2 }
 0x279   : > { %v5551_v49 = vpop.f32.mrf.mxu3 }
 0x288   : > { %v5878_v44 = vpop.f32.mrf.mxu0 }
 0x289   : > { %v5891_v26 = vpop.f32.mrf.mxu1 }
 0x28a   : > { %v5892_v15 = vadd.f32 %v5891_v26, %v5878_v44 }
 0x290   : > { %v5904_v18 = vpop.f32.mrf.mxu2  ;;  %v5880_v29 = vpop.f32.mrf.mxu0 }
 0x291   : > { %v5917_v19 = vpop.f32.mrf.mxu3  ;;  %v5905_v20 = vadd.f32 %v5904_v18, %v5892_v15  ;;  %v5893_v35 = vpop.f32.mrf.mxu1 }
 0x293   : > { %v5918_v42 = vadd.f32 %v5917_v19, %v5905_v20 }
 0x295   : > { %v5921_v58 = vadd.f32 %v5918_v42, %v5553_v41 }
 0x297   : > { %v5926_v48 = vadd.f32 %v9520_v47, %v5921_v58 }
 0x298   : > { %v5906_v51 = vpop.f32.mrf.mxu2 }
 0x299   : > { %v5919_v13 = vpop.f32.mrf.mxu3  ;;  %v5927_v30 = vpack.c.bf16 %v5926_v48, %v5926_v48 }
 0x29b   : > { %5928 = vst [vmem:[%s222_s16] sm:$0x3] %v5927_v30 }
 0x29c PF: > { %s15_s18 = sadd.s32 1, %s9527_s18  }
 0x29d   : > { %p12_p4 = scmp.ge.s32.totalorder %s15_s18, 4  }
 0x29f   :  { %14 = sbr.rel (!%p12_p4) target bundleno = 1 (0x1), region = 85 }

</bundles_post_ra>
